<compile_context>
chip_gen: v7x
topology: tpu7x:2x2x1
jax: 0.10.0
libtpu: 0.0.40
codegen_flags: <defaults>
</compile_context>

<pallas_src>
import math
from functools import partial

import jax
import jax.numpy as jnp
from jax import lax
from jax.experimental import pallas as pl
from jax.experimental.pallas import tpu as pltpu


# ----------------------------------------------------------------------------
# Small (synthetic) SEANetEncoder / RVQ configuration
# ----------------------------------------------------------------------------
CHANNELS = 1
DIMENSION = 16
N_FILTERS = 4
RATIOS = [4, 2]            # SEANetEncoder uses list(reversed(ratios)) -> [2, 4]
N_RES = 1
KERNEL_SIZE = 7
LAST_KERNEL_SIZE = 7
RES_KERNEL = 3
DILATION_BASE = 2
LSTM_LAYERS = 2
N_Q = 4
CODEBOOK_SIZE = 16

BATCH = 2
SEQ = 64

CP = 128          # lane-padded channel width of the conv trunk (real channels live in [:dim])
GP = 128          # lane group width per LSTM gate (4 gates -> 4*GP weight columns)
KPAD = 128        # RVQ codebook rows padded to a full lane group (real rows [:CODEBOOK_SIZE])
CODE_LANES = 128  # codes written lane-dense; real codes live in lanes [:N_Q]


# ----------------------------------------------------------------------------
# In-kernel helpers (operate on values; weights come in as VMEM refs)
# ----------------------------------------------------------------------------
def _elu(x):
    # ELU(alpha=1); exp argument clamped so the unselected branch never produces inf.
    return jnp.where(x > 0.0, x, jnp.exp(jnp.minimum(x, 0.0)) - 1.0)


def _reflect_pad_rows(x, pad_l, pad_r):
    """Reflect-pad a (L, C) value along rows (time). pad amounts are small & static."""
    L = x.shape[0]
    pieces = [x[i:i + 1, :] for i in range(pad_l, 0, -1)]
    pieces.append(x)
    pieces += [x[L - 1 - i:L - i, :] for i in range(1, pad_r + 1)]
    if len(pieces) == 1:
        return x
    return jnp.concatenate(pieces, axis=0)


def _conv_taps(xp, w_ref, l_out, taps, dil):
    """Stride-1 Conv1d core: `taps` shifted matmuls (bf16 in, f32 acc), no bias."""
    c_out = w_ref.shape[2]
    acc = jnp.zeros((l_out, c_out), jnp.float32)
    for j in range(taps):                                    # static python loop (taps <= 8)
        xj = xp[j * dil: j * dil + l_out, :].astype(jnp.bfloat16)
        acc = acc + jnp.dot(xj, w_ref[j], preferred_element_type=jnp.float32)
    return acc


def _conv(x, w_ref, b_ref, *, k, dil, pad_l, pad_r, elu_in):
    if elu_in:
        x = _elu(x)                                          # ELU hoisted out of the tap loop
    xp = _reflect_pad_rows(x, pad_l, pad_r)
    l_out = xp.shape[0] - (k - 1) * dil
    return _conv_taps(xp, w_ref, l_out, k, dil) + b_ref[...]


def _down(x, w_ref, b_ref, *, k, stride, pad_l, pad_r):
    """ELU -> strided SConv1d, as stride-1 conv + exact 0/1 row-selection matmul."""
    xe = _elu(x)                                             # hoisted ELU
    xp = _reflect_pad_rows(xe, pad_l, pad_r)
    lp = xp.shape[0]
    l_full = lp - k + 1
    y = _conv_taps(xp, w_ref, l_full, k, 1)                  # (l_full, Cout) f32
    l_out = (lp - k) // stride + 1
    rows = lax.broadcasted_iota(jnp.int32, (l_out, l_full), 0)
    cols = lax.broadcasted_iota(jnp.int32, (l_out, l_full), 1)
    sel = (cols == rows * stride).astype(jnp.float32)        # exact 0/1 selection
    return jnp.dot(sel, y, preferred_element_type=jnp.float32) + b_ref[...]


def _res(x, w1_ref, b1_ref, w2_ref, b2_ref, ws_ref, bs_ref, *, k, dil, pad_l, pad_r):
    """Fused SEANetResnetBlock: shortcut_1x1(x) + conv1x1(elu(conv_k(elu(x))))."""
    L = x.shape[0]
    xe = _elu(x)                                             # hoisted ELU (block input)
    xp = _reflect_pad_rows(xe, pad_l, pad_r)
    t1 = _elu(_conv_taps(xp, w1_ref, L, k, dil) + b1_ref[...])
    t2 = jnp.dot(t1.astype(jnp.bfloat16), w2_ref[0],
                 preferred_element_type=jnp.float32) + b2_ref[...]
    sc = jnp.dot(x.astype(jnp.bfloat16), ws_ref[0],
                 preferred_element_type=jnp.float32) + bs_ref[...]
    return sc + t2


def _lstm(x, wih_ref, whh_ref, lb_ref, *, n_layers, hdim):
    """SLSTM (n_layers, skip=True) on a (T, CP) activation whose real width is hdim.

    Input projection for all T is one matmul; h/c are register-carried; the recurrence is a
    static unroll (tiny T here).
    TODO(synk): for production-length T use lax.fori_loop with a modest unroll factor.
    """
    T = x.shape[0]
    x_in = x[:, :hdim]                                       # (T, H) real lanes
    seq = x_in
    for layer in range(n_layers):                            # static python loop
        wih = wih_ref[layer]                                 # (H, 4*GP) bf16
        whh = whh_ref[layer]                                 # (H, 4*GP) bf16
        bias = lb_ref[layer]                                 # (1, 4*GP) f32
        gx = jnp.dot(seq.astype(jnp.bfloat16), wih,
                     preferred_element_type=jnp.float32) + bias   # (T, 4*GP)
        h = jnp.zeros((1, hdim), jnp.float32)
        c = jnp.zeros((1, hdim), jnp.float32)
        outs = []
        for t in range(T):                                   # static unroll (T is small)
            gates = gx[t:t + 1, :] + jnp.dot(h.astype(jnp.bfloat16), whh,
                                             preferred_element_type=jnp.float32)
            i = jax.nn.sigmoid(gates[:, 0 * GP:0 * GP + hdim])
            f = jax.nn.sigmoid(gates[:, 1 * GP:1 * GP + hdim])
            g = jnp.tanh(gates[:, 2 * GP:2 * GP + hdim])
            o = jax.nn.sigmoid(gates[:, 3 * GP:3 * GP + hdim])
            c = f * c + i * g
            h = o * jnp.tanh(c)
            outs.append(h)
        seq = jnp.concatenate(outs, axis=0)                  # (T, H)
    return x_in + seq                                        # skip=True


def _rvq(emb, cb_ref, cbt_ref, cbsq_ref, *, n_q, kpad):
    """Residual VQ encode over all codebooks; codes packed lane-dense into (T, CODE_LANES)."""
    T = emb.shape[0]
    r = emb                                                  # (T, DIM) f32
    lane = lax.broadcasted_iota(jnp.int32, (T, CODE_LANES), 1)
    codes = jnp.zeros((T, CODE_LANES), jnp.int32)
    for q in range(n_q):                                     # static python loop
        dots = jnp.dot(r, cbt_ref[q], preferred_element_type=jnp.float32)    # (T, kpad)
        dist = cbsq_ref[q] - 2.0 * dots      # ||r||^2 omitted (constant per row);
        #                                      pad rows carry a huge sentinel ||c||^2
        min_d = jnp.min(dist, axis=1, keepdims=True)
        iota = lax.broadcasted_iota(jnp.int32, (T, kpad), 1)
        idx = jnp.min(jnp.where(dist <= min_d, iota, kpad), axis=1, keepdims=True)  # first argmin
        codes = codes + jnp.where(lane == q, idx, 0)
        if q + 1 < n_q:
            onehot = (iota == idx).astype(jnp.float32)
            r = r - jnp.dot(onehot, cb_ref[q], preferred_element_type=jnp.float32)
    return codes


# ----------------------------------------------------------------------------
# The single fused kernel
# ----------------------------------------------------------------------------
def _fused_kernel(*refs, plan):
    x_ref = refs[0]
    codes_ref = refs[-1]
    it = iter(refs[1:-1])
    x = x_ref[0]                                             # (L0, CP) f32 for this batch elem
    for layer in plan:
        kind = layer['kind']
        if kind == 'conv':
            w, b = next(it), next(it)
            x = _conv(x, w, b, k=layer['k'], dil=layer['dil'],
                      pad_l=layer['pad_l'], pad_r=layer['pad_r'], elu_in=layer['elu_in'])
        elif kind == 'down':
            w, b = next(it), next(it)
            x = _down(x, w, b, k=layer['k'], stride=layer['stride'],
                      pad_l=layer['pad_l'], pad_r=layer['pad_r'])
        elif kind == 'res':
            w1, b1, w2, b2, ws, bs = [next(it) for _ in range(6)]
            x = _res(x, w1, b1, w2, b2, ws, bs, k=layer['k'], dil=layer['dil'],
                     pad_l=layer['pad_l'], pad_r=layer['pad_r'])
        elif kind == 'lstm':
            wih, whh, lb = next(it), next(it), next(it)
            x = _lstm(x, wih, whh, lb, n_layers=layer['n_layers'], hdim=layer['hdim'])
        elif kind == 'rvq':
            cb, cbt, cbsq = next(it), next(it), next(it)
            codes_ref[0] = _rvq(x, cb, cbt, cbsq, n_q=layer['n_q'], kpad=layer['kpad'])


# ----------------------------------------------------------------------------
# Static geometry (matches SConv1d's non-causal reflect padding)
# ----------------------------------------------------------------------------
def conv_geom(L, k, stride, dilation):
    eff_k = (k - 1) * dilation + 1
    padding_total = eff_k - stride
    n_frames = (L - eff_k + padding_total) / stride + 1
    ideal = (math.ceil(n_frames) - 1) * stride + (eff_k - padding_total)
    extra = ideal - L
    pad_right = padding_total // 2
    pad_left = padding_total - pad_right
    lp = L + pad_left + pad_right + extra
    l_out = (lp - eff_k) // stride + 1
    return pad_left, pad_right + extra, l_out


# ----------------------------------------------------------------------------
# Deterministic synthetic parameters packed into kernel-ready layouts + static plan
# ----------------------------------------------------------------------------
def build_encoder(key):
    keys = iter(jax.random.split(key, 64))
    plan, flat = [], []
    L = SEQ

    def conv_raw(c_out, c_in, k):
        k1, k2 = jax.random.split(next(keys))
        bound = 1.0 / math.sqrt(c_in * k)
        w = jax.random.uniform(k1, (c_out, c_in, k), jnp.float32, -bound, bound)
        b = jax.random.uniform(k2, (c_out,), jnp.float32, -bound, bound)
        return w, b

    def pack_w(w, cin_p, cout_p):
        c_out, c_in, k = w.shape
        wp = jnp.zeros((k, cin_p, cout_p), jnp.float32)
        wp = wp.at[:, :c_in, :c_out].set(jnp.transpose(w, (2, 1, 0)))
        return wp.astype(jnp.bfloat16)

    def pack_b(b, cout_p):
        return jnp.zeros((1, cout_p), jnp.float32).at[0, :b.shape[0]].set(b)

    def add_conv(c_in, c_out, k, stride=1, dil=1, elu_in=False, cin_p=CP, cout_p=CP):
        nonlocal L
        w, b = conv_raw(c_out, c_in, k)
        pad_l, pad_r, l_out = conv_geom(L, k, stride, dil)
        # TODO(synk): pad1d's zero-extension path (L <= max pad) is not implemented in-kernel.
        assert max(pad_l, pad_r) < L
        flat.extend([pack_w(w, cin_p, cout_p), pack_b(b, cout_p)])
        if stride == 1:
            plan.append(dict(kind='conv', k=k, dil=dil, pad_l=pad_l, pad_r=pad_r, elu_in=elu_in))
        else:
            plan.append(dict(kind='down', k=k, stride=stride, pad_l=pad_l, pad_r=pad_r))
        L = l_out

    mult = 1
    add_conv(CHANNELS, mult * N_FILTERS, KERNEL_SIZE)
    for ratio in reversed(RATIOS):
        dim = mult * N_FILTERS
        hidden = dim // 2                                    # compress=2
        for j in range(N_RES):
            d = DILATION_BASE ** j
            w1, b1 = conv_raw(hidden, dim, RES_KERNEL)
            w2, b2 = conv_raw(dim, hidden, 1)
            ws, bs = conv_raw(dim, dim, 1)                   # true_skip=False -> 1x1 shortcut
            pad_l, pad_r, l_out = conv_geom(L, RES_KERNEL, 1, d)
            assert l_out == L and max(pad_l, pad_r) < L
            flat.extend([pack_w(w1, CP, CP), pack_b(b1, CP),
                         pack_w(w2, CP, CP), pack_b(b2, CP),
                         pack_w(ws, CP, CP), pack_b(bs, CP)])
            plan.append(dict(kind='res', k=RES_KERNEL, dil=d, pad_l=pad_l, pad_r=pad_r))
        add_conv(dim, dim * 2, ratio * 2, stride=ratio, elu_in=True)
        mult *= 2

    H = mult * N_FILTERS
    assert 4 * H <= 4 * GP and H <= GP
    wih = jnp.zeros((LSTM_LAYERS, H, 4 * GP), jnp.float32)
    whh = jnp.zeros((LSTM_LAYERS, H, 4 * GP), jnp.float32)
    lb = jnp.zeros((LSTM_LAYERS, 1, 4 * GP), jnp.float32)
    bound = 1.0 / math.sqrt(H)
    for layer in range(LSTM_LAYERS):
        k1, k2, k3, k4 = jax.random.split(next(keys), 4)
        w_ih = jax.random.uniform(k1, (4 * H, H), jnp.float32, -bound, bound)
        w_hh = jax.random.uniform(k2, (4 * H, H), jnp.float32, -bound, bound)
        b_ih = jax.random.uniform(k3, (4 * H,), jnp.float32, -bound, bound)
        b_hh = jax.random.uniform(k4, (4 * H,), jnp.float32, -bound, bound)
        for g in range(4):                                   # PyTorch gate order: i, f, g, o
            wih = wih.at[layer, :, g * GP:g * GP + H].set(w_ih[g * H:(g + 1) * H, :].T)
            whh = whh.at[layer, :, g * GP:g * GP + H].set(w_hh[g * H:(g + 1) * H, :].T)
            lb = lb.at[layer, 0, g * GP:g * GP + H].set(
                b_ih[g * H:(g + 1) * H] + b_hh[g * H:(g + 1) * H])
    flat.extend([wih.astype(jnp.bfloat16), whh.astype(jnp.bfloat16), lb])
    plan.append(dict(kind='lstm', n_layers=LSTM_LAYERS, hdim=H))

    # Final conv (ELU fused): stays at real widths (H -> DIMENSION), no 128-lane padding needed.
    wl, bl = conv_raw(DIMENSION, H, LAST_KERNEL_SIZE)
    pad_l, pad_r, l_out = conv_geom(L, LAST_KERNEL_SIZE, 1, 1)
    assert max(pad_l, pad_r) < L
    flat.extend([pack_w(wl, H, DIMENSION), pack_b(bl, DIMENSION)])
    plan.append(dict(kind='conv', k=LAST_KERNEL_SIZE, dil=1, pad_l=pad_l, pad_r=pad_r,
                     elu_in=True))
    L = l_out

    # RVQ codebooks, padded lane-dense to KPAD rows (sentinel distance on pad rows).
    cb = jax.random.normal(next(keys), (N_Q, CODEBOOK_SIZE, DIMENSION), jnp.float32)
    cb_pad = jnp.zeros((N_Q, KPAD, DIMENSION), jnp.float32).at[:, :CODEBOOK_SIZE, :].set(cb)
    cbt = jnp.transpose(cb_pad, (0, 2, 1))
    cbsq = jnp.full((N_Q, 1, KPAD), 1e30, jnp.float32)
    cbsq = cbsq.at[:, 0, :CODEBOOK_SIZE].set(jnp.sum(cb * cb, axis=2))
    flat.extend([cb_pad, cbt, cbsq])
    plan.append(dict(kind='rvq', n_q=N_Q, kpad=KPAD))

    return plan, flat, L                                     # L == T_enc


# ----------------------------------------------------------------------------
# Encoder.forward (encode): one fused pallas_call, grid over batch
# ----------------------------------------------------------------------------
def _zero_map(nd):
    return lambda b: (0,) * nd


def encode(waveform, plan, flat_params, t_enc, n_q=None):
    B, channels, L = waveform.shape
    assert channels > 0 and channels <= 2
    x = jnp.transpose(waveform, (0, 2, 1)).astype(jnp.float32)   # one NCL->NLC transpose
    x = jnp.pad(x, ((0, 0), (0, 0), (0, CP - channels)))

    in_specs = [pl.BlockSpec((1, L, CP), lambda b: (b, 0, 0))]
    for p in flat_params:
        in_specs.append(pl.BlockSpec(tuple(p.shape), _zero_map(p.ndim)))
    out_spec = pl.BlockSpec((1, t_enc, CODE_LANES), lambda b: (b, 0, 0))

    bytes_accessed = int(x.size * 4
                         + sum(int(p.size) * p.dtype.itemsize for p in flat_params)
                         + B * t_enc * CODE_LANES * 4)
    cost = pl.CostEstimate(flops=int(1e8), transcendentals=int(1e5),
                           bytes_accessed=bytes_accessed)

    codes_full = pl.pallas_call(
        partial(_fused_kernel, plan=plan),
        grid=(B,),
        in_specs=in_specs,
        out_specs=out_spec,
        out_shape=jax.ShapeDtypeStruct((B, t_enc, CODE_LANES), jnp.int32),
        compiler_params=pltpu.CompilerParams(dimension_semantics=("parallel",)),
        cost_estimate=cost,
    )(x, *flat_params)

    n_q = n_q or N_Q
    # TODO(synk): PyTorch emits int64 codes; int32 is used here (TPU-friendly).
    codes = codes_full[:, :, :n_q]                           # (B, T, n_q)
    return jnp.transpose(codes, (2, 0, 1))                   # (n_q, B, T)


if __name__ == "__main__":
    key = jax.random.PRNGKey(0)
    pkey, xkey = jax.random.split(key)
    plan, flat_params, t_enc = build_encoder(pkey)
    waveform = jax.random.normal(xkey, (BATCH, CHANNELS, SEQ), jnp.float32)

    enc = jax.jit(lambda wav, fp: encode(wav, plan, fp, t_enc))
    codes = jax.block_until_ready(enc(waveform, flat_params))

    hop = 1
    for r in RATIOS:
        hop *= r
    assert codes.shape == (N_Q, BATCH, SEQ // hop), codes.shape
    assert codes.dtype == jnp.int32
    assert bool(jnp.all(codes >= 0)) and bool(jnp.all(codes < CODEBOOK_SIZE))

    print("KERNEL_OK")
</pallas_src>

<mosaic_0001>
module attributes {stable_mosaic.version = 11 : i64} {
  func.func @_fused_kernel(%arg0: i32, %arg1: memref<1x64x128xf32, #tpu.memory_space<vmem>>, %arg2: memref<7x128x128xbf16, #tpu.memory_space<vmem>>, %arg3: memref<1x128xf32, #tpu.memory_space<vmem>>, %arg4: memref<3x128x128xbf16, #tpu.memory_space<vmem>>, %arg5: memref<1x128xf32, #tpu.memory_space<vmem>>, %arg6: memref<1x128x128xbf16, #tpu.memory_space<vmem>>, %arg7: memref<1x128xf32, #tpu.memory_space<vmem>>, %arg8: memref<1x128x128xbf16, #tpu.memory_space<vmem>>, %arg9: memref<1x128xf32, #tpu.memory_space<vmem>>, %arg10: memref<4x128x128xbf16, #tpu.memory_space<vmem>>, %arg11: memref<1x128xf32, #tpu.memory_space<vmem>>, %arg12: memref<3x128x128xbf16, #tpu.memory_space<vmem>>, %arg13: memref<1x128xf32, #tpu.memory_space<vmem>>, %arg14: memref<1x128x128xbf16, #tpu.memory_space<vmem>>, %arg15: memref<1x128xf32, #tpu.memory_space<vmem>>, %arg16: memref<1x128x128xbf16, #tpu.memory_space<vmem>>, %arg17: memref<1x128xf32, #tpu.memory_space<vmem>>, %arg18: memref<8x128x128xbf16, #tpu.memory_space<vmem>>, %arg19: memref<1x128xf32, #tpu.memory_space<vmem>>, %arg20: memref<2x16x512xbf16, #tpu.memory_space<vmem>>, %arg21: memref<2x16x512xbf16, #tpu.memory_space<vmem>>, %arg22: memref<2x1x512xf32, #tpu.memory_space<vmem>>, %arg23: memref<7x16x16xbf16, #tpu.memory_space<vmem>>, %arg24: memref<1x16xf32, #tpu.memory_space<vmem>>, %arg25: memref<4x128x16xf32, #tpu.memory_space<vmem>>, %arg26: memref<4x16x128xf32, #tpu.memory_space<vmem>>, %arg27: memref<4x1x128xf32, #tpu.memory_space<vmem>>, %arg28: memref<1x8x128xi32, #tpu.memory_space<vmem>>) attributes {dimension_semantics = [#tpu.dimension_semantics<parallel>], iteration_bounds = array<i64: 2>, scalar_prefetch = 0 : i64, scratch_operands = 0 : i64, tpu.core_type = #tpu.core_type<tc>, window_params = [{transform_indices = @transform_0, window_bounds = array<i64: 1, 64, 128>}, {pipeline_mode = #tpu.pipeline_mode<synchronous>, transform_indices = @transform_1, window_bounds = array<i64: 7, 128, 128>}, {pipeline_mode = #tpu.pipeline_mode<synchronous>, transform_indices = @transform_2, window_bounds = array<i64: 1, 128>}, {pipeline_mode = #tpu.pipeline_mode<synchronous>, transform_indices = @transform_3, window_bounds = array<i64: 3, 128, 128>}, {pipeline_mode = #tpu.pipeline_mode<synchronous>, transform_indices = @transform_4, window_bounds = array<i64: 1, 128>}, {pipeline_mode = #tpu.pipeline_mode<synchronous>, transform_indices = @transform_5, window_bounds = array<i64: 1, 128, 128>}, {pipeline_mode = #tpu.pipeline_mode<synchronous>, transform_indices = @transform_6, window_bounds = array<i64: 1, 128>}, {pipeline_mode = #tpu.pipeline_mode<synchronous>, transform_indices = @transform_7, window_bounds = array<i64: 1, 128, 128>}, {pipeline_mode = #tpu.pipeline_mode<synchronous>, transform_indices = @transform_8, window_bounds = array<i64: 1, 128>}, {pipeline_mode = #tpu.pipeline_mode<synchronous>, transform_indices = @transform_9, window_bounds = array<i64: 4, 128, 128>}, {pipeline_mode = #tpu.pipeline_mode<synchronous>, transform_indices = @transform_10, window_bounds = array<i64: 1, 128>}, {pipeline_mode = #tpu.pipeline_mode<synchronous>, transform_indices = @transform_11, window_bounds = array<i64: 3, 128, 128>}, {pipeline_mode = #tpu.pipeline_mode<synchronous>, transform_indices = @transform_12, window_bounds = array<i64: 1, 128>}, {pipeline_mode = #tpu.pipeline_mode<synchronous>, transform_indices = @transform_13, window_bounds = array<i64: 1, 128, 128>}, {pipeline_mode = #tpu.pipeline_mode<synchronous>, transform_indices = @transform_14, window_bounds = array<i64: 1, 128>}, {pipeline_mode = #tpu.pipeline_mode<synchronous>, transform_indices = @transform_15, window_bounds = array<i64: 1, 128, 128>}, {pipeline_mode = #tpu.pipeline_mode<synchronous>, transform_indices = @transform_16, window_bounds = array<i64: 1, 128>}, {pipeline_mode = #tpu.pipeline_mode<synchronous>, transform_indices = @transform_17, window_bounds = array<i64: 8, 128, 128>}, {pipeline_mode = #tpu.pipeline_mode<synchronous>, transform_indices = @transform_18, window_bounds = array<i64: 1, 128>}, {pipeline_mode = #tpu.pipeline_mode<synchronous>, transform_indices = @transform_19, window_bounds = array<i64: 2, 16, 512>}, {pipeline_mode = #tpu.pipeline_mode<synchronous>, transform_indices = @transform_20, window_bounds = array<i64: 2, 16, 512>}, {pipeline_mode = #tpu.pipeline_mode<synchronous>, transform_indices = @transform_21, window_bounds = array<i64: 2, 1, 512>}, {pipeline_mode = #tpu.pipeline_mode<synchronous>, transform_indices = @transform_22, window_bounds = array<i64: 7, 16, 16>}, {pipeline_mode = #tpu.pipeline_mode<synchronous>, transform_indices = @transform_23, window_bounds = array<i64: 1, 16>}, {pipeline_mode = #tpu.pipeline_mode<synchronous>, transform_indices = @transform_24, window_bounds = array<i64: 4, 128, 16>}, {pipeline_mode = #tpu.pipeline_mode<synchronous>, transform_indices = @transform_25, window_bounds = array<i64: 4, 16, 128>}, {pipeline_mode = #tpu.pipeline_mode<synchronous>, transform_indices = @transform_26, window_bounds = array<i64: 4, 1, 128>}, {transform_indices = @transform_27, window_bounds = array<i64: 1, 8, 128>}]} {
    %c0 = arith.constant 0 : index
    %c0_0 = arith.constant 0 : index
    %c0_1 = arith.constant 0 : index
    %0 = vector.load %arg1[%c0, %c0_0, %c0_1] : memref<1x64x128xf32, #tpu.memory_space<vmem>>, vector<1x64x128xf32>
    %1 = vector.shape_cast %0 : vector<1x64x128xf32> to vector<64x128xf32>
    %2 = vector.extract_strided_slice %1 {offsets = [3, 0], sizes = [1, 128], strides = [1, 1]} : vector<64x128xf32> to vector<1x128xf32>
    %3 = vector.extract_strided_slice %1 {offsets = [2, 0], sizes = [1, 128], strides = [1, 1]} : vector<64x128xf32> to vector<1x128xf32>
    %4 = vector.extract_strided_slice %1 {offsets = [1, 0], sizes = [1, 128], strides = [1, 1]} : vector<64x128xf32> to vector<1x128xf32>
    %5 = vector.extract_strided_slice %1 {offsets = [62, 0], sizes = [1, 128], strides = [1, 1]} : vector<64x128xf32> to vector<1x128xf32>
    %6 = vector.extract_strided_slice %1 {offsets = [61, 0], sizes = [1, 128], strides = [1, 1]} : vector<64x128xf32> to vector<1x128xf32>
    %7 = vector.extract_strided_slice %1 {offsets = [60, 0], sizes = [1, 128], strides = [1, 1]} : vector<64x128xf32> to vector<1x128xf32>
    %8 = tpu.concatenate %2, %3, %4, %1, %5, %6, %7 in 0 : vector<1x128xf32>, vector<1x128xf32>, vector<1x128xf32>, vector<64x128xf32>, vector<1x128xf32>, vector<1x128xf32>, vector<1x128xf32> -> vector<70x128xf32>
    %cst = arith.constant 0.000000e+00 : f32
    %9 = vector.broadcast %cst : f32 to vector<64x128xf32>
    %10 = vector.extract_strided_slice %8 {offsets = [0, 0], sizes = [64, 128], strides = [1, 1]} : vector<70x128xf32> to vector<64x128xf32>
    %11 = arith.truncf %10 : vector<64x128xf32> to vector<64x128xbf16>
    %c0_2 = arith.constant 0 : index
    %c0_3 = arith.constant 0 : index
    %c0_4 = arith.constant 0 : index
    %12 = vector.load %arg2[%c0_2, %c0_3, %c0_4] : memref<7x128x128xbf16, #tpu.memory_space<vmem>>, vector<1x128x128xbf16>
    %13 = vector.shape_cast %12 : vector<1x128x128xbf16> to vector<128x128xbf16>
    %cst_5 = arith.constant dense<0.000000e+00> : vector<64x128xf32>
    %14 = tpu.matmul %11, %13, %cst_5 {dimension_numbers = #tpu.dot_dimension_numbers<[1], [0], [0], [1], [0, 0, 1, 1], [], []>} : vector<64x128xbf16>, vector<128x128xbf16>, vector<64x128xf32> -> vector<64x128xf32>
    %15 = arith.addf %9, %14 : vector<64x128xf32>
    %16 = vector.extract_strided_slice %8 {offsets = [1, 0], sizes = [64, 128], strides = [1, 1]} : vector<70x128xf32> to vector<64x128xf32>
    %17 = arith.truncf %16 : vector<64x128xf32> to vector<64x128xbf16>
    %c1 = arith.constant 1 : index
    %c0_6 = arith.constant 0 : index
    %c0_7 = arith.constant 0 : index
    %18 = vector.load %arg2[%c1, %c0_6, %c0_7] : memref<7x128x128xbf16, #tpu.memory_space<vmem>>, vector<1x128x128xbf16>
    %19 = vector.shape_cast %18 : vector<1x128x128xbf16> to vector<128x128xbf16>
    %cst_8 = arith.constant dense<0.000000e+00> : vector<64x128xf32>
    %20 = tpu.matmul %17, %19, %cst_8 {dimension_numbers = #tpu.dot_dimension_numbers<[1], [0], [0], [1], [0, 0, 1, 1], [], []>} : vector<64x128xbf16>, vector<128x128xbf16>, vector<64x128xf32> -> vector<64x128xf32>
    %21 = arith.addf %15, %20 : vector<64x128xf32>
    %22 = vector.extract_strided_slice %8 {offsets = [2, 0], sizes = [64, 128], strides = [1, 1]} : vector<70x128xf32> to vector<64x128xf32>
    %23 = arith.truncf %22 : vector<64x128xf32> to vector<64x128xbf16>
    %c2 = arith.constant 2 : index
    %c0_9 = arith.constant 0 : index
    %c0_10 = arith.constant 0 : index
    %24 = vector.load %arg2[%c2, %c0_9, %c0_10] : memref<7x128x128xbf16, #tpu.memory_space<vmem>>, vector<1x128x128xbf16>
    %25 = vector.shape_cast %24 : vector<1x128x128xbf16> to vector<128x128xbf16>
    %cst_11 = arith.constant dense<0.000000e+00> : vector<64x128xf32>
    %26 = tpu.matmul %23, %25, %cst_11 {dimension_numbers = #tpu.dot_dimension_numbers<[1], [0], [0], [1], [0, 0, 1, 1], [], []>} : vector<64x128xbf16>, vector<128x128xbf16>, vector<64x128xf32> -> vector<64x128xf32>
    %27 = arith.addf %21, %26 : vector<64x128xf32>
    %28 = vector.extract_strided_slice %8 {offsets = [3, 0], sizes = [64, 128], strides = [1, 1]} : vector<70x128xf32> to vector<64x128xf32>
    %29 = arith.truncf %28 : vector<64x128xf32> to vector<64x128xbf16>
    %c3 = arith.constant 3 : index
    %c0_12 = arith.constant 0 : index
    %c0_13 = arith.constant 0 : index
    %30 = vector.load %arg2[%c3, %c0_12, %c0_13] : memref<7x128x128xbf16, #tpu.memory_space<vmem>>, vector<1x128x128xbf16>
    %31 = vector.shape_cast %30 : vector<1x128x128xbf16> to vector<128x128xbf16>
    %cst_14 = arith.constant dense<0.000000e+00> : vector<64x128xf32>
    %32 = tpu.matmul %29, %31, %cst_14 {dimension_numbers = #tpu.dot_dimension_numbers<[1], [0], [0], [1], [0, 0, 1, 1], [], []>} : vector<64x128xbf16>, vector<128x128xbf16>, vector<64x128xf32> -> vector<64x128xf32>
    %33 = arith.addf %27, %32 : vector<64x128xf32>
    %34 = vector.extract_strided_slice %8 {offsets = [4, 0], sizes = [64, 128], strides = [1, 1]} : vector<70x128xf32> to vector<64x128xf32>
    %35 = arith.truncf %34 : vector<64x128xf32> to vector<64x128xbf16>
    %c4 = arith.constant 4 : index
    %c0_15 = arith.constant 0 : index
    %c0_16 = arith.constant 0 : index
    %36 = vector.load %arg2[%c4, %c0_15, %c0_16] : memref<7x128x128xbf16, #tpu.memory_space<vmem>>, vector<1x128x128xbf16>
    %37 = vector.shape_cast %36 : vector<1x128x128xbf16> to vector<128x128xbf16>
    %cst_17 = arith.constant dense<0.000000e+00> : vector<64x128xf32>
    %38 = tpu.matmul %35, %37, %cst_17 {dimension_numbers = #tpu.dot_dimension_numbers<[1], [0], [0], [1], [0, 0, 1, 1], [], []>} : vector<64x128xbf16>, vector<128x128xbf16>, vector<64x128xf32> -> vector<64x128xf32>
    %39 = arith.addf %33, %38 : vector<64x128xf32>
    %40 = vector.extract_strided_slice %8 {offsets = [5, 0], sizes = [64, 128], strides = [1, 1]} : vector<70x128xf32> to vector<64x128xf32>
    %41 = arith.truncf %40 : vector<64x128xf32> to vector<64x128xbf16>
    %c5 = arith.constant 5 : index
    %c0_18 = arith.constant 0 : index
    %c0_19 = arith.constant 0 : index
    %42 = vector.load %arg2[%c5, %c0_18, %c0_19] : memref<7x128x128xbf16, #tpu.memory_space<vmem>>, vector<1x128x128xbf16>
    %43 = vector.shape_cast %42 : vector<1x128x128xbf16> to vector<128x128xbf16>
    %cst_20 = arith.constant dense<0.000000e+00> : vector<64x128xf32>
    %44 = tpu.matmul %41, %43, %cst_20 {dimension_numbers = #tpu.dot_dimension_numbers<[1], [0], [0], [1], [0, 0, 1, 1], [], []>} : vector<64x128xbf16>, vector<128x128xbf16>, vector<64x128xf32> -> vector<64x128xf32>
    %45 = arith.addf %39, %44 : vector<64x128xf32>
    %46 = vector.extract_strided_slice %8 {offsets = [6, 0], sizes = [64, 128], strides = [1, 1]} : vector<70x128xf32> to vector<64x128xf32>
    %47 = arith.truncf %46 : vector<64x128xf32> to vector<64x128xbf16>
    %c6 = arith.constant 6 : index
    %c0_21 = arith.constant 0 : index
    %c0_22 = arith.constant 0 : index
    %48 = vector.load %arg2[%c6, %c0_21, %c0_22] : memref<7x128x128xbf16, #tpu.memory_space<vmem>>, vector<1x128x128xbf16>
    %49 = vector.shape_cast %48 : vector<1x128x128xbf16> to vector<128x128xbf16>
    %cst_23 = arith.constant dense<0.000000e+00> : vector<64x128xf32>
    %50 = tpu.matmul %47, %49, %cst_23 {dimension_numbers = #tpu.dot_dimension_numbers<[1], [0], [0], [1], [0, 0, 1, 1], [], []>} : vector<64x128xbf16>, vector<128x128xbf16>, vector<64x128xf32> -> vector<64x128xf32>
    %51 = arith.addf %45, %50 : vector<64x128xf32>
    %c0_24 = arith.constant 0 : index
    %c0_25 = arith.constant 0 : index
    %52 = vector.load %arg3[%c0_24, %c0_25] : memref<1x128xf32, #tpu.memory_space<vmem>>, vector<1x128xf32>
    %53 = vector.broadcast %52 : vector<1x128xf32> to vector<64x128xf32>
    %54 = arith.addf %51, %53 : vector<64x128xf32>
    %cst_26 = arith.constant 0.000000e+00 : f32
    %55 = vector.broadcast %cst_26 : f32 to vector<64x128xf32>
    %56 = arith.cmpf ogt, %54, %55 : vector<64x128xf32>
    %cst_27 = arith.constant 0.000000e+00 : f32
    %57 = vector.broadcast %cst_27 : f32 to vector<64x128xf32>
    %58 = arith.minimumf %54, %57 : vector<64x128xf32>
    %59 = math.exp %58 : vector<64x128xf32>
    %cst_28 = arith.constant 1.000000e+00 : f32
    %60 = vector.broadcast %cst_28 : f32 to vector<64x128xf32>
    %61 = arith.subf %59, %60 : vector<64x128xf32>
    %62 = arith.select %56, %54, %61 : vector<64x128xi1>, vector<64x128xf32>
    %63 = vector.extract_strided_slice %62 {offsets = [1, 0], sizes = [1, 128], strides = [1, 1]} : vector<64x128xf32> to vector<1x128xf32>
    %64 = vector.extract_strided_slice %62 {offsets = [62, 0], sizes = [1, 128], strides = [1, 1]} : vector<64x128xf32> to vector<1x128xf32>
    %65 = tpu.concatenate %63, %62, %64 in 0 : vector<1x128xf32>, vector<64x128xf32>, vector<1x128xf32> -> vector<66x128xf32>
    %cst_29 = arith.constant 0.000000e+00 : f32
    %66 = vector.broadcast %cst_29 : f32 to vector<64x128xf32>
    %67 = vector.extract_strided_slice %65 {offsets = [0, 0], sizes = [64, 128], strides = [1, 1]} : vector<66x128xf32> to vector<64x128xf32>
    %68 = arith.truncf %67 : vector<64x128xf32> to vector<64x128xbf16>
    %c0_30 = arith.constant 0 : index
    %c0_31 = arith.constant 0 : index
    %c0_32 = arith.constant 0 : index
    %69 = vector.load %arg4[%c0_30, %c0_31, %c0_32] : memref<3x128x128xbf16, #tpu.memory_space<vmem>>, vector<1x128x128xbf16>
    %70 = vector.shape_cast %69 : vector<1x128x128xbf16> to vector<128x128xbf16>
    %cst_33 = arith.constant dense<0.000000e+00> : vector<64x128xf32>
    %71 = tpu.matmul %68, %70, %cst_33 {dimension_numbers = #tpu.dot_dimension_numbers<[1], [0], [0], [1], [0, 0, 1, 1], [], []>} : vector<64x128xbf16>, vector<128x128xbf16>, vector<64x128xf32> -> vector<64x128xf32>
    %72 = arith.addf %66, %71 : vector<64x128xf32>
    %73 = vector.extract_strided_slice %65 {offsets = [1, 0], sizes = [64, 128], strides = [1, 1]} : vector<66x128xf32> to vector<64x128xf32>
    %74 = arith.truncf %73 : vector<64x128xf32> to vector<64x128xbf16>
    %c1_34 = arith.constant 1 : index
    %c0_35 = arith.constant 0 : index
    %c0_36 = arith.constant 0 : index
    %75 = vector.load %arg4[%c1_34, %c0_35, %c0_36] : memref<3x128x128xbf16, #tpu.memory_space<vmem>>, vector<1x128x128xbf16>
    %76 = vector.shape_cast %75 : vector<1x128x128xbf16> to vector<128x128xbf16>
    %cst_37 = arith.constant dense<0.000000e+00> : vector<64x128xf32>
    %77 = tpu.matmul %74, %76, %cst_37 {dimension_numbers = #tpu.dot_dimension_numbers<[1], [0], [0], [1], [0, 0, 1, 1], [], []>} : vector<64x128xbf16>, vector<128x128xbf16>, vector<64x128xf32> -> vector<64x128xf32>
    %78 = arith.addf %72, %77 : vector<64x128xf32>
    %79 = vector.extract_strided_slice %65 {offsets = [2, 0], sizes = [64, 128], strides = [1, 1]} : vector<66x128xf32> to vector<64x128xf32>
    %80 = arith.truncf %79 : vector<64x128xf32> to vector<64x128xbf16>
    %c2_38 = arith.constant 2 : index
    %c0_39 = arith.constant 0 : index
    %c0_40 = arith.constant 0 : index
    %81 = vector.load %arg4[%c2_38, %c0_39, %c0_40] : memref<3x128x128xbf16, #tpu.memory_space<vmem>>, vector<1x128x128xbf16>
    %82 = vector.shape_cast %81 : vector<1x128x128xbf16> to vector<128x128xbf16>
    %cst_41 = arith.constant dense<0.000000e+00> : vector<64x128xf32>
    %83 = tpu.matmul %80, %82, %cst_41 {dimension_numbers = #tpu.dot_dimension_numbers<[1], [0], [0], [1], [0, 0, 1, 1], [], []>} : vector<64x128xbf16>, vector<128x128xbf16>, vector<64x128xf32> -> vector<64x128xf32>
    %84 = arith.addf %78, %83 : vector<64x128xf32>
    %c0_42 = arith.constant 0 : index
    %c0_43 = arith.constant 0 : index
    %85 = vector.load %arg5[%c0_42, %c0_43] : memref<1x128xf32, #tpu.memory_space<vmem>>, vector<1x128xf32>
    %86 = vector.broadcast %85 : vector<1x128xf32> to vector<64x128xf32>
    %87 = arith.addf %84, %86 : vector<64x128xf32>
    %cst_44 = arith.constant 0.000000e+00 : f32
    %88 = vector.broadcast %cst_44 : f32 to vector<64x128xf32>
    %89 = arith.cmpf ogt, %87, %88 : vector<64x128xf32>
    %cst_45 = arith.constant 0.000000e+00 : f32
    %90 = vector.broadcast %cst_45 : f32 to vector<64x128xf32>
    %91 = arith.minimumf %87, %90 : vector<64x128xf32>
    %92 = math.exp %91 : vector<64x128xf32>
    %cst_46 = arith.constant 1.000000e+00 : f32
    %93 = vector.broadcast %cst_46 : f32 to vector<64x128xf32>
    %94 = arith.subf %92, %93 : vector<64x128xf32>
    %95 = arith.select %89, %87, %94 : vector<64x128xi1>, vector<64x128xf32>
    %96 = arith.truncf %95 : vector<64x128xf32> to vector<64x128xbf16>
    %c0_47 = arith.constant 0 : index
    %c0_48 = arith.constant 0 : index
    %c0_49 = arith.constant 0 : index
    %97 = vector.load %arg6[%c0_47, %c0_48, %c0_49] : memref<1x128x128xbf16, #tpu.memory_space<vmem>>, vector<1x128x128xbf16>
    %98 = vector.shape_cast %97 : vector<1x128x128xbf16> to vector<128x128xbf16>
    %cst_50 = arith.constant dense<0.000000e+00> : vector<64x128xf32>
    %99 = tpu.matmul %96, %98, %cst_50 {dimension_numbers = #tpu.dot_dimension_numbers<[1], [0], [0], [1], [0, 0, 1, 1], [], []>} : vector<64x128xbf16>, vector<128x128xbf16>, vector<64x128xf32> -> vector<64x128xf32>
    %c0_51 = arith.constant 0 : index
    %c0_52 = arith.constant 0 : index
    %100 = vector.load %arg7[%c0_51, %c0_52] : memref<1x128xf32, #tpu.memory_space<vmem>>, vector<1x128xf32>
    %101 = vector.broadcast %100 : vector<1x128xf32> to vector<64x128xf32>
    %102 = arith.addf %99, %101 : vector<64x128xf32>
    %103 = arith.truncf %54 : vector<64x128xf32> to vector<64x128xbf16>
    %c0_53 = arith.constant 0 : index
    %c0_54 = arith.constant 0 : index
    %c0_55 = arith.constant 0 : index
    %104 = vector.load %arg8[%c0_53, %c0_54, %c0_55] : memref<1x128x128xbf16, #tpu.memory_space<vmem>>, vector<1x128x128xbf16>
    %105 = vector.shape_cast %104 : vector<1x128x128xbf16> to vector<128x128xbf16>
    %cst_56 = arith.constant dense<0.000000e+00> : vector<64x128xf32>
    %106 = tpu.matmul %103, %105, %cst_56 {dimension_numbers = #tpu.dot_dimension_numbers<[1], [0], [0], [1], [0, 0, 1, 1], [], []>} : vector<64x128xbf16>, vector<128x128xbf16>, vector<64x128xf32> -> vector<64x128xf32>
    %c0_57 = arith.constant 0 : index
    %c0_58 = arith.constant 0 : index
    %107 = vector.load %arg9[%c0_57, %c0_58] : memref<1x128xf32, #tpu.memory_space<vmem>>, vector<1x128xf32>
    %108 = vector.broadcast %107 : vector<1x128xf32> to vector<64x128xf32>
    %109 = arith.addf %106, %108 : vector<64x128xf32>
    %110 = arith.addf %109, %102 : vector<64x128xf32>
    %cst_59 = arith.constant 0.000000e+00 : f32
    %111 = vector.broadcast %cst_59 : f32 to vector<64x128xf32>
    %112 = arith.cmpf ogt, %110, %111 : vector<64x128xf32>
    %cst_60 = arith.constant 0.000000e+00 : f32
    %113 = vector.broadcast %cst_60 : f32 to vector<64x128xf32>
    %114 = arith.minimumf %110, %113 : vector<64x128xf32>
    %115 = math.exp %114 : vector<64x128xf32>
    %cst_61 = arith.constant 1.000000e+00 : f32
    %116 = vector.broadcast %cst_61 : f32 to vector<64x128xf32>
    %117 = arith.subf %115, %116 : vector<64x128xf32>
    %118 = arith.select %112, %110, %117 : vector<64x128xi1>, vector<64x128xf32>
    %119 = vector.extract_strided_slice %118 {offsets = [1, 0], sizes = [1, 128], strides = [1, 1]} : vector<64x128xf32> to vector<1x128xf32>
    %120 = vector.extract_strided_slice %118 {offsets = [62, 0], sizes = [1, 128], strides = [1, 1]} : vector<64x128xf32> to vector<1x128xf32>
    %121 = tpu.concatenate %119, %118, %120 in 0 : vector<1x128xf32>, vector<64x128xf32>, vector<1x128xf32> -> vector<66x128xf32>
    %cst_62 = arith.constant 0.000000e+00 : f32
    %122 = vector.broadcast %cst_62 : f32 to vector<63x128xf32>
    %123 = vector.extract_strided_slice %121 {offsets = [0, 0], sizes = [63, 128], strides = [1, 1]} : vector<66x128xf32> to vector<63x128xf32>
    %124 = arith.truncf %123 : vector<63x128xf32> to vector<63x128xbf16>
    %c0_63 = arith.constant 0 : index
    %c0_64 = arith.constant 0 : index
    %c0_65 = arith.constant 0 : index
    %125 = vector.load %arg10[%c0_63, %c0_64, %c0_65] : memref<4x128x128xbf16, #tpu.memory_space<vmem>>, vector<1x128x128xbf16>
    %126 = vector.shape_cast %125 : vector<1x128x128xbf16> to vector<128x128xbf16>
    %cst_66 = arith.constant dense<0.000000e+00> : vector<63x128xf32>
    %127 = tpu.matmul %124, %126, %cst_66 {dimension_numbers = #tpu.dot_dimension_numbers<[1], [0], [0], [1], [0, 0, 1, 1], [], []>} : vector<63x128xbf16>, vector<128x128xbf16>, vector<63x128xf32> -> vector<63x128xf32>
    %128 = arith.addf %122, %127 : vector<63x128xf32>
    %129 = vector.extract_strided_slice %121 {offsets = [1, 0], sizes = [63, 128], strides = [1, 1]} : vector<66x128xf32> to vector<63x128xf32>
    %130 = arith.truncf %129 : vector<63x128xf32> to vector<63x128xbf16>
    %c1_67 = arith.constant 1 : index
    %c0_68 = arith.constant 0 : index
    %c0_69 = arith.constant 0 : index
    %131 = vector.load %arg10[%c1_67, %c0_68, %c0_69] : memref<4x128x128xbf16, #tpu.memory_space<vmem>>, vector<1x128x128xbf16>
    %132 = vector.shape_cast %131 : vector<1x128x128xbf16> to vector<128x128xbf16>
    %cst_70 = arith.constant dense<0.000000e+00> : vector<63x128xf32>
    %133 = tpu.matmul %130, %132, %cst_70 {dimension_numbers = #tpu.dot_dimension_numbers<[1], [0], [0], [1], [0, 0, 1, 1], [], []>} : vector<63x128xbf16>, vector<128x128xbf16>, vector<63x128xf32> -> vector<63x128xf32>
    %134 = arith.addf %128, %133 : vector<63x128xf32>
    %135 = vector.extract_strided_slice %121 {offsets = [2, 0], sizes = [63, 128], strides = [1, 1]} : vector<66x128xf32> to vector<63x128xf32>
    %136 = arith.truncf %135 : vector<63x128xf32> to vector<63x128xbf16>
    %c2_71 = arith.constant 2 : index
    %c0_72 = arith.constant 0 : index
    %c0_73 = arith.constant 0 : index
    %137 = vector.load %arg10[%c2_71, %c0_72, %c0_73] : memref<4x128x128xbf16, #tpu.memory_space<vmem>>, vector<1x128x128xbf16>
    %138 = vector.shape_cast %137 : vector<1x128x128xbf16> to vector<128x128xbf16>
    %cst_74 = arith.constant dense<0.000000e+00> : vector<63x128xf32>
    %139 = tpu.matmul %136, %138, %cst_74 {dimension_numbers = #tpu.dot_dimension_numbers<[1], [0], [0], [1], [0, 0, 1, 1], [], []>} : vector<63x128xbf16>, vector<128x128xbf16>, vector<63x128xf32> -> vector<63x128xf32>
    %140 = arith.addf %134, %139 : vector<63x128xf32>
    %141 = vector.extract_strided_slice %121 {offsets = [3, 0], sizes = [63, 128], strides = [1, 1]} : vector<66x128xf32> to vector<63x128xf32>
    %142 = arith.truncf %141 : vector<63x128xf32> to vector<63x128xbf16>
    %c3_75 = arith.constant 3 : index
    %c0_76 = arith.constant 0 : index
    %c0_77 = arith.constant 0 : index
    %143 = vector.load %arg10[%c3_75, %c0_76, %c0_77] : memref<4x128x128xbf16, #tpu.memory_space<vmem>>, vector<1x128x128xbf16>
    %144 = vector.shape_cast %143 : vector<1x128x128xbf16> to vector<128x128xbf16>
    %cst_78 = arith.constant dense<0.000000e+00> : vector<63x128xf32>
    %145 = tpu.matmul %142, %144, %cst_78 {dimension_numbers = #tpu.dot_dimension_numbers<[1], [0], [0], [1], [0, 0, 1, 1], [], []>} : vector<63x128xbf16>, vector<128x128xbf16>, vector<63x128xf32> -> vector<63x128xf32>
    %146 = arith.addf %140, %145 : vector<63x128xf32>
    %147 = tpu.iota {dimensions = array<i32: 0>} : vector<32x63xi32>
    %148 = tpu.iota {dimensions = array<i32: 1>} : vector<32x63xi32>
    %c2_i32 = arith.constant 2 : i32
    %149 = vector.broadcast %c2_i32 : i32 to vector<32x63xi32>
    %150 = arith.muli %147, %149 : vector<32x63xi32>
    %151 = arith.cmpi eq, %148, %150 : vector<32x63xi32>
    %152 = arith.extui %151 : vector<32x63xi1> to vector<32x63xi32>
    %153 = arith.sitofp %152 : vector<32x63xi32> to vector<32x63xf32>
    %cst_79 = arith.constant dense<0.000000e+00> : vector<32x128xf32>
    %154 = tpu.matmul %153, %146, %cst_79 {dimension_numbers = #tpu.dot_dimension_numbers<[1], [0], [0], [1], [0, 0, 1, 1], [], []>} : vector<32x63xf32>, vector<63x128xf32>, vector<32x128xf32> -> vector<32x128xf32>
    %c0_80 = arith.constant 0 : index
    %c0_81 = arith.constant 0 : index
    %155 = vector.load %arg11[%c0_80, %c0_81] : memref<1x128xf32, #tpu.memory_space<vmem>>, vector<1x128xf32>
    %156 = vector.broadcast %155 : vector<1x128xf32> to vector<32x128xf32>
    %157 = arith.addf %154, %156 : vector<32x128xf32>
    %cst_82 = arith.constant 0.000000e+00 : f32
    %158 = vector.broadcast %cst_82 : f32 to vector<32x128xf32>
    %159 = arith.cmpf ogt, %157, %158 : vector<32x128xf32>
    %cst_83 = arith.constant 0.000000e+00 : f32
    %160 = vector.broadcast %cst_83 : f32 to vector<32x128xf32>
    %161 = arith.minimumf %157, %160 : vector<32x128xf32>
    %162 = math.exp %161 : vector<32x128xf32>
    %cst_84 = arith.constant 1.000000e+00 : f32
    %163 = vector.broadcast %cst_84 : f32 to vector<32x128xf32>
    %164 = arith.subf %162, %163 : vector<32x128xf32>
    %165 = arith.select %159, %157, %164 : vector<32x128xi1>, vector<32x128xf32>
    %166 = vector.extract_strided_slice %165 {offsets = [1, 0], sizes = [1, 128], strides = [1, 1]} : vector<32x128xf32> to vector<1x128xf32>
    %167 = vector.extract_strided_slice %165 {offsets = [30, 0], sizes = [1, 128], strides = [1, 1]} : vector<32x128xf32> to vector<1x128xf32>
    %168 = tpu.concatenate %166, %165, %167 in 0 : vector<1x128xf32>, vector<32x128xf32>, vector<1x128xf32> -> vector<34x128xf32>
    %cst_85 = arith.constant 0.000000e+00 : f32
    %169 = vector.broadcast %cst_85 : f32 to vector<32x128xf32>
    %170 = vector.extract_strided_slice %168 {offsets = [0, 0], sizes = [32, 128], strides = [1, 1]} : vector<34x128xf32> to vector<32x128xf32>
    %171 = arith.truncf %170 : vector<32x128xf32> to vector<32x128xbf16>
    %c0_86 = arith.constant 0 : index
    %c0_87 = arith.constant 0 : index
    %c0_88 = arith.constant 0 : index
    %172 = vector.load %arg12[%c0_86, %c0_87, %c0_88] : memref<3x128x128xbf16, #tpu.memory_space<vmem>>, vector<1x128x128xbf16>
    %173 = vector.shape_cast %172 : vector<1x128x128xbf16> to vector<128x128xbf16>
    %cst_89 = arith.constant dense<0.000000e+00> : vector<32x128xf32>
    %174 = tpu.matmul %171, %173, %cst_89 {dimension_numbers = #tpu.dot_dimension_numbers<[1], [0], [0], [1], [0, 0, 1, 1], [], []>} : vector<32x128xbf16>, vector<128x128xbf16>, vector<32x128xf32> -> vector<32x128xf32>
    %175 = arith.addf %169, %174 : vector<32x128xf32>
    %176 = vector.extract_strided_slice %168 {offsets = [1, 0], sizes = [32, 128], strides = [1, 1]} : vector<34x128xf32> to vector<32x128xf32>
    %177 = arith.truncf %176 : vector<32x128xf32> to vector<32x128xbf16>
    %c1_90 = arith.constant 1 : index
    %c0_91 = arith.constant 0 : index
    %c0_92 = arith.constant 0 : index
    %178 = vector.load %arg12[%c1_90, %c0_91, %c0_92] : memref<3x128x128xbf16, #tpu.memory_space<vmem>>, vector<1x128x128xbf16>
    %179 = vector.shape_cast %178 : vector<1x128x128xbf16> to vector<128x128xbf16>
    %cst_93 = arith.constant dense<0.000000e+00> : vector<32x128xf32>
    %180 = tpu.matmul %177, %179, %cst_93 {dimension_numbers = #tpu.dot_dimension_numbers<[1], [0], [0], [1], [0, 0, 1, 1], [], []>} : vector<32x128xbf16>, vector<128x128xbf16>, vector<32x128xf32> -> vector<32x128xf32>
    %181 = arith.addf %175, %180 : vector<32x128xf32>
    %182 = vector.extract_strided_slice %168 {offsets = [2, 0], sizes = [32, 128], strides = [1, 1]} : vector<34x128xf32> to vector<32x128xf32>
    %183 = arith.truncf %182 : vector<32x128xf32> to vector<32x128xbf16>
    %c2_94 = arith.constant 2 : index
    %c0_95 = arith.constant 0 : index
    %c0_96 = arith.constant 0 : index
    %184 = vector.load %arg12[%c2_94, %c0_95, %c0_96] : memref<3x128x128xbf16, #tpu.memory_space<vmem>>, vector<1x128x128xbf16>
    %185 = vector.shape_cast %184 : vector<1x128x128xbf16> to vector<128x128xbf16>
    %cst_97 = arith.constant dense<0.000000e+00> : vector<32x128xf32>
    %186 = tpu.matmul %183, %185, %cst_97 {dimension_numbers = #tpu.dot_dimension_numbers<[1], [0], [0], [1], [0, 0, 1, 1], [], []>} : vector<32x128xbf16>, vector<128x128xbf16>, vector<32x128xf32> -> vector<32x128xf32>
    %187 = arith.addf %181, %186 : vector<32x128xf32>
    %c0_98 = arith.constant 0 : index
    %c0_99 = arith.constant 0 : index
    %188 = vector.load %arg13[%c0_98, %c0_99] : memref<1x128xf32, #tpu.memory_space<vmem>>, vector<1x128xf32>
    %189 = vector.broadcast %188 : vector<1x128xf32> to vector<32x128xf32>
    %190 = arith.addf %187, %189 : vector<32x128xf32>
    %cst_100 = arith.constant 0.000000e+00 : f32
    %191 = vector.broadcast %cst_100 : f32 to vector<32x128xf32>
    %192 = arith.cmpf ogt, %190, %191 : vector<32x128xf32>
    %cst_101 = arith.constant 0.000000e+00 : f32
    %193 = vector.broadcast %cst_101 : f32 to vector<32x128xf32>
    %194 = arith.minimumf %190, %193 : vector<32x128xf32>
    %195 = math.exp %194 : vector<32x128xf32>
    %cst_102 = arith.constant 1.000000e+00 : f32
    %196 = vector.broadcast %cst_102 : f32 to vector<32x128xf32>
    %197 = arith.subf %195, %196 : vector<32x128xf32>
    %198 = arith.select %192, %190, %197 : vector<32x128xi1>, vector<32x128xf32>
    %199 = arith.truncf %198 : vector<32x128xf32> to vector<32x128xbf16>
    %c0_103 = arith.constant 0 : index
    %c0_104 = arith.constant 0 : index
    %c0_105 = arith.constant 0 : index
    %200 = vector.load %arg14[%c0_103, %c0_104, %c0_105] : memref<1x128x128xbf16, #tpu.memory_space<vmem>>, vector<1x128x128xbf16>
    %201 = vector.shape_cast %200 : vector<1x128x128xbf16> to vector<128x128xbf16>
    %cst_106 = arith.constant dense<0.000000e+00> : vector<32x128xf32>
    %202 = tpu.matmul %199, %201, %cst_106 {dimension_numbers = #tpu.dot_dimension_numbers<[1], [0], [0], [1], [0, 0, 1, 1], [], []>} : vector<32x128xbf16>, vector<128x128xbf16>, vector<32x128xf32> -> vector<32x128xf32>
    %c0_107 = arith.constant 0 : index
    %c0_108 = arith.constant 0 : index
    %203 = vector.load %arg15[%c0_107, %c0_108] : memref<1x128xf32, #tpu.memory_space<vmem>>, vector<1x128xf32>
    %204 = vector.broadcast %203 : vector<1x128xf32> to vector<32x128xf32>
    %205 = arith.addf %202, %204 : vector<32x128xf32>
    %206 = arith.truncf %157 : vector<32x128xf32> to vector<32x128xbf16>
    %c0_109 = arith.constant 0 : index
    %c0_110 = arith.constant 0 : index
    %c0_111 = arith.constant 0 : index
    %207 = vector.load %arg16[%c0_109, %c0_110, %c0_111] : memref<1x128x128xbf16, #tpu.memory_space<vmem>>, vector<1x128x128xbf16>
    %208 = vector.shape_cast %207 : vector<1x128x128xbf16> to vector<128x128xbf16>
    %cst_112 = arith.constant dense<0.000000e+00> : vector<32x128xf32>
    %209 = tpu.matmul %206, %208, %cst_112 {dimension_numbers = #tpu.dot_dimension_numbers<[1], [0], [0], [1], [0, 0, 1, 1], [], []>} : vector<32x128xbf16>, vector<128x128xbf16>, vector<32x128xf32> -> vector<32x128xf32>
    %c0_113 = arith.constant 0 : index
    %c0_114 = arith.constant 0 : index
    %210 = vector.load %arg17[%c0_113, %c0_114] : memref<1x128xf32, #tpu.memory_space<vmem>>, vector<1x128xf32>
    %211 = vector.broadcast %210 : vector<1x128xf32> to vector<32x128xf32>
    %212 = arith.addf %209, %211 : vector<32x128xf32>
    %213 = arith.addf %212, %205 : vector<32x128xf32>
    %cst_115 = arith.constant 0.000000e+00 : f32
    %214 = vector.broadcast %cst_115 : f32 to vector<32x128xf32>
    %215 = arith.cmpf ogt, %213, %214 : vector<32x128xf32>
    %cst_116 = arith.constant 0.000000e+00 : f32
    %216 = vector.broadcast %cst_116 : f32 to vector<32x128xf32>
    %217 = arith.minimumf %213, %216 : vector<32x128xf32>
    %218 = math.exp %217 : vector<32x128xf32>
    %cst_117 = arith.constant 1.000000e+00 : f32
    %219 = vector.broadcast %cst_117 : f32 to vector<32x128xf32>
    %220 = arith.subf %218, %219 : vector<32x128xf32>
    %221 = arith.select %215, %213, %220 : vector<32x128xi1>, vector<32x128xf32>
    %222 = vector.extract_strided_slice %221 {offsets = [2, 0], sizes = [1, 128], strides = [1, 1]} : vector<32x128xf32> to vector<1x128xf32>
    %223 = vector.extract_strided_slice %221 {offsets = [1, 0], sizes = [1, 128], strides = [1, 1]} : vector<32x128xf32> to vector<1x128xf32>
    %224 = vector.extract_strided_slice %221 {offsets = [30, 0], sizes = [1, 128], strides = [1, 1]} : vector<32x128xf32> to vector<1x128xf32>
    %225 = vector.extract_strided_slice %221 {offsets = [29, 0], sizes = [1, 128], strides = [1, 1]} : vector<32x128xf32> to vector<1x128xf32>
    %226 = tpu.concatenate %222, %223, %221, %224, %225 in 0 : vector<1x128xf32>, vector<1x128xf32>, vector<32x128xf32>, vector<1x128xf32>, vector<1x128xf32> -> vector<36x128xf32>
    %cst_118 = arith.constant 0.000000e+00 : f32
    %227 = vector.broadcast %cst_118 : f32 to vector<29x128xf32>
    %228 = vector.extract_strided_slice %226 {offsets = [0, 0], sizes = [29, 128], strides = [1, 1]} : vector<36x128xf32> to vector<29x128xf32>
    %229 = arith.truncf %228 : vector<29x128xf32> to vector<29x128xbf16>
    %c0_119 = arith.constant 0 : index
    %c0_120 = arith.constant 0 : index
    %c0_121 = arith.constant 0 : index
    %230 = vector.load %arg18[%c0_119, %c0_120, %c0_121] : memref<8x128x128xbf16, #tpu.memory_space<vmem>>, vector<1x128x128xbf16>
    %231 = vector.shape_cast %230 : vector<1x128x128xbf16> to vector<128x128xbf16>
    %cst_122 = arith.constant dense<0.000000e+00> : vector<29x128xf32>
    %232 = tpu.matmul %229, %231, %cst_122 {dimension_numbers = #tpu.dot_dimension_numbers<[1], [0], [0], [1], [0, 0, 1, 1], [], []>} : vector<29x128xbf16>, vector<128x128xbf16>, vector<29x128xf32> -> vector<29x128xf32>
    %233 = arith.addf %227, %232 : vector<29x128xf32>
    %234 = vector.extract_strided_slice %226 {offsets = [1, 0], sizes = [29, 128], strides = [1, 1]} : vector<36x128xf32> to vector<29x128xf32>
    %235 = arith.truncf %234 : vector<29x128xf32> to vector<29x128xbf16>
    %c1_123 = arith.constant 1 : index
    %c0_124 = arith.constant 0 : index
    %c0_125 = arith.constant 0 : index
    %236 = vector.load %arg18[%c1_123, %c0_124, %c0_125] : memref<8x128x128xbf16, #tpu.memory_space<vmem>>, vector<1x128x128xbf16>
    %237 = vector.shape_cast %236 : vector<1x128x128xbf16> to vector<128x128xbf16>
    %cst_126 = arith.constant dense<0.000000e+00> : vector<29x128xf32>
    %238 = tpu.matmul %235, %237, %cst_126 {dimension_numbers = #tpu.dot_dimension_numbers<[1], [0], [0], [1], [0, 0, 1, 1], [], []>} : vector<29x128xbf16>, vector<128x128xbf16>, vector<29x128xf32> -> vector<29x128xf32>
    %239 = arith.addf %233, %238 : vector<29x128xf32>
    %240 = vector.extract_strided_slice %226 {offsets = [2, 0], sizes = [29, 128], strides = [1, 1]} : vector<36x128xf32> to vector<29x128xf32>
    %241 = arith.truncf %240 : vector<29x128xf32> to vector<29x128xbf16>
    %c2_127 = arith.constant 2 : index
    %c0_128 = arith.constant 0 : index
    %c0_129 = arith.constant 0 : index
    %242 = vector.load %arg18[%c2_127, %c0_128, %c0_129] : memref<8x128x128xbf16, #tpu.memory_space<vmem>>, vector<1x128x128xbf16>
    %243 = vector.shape_cast %242 : vector<1x128x128xbf16> to vector<128x128xbf16>
    %cst_130 = arith.constant dense<0.000000e+00> : vector<29x128xf32>
    %244 = tpu.matmul %241, %243, %cst_130 {dimension_numbers = #tpu.dot_dimension_numbers<[1], [0], [0], [1], [0, 0, 1, 1], [], []>} : vector<29x128xbf16>, vector<128x128xbf16>, vector<29x128xf32> -> vector<29x128xf32>
    %245 = arith.addf %239, %244 : vector<29x128xf32>
    %246 = vector.extract_strided_slice %226 {offsets = [3, 0], sizes = [29, 128], strides = [1, 1]} : vector<36x128xf32> to vector<29x128xf32>
    %247 = arith.truncf %246 : vector<29x128xf32> to vector<29x128xbf16>
    %c3_131 = arith.constant 3 : index
    %c0_132 = arith.constant 0 : index
    %c0_133 = arith.constant 0 : index
    %248 = vector.load %arg18[%c3_131, %c0_132, %c0_133] : memref<8x128x128xbf16, #tpu.memory_space<vmem>>, vector<1x128x128xbf16>
    %249 = vector.shape_cast %248 : vector<1x128x128xbf16> to vector<128x128xbf16>
    %cst_134 = arith.constant dense<0.000000e+00> : vector<29x128xf32>
    %250 = tpu.matmul %247, %249, %cst_134 {dimension_numbers = #tpu.dot_dimension_numbers<[1], [0], [0], [1], [0, 0, 1, 1], [], []>} : vector<29x128xbf16>, vector<128x128xbf16>, vector<29x128xf32> -> vector<29x128xf32>
    %251 = arith.addf %245, %250 : vector<29x128xf32>
    %252 = vector.extract_strided_slice %226 {offsets = [4, 0], sizes = [29, 128], strides = [1, 1]} : vector<36x128xf32> to vector<29x128xf32>
    %253 = arith.truncf %252 : vector<29x128xf32> to vector<29x128xbf16>
    %c4_135 = arith.constant 4 : index
    %c0_136 = arith.constant 0 : index
    %c0_137 = arith.constant 0 : index
    %254 = vector.load %arg18[%c4_135, %c0_136, %c0_137] : memref<8x128x128xbf16, #tpu.memory_space<vmem>>, vector<1x128x128xbf16>
    %255 = vector.shape_cast %254 : vector<1x128x128xbf16> to vector<128x128xbf16>
    %cst_138 = arith.constant dense<0.000000e+00> : vector<29x128xf32>
    %256 = tpu.matmul %253, %255, %cst_138 {dimension_numbers = #tpu.dot_dimension_numbers<[1], [0], [0], [1], [0, 0, 1, 1], [], []>} : vector<29x128xbf16>, vector<128x128xbf16>, vector<29x128xf32> -> vector<29x128xf32>
    %257 = arith.addf %251, %256 : vector<29x128xf32>
    %258 = vector.extract_strided_slice %226 {offsets = [5, 0], sizes = [29, 128], strides = [1, 1]} : vector<36x128xf32> to vector<29x128xf32>
    %259 = arith.truncf %258 : vector<29x128xf32> to vector<29x128xbf16>
    %c5_139 = arith.constant 5 : index
    %c0_140 = arith.constant 0 : index
    %c0_141 = arith.constant 0 : index
    %260 = vector.load %arg18[%c5_139, %c0_140, %c0_141] : memref<8x128x128xbf16, #tpu.memory_space<vmem>>, vector<1x128x128xbf16>
    %261 = vector.shape_cast %260 : vector<1x128x128xbf16> to vector<128x128xbf16>
    %cst_142 = arith.constant dense<0.000000e+00> : vector<29x128xf32>
    %262 = tpu.matmul %259, %261, %cst_142 {dimension_numbers = #tpu.dot_dimension_numbers<[1], [0], [0], [1], [0, 0, 1, 1], [], []>} : vector<29x128xbf16>, vector<128x128xbf16>, vector<29x128xf32> -> vector<29x128xf32>
    %263 = arith.addf %257, %262 : vector<29x128xf32>
    %264 = vector.extract_strided_slice %226 {offsets = [6, 0], sizes = [29, 128], strides = [1, 1]} : vector<36x128xf32> to vector<29x128xf32>
    %265 = arith.truncf %264 : vector<29x128xf32> to vector<29x128xbf16>
    %c6_143 = arith.constant 6 : index
    %c0_144 = arith.constant 0 : index
    %c0_145 = arith.constant 0 : index
    %266 = vector.load %arg18[%c6_143, %c0_144, %c0_145] : memref<8x128x128xbf16, #tpu.memory_space<vmem>>, vector<1x128x128xbf16>
    %267 = vector.shape_cast %266 : vector<1x128x128xbf16> to vector<128x128xbf16>
    %cst_146 = arith.constant dense<0.000000e+00> : vector<29x128xf32>
    %268 = tpu.matmul %265, %267, %cst_146 {dimension_numbers = #tpu.dot_dimension_numbers<[1], [0], [0], [1], [0, 0, 1, 1], [], []>} : vector<29x128xbf16>, vector<128x128xbf16>, vector<29x128xf32> -> vector<29x128xf32>
    %269 = arith.addf %263, %268 : vector<29x128xf32>
    %270 = vector.extract_strided_slice %226 {offsets = [7, 0], sizes = [29, 128], strides = [1, 1]} : vector<36x128xf32> to vector<29x128xf32>
    %271 = arith.truncf %270 : vector<29x128xf32> to vector<29x128xbf16>
    %c7 = arith.constant 7 : index
    %c0_147 = arith.constant 0 : index
    %c0_148 = arith.constant 0 : index
    %272 = vector.load %arg18[%c7, %c0_147, %c0_148] : memref<8x128x128xbf16, #tpu.memory_space<vmem>>, vector<1x128x128xbf16>
    %273 = vector.shape_cast %272 : vector<1x128x128xbf16> to vector<128x128xbf16>
    %cst_149 = arith.constant dense<0.000000e+00> : vector<29x128xf32>
    %274 = tpu.matmul %271, %273, %cst_149 {dimension_numbers = #tpu.dot_dimension_numbers<[1], [0], [0], [1], [0, 0, 1, 1], [], []>} : vector<29x128xbf16>, vector<128x128xbf16>, vector<29x128xf32> -> vector<29x128xf32>
    %275 = arith.addf %269, %274 : vector<29x128xf32>
    %276 = tpu.iota {dimensions = array<i32: 0>} : vector<8x29xi32>
    %277 = tpu.iota {dimensions = array<i32: 1>} : vector<8x29xi32>
    %c4_i32 = arith.constant 4 : i32
    %278 = vector.broadcast %c4_i32 : i32 to vector<8x29xi32>
    %279 = arith.muli %276, %278 : vector<8x29xi32>
    %280 = arith.cmpi eq, %277, %279 : vector<8x29xi32>
    %281 = arith.extui %280 : vector<8x29xi1> to vector<8x29xi32>
    %282 = arith.sitofp %281 : vector<8x29xi32> to vector<8x29xf32>
    %cst_150 = arith.constant dense<0.000000e+00> : vector<8x128xf32>
    %283 = tpu.matmul %282, %275, %cst_150 {dimension_numbers = #tpu.dot_dimension_numbers<[1], [0], [0], [1], [0, 0, 1, 1], [], []>} : vector<8x29xf32>, vector<29x128xf32>, vector<8x128xf32> -> vector<8x128xf32>
    %c0_151 = arith.constant 0 : index
    %c0_152 = arith.constant 0 : index
    %284 = vector.load %arg19[%c0_151, %c0_152] : memref<1x128xf32, #tpu.memory_space<vmem>>, vector<1x128xf32>
    %285 = vector.broadcast %284 : vector<1x128xf32> to vector<8x128xf32>
    %286 = arith.addf %283, %285 : vector<8x128xf32>
    %287 = vector.extract_strided_slice %286 {offsets = [0, 0], sizes = [8, 16], strides = [1, 1]} : vector<8x128xf32> to vector<8x16xf32>
    %c0_153 = arith.constant 0 : index
    %c0_154 = arith.constant 0 : index
    %c0_155 = arith.constant 0 : index
    %288 = vector.load %arg20[%c0_153, %c0_154, %c0_155] : memref<2x16x512xbf16, #tpu.memory_space<vmem>>, vector<1x16x512xbf16>
    %289 = vector.shape_cast %288 : vector<1x16x512xbf16> to vector<16x512xbf16>
    %c0_156 = arith.constant 0 : index
    %c0_157 = arith.constant 0 : index
    %c0_158 = arith.constant 0 : index
    %290 = vector.load %arg21[%c0_156, %c0_157, %c0_158] : memref<2x16x512xbf16, #tpu.memory_space<vmem>>, vector<1x16x512xbf16>
    %291 = vector.shape_cast %290 : vector<1x16x512xbf16> to vector<16x512xbf16>
    %c0_159 = arith.constant 0 : index
    %c0_160 = arith.constant 0 : index
    %c0_161 = arith.constant 0 : index
    %292 = vector.load %arg22[%c0_159, %c0_160, %c0_161] : memref<2x1x512xf32, #tpu.memory_space<vmem>>, vector<1x1x512xf32>
    %293 = vector.shape_cast %292 : vector<1x1x512xf32> to vector<1x512xf32>
    %294 = arith.truncf %287 : vector<8x16xf32> to vector<8x16xbf16>
    %cst_162 = arith.constant dense<0.000000e+00> : vector<8x512xf32>
    %295 = tpu.matmul %294, %289, %cst_162 {dimension_numbers = #tpu.dot_dimension_numbers<[1], [0], [0], [1], [0, 0, 1, 1], [], []>} : vector<8x16xbf16>, vector<16x512xbf16>, vector<8x512xf32> -> vector<8x512xf32>
    %296 = vector.broadcast %293 : vector<1x512xf32> to vector<8x512xf32>
    %297 = arith.addf %295, %296 : vector<8x512xf32>
    %cst_163 = arith.constant 0.000000e+00 : f32
    %298 = vector.broadcast %cst_163 : f32 to vector<1x16xf32>
    %cst_164 = arith.constant 0.000000e+00 : f32
    %299 = vector.broadcast %cst_164 : f32 to vector<1x16xf32>
    %300 = vector.extract_strided_slice %297 {offsets = [0, 0], sizes = [1, 512], strides = [1, 1]} : vector<8x512xf32> to vector<1x512xf32>
    %301 = arith.truncf %298 : vector<1x16xf32> to vector<1x16xbf16>
    %cst_165 = arith.constant dense<0.000000e+00> : vector<1x512xf32>
    %302 = tpu.matmul %301, %291, %cst_165 {dimension_numbers = #tpu.dot_dimension_numbers<[1], [0], [0], [1], [0, 0, 1, 1], [], []>} : vector<1x16xbf16>, vector<16x512xbf16>, vector<1x512xf32> -> vector<1x512xf32>
    %303 = arith.addf %300, %302 : vector<1x512xf32>
    %304 = vector.extract_strided_slice %303 {offsets = [0, 0], sizes = [1, 16], strides = [1, 1]} : vector<1x512xf32> to vector<1x16xf32>
    %305 = arith.negf %304 : vector<1x16xf32>
    %306 = math.exp %305 : vector<1x16xf32>
    %cst_166 = arith.constant 1.000000e+00 : f32
    %307 = vector.broadcast %cst_166 : f32 to vector<1x16xf32>
    %308 = arith.addf %307, %306 : vector<1x16xf32>
    %309 = arith.divf %307, %308 : vector<1x16xf32>
    %310 = vector.extract_strided_slice %303 {offsets = [0, 128], sizes = [1, 16], strides = [1, 1]} : vector<1x512xf32> to vector<1x16xf32>
    %311 = arith.negf %310 : vector<1x16xf32>
    %312 = math.exp %311 : vector<1x16xf32>
    %cst_167 = arith.constant 1.000000e+00 : f32
    %313 = vector.broadcast %cst_167 : f32 to vector<1x16xf32>
    %314 = arith.addf %313, %312 : vector<1x16xf32>
    %315 = arith.divf %313, %314 : vector<1x16xf32>
    %316 = vector.extract_strided_slice %303 {offsets = [0, 256], sizes = [1, 16], strides = [1, 1]} : vector<1x512xf32> to vector<1x16xf32>
    %317 = math.tanh %316 : vector<1x16xf32>
    %318 = vector.extract_strided_slice %303 {offsets = [0, 384], sizes = [1, 16], strides = [1, 1]} : vector<1x512xf32> to vector<1x16xf32>
    %319 = arith.negf %318 : vector<1x16xf32>
    %320 = math.exp %319 : vector<1x16xf32>
    %cst_168 = arith.constant 1.000000e+00 : f32
    %321 = vector.broadcast %cst_168 : f32 to vector<1x16xf32>
    %322 = arith.addf %321, %320 : vector<1x16xf32>
    %323 = arith.divf %321, %322 : vector<1x16xf32>
    %324 = arith.mulf %315, %299 : vector<1x16xf32>
    %325 = arith.mulf %309, %317 : vector<1x16xf32>
    %326 = arith.addf %324, %325 : vector<1x16xf32>
    %327 = math.tanh %326 : vector<1x16xf32>
    %328 = arith.mulf %323, %327 : vector<1x16xf32>
    %329 = vector.extract_strided_slice %297 {offsets = [1, 0], sizes = [1, 512], strides = [1, 1]} : vector<8x512xf32> to vector<1x512xf32>
    %330 = arith.truncf %328 : vector<1x16xf32> to vector<1x16xbf16>
    %cst_169 = arith.constant dense<0.000000e+00> : vector<1x512xf32>
    %331 = tpu.matmul %330, %291, %cst_169 {dimension_numbers = #tpu.dot_dimension_numbers<[1], [0], [0], [1], [0, 0, 1, 1], [], []>} : vector<1x16xbf16>, vector<16x512xbf16>, vector<1x512xf32> -> vector<1x512xf32>
    %332 = arith.addf %329, %331 : vector<1x512xf32>
    %333 = vector.extract_strided_slice %332 {offsets = [0, 0], sizes = [1, 16], strides = [1, 1]} : vector<1x512xf32> to vector<1x16xf32>
    %334 = arith.negf %333 : vector<1x16xf32>
    %335 = math.exp %334 : vector<1x16xf32>
    %cst_170 = arith.constant 1.000000e+00 : f32
    %336 = vector.broadcast %cst_170 : f32 to vector<1x16xf32>
    %337 = arith.addf %336, %335 : vector<1x16xf32>
    %338 = arith.divf %336, %337 : vector<1x16xf32>
    %339 = vector.extract_strided_slice %332 {offsets = [0, 128], sizes = [1, 16], strides = [1, 1]} : vector<1x512xf32> to vector<1x16xf32>
    %340 = arith.negf %339 : vector<1x16xf32>
    %341 = math.exp %340 : vector<1x16xf32>
    %cst_171 = arith.constant 1.000000e+00 : f32
    %342 = vector.broadcast %cst_171 : f32 to vector<1x16xf32>
    %343 = arith.addf %342, %341 : vector<1x16xf32>
    %344 = arith.divf %342, %343 : vector<1x16xf32>
    %345 = vector.extract_strided_slice %332 {offsets = [0, 256], sizes = [1, 16], strides = [1, 1]} : vector<1x512xf32> to vector<1x16xf32>
    %346 = math.tanh %345 : vector<1x16xf32>
    %347 = vector.extract_strided_slice %332 {offsets = [0, 384], sizes = [1, 16], strides = [1, 1]} : vector<1x512xf32> to vector<1x16xf32>
    %348 = arith.negf %347 : vector<1x16xf32>
    %349 = math.exp %348 : vector<1x16xf32>
    %cst_172 = arith.constant 1.000000e+00 : f32
    %350 = vector.broadcast %cst_172 : f32 to vector<1x16xf32>
    %351 = arith.addf %350, %349 : vector<1x16xf32>
    %352 = arith.divf %350, %351 : vector<1x16xf32>
    %353 = arith.mulf %344, %326 : vector<1x16xf32>
    %354 = arith.mulf %338, %346 : vector<1x16xf32>
    %355 = arith.addf %353, %354 : vector<1x16xf32>
    %356 = math.tanh %355 : vector<1x16xf32>
    %357 = arith.mulf %352, %356 : vector<1x16xf32>
    %358 = vector.extract_strided_slice %297 {offsets = [2, 0], sizes = [1, 512], strides = [1, 1]} : vector<8x512xf32> to vector<1x512xf32>
    %359 = arith.truncf %357 : vector<1x16xf32> to vector<1x16xbf16>
    %cst_173 = arith.constant dense<0.000000e+00> : vector<1x512xf32>
    %360 = tpu.matmul %359, %291, %cst_173 {dimension_numbers = #tpu.dot_dimension_numbers<[1], [0], [0], [1], [0, 0, 1, 1], [], []>} : vector<1x16xbf16>, vector<16x512xbf16>, vector<1x512xf32> -> vector<1x512xf32>
    %361 = arith.addf %358, %360 : vector<1x512xf32>
    %362 = vector.extract_strided_slice %361 {offsets = [0, 0], sizes = [1, 16], strides = [1, 1]} : vector<1x512xf32> to vector<1x16xf32>
    %363 = arith.negf %362 : vector<1x16xf32>
    %364 = math.exp %363 : vector<1x16xf32>
    %cst_174 = arith.constant 1.000000e+00 : f32
    %365 = vector.broadcast %cst_174 : f32 to vector<1x16xf32>
    %366 = arith.addf %365, %364 : vector<1x16xf32>
    %367 = arith.divf %365, %366 : vector<1x16xf32>
    %368 = vector.extract_strided_slice %361 {offsets = [0, 128], sizes = [1, 16], strides = [1, 1]} : vector<1x512xf32> to vector<1x16xf32>
    %369 = arith.negf %368 : vector<1x16xf32>
    %370 = math.exp %369 : vector<1x16xf32>
    %cst_175 = arith.constant 1.000000e+00 : f32
    %371 = vector.broadcast %cst_175 : f32 to vector<1x16xf32>
    %372 = arith.addf %371, %370 : vector<1x16xf32>
    %373 = arith.divf %371, %372 : vector<1x16xf32>
    %374 = vector.extract_strided_slice %361 {offsets = [0, 256], sizes = [1, 16], strides = [1, 1]} : vector<1x512xf32> to vector<1x16xf32>
    %375 = math.tanh %374 : vector<1x16xf32>
    %376 = vector.extract_strided_slice %361 {offsets = [0, 384], sizes = [1, 16], strides = [1, 1]} : vector<1x512xf32> to vector<1x16xf32>
    %377 = arith.negf %376 : vector<1x16xf32>
    %378 = math.exp %377 : vector<1x16xf32>
    %cst_176 = arith.constant 1.000000e+00 : f32
    %379 = vector.broadcast %cst_176 : f32 to vector<1x16xf32>
    %380 = arith.addf %379, %378 : vector<1x16xf32>
    %381 = arith.divf %379, %380 : vector<1x16xf32>
    %382 = arith.mulf %373, %355 : vector<1x16xf32>
    %383 = arith.mulf %367, %375 : vector<1x16xf32>
    %384 = arith.addf %382, %383 : vector<1x16xf32>
    %385 = math.tanh %384 : vector<1x16xf32>
    %386 = arith.mulf %381, %385 : vector<1x16xf32>
    %387 = vector.extract_strided_slice %297 {offsets = [3, 0], sizes = [1, 512], strides = [1, 1]} : vector<8x512xf32> to vector<1x512xf32>
    %388 = arith.truncf %386 : vector<1x16xf32> to vector<1x16xbf16>
    %cst_177 = arith.constant dense<0.000000e+00> : vector<1x512xf32>
    %389 = tpu.matmul %388, %291, %cst_177 {dimension_numbers = #tpu.dot_dimension_numbers<[1], [0], [0], [1], [0, 0, 1, 1], [], []>} : vector<1x16xbf16>, vector<16x512xbf16>, vector<1x512xf32> -> vector<1x512xf32>
    %390 = arith.addf %387, %389 : vector<1x512xf32>
    %391 = vector.extract_strided_slice %390 {offsets = [0, 0], sizes = [1, 16], strides = [1, 1]} : vector<1x512xf32> to vector<1x16xf32>
    %392 = arith.negf %391 : vector<1x16xf32>
    %393 = math.exp %392 : vector<1x16xf32>
    %cst_178 = arith.constant 1.000000e+00 : f32
    %394 = vector.broadcast %cst_178 : f32 to vector<1x16xf32>
    %395 = arith.addf %394, %393 : vector<1x16xf32>
    %396 = arith.divf %394, %395 : vector<1x16xf32>
    %397 = vector.extract_strided_slice %390 {offsets = [0, 128], sizes = [1, 16], strides = [1, 1]} : vector<1x512xf32> to vector<1x16xf32>
    %398 = arith.negf %397 : vector<1x16xf32>
    %399 = math.exp %398 : vector<1x16xf32>
    %cst_179 = arith.constant 1.000000e+00 : f32
    %400 = vector.broadcast %cst_179 : f32 to vector<1x16xf32>
    %401 = arith.addf %400, %399 : vector<1x16xf32>
    %402 = arith.divf %400, %401 : vector<1x16xf32>
    %403 = vector.extract_strided_slice %390 {offsets = [0, 256], sizes = [1, 16], strides = [1, 1]} : vector<1x512xf32> to vector<1x16xf32>
    %404 = math.tanh %403 : vector<1x16xf32>
    %405 = vector.extract_strided_slice %390 {offsets = [0, 384], sizes = [1, 16], strides = [1, 1]} : vector<1x512xf32> to vector<1x16xf32>
    %406 = arith.negf %405 : vector<1x16xf32>
    %407 = math.exp %406 : vector<1x16xf32>
    %cst_180 = arith.constant 1.000000e+00 : f32
    %408 = vector.broadcast %cst_180 : f32 to vector<1x16xf32>
    %409 = arith.addf %408, %407 : vector<1x16xf32>
    %410 = arith.divf %408, %409 : vector<1x16xf32>
    %411 = arith.mulf %402, %384 : vector<1x16xf32>
    %412 = arith.mulf %396, %404 : vector<1x16xf32>
    %413 = arith.addf %411, %412 : vector<1x16xf32>
    %414 = math.tanh %413 : vector<1x16xf32>
    %415 = arith.mulf %410, %414 : vector<1x16xf32>
    %416 = vector.extract_strided_slice %297 {offsets = [4, 0], sizes = [1, 512], strides = [1, 1]} : vector<8x512xf32> to vector<1x512xf32>
    %417 = arith.truncf %415 : vector<1x16xf32> to vector<1x16xbf16>
    %cst_181 = arith.constant dense<0.000000e+00> : vector<1x512xf32>
    %418 = tpu.matmul %417, %291, %cst_181 {dimension_numbers = #tpu.dot_dimension_numbers<[1], [0], [0], [1], [0, 0, 1, 1], [], []>} : vector<1x16xbf16>, vector<16x512xbf16>, vector<1x512xf32> -> vector<1x512xf32>
    %419 = arith.addf %416, %418 : vector<1x512xf32>
    %420 = vector.extract_strided_slice %419 {offsets = [0, 0], sizes = [1, 16], strides = [1, 1]} : vector<1x512xf32> to vector<1x16xf32>
    %421 = arith.negf %420 : vector<1x16xf32>
    %422 = math.exp %421 : vector<1x16xf32>
    %cst_182 = arith.constant 1.000000e+00 : f32
    %423 = vector.broadcast %cst_182 : f32 to vector<1x16xf32>
    %424 = arith.addf %423, %422 : vector<1x16xf32>
    %425 = arith.divf %423, %424 : vector<1x16xf32>
    %426 = vector.extract_strided_slice %419 {offsets = [0, 128], sizes = [1, 16], strides = [1, 1]} : vector<1x512xf32> to vector<1x16xf32>
    %427 = arith.negf %426 : vector<1x16xf32>
    %428 = math.exp %427 : vector<1x16xf32>
    %cst_183 = arith.constant 1.000000e+00 : f32
    %429 = vector.broadcast %cst_183 : f32 to vector<1x16xf32>
    %430 = arith.addf %429, %428 : vector<1x16xf32>
    %431 = arith.divf %429, %430 : vector<1x16xf32>
    %432 = vector.extract_strided_slice %419 {offsets = [0, 256], sizes = [1, 16], strides = [1, 1]} : vector<1x512xf32> to vector<1x16xf32>
    %433 = math.tanh %432 : vector<1x16xf32>
    %434 = vector.extract_strided_slice %419 {offsets = [0, 384], sizes = [1, 16], strides = [1, 1]} : vector<1x512xf32> to vector<1x16xf32>
    %435 = arith.negf %434 : vector<1x16xf32>
    %436 = math.exp %435 : vector<1x16xf32>
    %cst_184 = arith.constant 1.000000e+00 : f32
    %437 = vector.broadcast %cst_184 : f32 to vector<1x16xf32>
    %438 = arith.addf %437, %436 : vector<1x16xf32>
    %439 = arith.divf %437, %438 : vector<1x16xf32>
    %440 = arith.mulf %431, %413 : vector<1x16xf32>
    %441 = arith.mulf %425, %433 : vector<1x16xf32>
    %442 = arith.addf %440, %441 : vector<1x16xf32>
    %443 = math.tanh %442 : vector<1x16xf32>
    %444 = arith.mulf %439, %443 : vector<1x16xf32>
    %445 = vector.extract_strided_slice %297 {offsets = [5, 0], sizes = [1, 512], strides = [1, 1]} : vector<8x512xf32> to vector<1x512xf32>
    %446 = arith.truncf %444 : vector<1x16xf32> to vector<1x16xbf16>
    %cst_185 = arith.constant dense<0.000000e+00> : vector<1x512xf32>
    %447 = tpu.matmul %446, %291, %cst_185 {dimension_numbers = #tpu.dot_dimension_numbers<[1], [0], [0], [1], [0, 0, 1, 1], [], []>} : vector<1x16xbf16>, vector<16x512xbf16>, vector<1x512xf32> -> vector<1x512xf32>
    %448 = arith.addf %445, %447 : vector<1x512xf32>
    %449 = vector.extract_strided_slice %448 {offsets = [0, 0], sizes = [1, 16], strides = [1, 1]} : vector<1x512xf32> to vector<1x16xf32>
    %450 = arith.negf %449 : vector<1x16xf32>
    %451 = math.exp %450 : vector<1x16xf32>
    %cst_186 = arith.constant 1.000000e+00 : f32
    %452 = vector.broadcast %cst_186 : f32 to vector<1x16xf32>
    %453 = arith.addf %452, %451 : vector<1x16xf32>
    %454 = arith.divf %452, %453 : vector<1x16xf32>
    %455 = vector.extract_strided_slice %448 {offsets = [0, 128], sizes = [1, 16], strides = [1, 1]} : vector<1x512xf32> to vector<1x16xf32>
    %456 = arith.negf %455 : vector<1x16xf32>
    %457 = math.exp %456 : vector<1x16xf32>
    %cst_187 = arith.constant 1.000000e+00 : f32
    %458 = vector.broadcast %cst_187 : f32 to vector<1x16xf32>
    %459 = arith.addf %458, %457 : vector<1x16xf32>
    %460 = arith.divf %458, %459 : vector<1x16xf32>
    %461 = vector.extract_strided_slice %448 {offsets = [0, 256], sizes = [1, 16], strides = [1, 1]} : vector<1x512xf32> to vector<1x16xf32>
    %462 = math.tanh %461 : vector<1x16xf32>
    %463 = vector.extract_strided_slice %448 {offsets = [0, 384], sizes = [1, 16], strides = [1, 1]} : vector<1x512xf32> to vector<1x16xf32>
    %464 = arith.negf %463 : vector<1x16xf32>
    %465 = math.exp %464 : vector<1x16xf32>
    %cst_188 = arith.constant 1.000000e+00 : f32
    %466 = vector.broadcast %cst_188 : f32 to vector<1x16xf32>
    %467 = arith.addf %466, %465 : vector<1x16xf32>
    %468 = arith.divf %466, %467 : vector<1x16xf32>
    %469 = arith.mulf %460, %442 : vector<1x16xf32>
    %470 = arith.mulf %454, %462 : vector<1x16xf32>
    %471 = arith.addf %469, %470 : vector<1x16xf32>
    %472 = math.tanh %471 : vector<1x16xf32>
    %473 = arith.mulf %468, %472 : vector<1x16xf32>
    %474 = vector.extract_strided_slice %297 {offsets = [6, 0], sizes = [1, 512], strides = [1, 1]} : vector<8x512xf32> to vector<1x512xf32>
    %475 = arith.truncf %473 : vector<1x16xf32> to vector<1x16xbf16>
    %cst_189 = arith.constant dense<0.000000e+00> : vector<1x512xf32>
    %476 = tpu.matmul %475, %291, %cst_189 {dimension_numbers = #tpu.dot_dimension_numbers<[1], [0], [0], [1], [0, 0, 1, 1], [], []>} : vector<1x16xbf16>, vector<16x512xbf16>, vector<1x512xf32> -> vector<1x512xf32>
    %477 = arith.addf %474, %476 : vector<1x512xf32>
    %478 = vector.extract_strided_slice %477 {offsets = [0, 0], sizes = [1, 16], strides = [1, 1]} : vector<1x512xf32> to vector<1x16xf32>
    %479 = arith.negf %478 : vector<1x16xf32>
    %480 = math.exp %479 : vector<1x16xf32>
    %cst_190 = arith.constant 1.000000e+00 : f32
    %481 = vector.broadcast %cst_190 : f32 to vector<1x16xf32>
    %482 = arith.addf %481, %480 : vector<1x16xf32>
    %483 = arith.divf %481, %482 : vector<1x16xf32>
    %484 = vector.extract_strided_slice %477 {offsets = [0, 128], sizes = [1, 16], strides = [1, 1]} : vector<1x512xf32> to vector<1x16xf32>
    %485 = arith.negf %484 : vector<1x16xf32>
    %486 = math.exp %485 : vector<1x16xf32>
    %cst_191 = arith.constant 1.000000e+00 : f32
    %487 = vector.broadcast %cst_191 : f32 to vector<1x16xf32>
    %488 = arith.addf %487, %486 : vector<1x16xf32>
    %489 = arith.divf %487, %488 : vector<1x16xf32>
    %490 = vector.extract_strided_slice %477 {offsets = [0, 256], sizes = [1, 16], strides = [1, 1]} : vector<1x512xf32> to vector<1x16xf32>
    %491 = math.tanh %490 : vector<1x16xf32>
    %492 = vector.extract_strided_slice %477 {offsets = [0, 384], sizes = [1, 16], strides = [1, 1]} : vector<1x512xf32> to vector<1x16xf32>
    %493 = arith.negf %492 : vector<1x16xf32>
    %494 = math.exp %493 : vector<1x16xf32>
    %cst_192 = arith.constant 1.000000e+00 : f32
    %495 = vector.broadcast %cst_192 : f32 to vector<1x16xf32>
    %496 = arith.addf %495, %494 : vector<1x16xf32>
    %497 = arith.divf %495, %496 : vector<1x16xf32>
    %498 = arith.mulf %489, %471 : vector<1x16xf32>
    %499 = arith.mulf %483, %491 : vector<1x16xf32>
    %500 = arith.addf %498, %499 : vector<1x16xf32>
    %501 = math.tanh %500 : vector<1x16xf32>
    %502 = arith.mulf %497, %501 : vector<1x16xf32>
    %503 = vector.extract_strided_slice %297 {offsets = [7, 0], sizes = [1, 512], strides = [1, 1]} : vector<8x512xf32> to vector<1x512xf32>
    %504 = arith.truncf %502 : vector<1x16xf32> to vector<1x16xbf16>
    %cst_193 = arith.constant dense<0.000000e+00> : vector<1x512xf32>
    %505 = tpu.matmul %504, %291, %cst_193 {dimension_numbers = #tpu.dot_dimension_numbers<[1], [0], [0], [1], [0, 0, 1, 1], [], []>} : vector<1x16xbf16>, vector<16x512xbf16>, vector<1x512xf32> -> vector<1x512xf32>
    %506 = arith.addf %503, %505 : vector<1x512xf32>
    %507 = vector.extract_strided_slice %506 {offsets = [0, 0], sizes = [1, 16], strides = [1, 1]} : vector<1x512xf32> to vector<1x16xf32>
    %508 = arith.negf %507 : vector<1x16xf32>
    %509 = math.exp %508 : vector<1x16xf32>
    %cst_194 = arith.constant 1.000000e+00 : f32
    %510 = vector.broadcast %cst_194 : f32 to vector<1x16xf32>
    %511 = arith.addf %510, %509 : vector<1x16xf32>
    %512 = arith.divf %510, %511 : vector<1x16xf32>
    %513 = vector.extract_strided_slice %506 {offsets = [0, 128], sizes = [1, 16], strides = [1, 1]} : vector<1x512xf32> to vector<1x16xf32>
    %514 = arith.negf %513 : vector<1x16xf32>
    %515 = math.exp %514 : vector<1x16xf32>
    %cst_195 = arith.constant 1.000000e+00 : f32
    %516 = vector.broadcast %cst_195 : f32 to vector<1x16xf32>
    %517 = arith.addf %516, %515 : vector<1x16xf32>
    %518 = arith.divf %516, %517 : vector<1x16xf32>
    %519 = vector.extract_strided_slice %506 {offsets = [0, 256], sizes = [1, 16], strides = [1, 1]} : vector<1x512xf32> to vector<1x16xf32>
    %520 = math.tanh %519 : vector<1x16xf32>
    %521 = vector.extract_strided_slice %506 {offsets = [0, 384], sizes = [1, 16], strides = [1, 1]} : vector<1x512xf32> to vector<1x16xf32>
    %522 = arith.negf %521 : vector<1x16xf32>
    %523 = math.exp %522 : vector<1x16xf32>
    %cst_196 = arith.constant 1.000000e+00 : f32
    %524 = vector.broadcast %cst_196 : f32 to vector<1x16xf32>
    %525 = arith.addf %524, %523 : vector<1x16xf32>
    %526 = arith.divf %524, %525 : vector<1x16xf32>
    %527 = arith.mulf %518, %500 : vector<1x16xf32>
    %528 = arith.mulf %512, %520 : vector<1x16xf32>
    %529 = arith.addf %527, %528 : vector<1x16xf32>
    %530 = math.tanh %529 : vector<1x16xf32>
    %531 = arith.mulf %526, %530 : vector<1x16xf32>
    %532 = tpu.concatenate %328, %357, %386, %415, %444, %473, %502, %531 in 0 : vector<1x16xf32>, vector<1x16xf32>, vector<1x16xf32>, vector<1x16xf32>, vector<1x16xf32>, vector<1x16xf32>, vector<1x16xf32>, vector<1x16xf32> -> vector<8x16xf32>
    %c1_197 = arith.constant 1 : index
    %c0_198 = arith.constant 0 : index
    %c0_199 = arith.constant 0 : index
    %533 = vector.load %arg20[%c1_197, %c0_198, %c0_199] : memref<2x16x512xbf16, #tpu.memory_space<vmem>>, vector<1x16x512xbf16>
    %534 = vector.shape_cast %533 : vector<1x16x512xbf16> to vector<16x512xbf16>
    %c1_200 = arith.constant 1 : index
    %c0_201 = arith.constant 0 : index
    %c0_202 = arith.constant 0 : index
    %535 = vector.load %arg21[%c1_200, %c0_201, %c0_202] : memref<2x16x512xbf16, #tpu.memory_space<vmem>>, vector<1x16x512xbf16>
    %536 = vector.shape_cast %535 : vector<1x16x512xbf16> to vector<16x512xbf16>
    %c1_203 = arith.constant 1 : index
    %c0_204 = arith.constant 0 : index
    %c0_205 = arith.constant 0 : index
    %537 = vector.load %arg22[%c1_203, %c0_204, %c0_205] : memref<2x1x512xf32, #tpu.memory_space<vmem>>, vector<1x1x512xf32>
    %538 = vector.shape_cast %537 : vector<1x1x512xf32> to vector<1x512xf32>
    %539 = arith.truncf %532 : vector<8x16xf32> to vector<8x16xbf16>
    %cst_206 = arith.constant dense<0.000000e+00> : vector<8x512xf32>
    %540 = tpu.matmul %539, %534, %cst_206 {dimension_numbers = #tpu.dot_dimension_numbers<[1], [0], [0], [1], [0, 0, 1, 1], [], []>} : vector<8x16xbf16>, vector<16x512xbf16>, vector<8x512xf32> -> vector<8x512xf32>
    %541 = vector.broadcast %538 : vector<1x512xf32> to vector<8x512xf32>
    %542 = arith.addf %540, %541 : vector<8x512xf32>
    %cst_207 = arith.constant 0.000000e+00 : f32
    %543 = vector.broadcast %cst_207 : f32 to vector<1x16xf32>
    %cst_208 = arith.constant 0.000000e+00 : f32
    %544 = vector.broadcast %cst_208 : f32 to vector<1x16xf32>
    %545 = vector.extract_strided_slice %542 {offsets = [0, 0], sizes = [1, 512], strides = [1, 1]} : vector<8x512xf32> to vector<1x512xf32>
    %546 = arith.truncf %543 : vector<1x16xf32> to vector<1x16xbf16>
    %cst_209 = arith.constant dense<0.000000e+00> : vector<1x512xf32>
    %547 = tpu.matmul %546, %536, %cst_209 {dimension_numbers = #tpu.dot_dimension_numbers<[1], [0], [0], [1], [0, 0, 1, 1], [], []>} : vector<1x16xbf16>, vector<16x512xbf16>, vector<1x512xf32> -> vector<1x512xf32>
    %548 = arith.addf %545, %547 : vector<1x512xf32>
    %549 = vector.extract_strided_slice %548 {offsets = [0, 0], sizes = [1, 16], strides = [1, 1]} : vector<1x512xf32> to vector<1x16xf32>
    %550 = arith.negf %549 : vector<1x16xf32>
    %551 = math.exp %550 : vector<1x16xf32>
    %cst_210 = arith.constant 1.000000e+00 : f32
    %552 = vector.broadcast %cst_210 : f32 to vector<1x16xf32>
    %553 = arith.addf %552, %551 : vector<1x16xf32>
    %554 = arith.divf %552, %553 : vector<1x16xf32>
    %555 = vector.extract_strided_slice %548 {offsets = [0, 128], sizes = [1, 16], strides = [1, 1]} : vector<1x512xf32> to vector<1x16xf32>
    %556 = arith.negf %555 : vector<1x16xf32>
    %557 = math.exp %556 : vector<1x16xf32>
    %cst_211 = arith.constant 1.000000e+00 : f32
    %558 = vector.broadcast %cst_211 : f32 to vector<1x16xf32>
    %559 = arith.addf %558, %557 : vector<1x16xf32>
    %560 = arith.divf %558, %559 : vector<1x16xf32>
    %561 = vector.extract_strided_slice %548 {offsets = [0, 256], sizes = [1, 16], strides = [1, 1]} : vector<1x512xf32> to vector<1x16xf32>
    %562 = math.tanh %561 : vector<1x16xf32>
    %563 = vector.extract_strided_slice %548 {offsets = [0, 384], sizes = [1, 16], strides = [1, 1]} : vector<1x512xf32> to vector<1x16xf32>
    %564 = arith.negf %563 : vector<1x16xf32>
    %565 = math.exp %564 : vector<1x16xf32>
    %cst_212 = arith.constant 1.000000e+00 : f32
    %566 = vector.broadcast %cst_212 : f32 to vector<1x16xf32>
    %567 = arith.addf %566, %565 : vector<1x16xf32>
    %568 = arith.divf %566, %567 : vector<1x16xf32>
    %569 = arith.mulf %560, %544 : vector<1x16xf32>
    %570 = arith.mulf %554, %562 : vector<1x16xf32>
    %571 = arith.addf %569, %570 : vector<1x16xf32>
    %572 = math.tanh %571 : vector<1x16xf32>
    %573 = arith.mulf %568, %572 : vector<1x16xf32>
    %574 = vector.extract_strided_slice %542 {offsets = [1, 0], sizes = [1, 512], strides = [1, 1]} : vector<8x512xf32> to vector<1x512xf32>
    %575 = arith.truncf %573 : vector<1x16xf32> to vector<1x16xbf16>
    %cst_213 = arith.constant dense<0.000000e+00> : vector<1x512xf32>
    %576 = tpu.matmul %575, %536, %cst_213 {dimension_numbers = #tpu.dot_dimension_numbers<[1], [0], [0], [1], [0, 0, 1, 1], [], []>} : vector<1x16xbf16>, vector<16x512xbf16>, vector<1x512xf32> -> vector<1x512xf32>
    %577 = arith.addf %574, %576 : vector<1x512xf32>
    %578 = vector.extract_strided_slice %577 {offsets = [0, 0], sizes = [1, 16], strides = [1, 1]} : vector<1x512xf32> to vector<1x16xf32>
    %579 = arith.negf %578 : vector<1x16xf32>
    %580 = math.exp %579 : vector<1x16xf32>
    %cst_214 = arith.constant 1.000000e+00 : f32
    %581 = vector.broadcast %cst_214 : f32 to vector<1x16xf32>
    %582 = arith.addf %581, %580 : vector<1x16xf32>
    %583 = arith.divf %581, %582 : vector<1x16xf32>
    %584 = vector.extract_strided_slice %577 {offsets = [0, 128], sizes = [1, 16], strides = [1, 1]} : vector<1x512xf32> to vector<1x16xf32>
    %585 = arith.negf %584 : vector<1x16xf32>
    %586 = math.exp %585 : vector<1x16xf32>
    %cst_215 = arith.constant 1.000000e+00 : f32
    %587 = vector.broadcast %cst_215 : f32 to vector<1x16xf32>
    %588 = arith.addf %587, %586 : vector<1x16xf32>
    %589 = arith.divf %587, %588 : vector<1x16xf32>
    %590 = vector.extract_strided_slice %577 {offsets = [0, 256], sizes = [1, 16], strides = [1, 1]} : vector<1x512xf32> to vector<1x16xf32>
    %591 = math.tanh %590 : vector<1x16xf32>
    %592 = vector.extract_strided_slice %577 {offsets = [0, 384], sizes = [1, 16], strides = [1, 1]} : vector<1x512xf32> to vector<1x16xf32>
    %593 = arith.negf %592 : vector<1x16xf32>
    %594 = math.exp %593 : vector<1x16xf32>
    %cst_216 = arith.constant 1.000000e+00 : f32
    %595 = vector.broadcast %cst_216 : f32 to vector<1x16xf32>
    %596 = arith.addf %595, %594 : vector<1x16xf32>
    %597 = arith.divf %595, %596 : vector<1x16xf32>
    %598 = arith.mulf %589, %571 : vector<1x16xf32>
    %599 = arith.mulf %583, %591 : vector<1x16xf32>
    %600 = arith.addf %598, %599 : vector<1x16xf32>
    %601 = math.tanh %600 : vector<1x16xf32>
    %602 = arith.mulf %597, %601 : vector<1x16xf32>
    %603 = vector.extract_strided_slice %542 {offsets = [2, 0], sizes = [1, 512], strides = [1, 1]} : vector<8x512xf32> to vector<1x512xf32>
    %604 = arith.truncf %602 : vector<1x16xf32> to vector<1x16xbf16>
    %cst_217 = arith.constant dense<0.000000e+00> : vector<1x512xf32>
    %605 = tpu.matmul %604, %536, %cst_217 {dimension_numbers = #tpu.dot_dimension_numbers<[1], [0], [0], [1], [0, 0, 1, 1], [], []>} : vector<1x16xbf16>, vector<16x512xbf16>, vector<1x512xf32> -> vector<1x512xf32>
    %606 = arith.addf %603, %605 : vector<1x512xf32>
    %607 = vector.extract_strided_slice %606 {offsets = [0, 0], sizes = [1, 16], strides = [1, 1]} : vector<1x512xf32> to vector<1x16xf32>
    %608 = arith.negf %607 : vector<1x16xf32>
    %609 = math.exp %608 : vector<1x16xf32>
    %cst_218 = arith.constant 1.000000e+00 : f32
    %610 = vector.broadcast %cst_218 : f32 to vector<1x16xf32>
    %611 = arith.addf %610, %609 : vector<1x16xf32>
    %612 = arith.divf %610, %611 : vector<1x16xf32>
    %613 = vector.extract_strided_slice %606 {offsets = [0, 128], sizes = [1, 16], strides = [1, 1]} : vector<1x512xf32> to vector<1x16xf32>
    %614 = arith.negf %613 : vector<1x16xf32>
    %615 = math.exp %614 : vector<1x16xf32>
    %cst_219 = arith.constant 1.000000e+00 : f32
    %616 = vector.broadcast %cst_219 : f32 to vector<1x16xf32>
    %617 = arith.addf %616, %615 : vector<1x16xf32>
    %618 = arith.divf %616, %617 : vector<1x16xf32>
    %619 = vector.extract_strided_slice %606 {offsets = [0, 256], sizes = [1, 16], strides = [1, 1]} : vector<1x512xf32> to vector<1x16xf32>
    %620 = math.tanh %619 : vector<1x16xf32>
    %621 = vector.extract_strided_slice %606 {offsets = [0, 384], sizes = [1, 16], strides = [1, 1]} : vector<1x512xf32> to vector<1x16xf32>
    %622 = arith.negf %621 : vector<1x16xf32>
    %623 = math.exp %622 : vector<1x16xf32>
    %cst_220 = arith.constant 1.000000e+00 : f32
    %624 = vector.broadcast %cst_220 : f32 to vector<1x16xf32>
    %625 = arith.addf %624, %623 : vector<1x16xf32>
    %626 = arith.divf %624, %625 : vector<1x16xf32>
    %627 = arith.mulf %618, %600 : vector<1x16xf32>
    %628 = arith.mulf %612, %620 : vector<1x16xf32>
    %629 = arith.addf %627, %628 : vector<1x16xf32>
    %630 = math.tanh %629 : vector<1x16xf32>
    %631 = arith.mulf %626, %630 : vector<1x16xf32>
    %632 = vector.extract_strided_slice %542 {offsets = [3, 0], sizes = [1, 512], strides = [1, 1]} : vector<8x512xf32> to vector<1x512xf32>
    %633 = arith.truncf %631 : vector<1x16xf32> to vector<1x16xbf16>
    %cst_221 = arith.constant dense<0.000000e+00> : vector<1x512xf32>
    %634 = tpu.matmul %633, %536, %cst_221 {dimension_numbers = #tpu.dot_dimension_numbers<[1], [0], [0], [1], [0, 0, 1, 1], [], []>} : vector<1x16xbf16>, vector<16x512xbf16>, vector<1x512xf32> -> vector<1x512xf32>
    %635 = arith.addf %632, %634 : vector<1x512xf32>
    %636 = vector.extract_strided_slice %635 {offsets = [0, 0], sizes = [1, 16], strides = [1, 1]} : vector<1x512xf32> to vector<1x16xf32>
    %637 = arith.negf %636 : vector<1x16xf32>
    %638 = math.exp %637 : vector<1x16xf32>
    %cst_222 = arith.constant 1.000000e+00 : f32
    %639 = vector.broadcast %cst_222 : f32 to vector<1x16xf32>
    %640 = arith.addf %639, %638 : vector<1x16xf32>
    %641 = arith.divf %639, %640 : vector<1x16xf32>
    %642 = vector.extract_strided_slice %635 {offsets = [0, 128], sizes = [1, 16], strides = [1, 1]} : vector<1x512xf32> to vector<1x16xf32>
    %643 = arith.negf %642 : vector<1x16xf32>
    %644 = math.exp %643 : vector<1x16xf32>
    %cst_223 = arith.constant 1.000000e+00 : f32
    %645 = vector.broadcast %cst_223 : f32 to vector<1x16xf32>
    %646 = arith.addf %645, %644 : vector<1x16xf32>
    %647 = arith.divf %645, %646 : vector<1x16xf32>
    %648 = vector.extract_strided_slice %635 {offsets = [0, 256], sizes = [1, 16], strides = [1, 1]} : vector<1x512xf32> to vector<1x16xf32>
    %649 = math.tanh %648 : vector<1x16xf32>
    %650 = vector.extract_strided_slice %635 {offsets = [0, 384], sizes = [1, 16], strides = [1, 1]} : vector<1x512xf32> to vector<1x16xf32>
    %651 = arith.negf %650 : vector<1x16xf32>
    %652 = math.exp %651 : vector<1x16xf32>
    %cst_224 = arith.constant 1.000000e+00 : f32
    %653 = vector.broadcast %cst_224 : f32 to vector<1x16xf32>
    %654 = arith.addf %653, %652 : vector<1x16xf32>
    %655 = arith.divf %653, %654 : vector<1x16xf32>
    %656 = arith.mulf %647, %629 : vector<1x16xf32>
    %657 = arith.mulf %641, %649 : vector<1x16xf32>
    %658 = arith.addf %656, %657 : vector<1x16xf32>
    %659 = math.tanh %658 : vector<1x16xf32>
    %660 = arith.mulf %655, %659 : vector<1x16xf32>
    %661 = vector.extract_strided_slice %542 {offsets = [4, 0], sizes = [1, 512], strides = [1, 1]} : vector<8x512xf32> to vector<1x512xf32>
    %662 = arith.truncf %660 : vector<1x16xf32> to vector<1x16xbf16>
    %cst_225 = arith.constant dense<0.000000e+00> : vector<1x512xf32>
    %663 = tpu.matmul %662, %536, %cst_225 {dimension_numbers = #tpu.dot_dimension_numbers<[1], [0], [0], [1], [0, 0, 1, 1], [], []>} : vector<1x16xbf16>, vector<16x512xbf16>, vector<1x512xf32> -> vector<1x512xf32>
    %664 = arith.addf %661, %663 : vector<1x512xf32>
    %665 = vector.extract_strided_slice %664 {offsets = [0, 0], sizes = [1, 16], strides = [1, 1]} : vector<1x512xf32> to vector<1x16xf32>
    %666 = arith.negf %665 : vector<1x16xf32>
    %667 = math.exp %666 : vector<1x16xf32>
    %cst_226 = arith.constant 1.000000e+00 : f32
    %668 = vector.broadcast %cst_226 : f32 to vector<1x16xf32>
    %669 = arith.addf %668, %667 : vector<1x16xf32>
    %670 = arith.divf %668, %669 : vector<1x16xf32>
    %671 = vector.extract_strided_slice %664 {offsets = [0, 128], sizes = [1, 16], strides = [1, 1]} : vector<1x512xf32> to vector<1x16xf32>
    %672 = arith.negf %671 : vector<1x16xf32>
    %673 = math.exp %672 : vector<1x16xf32>
    %cst_227 = arith.constant 1.000000e+00 : f32
    %674 = vector.broadcast %cst_227 : f32 to vector<1x16xf32>
    %675 = arith.addf %674, %673 : vector<1x16xf32>
    %676 = arith.divf %674, %675 : vector<1x16xf32>
    %677 = vector.extract_strided_slice %664 {offsets = [0, 256], sizes = [1, 16], strides = [1, 1]} : vector<1x512xf32> to vector<1x16xf32>
    %678 = math.tanh %677 : vector<1x16xf32>
    %679 = vector.extract_strided_slice %664 {offsets = [0, 384], sizes = [1, 16], strides = [1, 1]} : vector<1x512xf32> to vector<1x16xf32>
    %680 = arith.negf %679 : vector<1x16xf32>
    %681 = math.exp %680 : vector<1x16xf32>
    %cst_228 = arith.constant 1.000000e+00 : f32
    %682 = vector.broadcast %cst_228 : f32 to vector<1x16xf32>
    %683 = arith.addf %682, %681 : vector<1x16xf32>
    %684 = arith.divf %682, %683 : vector<1x16xf32>
    %685 = arith.mulf %676, %658 : vector<1x16xf32>
    %686 = arith.mulf %670, %678 : vector<1x16xf32>
    %687 = arith.addf %685, %686 : vector<1x16xf32>
    %688 = math.tanh %687 : vector<1x16xf32>
    %689 = arith.mulf %684, %688 : vector<1x16xf32>
    %690 = vector.extract_strided_slice %542 {offsets = [5, 0], sizes = [1, 512], strides = [1, 1]} : vector<8x512xf32> to vector<1x512xf32>
    %691 = arith.truncf %689 : vector<1x16xf32> to vector<1x16xbf16>
    %cst_229 = arith.constant dense<0.000000e+00> : vector<1x512xf32>
    %692 = tpu.matmul %691, %536, %cst_229 {dimension_numbers = #tpu.dot_dimension_numbers<[1], [0], [0], [1], [0, 0, 1, 1], [], []>} : vector<1x16xbf16>, vector<16x512xbf16>, vector<1x512xf32> -> vector<1x512xf32>
    %693 = arith.addf %690, %692 : vector<1x512xf32>
    %694 = vector.extract_strided_slice %693 {offsets = [0, 0], sizes = [1, 16], strides = [1, 1]} : vector<1x512xf32> to vector<1x16xf32>
    %695 = arith.negf %694 : vector<1x16xf32>
    %696 = math.exp %695 : vector<1x16xf32>
    %cst_230 = arith.constant 1.000000e+00 : f32
    %697 = vector.broadcast %cst_230 : f32 to vector<1x16xf32>
    %698 = arith.addf %697, %696 : vector<1x16xf32>
    %699 = arith.divf %697, %698 : vector<1x16xf32>
    %700 = vector.extract_strided_slice %693 {offsets = [0, 128], sizes = [1, 16], strides = [1, 1]} : vector<1x512xf32> to vector<1x16xf32>
    %701 = arith.negf %700 : vector<1x16xf32>
    %702 = math.exp %701 : vector<1x16xf32>
    %cst_231 = arith.constant 1.000000e+00 : f32
    %703 = vector.broadcast %cst_231 : f32 to vector<1x16xf32>
    %704 = arith.addf %703, %702 : vector<1x16xf32>
    %705 = arith.divf %703, %704 : vector<1x16xf32>
    %706 = vector.extract_strided_slice %693 {offsets = [0, 256], sizes = [1, 16], strides = [1, 1]} : vector<1x512xf32> to vector<1x16xf32>
    %707 = math.tanh %706 : vector<1x16xf32>
    %708 = vector.extract_strided_slice %693 {offsets = [0, 384], sizes = [1, 16], strides = [1, 1]} : vector<1x512xf32> to vector<1x16xf32>
    %709 = arith.negf %708 : vector<1x16xf32>
    %710 = math.exp %709 : vector<1x16xf32>
    %cst_232 = arith.constant 1.000000e+00 : f32
    %711 = vector.broadcast %cst_232 : f32 to vector<1x16xf32>
    %712 = arith.addf %711, %710 : vector<1x16xf32>
    %713 = arith.divf %711, %712 : vector<1x16xf32>
    %714 = arith.mulf %705, %687 : vector<1x16xf32>
    %715 = arith.mulf %699, %707 : vector<1x16xf32>
    %716 = arith.addf %714, %715 : vector<1x16xf32>
    %717 = math.tanh %716 : vector<1x16xf32>
    %718 = arith.mulf %713, %717 : vector<1x16xf32>
    %719 = vector.extract_strided_slice %542 {offsets = [6, 0], sizes = [1, 512], strides = [1, 1]} : vector<8x512xf32> to vector<1x512xf32>
    %720 = arith.truncf %718 : vector<1x16xf32> to vector<1x16xbf16>
    %cst_233 = arith.constant dense<0.000000e+00> : vector<1x512xf32>
    %721 = tpu.matmul %720, %536, %cst_233 {dimension_numbers = #tpu.dot_dimension_numbers<[1], [0], [0], [1], [0, 0, 1, 1], [], []>} : vector<1x16xbf16>, vector<16x512xbf16>, vector<1x512xf32> -> vector<1x512xf32>
    %722 = arith.addf %719, %721 : vector<1x512xf32>
    %723 = vector.extract_strided_slice %722 {offsets = [0, 0], sizes = [1, 16], strides = [1, 1]} : vector<1x512xf32> to vector<1x16xf32>
    %724 = arith.negf %723 : vector<1x16xf32>
    %725 = math.exp %724 : vector<1x16xf32>
    %cst_234 = arith.constant 1.000000e+00 : f32
    %726 = vector.broadcast %cst_234 : f32 to vector<1x16xf32>
    %727 = arith.addf %726, %725 : vector<1x16xf32>
    %728 = arith.divf %726, %727 : vector<1x16xf32>
    %729 = vector.extract_strided_slice %722 {offsets = [0, 128], sizes = [1, 16], strides = [1, 1]} : vector<1x512xf32> to vector<1x16xf32>
    %730 = arith.negf %729 : vector<1x16xf32>
    %731 = math.exp %730 : vector<1x16xf32>
    %cst_235 = arith.constant 1.000000e+00 : f32
    %732 = vector.broadcast %cst_235 : f32 to vector<1x16xf32>
    %733 = arith.addf %732, %731 : vector<1x16xf32>
    %734 = arith.divf %732, %733 : vector<1x16xf32>
    %735 = vector.extract_strided_slice %722 {offsets = [0, 256], sizes = [1, 16], strides = [1, 1]} : vector<1x512xf32> to vector<1x16xf32>
    %736 = math.tanh %735 : vector<1x16xf32>
    %737 = vector.extract_strided_slice %722 {offsets = [0, 384], sizes = [1, 16], strides = [1, 1]} : vector<1x512xf32> to vector<1x16xf32>
    %738 = arith.negf %737 : vector<1x16xf32>
    %739 = math.exp %738 : vector<1x16xf32>
    %cst_236 = arith.constant 1.000000e+00 : f32
    %740 = vector.broadcast %cst_236 : f32 to vector<1x16xf32>
    %741 = arith.addf %740, %739 : vector<1x16xf32>
    %742 = arith.divf %740, %741 : vector<1x16xf32>
    %743 = arith.mulf %734, %716 : vector<1x16xf32>
    %744 = arith.mulf %728, %736 : vector<1x16xf32>
    %745 = arith.addf %743, %744 : vector<1x16xf32>
    %746 = math.tanh %745 : vector<1x16xf32>
    %747 = arith.mulf %742, %746 : vector<1x16xf32>
    %748 = vector.extract_strided_slice %542 {offsets = [7, 0], sizes = [1, 512], strides = [1, 1]} : vector<8x512xf32> to vector<1x512xf32>
    %749 = arith.truncf %747 : vector<1x16xf32> to vector<1x16xbf16>
    %cst_237 = arith.constant dense<0.000000e+00> : vector<1x512xf32>
    %750 = tpu.matmul %749, %536, %cst_237 {dimension_numbers = #tpu.dot_dimension_numbers<[1], [0], [0], [1], [0, 0, 1, 1], [], []>} : vector<1x16xbf16>, vector<16x512xbf16>, vector<1x512xf32> -> vector<1x512xf32>
    %751 = arith.addf %748, %750 : vector<1x512xf32>
    %752 = vector.extract_strided_slice %751 {offsets = [0, 0], sizes = [1, 16], strides = [1, 1]} : vector<1x512xf32> to vector<1x16xf32>
    %753 = arith.negf %752 : vector<1x16xf32>
    %754 = math.exp %753 : vector<1x16xf32>
    %cst_238 = arith.constant 1.000000e+00 : f32
    %755 = vector.broadcast %cst_238 : f32 to vector<1x16xf32>
    %756 = arith.addf %755, %754 : vector<1x16xf32>
    %757 = arith.divf %755, %756 : vector<1x16xf32>
    %758 = vector.extract_strided_slice %751 {offsets = [0, 128], sizes = [1, 16], strides = [1, 1]} : vector<1x512xf32> to vector<1x16xf32>
    %759 = arith.negf %758 : vector<1x16xf32>
    %760 = math.exp %759 : vector<1x16xf32>
    %cst_239 = arith.constant 1.000000e+00 : f32
    %761 = vector.broadcast %cst_239 : f32 to vector<1x16xf32>
    %762 = arith.addf %761, %760 : vector<1x16xf32>
    %763 = arith.divf %761, %762 : vector<1x16xf32>
    %764 = vector.extract_strided_slice %751 {offsets = [0, 256], sizes = [1, 16], strides = [1, 1]} : vector<1x512xf32> to vector<1x16xf32>
    %765 = math.tanh %764 : vector<1x16xf32>
    %766 = vector.extract_strided_slice %751 {offsets = [0, 384], sizes = [1, 16], strides = [1, 1]} : vector<1x512xf32> to vector<1x16xf32>
    %767 = arith.negf %766 : vector<1x16xf32>
    %768 = math.exp %767 : vector<1x16xf32>
    %cst_240 = arith.constant 1.000000e+00 : f32
    %769 = vector.broadcast %cst_240 : f32 to vector<1x16xf32>
    %770 = arith.addf %769, %768 : vector<1x16xf32>
    %771 = arith.divf %769, %770 : vector<1x16xf32>
    %772 = arith.mulf %763, %745 : vector<1x16xf32>
    %773 = arith.mulf %757, %765 : vector<1x16xf32>
    %774 = arith.addf %772, %773 : vector<1x16xf32>
    %775 = math.tanh %774 : vector<1x16xf32>
    %776 = arith.mulf %771, %775 : vector<1x16xf32>
    %777 = tpu.concatenate %573, %602, %631, %660, %689, %718, %747, %776 in 0 : vector<1x16xf32>, vector<1x16xf32>, vector<1x16xf32>, vector<1x16xf32>, vector<1x16xf32>, vector<1x16xf32>, vector<1x16xf32>, vector<1x16xf32> -> vector<8x16xf32>
    %778 = arith.addf %287, %777 : vector<8x16xf32>
    %cst_241 = arith.constant 0.000000e+00 : f32
    %779 = vector.broadcast %cst_241 : f32 to vector<8x16xf32>
    %780 = arith.cmpf ogt, %778, %779 : vector<8x16xf32>
    %cst_242 = arith.constant 0.000000e+00 : f32
    %781 = vector.broadcast %cst_242 : f32 to vector<8x16xf32>
    %782 = arith.minimumf %778, %781 : vector<8x16xf32>
    %783 = math.exp %782 : vector<8x16xf32>
    %cst_243 = arith.constant 1.000000e+00 : f32
    %784 = vector.broadcast %cst_243 : f32 to vector<8x16xf32>
    %785 = arith.subf %783, %784 : vector<8x16xf32>
    %786 = arith.select %780, %778, %785 : vector<8x16xi1>, vector<8x16xf32>
    %787 = vector.extract_strided_slice %786 {offsets = [3, 0], sizes = [1, 16], strides = [1, 1]} : vector<8x16xf32> to vector<1x16xf32>
    %788 = vector.extract_strided_slice %786 {offsets = [2, 0], sizes = [1, 16], strides = [1, 1]} : vector<8x16xf32> to vector<1x16xf32>
    %789 = vector.extract_strided_slice %786 {offsets = [1, 0], sizes = [1, 16], strides = [1, 1]} : vector<8x16xf32> to vector<1x16xf32>
    %790 = vector.extract_strided_slice %786 {offsets = [6, 0], sizes = [1, 16], strides = [1, 1]} : vector<8x16xf32> to vector<1x16xf32>
    %791 = vector.extract_strided_slice %786 {offsets = [5, 0], sizes = [1, 16], strides = [1, 1]} : vector<8x16xf32> to vector<1x16xf32>
    %792 = vector.extract_strided_slice %786 {offsets = [4, 0], sizes = [1, 16], strides = [1, 1]} : vector<8x16xf32> to vector<1x16xf32>
    %793 = tpu.concatenate %787, %788, %789, %786, %790, %791, %792 in 0 : vector<1x16xf32>, vector<1x16xf32>, vector<1x16xf32>, vector<8x16xf32>, vector<1x16xf32>, vector<1x16xf32>, vector<1x16xf32> -> vector<14x16xf32>
    %cst_244 = arith.constant 0.000000e+00 : f32
    %794 = vector.broadcast %cst_244 : f32 to vector<8x16xf32>
    %795 = vector.extract_strided_slice %793 {offsets = [0, 0], sizes = [8, 16], strides = [1, 1]} : vector<14x16xf32> to vector<8x16xf32>
    %796 = arith.truncf %795 : vector<8x16xf32> to vector<8x16xbf16>
    %c0_245 = arith.constant 0 : index
    %c0_246 = arith.constant 0 : index
    %c0_247 = arith.constant 0 : index
    %797 = vector.load %arg23[%c0_245, %c0_246, %c0_247] : memref<7x16x16xbf16, #tpu.memory_space<vmem>>, vector<1x16x16xbf16>
    %798 = vector.shape_cast %797 : vector<1x16x16xbf16> to vector<16x16xbf16>
    %cst_248 = arith.constant dense<0.000000e+00> : vector<8x16xf32>
    %799 = tpu.matmul %796, %798, %cst_248 {dimension_numbers = #tpu.dot_dimension_numbers<[1], [0], [0], [1], [0, 0, 1, 1], [], []>} : vector<8x16xbf16>, vector<16x16xbf16>, vector<8x16xf32> -> vector<8x16xf32>
    %800 = arith.addf %794, %799 : vector<8x16xf32>
    %801 = vector.extract_strided_slice %793 {offsets = [1, 0], sizes = [8, 16], strides = [1, 1]} : vector<14x16xf32> to vector<8x16xf32>
    %802 = arith.truncf %801 : vector<8x16xf32> to vector<8x16xbf16>
    %c1_249 = arith.constant 1 : index
    %c0_250 = arith.constant 0 : index
    %c0_251 = arith.constant 0 : index
    %803 = vector.load %arg23[%c1_249, %c0_250, %c0_251] : memref<7x16x16xbf16, #tpu.memory_space<vmem>>, vector<1x16x16xbf16>
    %804 = vector.shape_cast %803 : vector<1x16x16xbf16> to vector<16x16xbf16>
    %cst_252 = arith.constant dense<0.000000e+00> : vector<8x16xf32>
    %805 = tpu.matmul %802, %804, %cst_252 {dimension_numbers = #tpu.dot_dimension_numbers<[1], [0], [0], [1], [0, 0, 1, 1], [], []>} : vector<8x16xbf16>, vector<16x16xbf16>, vector<8x16xf32> -> vector<8x16xf32>
    %806 = arith.addf %800, %805 : vector<8x16xf32>
    %807 = vector.extract_strided_slice %793 {offsets = [2, 0], sizes = [8, 16], strides = [1, 1]} : vector<14x16xf32> to vector<8x16xf32>
    %808 = arith.truncf %807 : vector<8x16xf32> to vector<8x16xbf16>
    %c2_253 = arith.constant 2 : index
    %c0_254 = arith.constant 0 : index
    %c0_255 = arith.constant 0 : index
    %809 = vector.load %arg23[%c2_253, %c0_254, %c0_255] : memref<7x16x16xbf16, #tpu.memory_space<vmem>>, vector<1x16x16xbf16>
    %810 = vector.shape_cast %809 : vector<1x16x16xbf16> to vector<16x16xbf16>
    %cst_256 = arith.constant dense<0.000000e+00> : vector<8x16xf32>
    %811 = tpu.matmul %808, %810, %cst_256 {dimension_numbers = #tpu.dot_dimension_numbers<[1], [0], [0], [1], [0, 0, 1, 1], [], []>} : vector<8x16xbf16>, vector<16x16xbf16>, vector<8x16xf32> -> vector<8x16xf32>
    %812 = arith.addf %806, %811 : vector<8x16xf32>
    %813 = vector.extract_strided_slice %793 {offsets = [3, 0], sizes = [8, 16], strides = [1, 1]} : vector<14x16xf32> to vector<8x16xf32>
    %814 = arith.truncf %813 : vector<8x16xf32> to vector<8x16xbf16>
    %c3_257 = arith.constant 3 : index
    %c0_258 = arith.constant 0 : index
    %c0_259 = arith.constant 0 : index
    %815 = vector.load %arg23[%c3_257, %c0_258, %c0_259] : memref<7x16x16xbf16, #tpu.memory_space<vmem>>, vector<1x16x16xbf16>
    %816 = vector.shape_cast %815 : vector<1x16x16xbf16> to vector<16x16xbf16>
    %cst_260 = arith.constant dense<0.000000e+00> : vector<8x16xf32>
    %817 = tpu.matmul %814, %816, %cst_260 {dimension_numbers = #tpu.dot_dimension_numbers<[1], [0], [0], [1], [0, 0, 1, 1], [], []>} : vector<8x16xbf16>, vector<16x16xbf16>, vector<8x16xf32> -> vector<8x16xf32>
    %818 = arith.addf %812, %817 : vector<8x16xf32>
    %819 = vector.extract_strided_slice %793 {offsets = [4, 0], sizes = [8, 16], strides = [1, 1]} : vector<14x16xf32> to vector<8x16xf32>
    %820 = arith.truncf %819 : vector<8x16xf32> to vector<8x16xbf16>
    %c4_261 = arith.constant 4 : index
    %c0_262 = arith.constant 0 : index
    %c0_263 = arith.constant 0 : index
    %821 = vector.load %arg23[%c4_261, %c0_262, %c0_263] : memref<7x16x16xbf16, #tpu.memory_space<vmem>>, vector<1x16x16xbf16>
    %822 = vector.shape_cast %821 : vector<1x16x16xbf16> to vector<16x16xbf16>
    %cst_264 = arith.constant dense<0.000000e+00> : vector<8x16xf32>
    %823 = tpu.matmul %820, %822, %cst_264 {dimension_numbers = #tpu.dot_dimension_numbers<[1], [0], [0], [1], [0, 0, 1, 1], [], []>} : vector<8x16xbf16>, vector<16x16xbf16>, vector<8x16xf32> -> vector<8x16xf32>
    %824 = arith.addf %818, %823 : vector<8x16xf32>
    %825 = vector.extract_strided_slice %793 {offsets = [5, 0], sizes = [8, 16], strides = [1, 1]} : vector<14x16xf32> to vector<8x16xf32>
    %826 = arith.truncf %825 : vector<8x16xf32> to vector<8x16xbf16>
    %c5_265 = arith.constant 5 : index
    %c0_266 = arith.constant 0 : index
    %c0_267 = arith.constant 0 : index
    %827 = vector.load %arg23[%c5_265, %c0_266, %c0_267] : memref<7x16x16xbf16, #tpu.memory_space<vmem>>, vector<1x16x16xbf16>
    %828 = vector.shape_cast %827 : vector<1x16x16xbf16> to vector<16x16xbf16>
    %cst_268 = arith.constant dense<0.000000e+00> : vector<8x16xf32>
    %829 = tpu.matmul %826, %828, %cst_268 {dimension_numbers = #tpu.dot_dimension_numbers<[1], [0], [0], [1], [0, 0, 1, 1], [], []>} : vector<8x16xbf16>, vector<16x16xbf16>, vector<8x16xf32> -> vector<8x16xf32>
    %830 = arith.addf %824, %829 : vector<8x16xf32>
    %831 = vector.extract_strided_slice %793 {offsets = [6, 0], sizes = [8, 16], strides = [1, 1]} : vector<14x16xf32> to vector<8x16xf32>
    %832 = arith.truncf %831 : vector<8x16xf32> to vector<8x16xbf16>
    %c6_269 = arith.constant 6 : index
    %c0_270 = arith.constant 0 : index
    %c0_271 = arith.constant 0 : index
    %833 = vector.load %arg23[%c6_269, %c0_270, %c0_271] : memref<7x16x16xbf16, #tpu.memory_space<vmem>>, vector<1x16x16xbf16>
    %834 = vector.shape_cast %833 : vector<1x16x16xbf16> to vector<16x16xbf16>
    %cst_272 = arith.constant dense<0.000000e+00> : vector<8x16xf32>
    %835 = tpu.matmul %832, %834, %cst_272 {dimension_numbers = #tpu.dot_dimension_numbers<[1], [0], [0], [1], [0, 0, 1, 1], [], []>} : vector<8x16xbf16>, vector<16x16xbf16>, vector<8x16xf32> -> vector<8x16xf32>
    %836 = arith.addf %830, %835 : vector<8x16xf32>
    %c0_273 = arith.constant 0 : index
    %c0_274 = arith.constant 0 : index
    %837 = vector.load %arg24[%c0_273, %c0_274] : memref<1x16xf32, #tpu.memory_space<vmem>>, vector<1x16xf32>
    %838 = vector.broadcast %837 : vector<1x16xf32> to vector<8x16xf32>
    %839 = arith.addf %836, %838 : vector<8x16xf32>
    %840 = tpu.iota {dimensions = array<i32: 1>} : vector<8x128xi32>
    %c0_i32 = arith.constant 0 : i32
    %841 = vector.broadcast %c0_i32 : i32 to vector<8x128xi32>
    %c0_275 = arith.constant 0 : index
    %c0_276 = arith.constant 0 : index
    %c0_277 = arith.constant 0 : index
    %842 = vector.load %arg26[%c0_275, %c0_276, %c0_277] : memref<4x16x128xf32, #tpu.memory_space<vmem>>, vector<1x16x128xf32>
    %843 = vector.shape_cast %842 : vector<1x16x128xf32> to vector<16x128xf32>
    %cst_278 = arith.constant dense<0.000000e+00> : vector<8x128xf32>
    %844 = tpu.matmul %839, %843, %cst_278 {dimension_numbers = #tpu.dot_dimension_numbers<[1], [0], [0], [1], [0, 0, 1, 1], [], []>} : vector<8x16xf32>, vector<16x128xf32>, vector<8x128xf32> -> vector<8x128xf32>
    %c0_279 = arith.constant 0 : index
    %c0_280 = arith.constant 0 : index
    %c0_281 = arith.constant 0 : index
    %845 = vector.load %arg27[%c0_279, %c0_280, %c0_281] : memref<4x1x128xf32, #tpu.memory_space<vmem>>, vector<1x1x128xf32>
    %846 = vector.shape_cast %845 : vector<1x1x128xf32> to vector<1x128xf32>
    %cst_282 = arith.constant 2.000000e+00 : f32
    %847 = vector.broadcast %cst_282 : f32 to vector<8x128xf32>
    %848 = arith.mulf %847, %844 : vector<8x128xf32>
    %849 = vector.broadcast %846 : vector<1x128xf32> to vector<8x128xf32>
    %850 = arith.subf %849, %848 : vector<8x128xf32>
    %cst_283 = arith.constant dense<0x7F800000> : vector<8xf32>
    %851 = vector.multi_reduction <minimumf>, %850, %cst_283 [1] : vector<8x128xf32> to vector<8xf32>
    %852 = vector.shape_cast %851 : vector<8xf32> to vector<8x1xf32>
    %853 = tpu.iota {dimensions = array<i32: 1>} : vector<8x128xi32>
    %854 = vector.broadcast %852 : vector<8x1xf32> to vector<8x128xf32>
    %855 = arith.cmpf ole, %850, %854 : vector<8x128xf32>
    %c128_i32 = arith.constant 128 : i32
    %856 = vector.broadcast %c128_i32 : i32 to vector<8x128xi32>
    %857 = arith.select %855, %853, %856 : vector<8x128xi1>, vector<8x128xi32>
    %cst_284 = arith.constant dense<2147483647> : vector<8xi32>
    %858 = vector.multi_reduction <minsi>, %857, %cst_284 [1] : vector<8x128xi32> to vector<8xi32>
    %859 = vector.shape_cast %858 : vector<8xi32> to vector<8x1xi32>
    %c0_i32_285 = arith.constant 0 : i32
    %860 = vector.broadcast %c0_i32_285 : i32 to vector<8x128xi32>
    %861 = arith.cmpi eq, %840, %860 : vector<8x128xi32>
    %c0_i32_286 = arith.constant 0 : i32
    %862 = vector.shape_cast %859 : vector<8x1xi32> to vector<8x1xi32>
    %863 = vector.broadcast %862 : vector<8x1xi32> to vector<8x128xi32>
    %864 = vector.broadcast %c0_i32_286 : i32 to vector<8x128xi32>
    %865 = arith.select %861, %863, %864 : vector<8x128xi1>, vector<8x128xi32>
    %866 = arith.addi %841, %865 : vector<8x128xi32>
    %867 = vector.broadcast %859 : vector<8x1xi32> to vector<8x128xi32>
    %868 = arith.cmpi eq, %853, %867 : vector<8x128xi32>
    %869 = arith.extui %868 : vector<8x128xi1> to vector<8x128xi32>
    %870 = arith.sitofp %869 : vector<8x128xi32> to vector<8x128xf32>
    %c0_287 = arith.constant 0 : index
    %c0_288 = arith.constant 0 : index
    %c0_289 = arith.constant 0 : index
    %871 = vector.load %arg25[%c0_287, %c0_288, %c0_289] : memref<4x128x16xf32, #tpu.memory_space<vmem>>, vector<1x128x16xf32>
    %872 = vector.shape_cast %871 : vector<1x128x16xf32> to vector<128x16xf32>
    %cst_290 = arith.constant dense<0.000000e+00> : vector<8x16xf32>
    %873 = tpu.matmul %870, %872, %cst_290 {dimension_numbers = #tpu.dot_dimension_numbers<[1], [0], [0], [1], [0, 0, 1, 1], [], []>} : vector<8x128xf32>, vector<128x16xf32>, vector<8x16xf32> -> vector<8x16xf32>
    %874 = arith.subf %839, %873 : vector<8x16xf32>
    %c1_291 = arith.constant 1 : index
    %c0_292 = arith.constant 0 : index
    %c0_293 = arith.constant 0 : index
    %875 = vector.load %arg26[%c1_291, %c0_292, %c0_293] : memref<4x16x128xf32, #tpu.memory_space<vmem>>, vector<1x16x128xf32>
    %876 = vector.shape_cast %875 : vector<1x16x128xf32> to vector<16x128xf32>
    %cst_294 = arith.constant dense<0.000000e+00> : vector<8x128xf32>
    %877 = tpu.matmul %874, %876, %cst_294 {dimension_numbers = #tpu.dot_dimension_numbers<[1], [0], [0], [1], [0, 0, 1, 1], [], []>} : vector<8x16xf32>, vector<16x128xf32>, vector<8x128xf32> -> vector<8x128xf32>
    %c1_295 = arith.constant 1 : index
    %c0_296 = arith.constant 0 : index
    %c0_297 = arith.constant 0 : index
    %878 = vector.load %arg27[%c1_295, %c0_296, %c0_297] : memref<4x1x128xf32, #tpu.memory_space<vmem>>, vector<1x1x128xf32>
    %879 = vector.shape_cast %878 : vector<1x1x128xf32> to vector<1x128xf32>
    %cst_298 = arith.constant 2.000000e+00 : f32
    %880 = vector.broadcast %cst_298 : f32 to vector<8x128xf32>
    %881 = arith.mulf %880, %877 : vector<8x128xf32>
    %882 = vector.broadcast %879 : vector<1x128xf32> to vector<8x128xf32>
    %883 = arith.subf %882, %881 : vector<8x128xf32>
    %cst_299 = arith.constant dense<0x7F800000> : vector<8xf32>
    %884 = vector.multi_reduction <minimumf>, %883, %cst_299 [1] : vector<8x128xf32> to vector<8xf32>
    %885 = vector.shape_cast %884 : vector<8xf32> to vector<8x1xf32>
    %886 = tpu.iota {dimensions = array<i32: 1>} : vector<8x128xi32>
    %887 = vector.broadcast %885 : vector<8x1xf32> to vector<8x128xf32>
    %888 = arith.cmpf ole, %883, %887 : vector<8x128xf32>
    %c128_i32_300 = arith.constant 128 : i32
    %889 = vector.broadcast %c128_i32_300 : i32 to vector<8x128xi32>
    %890 = arith.select %888, %886, %889 : vector<8x128xi1>, vector<8x128xi32>
    %cst_301 = arith.constant dense<2147483647> : vector<8xi32>
    %891 = vector.multi_reduction <minsi>, %890, %cst_301 [1] : vector<8x128xi32> to vector<8xi32>
    %892 = vector.shape_cast %891 : vector<8xi32> to vector<8x1xi32>
    %c1_i32 = arith.constant 1 : i32
    %893 = vector.broadcast %c1_i32 : i32 to vector<8x128xi32>
    %894 = arith.cmpi eq, %840, %893 : vector<8x128xi32>
    %c0_i32_302 = arith.constant 0 : i32
    %895 = vector.shape_cast %892 : vector<8x1xi32> to vector<8x1xi32>
    %896 = vector.broadcast %895 : vector<8x1xi32> to vector<8x128xi32>
    %897 = vector.broadcast %c0_i32_302 : i32 to vector<8x128xi32>
    %898 = arith.select %894, %896, %897 : vector<8x128xi1>, vector<8x128xi32>
    %899 = arith.addi %866, %898 : vector<8x128xi32>
    %900 = vector.broadcast %892 : vector<8x1xi32> to vector<8x128xi32>
    %901 = arith.cmpi eq, %886, %900 : vector<8x128xi32>
    %902 = arith.extui %901 : vector<8x128xi1> to vector<8x128xi32>
    %903 = arith.sitofp %902 : vector<8x128xi32> to vector<8x128xf32>
    %c1_303 = arith.constant 1 : index
    %c0_304 = arith.constant 0 : index
    %c0_305 = arith.constant 0 : index
    %904 = vector.load %arg25[%c1_303, %c0_304, %c0_305] : memref<4x128x16xf32, #tpu.memory_space<vmem>>, vector<1x128x16xf32>
    %905 = vector.shape_cast %904 : vector<1x128x16xf32> to vector<128x16xf32>
    %cst_306 = arith.constant dense<0.000000e+00> : vector<8x16xf32>
    %906 = tpu.matmul %903, %905, %cst_306 {dimension_numbers = #tpu.dot_dimension_numbers<[1], [0], [0], [1], [0, 0, 1, 1], [], []>} : vector<8x128xf32>, vector<128x16xf32>, vector<8x16xf32> -> vector<8x16xf32>
    %907 = arith.subf %874, %906 : vector<8x16xf32>
    %c2_307 = arith.constant 2 : index
    %c0_308 = arith.constant 0 : index
    %c0_309 = arith.constant 0 : index
    %908 = vector.load %arg26[%c2_307, %c0_308, %c0_309] : memref<4x16x128xf32, #tpu.memory_space<vmem>>, vector<1x16x128xf32>
    %909 = vector.shape_cast %908 : vector<1x16x128xf32> to vector<16x128xf32>
    %cst_310 = arith.constant dense<0.000000e+00> : vector<8x128xf32>
    %910 = tpu.matmul %907, %909, %cst_310 {dimension_numbers = #tpu.dot_dimension_numbers<[1], [0], [0], [1], [0, 0, 1, 1], [], []>} : vector<8x16xf32>, vector<16x128xf32>, vector<8x128xf32> -> vector<8x128xf32>
    %c2_311 = arith.constant 2 : index
    %c0_312 = arith.constant 0 : index
    %c0_313 = arith.constant 0 : index
    %911 = vector.load %arg27[%c2_311, %c0_312, %c0_313] : memref<4x1x128xf32, #tpu.memory_space<vmem>>, vector<1x1x128xf32>
    %912 = vector.shape_cast %911 : vector<1x1x128xf32> to vector<1x128xf32>
    %cst_314 = arith.constant 2.000000e+00 : f32
    %913 = vector.broadcast %cst_314 : f32 to vector<8x128xf32>
    %914 = arith.mulf %913, %910 : vector<8x128xf32>
    %915 = vector.broadcast %912 : vector<1x128xf32> to vector<8x128xf32>
    %916 = arith.subf %915, %914 : vector<8x128xf32>
    %cst_315 = arith.constant dense<0x7F800000> : vector<8xf32>
    %917 = vector.multi_reduction <minimumf>, %916, %cst_315 [1] : vector<8x128xf32> to vector<8xf32>
    %918 = vector.shape_cast %917 : vector<8xf32> to vector<8x1xf32>
    %919 = tpu.iota {dimensions = array<i32: 1>} : vector<8x128xi32>
    %920 = vector.broadcast %918 : vector<8x1xf32> to vector<8x128xf32>
    %921 = arith.cmpf ole, %916, %920 : vector<8x128xf32>
    %c128_i32_316 = arith.constant 128 : i32
    %922 = vector.broadcast %c128_i32_316 : i32 to vector<8x128xi32>
    %923 = arith.select %921, %919, %922 : vector<8x128xi1>, vector<8x128xi32>
    %cst_317 = arith.constant dense<2147483647> : vector<8xi32>
    %924 = vector.multi_reduction <minsi>, %923, %cst_317 [1] : vector<8x128xi32> to vector<8xi32>
    %925 = vector.shape_cast %924 : vector<8xi32> to vector<8x1xi32>
    %c2_i32_318 = arith.constant 2 : i32
    %926 = vector.broadcast %c2_i32_318 : i32 to vector<8x128xi32>
    %927 = arith.cmpi eq, %840, %926 : vector<8x128xi32>
    %c0_i32_319 = arith.constant 0 : i32
    %928 = vector.shape_cast %925 : vector<8x1xi32> to vector<8x1xi32>
    %929 = vector.broadcast %928 : vector<8x1xi32> to vector<8x128xi32>
    %930 = vector.broadcast %c0_i32_319 : i32 to vector<8x128xi32>
    %931 = arith.select %927, %929, %930 : vector<8x128xi1>, vector<8x128xi32>
    %932 = arith.addi %899, %931 : vector<8x128xi32>
    %933 = vector.broadcast %925 : vector<8x1xi32> to vector<8x128xi32>
    %934 = arith.cmpi eq, %919, %933 : vector<8x128xi32>
    %935 = arith.extui %934 : vector<8x128xi1> to vector<8x128xi32>
    %936 = arith.sitofp %935 : vector<8x128xi32> to vector<8x128xf32>
    %c2_320 = arith.constant 2 : index
    %c0_321 = arith.constant 0 : index
    %c0_322 = arith.constant 0 : index
    %937 = vector.load %arg25[%c2_320, %c0_321, %c0_322] : memref<4x128x16xf32, #tpu.memory_space<vmem>>, vector<1x128x16xf32>
    %938 = vector.shape_cast %937 : vector<1x128x16xf32> to vector<128x16xf32>
    %cst_323 = arith.constant dense<0.000000e+00> : vector<8x16xf32>
    %939 = tpu.matmul %936, %938, %cst_323 {dimension_numbers = #tpu.dot_dimension_numbers<[1], [0], [0], [1], [0, 0, 1, 1], [], []>} : vector<8x128xf32>, vector<128x16xf32>, vector<8x16xf32> -> vector<8x16xf32>
    %940 = arith.subf %907, %939 : vector<8x16xf32>
    %c3_324 = arith.constant 3 : index
    %c0_325 = arith.constant 0 : index
    %c0_326 = arith.constant 0 : index
    %941 = vector.load %arg26[%c3_324, %c0_325, %c0_326] : memref<4x16x128xf32, #tpu.memory_space<vmem>>, vector<1x16x128xf32>
    %942 = vector.shape_cast %941 : vector<1x16x128xf32> to vector<16x128xf32>
    %cst_327 = arith.constant dense<0.000000e+00> : vector<8x128xf32>
    %943 = tpu.matmul %940, %942, %cst_327 {dimension_numbers = #tpu.dot_dimension_numbers<[1], [0], [0], [1], [0, 0, 1, 1], [], []>} : vector<8x16xf32>, vector<16x128xf32>, vector<8x128xf32> -> vector<8x128xf32>
    %c3_328 = arith.constant 3 : index
    %c0_329 = arith.constant 0 : index
    %c0_330 = arith.constant 0 : index
    %944 = vector.load %arg27[%c3_328, %c0_329, %c0_330] : memref<4x1x128xf32, #tpu.memory_space<vmem>>, vector<1x1x128xf32>
    %945 = vector.shape_cast %944 : vector<1x1x128xf32> to vector<1x128xf32>
    %cst_331 = arith.constant 2.000000e+00 : f32
    %946 = vector.broadcast %cst_331 : f32 to vector<8x128xf32>
    %947 = arith.mulf %946, %943 : vector<8x128xf32>
    %948 = vector.broadcast %945 : vector<1x128xf32> to vector<8x128xf32>
    %949 = arith.subf %948, %947 : vector<8x128xf32>
    %cst_332 = arith.constant dense<0x7F800000> : vector<8xf32>
    %950 = vector.multi_reduction <minimumf>, %949, %cst_332 [1] : vector<8x128xf32> to vector<8xf32>
    %951 = vector.shape_cast %950 : vector<8xf32> to vector<8x1xf32>
    %952 = tpu.iota {dimensions = array<i32: 1>} : vector<8x128xi32>
    %953 = vector.broadcast %951 : vector<8x1xf32> to vector<8x128xf32>
    %954 = arith.cmpf ole, %949, %953 : vector<8x128xf32>
    %c128_i32_333 = arith.constant 128 : i32
    %955 = vector.broadcast %c128_i32_333 : i32 to vector<8x128xi32>
    %956 = arith.select %954, %952, %955 : vector<8x128xi1>, vector<8x128xi32>
    %cst_334 = arith.constant dense<2147483647> : vector<8xi32>
    %957 = vector.multi_reduction <minsi>, %956, %cst_334 [1] : vector<8x128xi32> to vector<8xi32>
    %958 = vector.shape_cast %957 : vector<8xi32> to vector<8x1xi32>
    %c3_i32 = arith.constant 3 : i32
    %959 = vector.broadcast %c3_i32 : i32 to vector<8x128xi32>
    %960 = arith.cmpi eq, %840, %959 : vector<8x128xi32>
    %c0_i32_335 = arith.constant 0 : i32
    %961 = vector.shape_cast %958 : vector<8x1xi32> to vector<8x1xi32>
    %962 = vector.broadcast %961 : vector<8x1xi32> to vector<8x128xi32>
    %963 = vector.broadcast %c0_i32_335 : i32 to vector<8x128xi32>
    %964 = arith.select %960, %962, %963 : vector<8x128xi1>, vector<8x128xi32>
    %965 = arith.addi %932, %964 : vector<8x128xi32>
    %c0_336 = arith.constant 0 : index
    %c0_337 = arith.constant 0 : index
    %c0_338 = arith.constant 0 : index
    %966 = vector.load %arg28[%c0_336, %c0_337, %c0_338] : memref<1x8x128xi32, #tpu.memory_space<vmem>>, vector<1x8x128xi32>
    %967 = vector.shape_cast %966 : vector<1x8x128xi32> to vector<8x128xi32>
    %968 = vector.shape_cast %965 : vector<8x128xi32> to vector<1x8x128xi32>
    tpu.vector_store %arg28[%c0_336, %c0_337, %c0_338], %968 {strides = array<i32>} : memref<1x8x128xi32, #tpu.memory_space<vmem>>, vector<1x8x128xi32>,
    return
  }
  func.func @transform_0(%arg0: i32) -> (i32, i32, i32) {
    %c0_i32 = arith.constant 0 : i32
    %c0_i32_0 = arith.constant 0 : i32
    %c0_i32_1 = arith.constant 0 : i32
    return %arg0, %c0_i32, %c0_i32_0 : i32, i32, i32
  }
  func.func @transform_1(%arg0: i32) -> (i32, i32, i32) {
    %c0_i32 = arith.constant 0 : i32
    %c0_i32_0 = arith.constant 0 : i32
    %c0_i32_1 = arith.constant 0 : i32
    %c0_i32_2 = arith.constant 0 : i32
    return %c0_i32, %c0_i32_0, %c0_i32_1 : i32, i32, i32
  }
  func.func @transform_2(%arg0: i32) -> (i32, i32) {
    %c0_i32 = arith.constant 0 : i32
    %c0_i32_0 = arith.constant 0 : i32
    %c0_i32_1 = arith.constant 0 : i32
    return %c0_i32, %c0_i32_0 : i32, i32
  }
  func.func @transform_3(%arg0: i32) -> (i32, i32, i32) {
    %c0_i32 = arith.constant 0 : i32
    %c0_i32_0 = arith.constant 0 : i32
    %c0_i32_1 = arith.constant 0 : i32
    %c0_i32_2 = arith.constant 0 : i32
    return %c0_i32, %c0_i32_0, %c0_i32_1 : i32, i32, i32
  }
  func.func @transform_4(%arg0: i32) -> (i32, i32) {
    %c0_i32 = arith.constant 0 : i32
    %c0_i32_0 = arith.constant 0 : i32
    %c0_i32_1 = arith.constant 0 : i32
    return %c0_i32, %c0_i32_0 : i32, i32
  }
  func.func @transform_5(%arg0: i32) -> (i32, i32, i32) {
    %c0_i32 = arith.constant 0 : i32
    %c0_i32_0 = arith.constant 0 : i32
    %c0_i32_1 = arith.constant 0 : i32
    %c0_i32_2 = arith.constant 0 : i32
    return %c0_i32, %c0_i32_0, %c0_i32_1 : i32, i32, i32
  }
  func.func @transform_6(%arg0: i32) -> (i32, i32) {
    %c0_i32 = arith.constant 0 : i32
    %c0_i32_0 = arith.constant 0 : i32
    %c0_i32_1 = arith.constant 0 : i32
    return %c0_i32, %c0_i32_0 : i32, i32
  }
  func.func @transform_7(%arg0: i32) -> (i32, i32, i32) {
    %c0_i32 = arith.constant 0 : i32
    %c0_i32_0 = arith.constant 0 : i32
    %c0_i32_1 = arith.constant 0 : i32
    %c0_i32_2 = arith.constant 0 : i32
    return %c0_i32, %c0_i32_0, %c0_i32_1 : i32, i32, i32
  }
  func.func @transform_8(%arg0: i32) -> (i32, i32) {
    %c0_i32 = arith.constant 0 : i32
    %c0_i32_0 = arith.constant 0 : i32
    %c0_i32_1 = arith.constant 0 : i32
    return %c0_i32, %c0_i32_0 : i32, i32
  }
  func.func @transform_9(%arg0: i32) -> (i32, i32, i32) {
    %c0_i32 = arith.constant 0 : i32
    %c0_i32_0 = arith.constant 0 : i32
    %c0_i32_1 = arith.constant 0 : i32
    %c0_i32_2 = arith.constant 0 : i32
    return %c0_i32, %c0_i32_0, %c0_i32_1 : i32, i32, i32
  }
  func.func @transform_10(%arg0: i32) -> (i32, i32) {
    %c0_i32 = arith.constant 0 : i32
    %c0_i32_0 = arith.constant 0 : i32
    %c0_i32_1 = arith.constant 0 : i32
    return %c0_i32, %c0_i32_0 : i32, i32
  }
  func.func @transform_11(%arg0: i32) -> (i32, i32, i32) {
    %c0_i32 = arith.constant 0 : i32
    %c0_i32_0 = arith.constant 0 : i32
    %c0_i32_1 = arith.constant 0 : i32
    %c0_i32_2 = arith.constant 0 : i32
    return %c0_i32, %c0_i32_0, %c0_i32_1 : i32, i32, i32
  }
  func.func @transform_12(%arg0: i32) -> (i32, i32) {
    %c0_i32 = arith.constant 0 : i32
    %c0_i32_0 = arith.constant 0 : i32
    %c0_i32_1 = arith.constant 0 : i32
    return %c0_i32, %c0_i32_0 : i32, i32
  }
  func.func @transform_13(%arg0: i32) -> (i32, i32, i32) {
    %c0_i32 = arith.constant 0 : i32
    %c0_i32_0 = arith.constant 0 : i32
    %c0_i32_1 = arith.constant 0 : i32
    %c0_i32_2 = arith.constant 0 : i32
    return %c0_i32, %c0_i32_0, %c0_i32_1 : i32, i32, i32
  }
  func.func @transform_14(%arg0: i32) -> (i32, i32) {
    %c0_i32 = arith.constant 0 : i32
    %c0_i32_0 = arith.constant 0 : i32
    %c0_i32_1 = arith.constant 0 : i32
    return %c0_i32, %c0_i32_0 : i32, i32
  }
  func.func @transform_15(%arg0: i32) -> (i32, i32, i32) {
    %c0_i32 = arith.constant 0 : i32
    %c0_i32_0 = arith.constant 0 : i32
    %c0_i32_1 = arith.constant 0 : i32
    %c0_i32_2 = arith.constant 0 : i32
    return %c0_i32, %c0_i32_0, %c0_i32_1 : i32, i32, i32
  }
  func.func @transform_16(%arg0: i32) -> (i32, i32) {
    %c0_i32 = arith.constant 0 : i32
    %c0_i32_0 = arith.constant 0 : i32
    %c0_i32_1 = arith.constant 0 : i32
    return %c0_i32, %c0_i32_0 : i32, i32
  }
  func.func @transform_17(%arg0: i32) -> (i32, i32, i32) {
    %c0_i32 = arith.constant 0 : i32
    %c0_i32_0 = arith.constant 0 : i32
    %c0_i32_1 = arith.constant 0 : i32
    %c0_i32_2 = arith.constant 0 : i32
    return %c0_i32, %c0_i32_0, %c0_i32_1 : i32, i32, i32
  }
  func.func @transform_18(%arg0: i32) -> (i32, i32) {
    %c0_i32 = arith.constant 0 : i32
    %c0_i32_0 = arith.constant 0 : i32
    %c0_i32_1 = arith.constant 0 : i32
    return %c0_i32, %c0_i32_0 : i32, i32
  }
  func.func @transform_19(%arg0: i32) -> (i32, i32, i32) {
    %c0_i32 = arith.constant 0 : i32
    %c0_i32_0 = arith.constant 0 : i32
    %c0_i32_1 = arith.constant 0 : i32
    %c0_i32_2 = arith.constant 0 : i32
    return %c0_i32, %c0_i32_0, %c0_i32_1 : i32, i32, i32
  }
  func.func @transform_20(%arg0: i32) -> (i32, i32, i32) {
    %c0_i32 = arith.constant 0 : i32
    %c0_i32_0 = arith.constant 0 : i32
    %c0_i32_1 = arith.constant 0 : i32
    %c0_i32_2 = arith.constant 0 : i32
    return %c0_i32, %c0_i32_0, %c0_i32_1 : i32, i32, i32
  }
  func.func @transform_21(%arg0: i32) -> (i32, i32, i32) {
    %c0_i32 = arith.constant 0 : i32
    %c0_i32_0 = arith.constant 0 : i32
    %c0_i32_1 = arith.constant 0 : i32
    %c0_i32_2 = arith.constant 0 : i32
    return %c0_i32, %c0_i32_0, %c0_i32_1 : i32, i32, i32
  }
  func.func @transform_22(%arg0: i32) -> (i32, i32, i32) {
    %c0_i32 = arith.constant 0 : i32
    %c0_i32_0 = arith.constant 0 : i32
    %c0_i32_1 = arith.constant 0 : i32
    %c0_i32_2 = arith.constant 0 : i32
    return %c0_i32, %c0_i32_0, %c0_i32_1 : i32, i32, i32
  }
  func.func @transform_23(%arg0: i32) -> (i32, i32) {
    %c0_i32 = arith.constant 0 : i32
    %c0_i32_0 = arith.constant 0 : i32
    %c0_i32_1 = arith.constant 0 : i32
    return %c0_i32, %c0_i32_0 : i32, i32
  }
  func.func @transform_24(%arg0: i32) -> (i32, i32, i32) {
    %c0_i32 = arith.constant 0 : i32
    %c0_i32_0 = arith.constant 0 : i32
    %c0_i32_1 = arith.constant 0 : i32
    %c0_i32_2 = arith.constant 0 : i32
    return %c0_i32, %c0_i32_0, %c0_i32_1 : i32, i32, i32
  }
  func.func @transform_25(%arg0: i32) -> (i32, i32, i32) {
    %c0_i32 = arith.constant 0 : i32
    %c0_i32_0 = arith.constant 0 : i32
    %c0_i32_1 = arith.constant 0 : i32
    %c0_i32_2 = arith.constant 0 : i32
    return %c0_i32, %c0_i32_0, %c0_i32_1 : i32, i32, i32
  }
  func.func @transform_26(%arg0: i32) -> (i32, i32, i32) {
    %c0_i32 = arith.constant 0 : i32
    %c0_i32_0 = arith.constant 0 : i32
    %c0_i32_1 = arith.constant 0 : i32
    %c0_i32_2 = arith.constant 0 : i32
    return %c0_i32, %c0_i32_0, %c0_i32_1 : i32, i32, i32
  }
  func.func @transform_27(%arg0: i32) -> (i32, i32, i32) {
    %c0_i32 = arith.constant 0 : i32
    %c0_i32_0 = arith.constant 0 : i32
    %c0_i32_1 = arith.constant 0 : i32
    return %arg0, %c0_i32, %c0_i32_0 : i32, i32, i32
  }
}

</mosaic_0001>

<bundles_post_ra>
// kernel: _lambda_.1
= control target key start
LH: loop header
LB: loop body
LE: loop exit
PB: predicated region body
PF: predicated region fallthrough
CT: control target
= control target key end

     0   :  { %s15165_s0 = inlined_call_operand.vmem [shape: f32[2,64,128], index: 0, kind: input, shape index: {}]   ;;  %s15166_s1 = inlined_call_operand.vmem [shape: bf16[7,128,128], index: 1, kind: input, shape index: {}]   ;;  %s15167_s2 = inlined_call_operand.vmem [shape: f32[1,128], index: 2, kind: input, shape index: {}]   ;;  %s15168_s3 = inlined_call_operand.hbm [shape: bf16[3,128,128], index: 3, kind: input, shape index: {}]   ;;  %s15169_s4 = inlined_call_operand.vmem [shape: f32[1,128], index: 4, kind: input, shape index: {}]   ;;  %s15170_s5 = inlined_call_operand.hbm [shape: bf16[1,128,128], index: 5, kind: input, shape index: {}]   ;;  %s15171_s6 = inlined_call_operand.vmem [shape: f32[1,128], index: 6, kind: input, shape index: {}]   ;;  %s15172_s7 = inlined_call_operand.hbm [shape: bf16[1,128,128], index: 7, kind: input, shape index: {}]   ;;  %s15173_s8 = inlined_call_operand.hbm [shape: f32[1,128], index: 8, kind: input, shape index: {}]   ;;  %s15174_s9 = inlined_call_operand.hbm [shape: bf16[4,128,128], index: 9, kind: input, shape index: {}]   ;;  %s15175_s10 = inlined_call_operand.hbm [shape: f32[1,128], index: 10, kind: input, shape index: {}]   ;;  %s15176_s11 = inlined_call_operand.hbm [shape: bf16[3,128,128], index: 11, kind: input, shape index: {}]   ;;  %s15177_s12 = inlined_call_operand.hbm [shape: f32[1,128], index: 12, kind: input, shape index: {}]   ;;  %s15178_s13 = inlined_call_operand.hbm [shape: bf16[1,128,128], index: 13, kind: input, shape index: {}]   ;;  %s15179_s14 = inlined_call_operand.hbm [shape: f32[1,128], index: 14, kind: input, shape index: {}]   ;;  %s15180_s15 = inlined_call_operand.hbm [shape: bf16[1,128,128], index: 15, kind: input, shape index: {}]   ;;  %s15181_s16 = inlined_call_operand.hbm [shape: f32[1,128], index: 16, kind: input, shape index: {}]   ;;  %s15182_s17 = inlined_call_operand.vmem [shape: bf16[8,128,128], index: 17, kind: input, shape index: {}]   ;;  %s15183_s18 = inlined_call_operand.hbm [shape: f32[1,128], index: 18, kind: input, shape index: {}]   ;;  %s15184_s19 = inlined_call_operand.hbm [shape: bf16[2,16,512], index: 19, kind: input, shape index: {}]   ;;  %s15185_s20 = inlined_call_operand.hbm [shape: bf16[2,16,512], index: 20, kind: input, shape index: {}]   ;;  %s15186_s21 = inlined_call_operand.vmem [shape: f32[2,1,512], index: 21, kind: input, shape index: {}]   ;;  %s15187_s22 = inlined_call_operand.hbm [shape: bf16[7,16,16], index: 22, kind: input, shape index: {}]   ;;  %s15188_s23 = inlined_call_operand.vmem [shape: f32[1,16], index: 23, kind: input, shape index: {}]   ;;  %s15189_s24 = inlined_call_operand.vmem [shape: f32[4,128,16], index: 24, kind: input, shape index: {}]   ;;  %s15190_s25 = inlined_call_operand.hbm [shape: f32[4,16,128], index: 25, kind: input, shape index: {}]   ;;  %s15191_s26 = inlined_call_operand.vmem [shape: f32[4,1,128], index: 26, kind: input, shape index: {}]   ;;  %s15192_s27 = inlined_call_operand.vmem [shape: s32[2,8,128], index: 27, kind: output, shape index: {}]  }
   0x1   :  { %15217 = sst [smem:[#allocation38_spill]] %s15165_s0 }
   0x2   :  { %15218 = sst [smem:[#allocation39_spill]] %s15166_s1 }
   0x3   :  { %15219 = sst [smem:[#allocation40_spill]] %s15167_s2 }
   0x4   :  { %15220 = sst [smem:[#allocation41_spill]] %s15168_s3 }
   0x5   :  { %15221 = sst [smem:[#allocation42_spill]] %s15169_s4 }
   0x6   :  { %15222 = sst [smem:[#allocation43_spill]] %s15170_s5 }
   0x7   :  { %15223 = sst [smem:[#allocation44_spill]] %s15171_s6 }
   0x8   :  { %15224 = sst [smem:[#allocation45_spill]] %s15172_s7 }
   0x9   :  { %15225 = sst [smem:[#allocation46_spill]] %s15173_s8 }
   0xa   :  { %15226 = sst [smem:[#allocation47_spill]] %s15174_s9 }
   0xb   :  { %15227 = sst [smem:[#allocation48_spill]] %s15175_s10 }
   0xc   :  { %15228 = sst [smem:[#allocation49_spill]] %s15176_s11 }
   0xd   :  { %15229 = sst [smem:[#allocation50_spill]] %s15177_s12 }
   0xe   :  { %15230 = sst [smem:[#allocation51_spill]] %s15182_s17 }
   0xf   :  { %15231 = sst [smem:[#allocation52_spill]] %s15186_s21 }
  0x10   :  { %15232 = sst [smem:[#allocation53_spill]] %s15188_s23 }
  0x11   :  { %15233 = sst [smem:[#allocation54_spill]] %s15189_s24 }
  0x12   :  { %15234 = sst [smem:[#allocation55_spill]] %s15191_s26 }
  0x13   :  { %15235 = sst [smem:[#allocation56_spill]] %s15192_s27 }
  0x14   :  { %32 = vsyncpa [#allocation3], 0 }
  0x15   :  { %33 = vsyncpa [#allocation5], 0 }
  0x16   :  { %34 = vsyncpa [#allocation8], 0 }
  0x17   :  { %35 = vsyncpa [#allocation11], 0 }
  0x18   :  { %36 = vsyncpa [#allocation14], 0 }
  0x19   :  { %37 = vsyncpa [#allocation17], 0 }
  0x1a   :  { %38 = vsyncpa [#allocation20], 0 }
  0x1b   :  { %39 = vsyncpa [#allocation23], 0 }
  0x1c   :  { %40 = vsyncpa [#allocation26], 0  ;;  %s13264_s7 = smov 0  }
  0x1d LB: > { %15236 = sst [smem:[#allocation37_spill]] %s13093_s7  ;;  %s13270_s4 = sadd.s32 4294967295, %s13093_s7   ;;  %s13093_s7 = sphi %s13264_s7, %s46_s7  }
  0x1e   : > { %p9552_p0 = scmp.ge.s32.totalorder %s13093_s7, 1  ;;  %p649_p1 = scmp.lt.s32.totalorder %s13093_s7, 3 }
  0x1f   : > { %p15206_p2 = scmp.eq.s32.totalorder %s13270_s4, 0  ;;  %s13095_s30 = smov [#allocation4]  }
  0x20   : > { %p13275_p3 = pnand %p9552_p0, %p649_p1  ;;  %s683_s9 = sshll.u32 %s13095_s30, 4  ;;  %s13279_s9 = int_to_ptr.vmem [resolvable:$true] %s683_s9 }
  0x21   : > { %s13096_s5 = smov [#allocation7]   ;;  %s13097_s10 = smov [#allocation10]  }
  0x22   : > { %s15237_s8 = scalar_select %p13275_p3, 1, 0 }
  0x23   : > { %p11859_p4 = pneg %p13275_p3  ;;  %s713_s28 = sshll.u32 %s13096_s5, 4  ;;  %s13283_s28 = int_to_ptr.vmem [resolvable:$true] %s713_s28 }
  0x24   : > { %s737_s29 = sshll.u32 %s13097_s10, 4  ;;  %s13098_s1 = smov [#allocation13]   ;;  %s13291_s29 = int_to_ptr.vmem [resolvable:$true] %s737_s29 }
  0x25   : > { %p13287_p5 = pnand %p15206_p2, %p11859_p4  ;;  %s13293_s6 = sshll.u32 %s13098_s1, 4  ;;  %s762_s6 = int_to_ptr.vmem [resolvable:$true] %s13293_s6 }
  0x26   : > { %s15239_s3 = sld [smem:[#allocation43_spill]] }
  0x27   : > { %p13303_p7 = pneg %p13287_p5 }
  0x2c   : > { %s12575_s30 = scalar_lea.hbm %s15239_s3, 1024 }
  0x2d   : > { %p12576_p6 = scmp.ne.s32.totalorder %s15239_s3, %s12575_s30  ;;  %p12582_p10 = scmp.lt.u32.totalorder %s12575_s30, %s15239_s3 }
  0x2f   : > { %p12578_p8 = pnand %p13303_p7, %p12576_p6 }
  0x31   : > { %p12579_p9 = pneg %p12578_p8 }
  0x33   : > { %p12584_p11 = pnand %p12582_p10, %p12579_p9 }
  0x35   : > { %12587 = shalt.err (!%p12584_p11)
}
  0x36   : > { %s12588_s7 = scalar_lea.vmem %s13279_s9, 1024  ;;  %p12596_p1 = scmp.lt.s32.totalorder %s13279_s9, %s13279_s9 }
  0x37   : > { %p12589_p12 = scmp.ne.s32.totalorder %s13279_s9, %s12588_s7  ;;  %p12597_p4 = scmp.lt.s32.totalorder %s12588_s7, %s12588_s7 }
  0x39   : > { %p12591_p13 = pnand %p12589_p12, %p13303_p7  ;;  %p12598_p6 = por %p12597_p4, %p12596_p1 }
  0x3b   : > { %p12592_p0 = pneg %p12591_p13 }
  0x3d   : > { %p12599_p8 = pnand %p12598_p6, %p12592_p0 }
  0x3f   : > { %12602 = shalt.err (!%p12599_p8)
}
  0x40   : > { %s15208_s11 = smov 64   ;;  %s15210_s2 = smov 4  }
  0x41   : > { %11865 = dma.hbm_to_vmem [thread:$0]  (!%p13287_p5), %s15239_s3, 1024, %s13279_s9, [#allocation5], %s15208_s11, %s15208_s11, %s15210_s2  }
  0x42   : > { %s15241_s24 = sld [smem:[#allocation46_spill]] }
  0x48   : > { %s12603_s7 = scalar_lea.hbm %s15241_s24, 16 }
  0x49   : > { %p12604_p9 = scmp.ne.s32.totalorder %s15241_s24, %s12603_s7  ;;  %p12610_p12 = scmp.lt.u32.totalorder %s12603_s7, %s15241_s24 }
  0x4b   : > { %p12606_p10 = pnand %p12604_p9, %p13303_p7 }
  0x4d   : > { %p12607_p11 = pneg %p12606_p10 }
  0x4f   : > { %p12612_p13 = pnand %p12610_p12, %p12607_p11 }
  0x51   : > { %12615 = shalt.err (!%p12612_p13)
}
  0x52   : > { %s12616_s9 = scalar_lea.vmem %s13283_s28, 16  ;;  %s12623_s23 = scalar_lea.vmem %s13283_s28, 32 }
  0x53   : > { %p12617_p0 = scmp.ne.s32.totalorder %s13283_s28, %s12616_s9  ;;  %p12624_p6 = scmp.lt.s32.totalorder %s13283_s28, %s13283_s28 }
  0x54   : > { %p12625_p8 = scmp.lt.s32.totalorder %s12623_s23, %s12616_s9 }
  0x55   : > { %p12619_p1 = pnand %p12617_p0, %p13303_p7 }
  0x56   : > { %p12626_p9 = por %p12625_p8, %p12624_p6 }
  0x57   : > { %p12620_p4 = pneg %p12619_p1 }
  0x59   : > { %p12627_p10 = pnand %p12626_p9, %p12620_p4 }
  0x5b   : > { %12630 = shalt.err (!%p12627_p10)
}
  0x5c   : > { %11871 = dma.hbm_to_vmem [thread:$0]  (!%p13287_p5), %s15241_s24, 16, %s13283_s28, [#allocation8]  }
  0x5d   : > { %s15242_s5 = sld [smem:[#allocation48_spill]] }
  0x63   : > { %s12631_s10 = scalar_lea.hbm %s15242_s5, 16 }
  0x64   : > { %p12632_p11 = scmp.ne.s32.totalorder %s15242_s5, %s12631_s10  ;;  %p12638_p0 = scmp.lt.u32.totalorder %s12631_s10, %s15242_s5 }
  0x66   : > { %p12634_p12 = pnand %p12632_p11, %p13303_p7 }
  0x68   : > { %p12635_p13 = pneg %p12634_p12 }
  0x6a   : > { %p12640_p1 = pnand %p12638_p0, %p12635_p13 }
  0x6c   : > { %12643 = shalt.err (!%p12640_p1)
}
  0x6d   : > { %s12644_s28 = scalar_lea.vmem %s13291_s29, 16  ;;  %s12651_s17 = scalar_lea.vmem %s13291_s29, 32 }
  0x6e   : > { %p12645_p4 = scmp.ne.s32.totalorder %s13291_s29, %s12644_s28  ;;  %p12652_p9 = scmp.lt.s32.totalorder %s13291_s29, %s13291_s29 }
  0x6f   : > { %p12653_p10 = scmp.lt.s32.totalorder %s12651_s17, %s12644_s28 }
  0x70   : > { %p12647_p6 = pnand %p12645_p4, %p13303_p7 }
  0x71   : > { %p12654_p11 = por %p12653_p10, %p12652_p9 }
  0x72   : > { %p12648_p8 = pneg %p12647_p6 }
  0x74   : > { %p12655_p12 = pnand %p12654_p11, %p12648_p8 }
  0x76   : > { %12658 = shalt.err (!%p12655_p12)
}
  0x77   : > { %11877 = dma.hbm_to_vmem [thread:$0]  (!%p13287_p5), %s15242_s5, 16, %s13291_s29, [#allocation11]  }
  0x78   : > { %s15243_s12 = sld [smem:[#allocation50_spill]] }
  0x7e   : > { %s12659_s1 = scalar_lea.hbm %s15243_s12, 16 }
  0x7f   : > { %p12660_p13 = scmp.ne.s32.totalorder %s15243_s12, %s12659_s1  ;;  %p12666_p4 = scmp.lt.u32.totalorder %s12659_s1, %s15243_s12 }
  0x81   : > { %p12662_p0 = pnand %p12660_p13, %p13303_p7 }
  0x83   : > { %p12663_p1 = pneg %p12662_p0 }
  0x85   : > { %p12668_p6 = pnand %p12666_p4, %p12663_p1 }
  0x87   : > { %12671 = shalt.err (!%p12668_p6)
}
  0x88   : > { %s12672_s17 = scalar_lea.vmem %s762_s6, 16  ;;  %s12679_s29 = scalar_lea.vmem %s762_s6, 32 }
  0x89   : > { %p12673_p8 = scmp.ne.s32.totalorder %s762_s6, %s12672_s17  ;;  %p12680_p11 = scmp.lt.s32.totalorder %s762_s6, %s762_s6 }
  0x8a   : > { %p12681_p12 = scmp.lt.s32.totalorder %s12679_s29, %s12672_s17 }
  0x8b   : > { %p12675_p9 = pnand %p12673_p8, %p13303_p7 }
  0x8c   : > { %p12682_p2 = por %p12681_p12, %p12680_p11 }
  0x8d   : > { %p12676_p10 = pneg %p12675_p9 }
  0x8f   : > { %p12683_p3 = pnand %p12682_p2, %p12676_p10 }
  0x91   : > { %12686 = shalt.err (!%p12683_p3)
}
  0x92   : > { %11883 = dma.hbm_to_vmem [thread:$0]  (!%p13287_p5), %s15243_s12, 16, %s762_s6, [#allocation14]  }
  0x93   : > { %s13101_s30 = smov [#allocation16]   ;;  %s13102_s1 = smov [#allocation19]  }
  0x94   : > { %s785_s10 = sshll.u32 %s13101_s30, 4  ;;  %s809_s7 = sshll.u32 %s13102_s1, 4  ;;  %s786_s10 = int_to_ptr.vmem [resolvable:$true] %s785_s10  ;;  %s810_s7 = int_to_ptr.vmem [resolvable:$true] %s809_s7 }
  0x95   : > { %s12687_s28 = scalar_lea.hbm %s15179_s14, 16 }
  0x96   : > { %p12688_p2 = scmp.ne.s32.totalorder %s15179_s14, %s12687_s28  ;;  %p12694_p0 = scmp.lt.u32.totalorder %s12687_s28, %s15179_s14 }
  0x98   : > { %p12690_p3 = pnand %p12688_p2, %p13303_p7 }
  0x9a   : > { %p12691_p13 = pneg %p12690_p3 }
  0x9c   : > { %p12696_p1 = pnand %p12694_p0, %p12691_p13 }
  0x9e   : > { %12699 = shalt.err (!%p12696_p1)
}
  0x9f   : > { %s12700_s6 = scalar_lea.vmem %s786_s10, 16  ;;  %s12707_s26 = scalar_lea.vmem %s786_s10, 32 }
  0xa0   : > { %p12701_p4 = scmp.ne.s32.totalorder %s786_s10, %s12700_s6  ;;  %p12708_p9 = scmp.lt.s32.totalorder %s786_s10, %s786_s10 }
  0xa1   : > { %p12709_p10 = scmp.lt.s32.totalorder %s12707_s26, %s12700_s6 }
  0xa2   : > { %p12703_p6 = pnand %p12701_p4, %p13303_p7 }
  0xa3   : > { %p12710_p11 = por %p12709_p10, %p12708_p9 }
  0xa4   : > { %p12704_p8 = pneg %p12703_p6 }
  0xa6   : > { %p12711_p12 = pnand %p12710_p11, %p12704_p8 }
  0xa8   : > { %12714 = shalt.err (!%p12711_p12)
}
  0xa9   : > { %11889 = dma.hbm_to_vmem [thread:$0]  (!%p13287_p5), %s15179_s14, 16, %s786_s10, [#allocation17]  }
  0xaa   : > { %s12715_s23 = scalar_lea.hbm %s15181_s16, 16 }
  0xab   : > { %p12716_p2 = scmp.ne.s32.totalorder %s15181_s16, %s12715_s23  ;;  %p12722_p0 = scmp.lt.u32.totalorder %s12715_s23, %s15181_s16 }
  0xad   : > { %p12718_p3 = pnand %p12716_p2, %p13303_p7 }
  0xaf   : > { %p12719_p13 = pneg %p12718_p3 }
  0xb1   : > { %p12724_p1 = pnand %p12722_p0, %p12719_p13 }
  0xb3   : > { %12727 = shalt.err (!%p12724_p1)
}
  0xb4   : > { %s12728_s6 = scalar_lea.vmem %s810_s7, 16  ;;  %s12735_s10 = scalar_lea.vmem %s810_s7, 32 }
  0xb5   : > { %p12729_p4 = scmp.ne.s32.totalorder %s810_s7, %s12728_s6  ;;  %p12736_p9 = scmp.lt.s32.totalorder %s810_s7, %s810_s7 }
  0xb6   : > { %p12737_p10 = scmp.lt.s32.totalorder %s12735_s10, %s12728_s6 }
  0xb7   : > { %p12731_p6 = pnand %p12729_p4, %p13303_p7 }
  0xb8   : > { %p12738_p11 = por %p12737_p10, %p12736_p9 }
  0xb9   : > { %p12732_p8 = pneg %p12731_p6 }
  0xbb   : > { %p12739_p12 = pnand %p12738_p11, %p12732_p8 }
  0xbd   : > { %12742 = shalt.err (!%p12739_p12)
}
  0xbe   : > { %11895 = dma.hbm_to_vmem [thread:$0]  (!%p13287_p5), %s15181_s16, 16, %s810_s7, [#allocation20]  }
  0xbf   : > { %s13103_s1 = smov [#allocation22]   ;;  %s12743_s28 = scalar_lea.hbm %s15184_s19, 1024 }
  0xc0   : > { %s833_s11 = sshll.u32 %s13103_s1, 4  ;;  %p12744_p2 = scmp.ne.s32.totalorder %s15184_s19, %s12743_s28  ;;  %s834_s11 = int_to_ptr.vmem [resolvable:$true] %s833_s11 }
  0xc1   : > { %p12750_p0 = scmp.lt.u32.totalorder %s12743_s28, %s15184_s19 }
  0xc2   : > { %p12746_p3 = pnand %p12744_p2, %p13303_p7 }
  0xc4   : > { %p12747_p13 = pneg %p12746_p3 }
  0xc6   : > { %p12752_p1 = pnand %p12750_p0, %p12747_p13 }
  0xc8   : > { %12755 = shalt.err (!%p12752_p1)
}
  0xc9   : > { %s12756_s7 = scalar_lea.vmem %s834_s11, 1024  ;;  %p12764_p9 = scmp.lt.s32.totalorder %s834_s11, %s834_s11 }
  0xca   : > { %p12757_p4 = scmp.ne.s32.totalorder %s834_s11, %s12756_s7  ;;  %p12765_p10 = scmp.lt.s32.totalorder %s12756_s7, %s12756_s7 }
  0xcc   : > { %p12759_p6 = pnand %p12757_p4, %p13303_p7  ;;  %p12766_p11 = por %p12765_p10, %p12764_p9 }
  0xce   : > { %p12760_p8 = pneg %p12759_p6 }
  0xd0   : > { %p12767_p12 = pnand %p12766_p11, %p12760_p8 }
  0xd2   : > { %12770 = shalt.err (!%p12767_p12)
}
  0xd3   : > { %s15212_s10 = smov 256   ;;  %s15213_s26 = smov 16  }
  0xd4   : > { %11901 = dma.hbm_to_vmem [thread:$0]  (!%p13287_p5), %s15184_s19, 1024, %s834_s11, [#allocation23], %s15212_s10, %s15212_s10, %s15213_s26  }
  0xd5   : > { %s13106_s9 = smov [#allocation25]   ;;  %s13107_s28 = smov [#allocation2]  }
  0xd6   : > { %s862_s23 = sshll.u32 %s13106_s9, 4  ;;  %s667_s17 = sshll.u32 %s13107_s28, 4  ;;  %s863_s23 = int_to_ptr.vmem [resolvable:$true] %s862_s23  ;;  %s13451_s17 = int_to_ptr.vmem [resolvable:$true] %s667_s17 }
  0xd7   : > { %s12771_s6 = scalar_lea.hbm %s15187_s22, 896 }
  0xd8   : > { %p12772_p2 = scmp.ne.s32.totalorder %s15187_s22, %s12771_s6  ;;  %p12778_p0 = scmp.lt.u32.totalorder %s12771_s6, %s15187_s22 }
  0xda   : > { %p12774_p3 = pnand %p12772_p2, %p13303_p7 }
  0xdc   : > { %p12775_p13 = pneg %p12774_p3 }
  0xde   : > { %p12780_p1 = pnand %p12778_p0, %p12775_p13 }
  0xe0   : > { %12783 = shalt.err (!%p12780_p1)
}
  0xe1   : > { %s12784_s1 = scalar_lea.vmem %s863_s23, 896  ;;  %p12792_p9 = scmp.lt.s32.totalorder %s863_s23, %s863_s23 }
  0xe2   : > { %p12785_p4 = scmp.ne.s32.totalorder %s863_s23, %s12784_s1  ;;  %p12793_p10 = scmp.lt.s32.totalorder %s12784_s1, %s12784_s1 }
  0xe4   : > { %p12787_p6 = pnand %p12785_p4, %p13303_p7  ;;  %p12794_p11 = por %p12793_p10, %p12792_p9 }
  0xe6   : > { %p12788_p8 = pneg %p12787_p6 }
  0xe8   : > { %p12795_p12 = pnand %p12794_p11, %p12788_p8 }
  0xea   : > { %12798 = shalt.err (!%p12795_p12)
}
  0xeb   : > { %s15244_s2 = smov 4   ;;  %s15245_s9 = smov 64  }
  0xec   : > { %11907 = dma.hbm_to_vmem [thread:$0]  (!%p13287_p5), %s15187_s22, 896, %s863_s23, [#allocation26], %s15245_s9, %s15245_s9, %s15244_s2  }
  0xed   : > { %s15246_s7 = sld [smem:[#allocation41_spill]] }
  0xf3   : > { %s15247_s30 = smov %s15246_s7  ;;  %s12799_s11 = scalar_lea.hbm %s15246_s7, 3072 }
  0xf4   : > { %p12800_p2 = scmp.ne.s32.totalorder %s15247_s30, %s12799_s11  ;;  %p12806_p0 = scmp.lt.u32.totalorder %s12799_s11, %s15247_s30 }
  0xf6   : > { %p12802_p3 = pnand %p12800_p2, %p13303_p7 }
  0xf8   : > { %p12803_p13 = pneg %p12802_p3 }
  0xfa   : > { %p12808_p1 = pnand %p12806_p0, %p12803_p13 }
  0xfc   : > { %12811 = shalt.err (!%p12808_p1)
}
  0xfd   : > { %s12812_s23 = scalar_lea.vmem %s13451_s17, 3072  ;;  %p12820_p9 = scmp.lt.s32.totalorder %s13451_s17, %s13451_s17 }
  0xfe   : > { %p12813_p4 = scmp.ne.s32.totalorder %s13451_s17, %s12812_s23  ;;  %p12821_p10 = scmp.lt.s32.totalorder %s12812_s23, %s12812_s23 }
 0x100   : > { %p12815_p6 = pnand %p12813_p4, %p13303_p7  ;;  %p12822_p11 = por %p12821_p10, %p12820_p9 }
 0x102   : > { %p12816_p8 = pneg %p12815_p6 }
 0x104   : > { %p12823_p12 = pnand %p12822_p11, %p12816_p8 }
 0x106   : > { %12826 = shalt.err (!%p12823_p12)
}
 0x107   : > { %11862 = dma.hbm_to_vmem [thread:$0]  (!%p13287_p5), %s15247_s30, 3072, %s13451_s17, [#allocation3], %s15245_s9, %s15245_s9, %s15244_s2  }
 0x108   : > { %s13108_s26 = smov [#allocation6]   ;;  %s13109_s29 = smov [#allocation9]  }
 0x109   : > { %s699_s28 = sshll.u32 %s13108_s26, 4  ;;  %s723_s21 = sshll.u32 %s13109_s29, 4  ;;  %s700_s28 = int_to_ptr.vmem [resolvable:$true] %s699_s28  ;;  %s13500_s21 = int_to_ptr.vmem [resolvable:$true] %s723_s21 }
 0x10a   : > { %s15248_s11 = sld [smem:[#allocation45_spill]] }
 0x110   : > { %s12827_s1 = scalar_lea.hbm %s15248_s11, 1024 }
 0x111   : > { %p12828_p2 = scmp.ne.s32.totalorder %s15248_s11, %s12827_s1  ;;  %p12834_p0 = scmp.lt.u32.totalorder %s12827_s1, %s15248_s11 }
 0x113   : > { %p12830_p3 = pnand %p12828_p2, %p13303_p7 }
 0x115   : > { %p12831_p13 = pneg %p12830_p3 }
 0x117   : > { %p12836_p1 = pnand %p12834_p0, %p12831_p13 }
 0x119   : > { %12839 = shalt.err (!%p12836_p1)
}
 0x11a   : > { %s12840_s10 = scalar_lea.vmem %s700_s28, 1024  ;;  %p12848_p9 = scmp.lt.s32.totalorder %s700_s28, %s700_s28 }
 0x11b   : > { %p12841_p4 = scmp.ne.s32.totalorder %s700_s28, %s12840_s10  ;;  %p12849_p10 = scmp.lt.s32.totalorder %s12840_s10, %s12840_s10 }
 0x11d   : > { %p12843_p6 = pnand %p12841_p4, %p13303_p7  ;;  %p12850_p11 = por %p12849_p10, %p12848_p9 }
 0x11f   : > { %p12844_p8 = pneg %p12843_p6 }
 0x121   : > { %p12851_p12 = pnand %p12850_p11, %p12844_p8 }
 0x123   : > { %12854 = shalt.err (!%p12851_p12)
}
 0x124   : > { %11868 = dma.hbm_to_vmem [thread:$0]  (!%p13287_p5), %s15248_s11, 1024, %s700_s28, [#allocation5], %s15245_s9, %s15245_s9, %s15244_s2  }
 0x125   : > { %s15249_s7 = sld [smem:[#allocation47_spill]] }
 0x12b   : > { %s15250_s1 = smov %s15249_s7  ;;  %s12855_s23 = scalar_lea.hbm %s15249_s7, 4096 }
 0x12c   : > { %p12856_p2 = scmp.ne.s32.totalorder %s15250_s1, %s12855_s23  ;;  %p12862_p0 = scmp.lt.u32.totalorder %s12855_s23, %s15250_s1 }
 0x12e   : > { %p12858_p3 = pnand %p12856_p2, %p13303_p7 }
 0x130   : > { %p12859_p13 = pneg %p12858_p3 }
 0x132   : > { %p12864_p1 = pnand %p12862_p0, %p12859_p13 }
 0x134   : > { %12867 = shalt.err (!%p12864_p1)
}
 0x135   : > { %s12868_s28 = scalar_lea.vmem %s13500_s21, 4096  ;;  %p12876_p9 = scmp.lt.s32.totalorder %s13500_s21, %s13500_s21 }
 0x136   : > { %p12869_p4 = scmp.ne.s32.totalorder %s13500_s21, %s12868_s28  ;;  %p12877_p10 = scmp.lt.s32.totalorder %s12868_s28, %s12868_s28 }
 0x138   : > { %p12871_p6 = pnand %p12869_p4, %p13303_p7  ;;  %p12878_p11 = por %p12877_p10, %p12876_p9 }
 0x13a   : > { %p12872_p8 = pneg %p12871_p6 }
 0x13c   : > { %p12879_p12 = pnand %p12878_p11, %p12872_p8 }
 0x13e   : > { %12882 = shalt.err (!%p12879_p12)
}
 0x13f   : > { %11874 = dma.hbm_to_vmem [thread:$0]  (!%p13287_p5), %s15250_s1, 4096, %s13500_s21, [#allocation8], %s15245_s9, %s15245_s9, %s15244_s2  }
 0x140   : > { %s13110_s26 = smov [#allocation12]   ;;  %s13111_s6 = smov [#allocation15]  }
 0x141   : > { %s747_s29 = sshll.u32 %s13110_s26, 4  ;;  %s771_s7 = sshll.u32 %s13111_s6, 4  ;;  %s748_s29 = int_to_ptr.vmem [resolvable:$true] %s747_s29  ;;  %s13549_s7 = int_to_ptr.vmem [resolvable:$true] %s771_s7 }
 0x142   : > { %s15251_s17 = sld [smem:[#allocation49_spill]] }
 0x148   : > { %s12883_s10 = scalar_lea.hbm %s15251_s17, 3072 }
 0x149   : > { %p12884_p2 = scmp.ne.s32.totalorder %s15251_s17, %s12883_s10  ;;  %p12890_p0 = scmp.lt.u32.totalorder %s12883_s10, %s15251_s17 }
 0x14b   : > { %p12886_p3 = pnand %p12884_p2, %p13303_p7 }
 0x14d   : > { %p12887_p13 = pneg %p12886_p3 }
 0x14f   : > { %p12892_p1 = pnand %p12890_p0, %p12887_p13 }
 0x151   : > { %12895 = shalt.err (!%p12892_p1)
}
 0x152   : > { %s12896_s5 = scalar_lea.vmem %s748_s29, 3072  ;;  %p12904_p9 = scmp.lt.s32.totalorder %s748_s29, %s748_s29 }
 0x153   : > { %p12897_p4 = scmp.ne.s32.totalorder %s748_s29, %s12896_s5  ;;  %p12905_p10 = scmp.lt.s32.totalorder %s12896_s5, %s12896_s5 }
 0x155   : > { %p12899_p6 = pnand %p12897_p4, %p13303_p7  ;;  %p12906_p11 = por %p12905_p10, %p12904_p9 }
 0x157   : > { %p12900_p8 = pneg %p12899_p6 }
 0x159   : > { %p12907_p12 = pnand %p12906_p11, %p12900_p8 }
 0x15b   : > { %12910 = shalt.err (!%p12907_p12)
}
 0x15c   : > { %11880 = dma.hbm_to_vmem [thread:$0]  (!%p13287_p5), %s15251_s17, 3072, %s748_s29, [#allocation11], %s15245_s9, %s15245_s9, %s15244_s2  }
 0x15d   : > { %s12911_s3 = scalar_lea.hbm %s15178_s13, 1024 }
 0x15e   : > { %p12912_p2 = scmp.ne.s32.totalorder %s15178_s13, %s12911_s3  ;;  %p12918_p0 = scmp.lt.u32.totalorder %s12911_s3, %s15178_s13 }
 0x160   : > { %p12914_p3 = pnand %p12912_p2, %p13303_p7 }
 0x162   : > { %p12915_p13 = pneg %p12914_p3 }
 0x164   : > { %p12920_p1 = pnand %p12918_p0, %p12915_p13 }
 0x166   : > { %12923 = shalt.err (!%p12920_p1)
}
 0x167   : > { %s12924_s29 = scalar_lea.vmem %s13549_s7, 1024  ;;  %p12932_p9 = scmp.lt.s32.totalorder %s13549_s7, %s13549_s7 }
 0x168   : > { %p12925_p4 = scmp.ne.s32.totalorder %s13549_s7, %s12924_s29  ;;  %p12933_p10 = scmp.lt.s32.totalorder %s12924_s29, %s12924_s29 }
 0x16a   : > { %p12927_p6 = pnand %p12925_p4, %p13303_p7  ;;  %p12934_p11 = por %p12933_p10, %p12932_p9 }
 0x16c   : > { %p12928_p8 = pneg %p12927_p6 }
 0x16e   : > { %p12935_p12 = pnand %p12934_p11, %p12928_p8 }
 0x170   : > { %12938 = shalt.err (!%p12935_p12)
}
 0x171   : > { %11886 = dma.hbm_to_vmem [thread:$0]  (!%p13287_p5), %s15178_s13, 1024, %s13549_s7, [#allocation14], %s15245_s9, %s15245_s9, %s15244_s2  }
 0x172   : > { %s13112_s26 = smov [#allocation18]   ;;  %s13113_s23 = smov [#allocation21]  }
 0x173   : > { %s795_s6 = sshll.u32 %s13112_s26, 4  ;;  %s823_s3 = sshll.u32 %s13113_s23, 4  ;;  %s796_s6 = int_to_ptr.vmem [resolvable:$true] %s795_s6  ;;  %s13598_s3 = int_to_ptr.vmem [resolvable:$true] %s823_s3 }
 0x174   : > { %s12939_s12 = scalar_lea.hbm %s15180_s15, 1024 }
 0x175   : > { %p12940_p2 = scmp.ne.s32.totalorder %s15180_s15, %s12939_s12  ;;  %p12946_p0 = scmp.lt.u32.totalorder %s12939_s12, %s15180_s15 }
 0x177   : > { %p12942_p3 = pnand %p12940_p2, %p13303_p7 }
 0x179   : > { %p12943_p13 = pneg %p12942_p3 }
 0x17b   : > { %p12948_p1 = pnand %p12946_p0, %p12943_p13 }
 0x17d   : > { %12951 = shalt.err (!%p12948_p1)
}
 0x17e   : > { %s12952_s11 = scalar_lea.vmem %s796_s6, 1024  ;;  %p12960_p9 = scmp.lt.s32.totalorder %s796_s6, %s796_s6 }
 0x17f   : > { %p12953_p4 = scmp.ne.s32.totalorder %s796_s6, %s12952_s11  ;;  %p12961_p10 = scmp.lt.s32.totalorder %s12952_s11, %s12952_s11 }
 0x181   : > { %p12955_p6 = pnand %p12953_p4, %p13303_p7  ;;  %p12962_p11 = por %p12961_p10, %p12960_p9 }
 0x183   : > { %p12956_p8 = pneg %p12955_p6 }
 0x185   : > { %p12963_p12 = pnand %p12962_p11, %p12956_p8 }
 0x187   : > { %12966 = shalt.err (!%p12963_p12)
}
 0x188   : > { %11892 = dma.hbm_to_vmem [thread:$0]  (!%p13287_p5), %s15180_s15, 1024, %s796_s6, [#allocation17], %s15245_s9, %s15245_s9, %s15244_s2  }
 0x189   : > { %s12967_s12 = scalar_lea.hbm %s15183_s18, 16 }
 0x18a   : > { %p12968_p2 = scmp.ne.s32.totalorder %s15183_s18, %s12967_s12  ;;  %p12974_p0 = scmp.lt.u32.totalorder %s12967_s12, %s15183_s18 }
 0x18c   : > { %p12970_p3 = pnand %p12968_p2, %p13303_p7 }
 0x18e   : > { %p12971_p13 = pneg %p12970_p3 }
 0x190   : > { %p12976_p1 = pnand %p12974_p0, %p12971_p13 }
 0x192   : > { %12979 = shalt.err (!%p12976_p1)
}
 0x193   : > { %s12980_s2 = scalar_lea.vmem %s13598_s3, 16  ;;  %s12987_s9 = scalar_lea.vmem %s13598_s3, 32 }
 0x194   : > { %p12981_p4 = scmp.ne.s32.totalorder %s13598_s3, %s12980_s2  ;;  %p12988_p9 = scmp.lt.s32.totalorder %s13598_s3, %s13598_s3 }
 0x195   : > { %p12989_p10 = scmp.lt.s32.totalorder %s12987_s9, %s12980_s2 }
 0x196   : > { %p12983_p6 = pnand %p12981_p4, %p13303_p7 }
 0x197   : > { %p12990_p11 = por %p12989_p10, %p12988_p9 }
 0x198   : > { %p12984_p8 = pneg %p12983_p6 }
 0x19a   : > { %p12991_p12 = pnand %p12990_p11, %p12984_p8 }
 0x19c   : > { %12994 = shalt.err (!%p12991_p12)
}
 0x19d   : > { %11898 = dma.hbm_to_vmem [thread:$0]  (!%p13287_p5), %s15183_s18, 16, %s13598_s3, [#allocation20]  }
 0x19e   : > { %s13114_s26 = smov [#allocation24]   ;;  %s13115_s10 = smov [#allocation27]  }
 0x19f   : > { %s846_s23 = sshll.u32 %s13114_s26, 4  ;;  %s881_s28 = sshll.u32 %s13115_s10, 4  ;;  %s847_s23 = int_to_ptr.vmem [resolvable:$true] %s846_s23  ;;  %s13645_s28 = int_to_ptr.vmem [resolvable:$true] %s881_s28 }
 0x1a0   : > { %s12995_s29 = scalar_lea.hbm %s15185_s20, 1024 }
 0x1a1   : > { %p12996_p2 = scmp.ne.s32.totalorder %s15185_s20, %s12995_s29  ;;  %p13002_p0 = scmp.lt.u32.totalorder %s12995_s29, %s15185_s20 }
 0x1a3   : > { %p12998_p3 = pnand %p12996_p2, %p13303_p7 }
 0x1a5   : > { %p12999_p13 = pneg %p12998_p3 }
 0x1a7   : > { %p13004_p1 = pnand %p13002_p0, %p12999_p13 }
 0x1a9   : > { %13007 = shalt.err (!%p13004_p1)
}
 0x1aa   : > { %s13008_s9 = scalar_lea.vmem %s847_s23, 1024  ;;  %p13016_p9 = scmp.lt.s32.totalorder %s847_s23, %s847_s23 }
 0x1ab   : > { %p13009_p4 = scmp.ne.s32.totalorder %s847_s23, %s13008_s9  ;;  %p13017_p10 = scmp.lt.s32.totalorder %s13008_s9, %s13008_s9 }
 0x1ad   : > { %p13011_p6 = pnand %p13009_p4, %p13303_p7  ;;  %p13018_p11 = por %p13017_p10, %p13016_p9 }
 0x1af   : > { %p13012_p8 = pneg %p13011_p6 }
 0x1b1   : > { %p13019_p12 = pnand %p13018_p11, %p13012_p8 }
 0x1b3   : > { %13022 = shalt.err (!%p13019_p12)
}
 0x1b4   : > { %s15252_s6 = smov 16   ;;  %s15253_s11 = smov 256  }
 0x1b5   : > { %11904 = dma.hbm_to_vmem [thread:$0]  (!%p13287_p5), %s15185_s20, 1024, %s847_s23, [#allocation23], %s15253_s11, %s15253_s11, %s15252_s6  }
 0x1b6   : > { %s13023_s29 = scalar_lea.hbm %s15190_s25, 1024 }
 0x1b7   : > { %p13024_p2 = scmp.ne.s32.totalorder %s15190_s25, %s13023_s29  ;;  %p13030_p0 = scmp.lt.u32.totalorder %s13023_s29, %s15190_s25 }
 0x1b9   : > { %p13026_p3 = pnand %p13024_p2, %p13303_p7 }
 0x1bb   : > { %p13027_p13 = pneg %p13026_p3 }
 0x1bd   : > { %p13032_p1 = pnand %p13030_p0, %p13027_p13 }
 0x1bf   : > { %13035 = shalt.err (!%p13032_p1)
}
 0x1c0   : > { %s13036_s23 = scalar_lea.vmem %s13645_s28, 1024  ;;  %p13044_p9 = scmp.lt.s32.totalorder %s13645_s28, %s13645_s28 }
 0x1c1   : > { %p13037_p4 = scmp.ne.s32.totalorder %s13645_s28, %s13036_s23  ;;  %p13045_p10 = scmp.lt.s32.totalorder %s13036_s23, %s13036_s23 }
 0x1c3   : > { %p13039_p6 = pnand %p13037_p4, %p13303_p7  ;;  %p13046_p11 = por %p13045_p10, %p13044_p9 }
 0x1c5   : > { %p13040_p8 = pneg %p13039_p6 }
 0x1c7   : > { %p13047_p12 = pnand %p13046_p11, %p13040_p8 }
 0x1c9   : > { %13050 = shalt.err (!%p13047_p12)
}
 0x1ca   : > { %s13116_s9 = smov 128   ;;  %s13117_s6 = smov 8  }
 0x1cb   : > { %11910 = dma.hbm_to_vmem [thread:$0]  (!%p13287_p5), %s15190_s25, 1024, %s13645_s28, [#allocation26], %s13116_s9, %s13116_s9, %s13117_s6  }
 0x1cc   : > { %p15254_p2 = scmp.ne.s32.totalorder %s15237_s8, 0 }
 0x1cd   : > { %p15255_p7 = scmp.eq.s32.totalorder (!%p15254_p2), %s13270_s4, 0 }
 0x1ce   : > { %908 = sbr.rel (%p15254_p2) target bundleno = 11183 (0x2baf), region = 128 }
 0x1d5   : > { %13056 = dma.done.wait (%p15255_p7), [#allocation3], 3072   ;;  %p15256_p3 = pmov %p15255_p7 }
 0x1d7   : > { %13058 = vsyncadd (%p15256_p3), [#allocation3], 4294964224  ;;  %p15257_p13 = pmov %p15256_p3 }
 0x1d8   : > { %p15258_p0 = pmov %p15256_p3 }
 0x1d9   : > { %13060 = dma.done.wait (%p15257_p13), [#allocation5], 2048  }
 0x1da   : > { %13062 = vsyncadd (%p15258_p0), [#allocation5], 4294965248  ;;  %p15259_p1 = pmov %p15258_p0 }
 0x1db   : > { %p15260_p5 = pmov %p15258_p0 }
 0x1dc   : > { %13064 = dma.done.wait (%p15259_p1), [#allocation8], 4112  }
 0x1dd   : > { %13066 = vsyncadd (%p15260_p5), [#allocation8], 4294963184  ;;  %p15261_p4 = pmov %p15258_p0 }
 0x1de   : > { %p15262_p6 = pmov %p15258_p0 }
 0x1df   : > { %13068 = dma.done.wait (%p15261_p4), [#allocation11], 3088  }
 0x1e0   : > { %13070 = vsyncadd (%p15262_p6), [#allocation11], 4294964208  ;;  %p15263_p8 = pmov %p15258_p0 }
 0x1e1   : > { %p15264_p9 = pmov %p15258_p0 }
 0x1e2   : > { %13072 = dma.done.wait (%p15263_p8), [#allocation14], 1040  }
 0x1e3   : > { %13074 = vsyncadd (%p15264_p9), [#allocation14], 4294966256  ;;  %p15265_p10 = pmov %p15258_p0 }
 0x1e4   : > { %p15266_p11 = pmov %p15258_p0 }
 0x1e5   : > { %13076 = dma.done.wait (%p15265_p10), [#allocation17], 1040  }
 0x1e6   : > { %13078 = vsyncadd (%p15266_p11), [#allocation17], 4294966256  ;;  %p15267_p12 = pmov %p15258_p0 }
 0x1e7   : > { %p15268_p2 = pmov %p15258_p0 }
 0x1e8   : > { %13080 = dma.done.wait (%p15267_p12), [#allocation20], 32  }
 0x1e9   : > { %13082 = vsyncadd (%p15268_p2), [#allocation20], 4294967264  ;;  %p15269_p7 = pmov %p15258_p0 }
 0x1ea   : > { %p15270_p3 = pmov %p15258_p0 }
 0x1eb   : > { %13084 = dma.done.wait (%p15269_p7), [#allocation23], 2048  }
 0x1ec   : > { %13086 = vsyncadd (%p15270_p3), [#allocation23], 4294965248  ;;  %p15271_p13 = pmov %p15258_p0 }
 0x1ee   : > { %13088 = dma.done.wait (%p15271_p13), [#allocation26], 1920  }
 0x1ef   : > { %13090 = vsyncadd (%p15258_p0), [#allocation26], 4294965376  ;;  %p1043_p1 = scmp.lt.s32.totalorder %s13270_s4, 1  ;;  %s15272_s0 = sld [smem:[#allocation39_spill]]  ;;  %vm1075_vm0 = vcmask 1042432   ;;  %vm1106_vm1 = vcmask 1040384  }
 0x1f0   : > { %s15273_s2 = sld [smem:[#allocation38_spill]]  ;;  %vm1108_vm2 = vcmask 1041408   ;;  %vm1154_vm3 = vsmask.f32 7424  ;;  %vm1112_vm4 = vcmask 1043456   ;;  %vm1114_vm5 = vcmask 1044480  }
 0x1f1   : > { %s15285_s4 = smov (!%p1043_p1, %s13270_s4), 1  ;;  %vm1595_vm6 = vsmask.f32 6400  ;;  %vm1443_vm7 = vcmask 1046528   ;;  %vm1911_vm8 = vsmask.f32 5376 }
 0x1f2   : > { %s10253_s12 = sshll.u32 %s15285_s4, 6  ;;  %vm1759_vm9 = vcmask 1045504   ;;  %s15274_s5 = sld [smem:[#allocation40_spill]] }
 0x1f3   : > { %s15276_s6 = sld [smem:[#allocation44_spill]]  ;;  %s15277_s27 = sld [smem:[#allocation51_spill]] }
 0x1f4   : > { %s15279_s11 = sld [smem:[#allocation53_spill]]  ;;  %s15280_s28 = sld [smem:[#allocation55_spill]] }
 0x1f5   : > { %v11982_v0 = vld [vmem:[%s15272_s0 + $0x40] sm:$0xff]   ;;  %v11983_v1 = vld [vmem:[%s15272_s0 + $0x48] sm:$0xff]   ;;  %v11984_v2 = vld [vmem:[%s15272_s0 + $0x50] sm:$0xff]   ;;  %s15281_s21 = sld [smem:[#allocation54_spill]]  ;;  %s9591_s23 = sshll.u32 %s15285_s4, 3 }
 0x1f6   : > { %10670 = vmatprep.subr.bf16.mxu0 %v11982_v0  ;;  %s13746_s3 = scalar_lea.vmem %s15273_s2, %s10253_s12  ;;  %v11985_v3 = vld [vmem:[%s15272_s0 + $0x58] sm:$0xff]   ;;  %v11986_v19 = vld [vmem:[%s15272_s0 + $0x60] sm:$0xff]   ;;  %v11987_v29 = vld [vmem:[%s15272_s0 + $0x68] sm:$0xff]   ;;  %s15278_s2 = sld [smem:[#allocation52_spill]] }
 0x1f7   : > { %10671 = vmatpush3.bf16.msra.mxu0 %v11982_v0  ;;  %v1053_v4 = vld [vmem:[%s13746_s3] sm:$0xff]  ;;  %v1054_v5 = vld [vmem:[%s13746_s3 + $0x8] sm:$0xff]  ;;  %v1055_v6 = vld [vmem:[%s13746_s3 + $0x10] sm:$0xff] }
 0x1f8   : > { %10672 = vmatprep.subr.bf16.mxu0 %v11983_v1  ;;  %v1056_v7 = vld [vmem:[%s13746_s3 + $0x18] sm:$0xff]  ;;  %v1062_v8 = vrot.slane %v1053_v4, 3  ;;  %v1064_v9 = vrot.slane %v1053_v4, 1  ;;  %v1066_v10 = vrot.slane %v1053_v4, 7  ;;  %v1076_v11 = vrot.slane %v1053_v4, 5  ;;  %v1057_v15 = vld [vmem:[%s13746_s3 + $0x20] sm:$0xff] }
 0x1f9   : > { %v1077_v12 = vrot.slane %v1054_v5, 5  ;;  %v1079_v13 = vrot.slane %v1055_v6, 5  ;;  %v1081_v14 = vrot.slane %v1056_v7, 5  ;;  %v1058_v17 = vld [vmem:[%s13746_s3 + $0x28] sm:$0xff]  ;;  %v1083_v18 = vrot.slane %v1057_v15, 5  ;;  %v1059_v35 = vld [vmem:[%s13746_s3 + $0x30] sm:$0xff] }
 0x1fa   : > { %v1107_v16 = vsel %vm1106_vm1, %v1062_v8, %v1064_v9  ;;  %v1085_v26 = vrot.slane %v1058_v17, 5  ;;  %v1060_v36 = vld [vmem:[%s13746_s3 + $0x38] sm:$0xff]  ;;  %v1087_v39 = vrot.slane %v1059_v35, 5  ;;  %v11988_v43 = vld [vmem:[%s15272_s0 + $0x70] sm:$0xff]   ;;  %v11990_v61 = vld [vmem:[%s15272_s0] sm:$0xff]   ;;  %s15275_s3 = sld [smem:[#allocation42_spill]] }
 0x1fb   : > { %10673 = vmatpush3.bf16.msra.mxu0 %v11983_v1  ;;  %v1078_v20 = vsel %vm1075_vm0, %v1076_v11, %v1077_v12  ;;  %v1080_v21 = vsel %vm1075_vm0, %v1077_v12, %v1079_v13  ;;  %v1082_v22 = vsel %vm1075_vm0, %v1079_v13, %v1081_v14  ;;  %v1109_v23 = vsel %vm1108_vm2, %v1107_v16, %v1066_v10  ;;  %v11989_v53 = vld [vmem:[%s15272_s0 + $0x78] sm:$0xff]   ;;  %v11992_v12 = vld [vmem:[%s15272_s0 + $0x10] sm:$0xff]  }
 0x1fc   : > { %10674 = vmatprep.subr.bf16.mxu0 %v11984_v2  ;;  %v1110_v24 = vsel %vm1075_vm0, %v1109_v23, %v1076_v11  ;;  %v13766_v25 = vpack.c.bf16 %v1082_v22, %v1080_v21  ;;  %v1084_v28 = vsel %vm1075_vm0, %v1081_v14, %v1083_v18  ;;  %v1086_v31 = vsel %vm1075_vm0, %v1083_v18, %v1085_v26  ;;  %v11993_v21 = vld [vmem:[%s15272_s0 + $0x18] sm:$0xff]  }
 0x1fd   : > { %v13768_v27 = vpack.c.bf16 %v1078_v20, %v1110_v24  ;;  %v13784_v34 = vpack.c.bf16 %v1086_v31, %v1084_v28  ;;  %v1089_v40 = vrot.slane %v1060_v36, 5  ;;  %v1100_v41 = vrot.slane %v1060_v36, 3  ;;  %v11994_v31 = vld [vmem:[%s15272_s0 + $0x20] sm:$0xff]  }
 0x1fe   : > { %v13775_v30 = vshll.u32 %v13766_v25, 16  ;;  %v1102_v42 = vrot.slane %v1060_v36, 1  ;;  %v1088_v45 = vsel %vm1075_vm0, %v1085_v26, %v1087_v39  ;;  %v1104_v48 = vrot.slane %v1060_v36, 7 }
 0x1ff   : > { %10675 = vmatpush3.bf16.msra.mxu0 %v11984_v2  ;;  %v13779_v32 = vshrl.u32 %v13768_v27, 16  ;;  %v13782_v33 = vshll.u32 %v13768_v27, 16  ;;  %v1090_v46 = vsel %vm1075_vm0, %v1087_v39, %v1089_v40  ;;  %v1111_v49 = vsel %vm1075_vm0, %v1089_v40, %v1100_v41  ;;  %v11997_v39 = vld [vmem:[%s15272_s0 + $0x38] sm:$0xff]   ;;  %v11998_v40 = vld [vmem:[%s15272_s0 + $0x80] sm:$0xff]  }
 0x200   : > { %10676 = vmatprep.subr.bf16.mxu0 %v11985_v3  ;;  %v1165_v38 = vrot.slane %v13775_v30, 1  ;;  %v13796_v47 = vpack.c.bf16 %v1090_v46, %v1088_v45  ;;  %v13801_v51 = vshll.u32 %v13784_v34, 16  ;;  %v1113_v52 = vsel %vm1112_vm4, %v1111_v49, %v1102_v42  ;;  %v11999_v49 = vld [vmem:[%s15272_s0 + $0x88] sm:$0xff]  }
 0x201   : > { %v1160_v37 = vrot.slane %v13782_v33, 1  ;;  %v13808_v54 = vshrl.u32 %v13766_v25, 16  ;;  %v13811_v55 = vshrl.u32 %v13784_v34, 16  ;;  %v1115_v57 = vsel %vm1114_vm5, %v1113_v52, %v1104_v48 }
 0x202   : > { %v13814_v56 = vshll.u32 %v13796_v47, 16  ;;  %v1173_v58 = vrot.slane %v13801_v51, 1  ;;  %v13819_v60 = vpack.c.bf16 %v1115_v57, %v1115_v57  ;;  %v13828_v1 = vshrl.u32 %v13796_v47, 16  ;;  %v12002_v57 = vld [vmem:[%s15272_s0 + $0xa0] sm:$0xff]  }
 0x203   : > { %10677 = vmatpush3.bf16.msra.mxu0 %v11985_v3  ;;  %v1161_v44 = vor.u32 %v1160_v37, %v13779_v32  ;;  %v1169_v59 = vor.u32 %v13808_v54, %v1165_v38  ;;  %v11991_v3 = vld [vmem:[%s15272_s0 + $0x8] sm:$0xff]   ;;  %v1596_v5 = vrot.slane %v13779_v32, 1  ;;  %v1597_v6 = vrot.slane %v13782_v33, 2 }
 0x204   : > { %10678 = vmatprep.subr.bf16.mxu0 %v11986_v19  ;;  %v1177_v62 = vor.u32 %v13811_v55, %v1173_v58  ;;  %v1181_v63 = vrot.slane %v13814_v56, 1  ;;  %v13831_v2 = vshll.u32 %v13819_v60, 16  ;;  %v1599_v7 = vrot.slane %v13808_v54, 1  ;;  %v11995_v37 = vld [vmem:[%s15272_s0 + $0x28] sm:$0xff]  }
 0x205   : > { %v1166_v50 = vsel %vm1154_vm3, %v1161_v44, %v1165_v38  ;;  %v1174_v0 = vsel %vm1154_vm3, %v1169_v59, %v1173_v58  ;;  %v1598_v10 = vor.u32 %v1597_v6, %v1596_v5  ;;  %v1600_v11 = vrot.slane %v13775_v30, 2  ;;  %v11996_v38 = vld [vmem:[%s15272_s0 + $0x30] sm:$0xff]   ;;  %v12003_v58 = vld [vmem:[%s15272_s0 + $0xa8] sm:$0xff]  }
 0x206   : > { %10686 = vmatprep.mubr.bf16.mxu0 %v1166_v50  ;;  %v1182_v4 = vsel %vm1154_vm3, %v1177_v62, %v1181_v63  ;;  %v1185_v8 = vor.u32 %v13828_v1, %v1181_v63  ;;  %v1189_v9 = vrot.slane %v13831_v2, 1  ;;  %v1603_v13 = vrot.slane %v13811_v55, 1  ;;  %v12004_v59 = vld [vmem:[%s15272_s0 + $0xb0] sm:$0xff]  }
 0x207   : > { %10679 = vmatpush3.bf16.msra.mxu0 %v11986_v19  ;;  %v1601_v14 = vor.u32 %v1600_v11, %v1599_v7  ;;  %v1604_v15 = vrot.slane %v13801_v51, 2  ;;  %v1607_v16 = vrot.slane %v13828_v1, 1  ;;  %v1608_v20 = vrot.slane %v13814_v56, 2 }
 0x208   : > { %10680 = vmatprep.subr.bf16.mxu0 %v11987_v29  ;;  %v1190_v17 = vsel %vm1154_vm3, %v1185_v8, %v1189_v9  ;;  %v1611_v22 = vshrl.u32 %v13819_v60, 16  ;;  %v1614_v26 = vrot.slane %v13831_v2, 2  ;;  %v1444_v41 = vrot.slane %v13768_v27, 1  ;;  %v12007_v9 = vld [vmem:[%s15272_s0 + $0xc8] sm:$0xff]  }
 0x209   : > { %v13851_v18 = vsel %vm1595_vm6, %v1598_v10, %v1601_v14  ;;  %v1605_v19 = vor.u32 %v1604_v15, %v1603_v13  ;;  %v1609_v24 = vor.u32 %v1608_v20, %v1607_v16  ;;  %v1912_v42 = vrot.slane %v13779_v32, 2  ;;  %v12008_v15 = vld [vmem:[%s15272_s0 + $0xd0] sm:$0xff]  }
 0x20a   : > { %v1613_v28 = vrot.slane %v1611_v22, 1  ;;  %v1915_v44 = vrot.slane %v13808_v54, 2  ;;  %v1916_v45 = vrot.slane %v13775_v30, 3  ;;  %v1919_v46 = vrot.slane %v13811_v55, 2  ;;  %v12001_v54 = vld [vmem:[%s15272_s0 + $0x98] sm:$0xff]  }
 0x20b   : > { %10681 = vmatpush3.bf16.msra.mxu0 %v11987_v29  ;;  %v13859_v23 = vsel %vm1595_vm6, %v1601_v14, %v1605_v19  ;;  %v13866_v29 = vsel %vm1595_vm6, %v1605_v19, %v1609_v24  ;;  %v1920_v48 = vrot.slane %v13801_v51, 3  ;;  %v12000_v51 = vld [vmem:[%s15272_s0 + $0x90] sm:$0xff]   ;;  %v1924_v62 = vrot.slane %v13814_v56, 3  ;;  %v12009_v19 = vld [vmem:[%s15272_s0 + $0xd8] sm:$0xff]  }
 0x20c   : > { %10682 = vmatprep.subr.bf16.mxu0 %v11988_v43  ;;  %v1615_v35 = vor.u32 %v1614_v26, %v1613_v28  ;;  %v1917_v52 = vor.u32 %v1916_v45, %v1915_v44  ;;  %v1927_v63 = vrot.slane %v1611_v22, 2  ;;  %v1447_v5 = vrot.slane %v13784_v34, 1  ;;  %v12011_v22 = vld [vmem:[%s15272_s0 + $0xe8] sm:$0xff]   ;;  %v12013_v26 = vld [vmem:[%s15272_s0 + $0xf8] sm:$0xff]  }
 0x20d   : > { %v1921_v32 = vor.u32 %v1920_v48, %v1919_v46  ;;  %v1451_v8 = vrot.slane %v13819_v60, 1  ;;  %v1760_v10 = vrot.slane %v13768_v27, 2  ;;  %v1761_v11 = vrot.slane %v13766_v25, 2  ;;  %v12015_v28 = vld [vmem:[%s15272_s0 + $0x108] sm:$0xff]   ;;  %v12025_v44 = vld [vmem:[%s15272_s0 + $0x158] sm:$0xff]   ;;  %v12026_v46 = vld [vmem:[%s15272_s0 + $0x160] sm:$0xff]  }
 0x20e   : > { %v13872_v36 = vsel %vm1595_vm6, %v1609_v24, %v1615_v35  ;;  %v1763_v13 = vrot.slane %v13784_v34, 2  ;;  %v1765_v16 = vrot.slane %v13796_v47, 2  ;;  %v12012_v24 = vld [vmem:[%s15272_s0 + $0xf0] sm:$0xff]   ;;  %v12017_v35 = vld [vmem:[%s15272_s0 + $0x118] sm:$0xff]   ;;  %v12027_v48 = vld [vmem:[%s15272_s0 + $0x168] sm:$0xff]  }
 0x20f   : > { %10683 = vmatpush3.bf16.msra.mxu0 %v11988_v43  ;;  %v1913_v43 = vrot.slane %v13782_v33, 3  ;;  %v13901_v30 = vsel %vm1911_vm8, %v1917_v52, %v1921_v32 }
 0x210   : > { %10684 = vmatprep.subr.bf16.mxu0 %v11989_v53 }
 0x211   : > { %v1914_v50 = vor.u32 %v1913_v43, %v1912_v42  ;;  %v1766_v42 = vsel %vm1759_vm9, %v1763_v13, %v1765_v16  ;;  %v12024_v43 = vld [vmem:[%s15272_s0 + $0x150] sm:$0xff]  }
 0x213   : > { %10685 = vmatpush3.bf16.msra.mxu0 %v11989_v53  ;;  %v13897_v33 = vsel %vm1911_vm8, %v1914_v50, %v1917_v52  ;;  %v1445_v53 = vrot.slane %v13766_v25, 1  ;;  %v12029_v50 = vld [vmem:[%s15272_s0 + $0x178] sm:$0xff]   ;;  %v12030_v52 = vld [vmem:[%s15272_s0 + $0x180] sm:$0xff]  }
 0x214   : > { %10694 = vmatprep.subr.bf16.mxu0 %v11990_v61 }
 0x215   : > { %v1446_v55 = vsel %vm1443_vm7, %v1444_v41, %v1445_v53  ;;  %v1764_v41 = vsel %vm1759_vm9, %v1761_v11, %v1763_v13 }
 0x216   : > { %10687 = vmatmul.mubr.bf16.vlgmr.msra.gmra.mrb[0].mxu0 %v1174_v0  ;;  %v1928_v0 = vrot.slane %v13831_v2, 3  ;;  %v1449_v2 = vrot.slane %v13796_v47, 1 }
 0x217   : > { %10695 = vmatpush3.bf16.msra.mxu0 %v11990_v61  ;;  %10690 = vmatprep.mubr.bf16.mxu0 %v1182_v4  ;;  %v1923_v61 = vrot.slane %v13828_v1, 2  ;;  %v12005_v4 = vld [vmem:[%s15272_s0 + $0xb8] sm:$0xff]   ;;  %v12006_v1 = vld [vmem:[%s15272_s0 + $0xc0] sm:$0xff]  }
 0x218   : > { %10696 = vmatprep.subr.bf16.mxu0 %v11991_v3  ;;  %v1929_v6 = vor.u32 %v1928_v0, %v1927_v63  ;;  %v1450_v14 = vsel %vm1443_vm7, %v1447_v5, %v1449_v2  ;;  %v1452_v20 = vsel %vm1443_vm7, %v1449_v2, %v1451_v8  ;;  %v2081_v63 = vrot.slane %v13819_v60, 3 }
 0x21b   : > { %10697 = vmatpush3.bf16.msra.mxu0 %v11991_v3  ;;  %v1925_v3 = vor.u32 %v1924_v62, %v1923_v61 }
 0x21c   : > { %10698 = vmatprep.subr.bf16.mxu0 %v11992_v12 }
 0x21d   : > { %v13932_v7 = vsel %vm1911_vm8, %v1921_v32, %v1925_v3  ;;  %v13935_v56 = vsel %vm1911_vm8, %v1925_v3, %v1929_v6  ;;  %v12031_v32 = vld [vmem:[%s15272_s0 + $0x188] sm:$0xff]   ;;  %v12038_v3 = vld [vmem:[#allocation2 + $0x40] sm:$0xff]  }
 0x21e   : > { %10691 = vmatmul.mubr.bf16.gmra.mrb[4].mxu0 %v1190_v17  ;;  %v1767_v17 = vrot.slane %v13819_v60, 2  ;;  %10838 = vmatprep.subr.bf16.mxu1 %v12038_v3  ;;  %v12043_v6 = vld [vmem:[#allocation2 + $0x68] sm:$0xff]   ;;  %v12044_v60 = vld [vmem:[#allocation2 + $0x70] sm:$0xff]  }
 0x21f   : > { %10699 = vmatpush3.bf16.msra.mxu0 %v11992_v12  ;;  %10710 = vmatprep.mubr.bf16.mxu0 %v13768_v27  ;;  %v1448_v12 = vsel %vm1443_vm7, %v1445_v53, %v1447_v5  ;;  %v2075_v53 = vrot.slane %v13766_v25, 3  ;;  %v12042_v5 = vld [vmem:[#allocation2 + $0x60] sm:$0xff]  }
 0x220   : > { %10700 = vmatprep.subr.bf16.mxu0 %v11993_v21  ;;  %v1768_v45 = vsel %vm1759_vm9, %v1765_v16, %v1767_v17  ;;  %10839 = vmatpush3.bf16.msra.mxu1 %v12038_v3 }
 0x223   : > { %10701 = vmatpush3.bf16.msra.mxu0 %v11993_v21  ;;  %v12010_v21 = vld [vmem:[%s15272_s0 + $0xe0] sm:$0xff]  }
 0x224   : > { %10702 = vmatprep.subr.bf16.mxu0 %v11994_v31 }
 0x227   : > { %10703 = vmatpush3.bf16.msra.mxu0 %v11994_v31  ;;  %v12016_v31 = vld [vmem:[%s15272_s0 + $0x110] sm:$0xff]  }
 0x228   : > { %10704 = vmatprep.subr.bf16.mxu0 %v11995_v37 }
 0x22b   : > { %10705 = vmatpush3.bf16.msra.mxu0 %v11995_v37  ;;  %v1762_v37 = vsel %vm1759_vm9, %v1760_v10, %v1761_v11 }
 0x22c   : > { %10706 = vmatprep.subr.bf16.mxu0 %v11996_v38 }
 0x22f   : > { %10707 = vmatpush3.bf16.msra.mxu0 %v11996_v38  ;;  %v12020_v38 = vld [vmem:[%s15272_s0 + $0x130] sm:$0xff]  }
 0x230   : > { %10708 = vmatprep.subr.bf16.mxu0 %v11997_v39 }
 0x233   : > { %10709 = vmatpush3.bf16.msra.mxu0 %v11997_v39  ;;  %v12021_v39 = vld [vmem:[%s15272_s0 + $0x138] sm:$0xff]  }
 0x234   : > { %10718 = vmatprep.subr.bf16.mxu0 %v11998_v40 }
 0x236   : > { %10711 = vmatmul.mubr.bf16.vlgmr.msra.gmra.mrb[0].mxu0 %v13766_v25  ;;  %v12035_v25 = vld [vmem:[%s15272_s0 + $0x1a8] sm:$0xff]  }
 0x237   : > { %10719 = vmatpush3.bf16.msra.mxu0 %v11998_v40  ;;  %10714 = vmatprep.mubr.bf16.mxu0 %v13784_v34  ;;  %v12023_v40 = vld [vmem:[%s15272_s0 + $0x148] sm:$0xff]  }
 0x238   : > { %10720 = vmatprep.subr.bf16.mxu0 %v11999_v49 }
 0x23b   : > { %10721 = vmatpush3.bf16.msra.mxu0 %v11999_v49  ;;  %v12028_v49 = vld [vmem:[%s15272_s0 + $0x170] sm:$0xff]  }
 0x23c   : > { %10722 = vmatprep.subr.bf16.mxu0 %v12000_v51 }
 0x23e   : > { %10715 = vmatmul.mubr.bf16.gmra.mrb[4].mxu0 %v13796_v47 }
 0x23f   : > { %10723 = vmatpush3.bf16.msra.mxu0 %v12000_v51  ;;  %10734 = vmatprep.mubr.bf16.mxu0 %v1446_v55  ;;  %v2074_v51 = vrot.slane %v13768_v27, 3  ;;  %v12034_v55 = vld [vmem:[%s15272_s0 + $0x1a0] sm:$0xff]   ;;  %v12036_v27 = vld [vmem:[%s15272_s0 + $0x1b0] sm:$0xff]  }
 0x240   : > { %10724 = vmatprep.subr.bf16.mxu0 %v12001_v54 }
 0x243   : > { %10725 = vmatpush3.bf16.msra.mxu0 %v12001_v54  ;;  %v12033_v54 = vld [vmem:[%s15272_s0 + $0x198] sm:$0xff]  }
 0x244   : > { %10726 = vmatprep.subr.bf16.mxu0 %v12002_v57 }
 0x247   : > { %10727 = vmatpush3.bf16.msra.mxu0 %v12002_v57  ;;  %v12037_v57 = vld [vmem:[%s15272_s0 + $0x1b8] sm:$0xff]  }
 0x248   : > { %10728 = vmatprep.subr.bf16.mxu0 %v12003_v58 }
 0x24b   : > { %10729 = vmatpush3.bf16.msra.mxu0 %v12003_v58  ;;  %v2077_v58 = vrot.slane %v13784_v34, 3  ;;  %v12040_v34 = vld [vmem:[#allocation2 + $0x50] sm:$0xff]  }
 0x24c   : > { %10730 = vmatprep.subr.bf16.mxu0 %v12004_v59 }
 0x24d   : > { %v2078_v61 = vsel %vm1114_vm5, %v2075_v53, %v2077_v58 }
 0x24f   : > { %10731 = vmatpush3.bf16.msra.mxu0 %v12004_v59  ;;  %v2079_v59 = vrot.slane %v13796_v47, 3  ;;  %v12041_v47 = vld [vmem:[#allocation2 + $0x58] sm:$0xff]  }
 0x250   : > { %10732 = vmatprep.subr.bf16.mxu0 %v12005_v4 }
 0x251   : > { %v2080_v62 = vsel %vm1114_vm5, %v2077_v58, %v2079_v59  ;;  %v2082_v0 = vsel %vm1114_vm5, %v2079_v59, %v2081_v63 }
 0x253   : > { %10733 = vmatpush3.bf16.msra.mxu0 %v12005_v4  ;;  %v12039_v4 = vld [vmem:[#allocation2 + $0x48] sm:$0xff]  }
 0x254   : > { %10742 = vmatprep.subr.bf16.mxu0 %v12006_v1  ;;  %10840 = vmatprep.subr.bf16.mxu1 %v12039_v4 }
 0x255   : > { %10841 = vmatpush3.bf16.msra.mxu1 %v12039_v4 }
 0x256   : > { %10735 = vmatmul.mubr.bf16.vlgmr.msra.gmra.mrb[0].mxu0 %v1448_v12  ;;  %10842 = vmatprep.subr.bf16.mxu1 %v12040_v34 }
 0x257   : > { %10743 = vmatpush3.bf16.msra.mxu0 %v12006_v1  ;;  %10738 = vmatprep.mubr.bf16.mxu0 %v1450_v14  ;;  %v9744_v1 = vld [vmem:[%s15274_s5] ss:$0 sm:$0xff] }
 0x258   : > { %10744 = vmatprep.subr.bf16.mxu0 %v12007_v9 }
 0x259   : > { %10843 = vmatpush3.bf16.msra.mxu1 %v12040_v34 }
 0x25a   : > { %10844 = vmatprep.subr.bf16.mxu1 %v12041_v47 }
 0x25b   : > { %10745 = vmatpush3.bf16.msra.mxu0 %v12007_v9 }
 0x25c   : > { %10746 = vmatprep.subr.bf16.mxu0 %v12008_v15 }
 0x25d   : > { %10845 = vmatpush3.bf16.msra.mxu1 %v12041_v47 }
 0x25e   : > { %10739 = vmatmul.mubr.bf16.gmra.mrb[4].mxu0 %v1452_v20  ;;  %10846 = vmatprep.subr.bf16.mxu1 %v12042_v5 }
 0x25f   : > { %10747 = vmatpush3.bf16.msra.mxu0 %v12008_v15  ;;  %10758 = vmatprep.mubr.bf16.mxu0 %v13851_v18  ;;  %v12014_v18 = vld [vmem:[%s15272_s0 + $0x100] sm:$0xff]  }
 0x260   : > { %10748 = vmatprep.subr.bf16.mxu0 %v12009_v19 }
 0x261   : > { %10847 = vmatpush3.bf16.msra.mxu1 %v12042_v5 }
 0x262   : > { %10848 = vmatprep.subr.bf16.mxu1 %v12043_v6 }
 0x263   : > { %10749 = vmatpush3.bf16.msra.mxu0 %v12009_v19 }
 0x264   : > { %10750 = vmatprep.subr.bf16.mxu0 %v12010_v21 }
 0x265   : > { %10849 = vmatpush3.bf16.msra.mxu1 %v12043_v6 }
 0x266   : > { %10850 = vmatprep.subr.bf16.mxu1 %v12044_v60 }
 0x267   : > { %10751 = vmatpush3.bf16.msra.mxu0 %v12010_v21 }
 0x268   : > { %10752 = vmatprep.subr.bf16.mxu0 %v12011_v22 }
 0x269   : > { %10851 = vmatpush3.bf16.msra.mxu1 %v12044_v60 }
 0x26b   : > { %10753 = vmatpush3.bf16.msra.mxu0 %v12011_v22 }
 0x26c   : > { %10754 = vmatprep.subr.bf16.mxu0 %v12012_v24 }
 0x26f   : > { %10755 = vmatpush3.bf16.msra.mxu0 %v12012_v24 }
 0x270   : > { %10756 = vmatprep.subr.bf16.mxu0 %v12013_v26 }
 0x273   : > { %10757 = vmatpush3.bf16.msra.mxu0 %v12013_v26 }
 0x274   : > { %10766 = vmatprep.subr.bf16.mxu0 %v12014_v18 }
 0x276   : > { %10759 = vmatmul.mubr.bf16.vlgmr.msra.gmra.mrb[0].mxu0 %v13859_v23  ;;  %v12018_v23 = vld [vmem:[%s15272_s0 + $0x120] sm:$0xff]  }
 0x277   : > { %10767 = vmatpush3.bf16.msra.mxu0 %v12014_v18  ;;  %10762 = vmatprep.mubr.bf16.mxu0 %v13866_v29  ;;  %v12019_v29 = vld [vmem:[%s15272_s0 + $0x128] sm:$0xff]  }
 0x278   : > { %10768 = vmatprep.subr.bf16.mxu0 %v12015_v28 }
 0x27b   : > { %10769 = vmatpush3.bf16.msra.mxu0 %v12015_v28 }
 0x27c   : > { %10770 = vmatprep.subr.bf16.mxu0 %v12016_v31 }
 0x27e   : > { %10763 = vmatmul.mubr.bf16.gmra.mrb[4].mxu0 %v13872_v36  ;;  %v12022_v36 = vld [vmem:[%s15272_s0 + $0x140] sm:$0xff]  }
 0x27f   : > { %10771 = vmatpush3.bf16.msra.mxu0 %v12016_v31  ;;  %10782 = vmatprep.mubr.bf16.mxu0 %v1762_v37 }
 0x280   : > { %10772 = vmatprep.subr.bf16.mxu0 %v12017_v35 }
 0x283   : > { %10773 = vmatpush3.bf16.msra.mxu0 %v12017_v35 }
 0x284   : > { %10774 = vmatprep.subr.bf16.mxu0 %v12018_v23 }
 0x287   : > { %10775 = vmatpush3.bf16.msra.mxu0 %v12018_v23 }
 0x288   : > { %10776 = vmatprep.subr.bf16.mxu0 %v12019_v29 }
 0x28b   : > { %10777 = vmatpush3.bf16.msra.mxu0 %v12019_v29 }
 0x28c   : > { %10778 = vmatprep.subr.bf16.mxu0 %v12020_v38 }
 0x28f   : > { %10779 = vmatpush3.bf16.msra.mxu0 %v12020_v38 }
 0x290   : > { %10780 = vmatprep.subr.bf16.mxu0 %v12021_v39 }
 0x293   : > { %10781 = vmatpush3.bf16.msra.mxu0 %v12021_v39 }
 0x294   : > { %10790 = vmatprep.subr.bf16.mxu0 %v12022_v36 }
 0x296   : > { %10783 = vmatmul.mubr.bf16.vlgmr.msra.gmra.mrb[0].mxu0 %v1764_v41 }
 0x297   : > { %10791 = vmatpush3.bf16.msra.mxu0 %v12022_v36  ;;  %10786 = vmatprep.mubr.bf16.mxu0 %v1766_v42 }
 0x298   : > { %10792 = vmatprep.subr.bf16.mxu0 %v12023_v40 }
 0x29b   : > { %10793 = vmatpush3.bf16.msra.mxu0 %v12023_v40 }
 0x29c   : > { %10794 = vmatprep.subr.bf16.mxu0 %v12024_v43 }
 0x29e   : > { %10787 = vmatmul.mubr.bf16.gmra.mrb[4].mxu0 %v1768_v45 }
 0x29f   : > { %10795 = vmatpush3.bf16.msra.mxu0 %v12024_v43  ;;  %10806 = vmatprep.mubr.bf16.mxu0 %v13897_v33  ;;  %v12032_v33 = vld [vmem:[%s15272_s0 + $0x190] sm:$0xff]  }
 0x2a0   : > { %10796 = vmatprep.subr.bf16.mxu0 %v12025_v44 }
 0x2a3   : > { %10797 = vmatpush3.bf16.msra.mxu0 %v12025_v44 }
 0x2a4   : > { %10798 = vmatprep.subr.bf16.mxu0 %v12026_v46 }
 0x2a7   : > { %10799 = vmatpush3.bf16.msra.mxu0 %v12026_v46 }
 0x2a8   : > { %10800 = vmatprep.subr.bf16.mxu0 %v12027_v48 }
 0x2ab   : > { %10801 = vmatpush3.bf16.msra.mxu0 %v12027_v48 }
 0x2ac   : > { %10802 = vmatprep.subr.bf16.mxu0 %v12028_v49 }
 0x2af   : > { %10803 = vmatpush3.bf16.msra.mxu0 %v12028_v49 }
 0x2b0   : > { %10804 = vmatprep.subr.bf16.mxu0 %v12029_v50 }
 0x2b3   : > { %10805 = vmatpush3.bf16.msra.mxu0 %v12029_v50 }
 0x2b4   : > { %10814 = vmatprep.subr.bf16.mxu0 %v12030_v52 }
 0x2b6   : > { %10807 = vmatmul.mubr.bf16.vlgmr.msra.gmra.mrb[0].mxu0 %v13901_v30  ;;  %v2076_v30 = vsel %vm1114_vm5, %v2074_v51, %v2075_v53 }
 0x2b7   : > { %10815 = vmatpush3.bf16.msra.mxu0 %v12030_v52  ;;  %10810 = vmatprep.mubr.bf16.mxu0 %v13932_v7  ;;  %v12045_v7 = vld [vmem:[#allocation2 + $0x78] sm:$0xff]  }
 0x2b8   : > { %10816 = vmatprep.subr.bf16.mxu0 %v12031_v32  ;;  %10852 = vmatprep.subr.bf16.mxu1 %v12045_v7 }
 0x2b9   : > { %10853 = vmatpush3.bf16.msra.mxu1 %v12045_v7 }
 0x2bb   : > { %10817 = vmatpush3.bf16.msra.mxu0 %v12031_v32 }
 0x2bc   : > { %10818 = vmatprep.subr.bf16.mxu0 %v12032_v33 }
 0x2be   : > { %10811 = vmatmul.mubr.bf16.gmra.mrb[4].mxu0 %v13935_v56  ;;  %v14078_v56 = vld [vmem:[#allocation2] sm:$0xff]  }
 0x2bf   : > { %10819 = vmatpush3.bf16.msra.mxu0 %v12032_v33  ;;  %10830 = vmatprep.mubr.bf16.mxu0 %v2076_v30 }
 0x2c0   : > { %10820 = vmatprep.subr.bf16.mxu0 %v12033_v54  ;;  %10862 = vmatprep.subr.bf16.mxu1 %v14078_v56 }
 0x2c3   : > { %10821 = vmatpush3.bf16.msra.mxu0 %v12033_v54 }
 0x2c4   : > { %10822 = vmatprep.subr.bf16.mxu0 %v12034_v55 }
 0x2c7   : > { %10823 = vmatpush3.bf16.msra.mxu0 %v12034_v55 }
 0x2c8   : > { %10824 = vmatprep.subr.bf16.mxu0 %v12035_v25 }
 0x2cb   : > { %10825 = vmatpush3.bf16.msra.mxu0 %v12035_v25 }
 0x2cc   : > { %10826 = vmatprep.subr.bf16.mxu0 %v12036_v27 }
 0x2cf   : > { %10827 = vmatpush3.bf16.msra.mxu0 %v12036_v27 }
 0x2d0   : > { %10828 = vmatprep.subr.bf16.mxu0 %v12037_v57 }
 0x2d3   : > { %10829 = vmatpush3.bf16.msra.mxu0 %v12037_v57 }
 0x2d6   : > { %10831 = vmatmul.mubr.bf16.vlgmr.msra.gmra.mrb[0].mxu0 %v2078_v61 }
 0x2d7   : > { %10834 = vmatprep.mubr.bf16.mxu0 %v2080_v62 }
 0x2de   : > { %10835 = vmatmul.mubr.bf16.gmra.mrb[4].mxu0 %v2082_v0 }
 0x3a9   : > { %v10832_v2 = vpop.f32.mrb[0].mxu0 }
 0x3aa   : > { %v14084_v8 = vadd.f32 %v10832_v2, %v9744_v1  ;;  %v2169_v9 = vpop.f32.mrb[1].mxu0 }
 0x3ab   : > { %v14086_v10 = vadd.f32 %v9744_v1, %v2169_v9  ;;  %v10833_v11 = vpop.f32.mrb[2].mxu0 }
 0x3ac   : > { %v2233_v12 = vmin.f32 %v14084_v8, 0.0  ;;  %v14089_v13 = vadd.f32 %v10833_v11, %v9744_v1  ;;  %v2172_v14 = vpop.f32.mrb[3].mxu0  ;;  %vm2225_vm10 = vcmp.gt.f32.partialorder %v14084_v8, 0.0 }
 0x3ad   : > { %v2231_v15 = vmin.f32 %v14086_v10, 0.0  ;;  %v14092_v16 = vadd.f32 %v9744_v1, %v2172_v14  ;;  %vm2223_vm11 = vcmp.gt.f32.partialorder %v14086_v10, 0.0 }
 0x3ae   : > { %v2243_v17 = vmul.f32 1.442695, %v2233_v12  ;;  %v2234_v19 = vmin.f32 %v14089_v13, 0.0  ;;  %v2973_v20 = vpack.c.bf16 %v14089_v13, %v14084_v8  ;;  %vm2226_vm12 = vcmp.gt.f32.partialorder %v14089_v13, 0.0 }
 0x3af   : > { %v2239_v21 = vmul.f32 1.442695, %v2231_v15  ;;  %v2232_v22 = vmin.f32 %v14092_v16, 0.0  ;;  %v2972_v24 = vpack.c.bf16 %v14092_v16, %v14086_v10  ;;  %vm2224_vm13 = vcmp.gt.f32.partialorder %v14092_v16, 0.0 }
 0x3b0   : > { %12245 = vpow2.f32 %v2243_v17  ;;  %v2245_v26 = vmul.f32 1.442695, %v2234_v19 }
 0x3b1   : > { %12247 = vpow2.f32 %v2239_v21  ;;  %v2241_v18 = vmul.f32 1.442695, %v2232_v22  ;;  %v10836_v28 = vpop.f32.mrb[4].mxu0 }
 0x3b2   : > { %12249 = vpow2.f32 %v2245_v26  ;;  %v14100_v31 = vadd.f32 %v10836_v28, %v9744_v1  ;;  %v2185_v35 = vpop.f32.mrb[5].mxu0 }
 0x3b3   : > { %12251 = vpow2.f32 %v2241_v18  ;;  %v14102_v37 = vadd.f32 %v9744_v1, %v2185_v35  ;;  %v10837_v23 = vpop.f32.mrb[6].mxu0 }
 0x3b4   : > { %v2237_v29 = vmin.f32 %v14100_v31, 0.0  ;;  %v14105_v38 = vadd.f32 %v10837_v23, %v9744_v1  ;;  %v2188_v39 = vpop.f32.mrb[7].mxu0  ;;  %vm2229_vm14 = vcmp.gt.f32.partialorder %v14100_v31, 0.0 }
 0x3b5   : > { %v2235_v36 = vmin.f32 %v14102_v37, 0.0  ;;  %v14108_v40 = vadd.f32 %v9744_v1, %v2188_v39  ;;  %vm2227_vm15 = vcmp.gt.f32.partialorder %v14102_v37, 0.0 }
 0x3b6   : > { %v2251_v41 = vmul.f32 1.442695, %v2237_v29  ;;  %v2238_v42 = vmin.f32 %v14105_v38, 0.0  ;;  %v2975_v43 = vpack.c.bf16 %v14105_v38, %v14100_v31 }
 0x3b7   : > { %v2247_v44 = vmul.f32 1.442695, %v2235_v36  ;;  %v2236_v45 = vmin.f32 %v14108_v40, 0.0  ;;  %v2974_v46 = vpack.c.bf16 %v14108_v40, %v14102_v37 }
 0x3b8   : > { %12253 = vpow2.f32 %v2251_v41  ;;  %v2253_v48 = vmul.f32 1.442695, %v2238_v42 }
 0x3b9   : > { %12255 = vpow2.f32 %v2247_v44  ;;  %v2249_v49 = vmul.f32 1.442695, %v2236_v45 }
 0x3ba   : > { %v12246_v50 = vpop.eup %12245  ;;  %12257 = vpow2.f32 %v2253_v48 }
 0x3bb   : > { %v12248_v52 = vpop.eup %12247  ;;  %v9747_v32 = vadd.f32 -1.0, %v12246_v50  ;;  %12259 = vpow2.f32 %v2249_v49 }
 0x3bc   : > { %v12250_v33 = vpop.eup %12249  ;;  %v9745_v51 = vadd.f32 -1.0, %v12248_v52 }
 0x3bd   : > { %v12252_v53 = vpop.eup %12251  ;;  %v2265_v54 = vsel %vm2225_vm10, %v14084_v8, %v9747_v32  ;;  %v9748_v30 = vadd.f32 -1.0, %v12250_v33  ;;  %vm2230_vm10 = vcmp.gt.f32.partialorder %v14105_v38, 0.0  ;;  %v12082_v8 = vld [vmem:[#allocation9 + $0x60] sm:$0xff]  }
 0x3be   : > { %v2263_v55 = vsel %vm2223_vm11, %v14086_v10, %v9745_v51  ;;  %v9746_v25 = vadd.f32 -1.0, %v12252_v53  ;;  %v2284_v59 = vrot.slane %v2265_v54, 7  ;;  %vm2228_vm11 = vcmp.gt.f32.partialorder %v14108_v40, 0.0  ;;  %v12078_v10 = vld [vmem:[#allocation9 + $0x40] sm:$0xff]  }
 0x3bf   : > { %v2272_v27 = vrot.slane %v2263_v55, 1  ;;  %v2281_v57 = vrot.slane %v2263_v55, 7  ;;  %v2266_v58 = vsel %vm2226_vm12, %v14089_v13, %v9748_v30  ;;  %v12083_v13 = vld [vmem:[#allocation9 + $0x68] sm:$0xff]  }
 0x3c0   : > { %v2286_v61 = vrot.slane %v2266_v58, 7  ;;  %v2264_v62 = vsel %vm2224_vm13, %v14092_v16, %v9746_v25  ;;  %v12079_v16 = vld [vmem:[#allocation9 + $0x48] sm:$0xff]  }
 0x3c1   : > { %v2282_v63 = vrot.slane %v2264_v62, 7  ;;  %v2307_v34 = vsel %vm1106_vm1, %v2272_v27, %v2281_v57 }
 0x3c2   : > { %v12254_v0 = vpop.eup %12253  ;;  %v2287_v3 = vsel %vm1106_vm1, %v2284_v59, %v2286_v61 }
 0x3c3   : > { %v12256_v4 = vpop.eup %12255  ;;  %v2283_v47 = vsel %vm1106_vm1, %v2281_v57, %v2282_v63  ;;  %v2285_v5 = vsel %vm1106_vm1, %v2282_v63, %v2284_v59  ;;  %v9751_v6 = vadd.f32 -1.0, %v12254_v0 }
 0x3c4   : > { %v12258_v60 = vpop.eup %12257  ;;  %v9749_v7 = vadd.f32 -1.0, %v12256_v4  ;;  %v14129_v1 = vpack.c.bf16 %v2283_v47, %v2307_v34  ;;  %v14131_v2 = vpack.c.bf16 %v2287_v3, %v2285_v5  ;;  %v12047_v4 = vld [vmem:[#allocation2 + $0x8] sm:$0xff]  }
 0x3c5   : > { %v12260_v9 = vpop.eup %12259  ;;  %v2269_v11 = vsel %vm2229_vm14, %v14100_v31, %v9751_v6  ;;  %v9752_v12 = vadd.f32 -1.0, %v12258_v60  ;;  %v12085_v31 = vld [vmem:[#allocation9 + $0x78] sm:$0xff]  }
 0x3c6   : > { %v2292_v14 = vrot.slane %v2269_v11, 7  ;;  %v2267_v15 = vsel %vm2227_vm15, %v14102_v37, %v9749_v7  ;;  %v9750_v17 = vadd.f32 -1.0, %v12260_v9  ;;  %v2350_v22 = vshll.u32 %v14129_v1, 16  ;;  %v14190_v37 = vld [vmem:[#allocation9] sm:$0xff]  }
 0x3c7   : > { %v2288_v19 = vrot.slane %v2267_v15, 7  ;;  %v2270_v21 = vsel %vm2230_vm10, %v14105_v38, %v9752_v12  ;;  %v2355_v26 = vshll.u32 %v14131_v2, 16  ;;  %v2348_v23 = vshrl.u32 %v14129_v1, 16  ;;  %v12049_v15 = vld [vmem:[#allocation2 + $0x18] sm:$0xff]   ;;  %v9786_v38 = vld [vmem:[%s15276_s6] ss:$0 sm:$0xff] }
 0x3c8   : > { %v2294_v18 = vrot.slane %v2270_v21, 7  ;;  %v2305_v28 = vrot.slane %v2270_v21, 5  ;;  %v2268_v35 = vsel %vm2228_vm11, %v14108_v40, %v9750_v17  ;;  %v2352_v36 = vrot.slane %v2350_v22, 1  ;;  %v12050_v17 = vld [vmem:[#allocation2 + $0x20] sm:$0xff]   ;;  %v12053_v21 = vld [vmem:[#allocation2 + $0x38] sm:$0xff]  }
 0x3c9   : > { %v2289_v29 = vsel %vm1106_vm1, %v2286_v61, %v2288_v19  ;;  %v2290_v39 = vrot.slane %v2268_v35, 7  ;;  %v2357_v41 = vrot.slane %v2355_v26, 1  ;;  %v2635_v45 = vrot.slane %v14129_v1, 1  ;;  %v12054_v22 = vld [vmem:[#allocation2 + $0x80] sm:$0xff]   ;;  %v12055_v26 = vld [vmem:[#allocation2 + $0x88] sm:$0xff]  }
 0x3ca   : > { %v2295_v42 = vsel %vm1106_vm1, %v2292_v14, %v2294_v18  ;;  %v2308_v44 = vsel %vm1106_vm1, %v2294_v18, %v2305_v28  ;;  %v2636_v48 = vrot.slane %v14131_v2, 1  ;;  %v2353_v52 = vor.u32 %v2352_v36, %v2348_v23  ;;  %v12057_v18 = vld [vmem:[#allocation2 + $0x98] sm:$0xff]   ;;  %v12058_v28 = vld [vmem:[#allocation2 + $0xa0] sm:$0xff]   ;;  %v12059_v35 = vld [vmem:[#allocation2 + $0xa8] sm:$0xff]  }
 0x3cb   : > { %v2291_v49 = vsel %vm1106_vm1, %v2288_v19, %v2290_v39  ;;  %v2293_v50 = vsel %vm1106_vm1, %v2290_v39, %v2292_v14  ;;  %v2359_v32 = vshrl.u32 %v14131_v2, 16  ;;  %v2329_v53 = vpack.c.bf16 %v2308_v44, %v2308_v44  ;;  %v12048_v14 = vld [vmem:[#allocation2 + $0x10] sm:$0xff]   ;;  %v12051_v19 = vld [vmem:[#allocation2 + $0x28] sm:$0xff]   ;;  %v9795_v40 = vld [vmem:[#allocation7] ss:$0 sm:$0xff] }
 0x3cc   : > { %v2311_v33 = vpack.c.bf16 %v2291_v49, %v2289_v29  ;;  %v2312_v51 = vpack.c.bf16 %v2295_v42, %v2293_v50  ;;  %v2637_v54 = vsel %vm1443_vm7, %v2635_v45, %v2636_v48  ;;  %v2358_v30 = vsel %vm1154_vm3, %v2353_v52, %v2357_v41  ;;  %v12060_v23 = vld [vmem:[#allocation2 + $0xb0] sm:$0xff]   ;;  %v12062_v29 = vld [vmem:[#allocation4] sm:$0xff]   ;;  %v12063_v39 = vld [vmem:[#allocation4 + $0x8] sm:$0xff]  }
 0x3cd   : > { %10854 = vmatprep.mubr.bf16.mxu1 %v2358_v30  ;;  %v2361_v55 = vor.u32 %v2359_v32, %v2357_v41  ;;  %v2379_v57 = vshll.u32 %v2329_v53, 16  ;;  %v2642_v61 = vrot.slane %v2329_v53, 1  ;;  %v12064_v36 = vld [vmem:[#allocation4 + $0x10] sm:$0xff]   ;;  %v12065_v41 = vld [vmem:[#allocation4 + $0x18] sm:$0xff]   ;;  %v12066_v42 = vld [vmem:[#allocation4 + $0x20] sm:$0xff]  }
 0x3ce   : > { %v2363_v25 = vshll.u32 %v2311_v33, 16  ;;  %v2371_v27 = vshll.u32 %v2312_v51, 16  ;;  %v2638_v58 = vrot.slane %v2311_v33, 1  ;;  %v2640_v59 = vrot.slane %v2312_v51, 1  ;;  %v12067_v44 = vld [vmem:[#allocation4 + $0x28] sm:$0xff]   ;;  %v12068_v45 = vld [vmem:[#allocation4 + $0x30] sm:$0xff]  }
 0x3cf   : > { %v2367_v63 = vshrl.u32 %v2311_v33, 16  ;;  %v2375_v3 = vshrl.u32 %v2312_v51, 16  ;;  %v2381_v9 = vrot.slane %v2379_v57, 1  ;;  %v14171_v49 = vld [vmem:[#allocation6] sm:$0xff]  }
 0x3d0   : > { %v2365_v62 = vrot.slane %v2363_v25, 1  ;;  %v2373_v0 = vrot.slane %v2371_v27, 1  ;;  %v14154_v34 = vsel %vm1443_vm7, %v2636_v48, %v2638_v58  ;;  %v14157_v47 = vsel %vm1443_vm7, %v2638_v58, %v2640_v59  ;;  %v12069_v48 = vld [vmem:[#allocation4 + $0x38] sm:$0xff]   ;;  %v9777_v50 = vld [vmem:[%s15275_s3] ss:$0 sm:$0xff] }
 0x3d1   : > { %v14160_v5 = vsel %vm1443_vm7, %v2640_v59, %v2642_v61 }
 0x3d2   : > { %v2366_v6 = vsel %vm1154_vm3, %v2361_v55, %v2365_v62  ;;  %v2369_v60 = vor.u32 %v2367_v63, %v2365_v62  ;;  %v2377_v7 = vor.u32 %v2375_v3, %v2373_v0 }
 0x3d3   : > { %10855 = vmatmul.mubr.bf16.vlgmr.msra.gmra.mrb[0].mxu1 %v2366_v6 }
 0x3d4   : > { %10863 = vmatpush3.bf16.msra.mxu1 %v14078_v56  ;;  %v2374_v11 = vsel %vm1154_vm3, %v2369_v60, %v2373_v0  ;;  %v2382_v12 = vsel %vm1154_vm3, %v2377_v7, %v2381_v9  ;;  %v12052_v56 = vld [vmem:[#allocation2 + $0x30] sm:$0xff]  }
 0x3d5   : > { %10858 = vmatprep.mubr.bf16.mxu1 %v2374_v11  ;;  %10864 = vmatprep.subr.bf16.mxu1 %v12047_v4 }
 0x3d8   : > { %10865 = vmatpush3.bf16.msra.mxu1 %v12047_v4 }
 0x3d9   : > { %10866 = vmatprep.subr.bf16.mxu1 %v12048_v14 }
 0x3db   : > { %10859 = vmatmul.mubr.bf16.gmra.mrb[4].mxu1 %v2382_v12 }
 0x3dc   : > { %10867 = vmatpush3.bf16.msra.mxu1 %v12048_v14  ;;  %10878 = vmatprep.mubr.bf16.mxu1 %v14129_v1  ;;  %v12056_v1 = vld [vmem:[#allocation2 + $0x90] sm:$0xff]  }
 0x3dd   : > { %10868 = vmatprep.subr.bf16.mxu1 %v12049_v15 }
 0x3e0   : > { %10869 = vmatpush3.bf16.msra.mxu1 %v12049_v15 }
 0x3e1   : > { %10870 = vmatprep.subr.bf16.mxu1 %v12050_v17 }
 0x3e4   : > { %10871 = vmatpush3.bf16.msra.mxu1 %v12050_v17 }
 0x3e5   : > { %10872 = vmatprep.subr.bf16.mxu1 %v12051_v19 }
 0x3e8   : > { %10873 = vmatpush3.bf16.msra.mxu1 %v12051_v19 }
 0x3e9   : > { %10874 = vmatprep.subr.bf16.mxu1 %v12052_v56 }
 0x3ec   : > { %10875 = vmatpush3.bf16.msra.mxu1 %v12052_v56 }
 0x3ed   : > { %10876 = vmatprep.subr.bf16.mxu1 %v12053_v21 }
 0x3f0   : > { %10877 = vmatpush3.bf16.msra.mxu1 %v12053_v21 }
 0x3f1   : > { %10886 = vmatprep.subr.bf16.mxu1 %v12054_v22 }
 0x3f3   : > { %10879 = vmatmul.mubr.bf16.vlgmr.msra.gmra.mrb[0].mxu1 %v14131_v2  ;;  %v12061_v2 = vld [vmem:[#allocation2 + $0xb8] sm:$0xff]  }
 0x3f4   : > { %10882 = vmatprep.mubr.bf16.mxu1 %v2311_v33  ;;  %10887 = vmatpush3.bf16.msra.mxu1 %v12054_v22 }
 0x3f5   : > { %10888 = vmatprep.subr.bf16.mxu1 %v12055_v26 }
 0x3f8   : > { %10889 = vmatpush3.bf16.msra.mxu1 %v12055_v26 }
 0x3f9   : > { %10890 = vmatprep.subr.bf16.mxu1 %v12056_v1 }
 0x3fb   : > { %10883 = vmatmul.mubr.bf16.gmra.mrb[4].mxu1 %v2312_v51 }
 0x3fc   : > { %10891 = vmatpush3.bf16.msra.mxu1 %v12056_v1  ;;  %10902 = vmatprep.mubr.bf16.mxu1 %v2637_v54 }
 0x3fd   : > { %10892 = vmatprep.subr.bf16.mxu1 %v12057_v18 }
 0x400   : > { %10893 = vmatpush3.bf16.msra.mxu1 %v12057_v18 }
 0x401   : > { %10894 = vmatprep.subr.bf16.mxu1 %v12058_v28 }
 0x404   : > { %10895 = vmatpush3.bf16.msra.mxu1 %v12058_v28 }
 0x405   : > { %10896 = vmatprep.subr.bf16.mxu1 %v12059_v35 }
 0x408   : > { %10897 = vmatpush3.bf16.msra.mxu1 %v12059_v35 }
 0x409   : > { %10898 = vmatprep.subr.bf16.mxu1 %v12060_v23 }
 0x40c   : > { %10899 = vmatpush3.bf16.msra.mxu1 %v12060_v23 }
 0x40d   : > { %10900 = vmatprep.subr.bf16.mxu1 %v12061_v2 }
 0x410   : > { %10901 = vmatpush3.bf16.msra.mxu1 %v12061_v2 }
 0x411   : > { %10910 = vmatprep.subr.bf16.mxu1 %v12062_v29 }
 0x413   : > { %10903 = vmatmul.mubr.bf16.vlgmr.msra.gmra.mrb[0].mxu1 %v14154_v34 }
 0x414   : > { %10906 = vmatprep.mubr.bf16.mxu1 %v14157_v47  ;;  %10911 = vmatpush3.bf16.msra.mxu1 %v12062_v29 }
 0x415   : > { %10912 = vmatprep.subr.bf16.mxu1 %v12063_v39 }
 0x418   : > { %10913 = vmatpush3.bf16.msra.mxu1 %v12063_v39 }
 0x419   : > { %10914 = vmatprep.subr.bf16.mxu1 %v12064_v36 }
 0x41b   : > { %10907 = vmatmul.mubr.bf16.gmra.mrb[4].mxu1 %v14160_v5 }
 0x41c   : > { %10915 = vmatpush3.bf16.msra.mxu1 %v12064_v36 }
 0x41d   : > { %10916 = vmatprep.subr.bf16.mxu1 %v12065_v41 }
 0x420   : > { %10917 = vmatpush3.bf16.msra.mxu1 %v12065_v41 }
 0x421   : > { %10918 = vmatprep.subr.bf16.mxu1 %v12066_v42 }
 0x424   : > { %10919 = vmatpush3.bf16.msra.mxu1 %v12066_v42 }
 0x425   : > { %10920 = vmatprep.subr.bf16.mxu1 %v12067_v44 }
 0x428   : > { %10921 = vmatpush3.bf16.msra.mxu1 %v12067_v44  ;;  %v12071_v44 = vld [vmem:[#allocation6 + $0x8] sm:$0xff]  }
 0x429   : > { %10922 = vmatprep.subr.bf16.mxu1 %v12068_v45 }
 0x42c   : > { %10923 = vmatpush3.bf16.msra.mxu1 %v12068_v45 }
 0x42d   : > { %10924 = vmatprep.subr.bf16.mxu1 %v12069_v48 }
 0x430   : > { %10925 = vmatpush3.bf16.msra.mxu1 %v12069_v48 }
 0x431   : > { %10934 = vmatprep.subr.bf16.mxu1 %v14171_v49 }
 0x4e6   : > { %v10904_v52 = vpop.f32.mrb[0].mxu1 }
 0x4e7   : > { %v2778_v32 = vadd.f32 %v10904_v52, %v9777_v50  ;;  %v2730_v33 = vpop.f32.mrb[1].mxu1 }
 0x4e8   : > { %v2776_v51 = vadd.f32 %v9777_v50, %v2730_v33  ;;  %v10905_v53 = vpop.f32.mrb[2].mxu1 }
 0x4e9   : > { %v2794_v54 = vmin.f32 %v2778_v32, 0.0  ;;  %v2779_v30 = vadd.f32 %v10905_v53, %v9777_v50  ;;  %v2733_v55 = vpop.f32.mrb[3].mxu1  ;;  %vm2786_vm12 = vcmp.gt.f32.partialorder %v2778_v32, 0.0 }
 0x4ea   : > { %v2792_v25 = vmin.f32 %v2776_v51, 0.0  ;;  %v2777_v27 = vadd.f32 %v9777_v50, %v2733_v55  ;;  %vm2784_vm14 = vcmp.gt.f32.partialorder %v2776_v51, 0.0 }
 0x4eb   : > { %v2804_v57 = vmul.f32 1.442695, %v2794_v54  ;;  %v2795_v58 = vmin.f32 %v2779_v30, 0.0  ;;  %vm2787_vm13 = vcmp.gt.f32.partialorder %v2779_v30, 0.0  ;;  %v12072_v54 = vld [vmem:[#allocation6 + $0x10] sm:$0xff]  }
 0x4ec   : > { %v2800_v59 = vmul.f32 1.442695, %v2792_v25  ;;  %v2793_v61 = vmin.f32 %v2777_v27, 0.0  ;;  %vm2785_vm15 = vcmp.gt.f32.partialorder %v2777_v27, 0.0 }
 0x4ed   : > { %12261 = vpow2.f32 %v2804_v57  ;;  %v2806_v62 = vmul.f32 1.442695, %v2795_v58  ;;  %v12073_v58 = vld [vmem:[#allocation6 + $0x18] sm:$0xff]  }
 0x4ee   : > { %12263 = vpow2.f32 %v2800_v59  ;;  %v2802_v63 = vmul.f32 1.442695, %v2793_v61  ;;  %v10908_v0 = vpop.f32.mrb[4].mxu1  ;;  %v12075_v59 = vld [vmem:[#allocation6 + $0x28] sm:$0xff]   ;;  %v12076_v61 = vld [vmem:[#allocation6 + $0x30] sm:$0xff]  }
 0x4ef   : > { %12265 = vpow2.f32 %v2806_v62  ;;  %v2782_v3 = vadd.f32 %v10908_v0, %v9777_v50  ;;  %v2746_v4 = vpop.f32.mrb[5].mxu1  ;;  %v12077_v62 = vld [vmem:[#allocation6 + $0x38] sm:$0xff]  }
 0x4f0   : > { %12267 = vpow2.f32 %v2802_v63  ;;  %v2780_v34 = vadd.f32 %v9777_v50, %v2746_v4  ;;  %v10909_v47 = vpop.f32.mrb[6].mxu1  ;;  %v12081_v63 = vld [vmem:[#allocation9 + $0x58] sm:$0xff]  }
 0x4f1   : > { %v2798_v5 = vmin.f32 %v2782_v3, 0.0  ;;  %v2783_v6 = vadd.f32 %v10909_v47, %v9777_v50  ;;  %v2749_v60 = vpop.f32.mrb[7].mxu1  ;;  %vm2790_vm10 = vcmp.gt.f32.partialorder %v2782_v3, 0.0 }
 0x4f2   : > { %v2796_v7 = vmin.f32 %v2780_v34, 0.0  ;;  %v2781_v9 = vadd.f32 %v9777_v50, %v2749_v60 }
 0x4f3   : > { %v2812_v11 = vmul.f32 1.442695, %v2798_v5  ;;  %v2799_v12 = vmin.f32 %v2783_v6, 0.0  ;;  %vm2791_vm11 = vcmp.gt.f32.partialorder %v2783_v6, 0.0 }
 0x4f4   : > { %v2808_v14 = vmul.f32 1.442695, %v2796_v7  ;;  %v2797_v15 = vmin.f32 %v2781_v9, 0.0 }
 0x4f5   : > { %12269 = vpow2.f32 %v2812_v11  ;;  %v2814_v17 = vmul.f32 1.442695, %v2799_v12 }
 0x4f6   : > { %12271 = vpow2.f32 %v2808_v14  ;;  %v2810_v19 = vmul.f32 1.442695, %v2797_v15 }
 0x4f7   : > { %v12262_v56 = vpop.eup %12261  ;;  %12273 = vpow2.f32 %v2814_v17 }
 0x4f8   : > { %v12264_v21 = vpop.eup %12263  ;;  %v9780_v22 = vadd.f32 -1.0, %v12262_v56  ;;  %12275 = vpow2.f32 %v2810_v19 }
 0x4f9   : > { %v12266_v26 = vpop.eup %12265  ;;  %v9778_v1 = vadd.f32 -1.0, %v12264_v21 }
 0x4fa   : > { %v12268_v18 = vpop.eup %12267  ;;  %v9781_v28 = vadd.f32 -1.0, %v12266_v26  ;;  %v2826_v23 = vsel %vm2786_vm12, %v2778_v32, %v9780_v22  ;;  %vm2788_vm12 = vcmp.gt.f32.partialorder %v2780_v34, 0.0 }
 0x4fb   : > { %v9779_v35 = vadd.f32 -1.0, %v12268_v18  ;;  %v2824_v39 = vsel %vm2784_vm14, %v2776_v51, %v9778_v1 }
 0x4fc   : > { %v2827_v2 = vsel %vm2787_vm13, %v2779_v30, %v9781_v28  ;;  %vm2789_vm13 = vcmp.gt.f32.partialorder %v2781_v9, 0.0 }
 0x4fd   : > { %v2833_v29 = vpack.c.bf16 %v2827_v2, %v2826_v23  ;;  %v2825_v36 = vsel %vm2785_vm15, %v2777_v27, %v9779_v35 }
 0x4fe   : > { %v2832_v41 = vpack.c.bf16 %v2825_v36, %v2824_v39 }
 0x4ff   : > { %v12270_v42 = vpop.eup %12269 }
 0x500   : > { %v12272_v45 = vpop.eup %12271  ;;  %v9784_v48 = vadd.f32 -1.0, %v12270_v42  ;;  %10926 = vmatprep.mubr.bf16.mxu1 %v2832_v41 }
 0x501   : > { %v12274_v50 = vpop.eup %12273  ;;  %v9782_v52 = vadd.f32 -1.0, %v12272_v45  ;;  %10927 = vmatmul.mubr.bf16.vlgmr.msra.gmra.mrb[8].mxu1 %v2833_v29 }
 0x502   : > { %v12276_v33 = vpop.eup %12275  ;;  %v9785_v53 = vadd.f32 -1.0, %v12274_v50  ;;  %10935 = vmatpush3.bf16.msra.mxu1 %v14171_v49  ;;  %v2830_v51 = vsel %vm2790_vm10, %v2782_v3, %v9784_v48  ;;  %v12074_v49 = vld [vmem:[#allocation6 + $0x20] sm:$0xff]  }
 0x503   : > { %v9783_v32 = vadd.f32 -1.0, %v12276_v33  ;;  %10936 = vmatprep.subr.bf16.mxu1 %v12071_v44  ;;  %v2828_v55 = vsel %vm2788_vm12, %v2780_v34, %v9782_v52 }
 0x504   : > { %v2831_v30 = vsel %vm2791_vm11, %v2783_v6, %v9785_v53 }
 0x505   : > { %v2829_v25 = vsel %vm2789_vm13, %v2781_v9, %v9783_v32  ;;  %v2835_v27 = vpack.c.bf16 %v2831_v30, %v2830_v51 }
 0x506   : > { %10937 = vmatpush3.bf16.msra.mxu1 %v12071_v44  ;;  %v2834_v57 = vpack.c.bf16 %v2829_v25, %v2828_v55 }
 0x507   : > { %10938 = vmatprep.subr.bf16.mxu1 %v12072_v54 }
 0x508   : > { %10930 = vmatprep.mubr.bf16.mxu1 %v2834_v57 }
 0x509   : > { %10931 = vmatmul.mubr.bf16.gmra.mrb[12].mxu1 %v2835_v27 }
 0x50a   : > { %10939 = vmatpush3.bf16.msra.mxu1 %v12072_v54  ;;  %10950 = vmatprep.mubr.bf16.mxu1 %v2972_v24  ;;  %v12080_v24 = vld [vmem:[#allocation9 + $0x50] sm:$0xff]  }
 0x50b   : > { %10940 = vmatprep.subr.bf16.mxu1 %v12073_v58 }
 0x50e   : > { %10941 = vmatpush3.bf16.msra.mxu1 %v12073_v58 }
 0x50f   : > { %10942 = vmatprep.subr.bf16.mxu1 %v12074_v49 }
 0x512   : > { %10943 = vmatpush3.bf16.msra.mxu1 %v12074_v49 }
 0x513   : > { %10944 = vmatprep.subr.bf16.mxu1 %v12075_v59 }
 0x516   : > { %10945 = vmatpush3.bf16.msra.mxu1 %v12075_v59 }
 0x517   : > { %10946 = vmatprep.subr.bf16.mxu1 %v12076_v61 }
 0x51a   : > { %10947 = vmatpush3.bf16.msra.mxu1 %v12076_v61 }
 0x51b   : > { %10948 = vmatprep.subr.bf16.mxu1 %v12077_v62 }
 0x51e   : > { %10949 = vmatpush3.bf16.msra.mxu1 %v12077_v62 }
 0x51f   : > { %10958 = vmatprep.subr.bf16.mxu1 %v12078_v10 }
 0x521   : > { %10951 = vmatmul.mubr.bf16.vlgmr.msra.gmra.mrb[8].mxu1 %v2973_v20  ;;  %v12084_v20 = vld [vmem:[#allocation9 + $0x70] sm:$0xff]  }
 0x522   : > { %10954 = vmatprep.mubr.bf16.mxu1 %v2974_v46  ;;  %10959 = vmatpush3.bf16.msra.mxu1 %v12078_v10 }
 0x523   : > { %10960 = vmatprep.subr.bf16.mxu1 %v12079_v16 }
 0x526   : > { %10961 = vmatpush3.bf16.msra.mxu1 %v12079_v16 }
 0x527   : > { %10962 = vmatprep.subr.bf16.mxu1 %v12080_v24 }
 0x529   : > { %10955 = vmatmul.mubr.bf16.gmra.mrb[12].mxu1 %v2975_v43  ;;  %v11637_v43 = vadd.f32 %v9795_v40, %v9786_v38 }
 0x52a   : > { %10963 = vmatpush3.bf16.msra.mxu1 %v12080_v24 }
 0x52b   : > { %10964 = vmatprep.subr.bf16.mxu1 %v12081_v63 }
 0x52e   : > { %10965 = vmatpush3.bf16.msra.mxu1 %v12081_v63 }
 0x52f   : > { %10966 = vmatprep.subr.bf16.mxu1 %v12082_v8 }
 0x532   : > { %10967 = vmatpush3.bf16.msra.mxu1 %v12082_v8 }
 0x533   : > { %10968 = vmatprep.subr.bf16.mxu1 %v12083_v13 }
 0x536   : > { %10969 = vmatpush3.bf16.msra.mxu1 %v12083_v13 }
 0x537   : > { %10970 = vmatprep.subr.bf16.mxu1 %v12084_v20 }
 0x53a   : > { %10971 = vmatpush3.bf16.msra.mxu1 %v12084_v20 }
 0x53b   : > { %10972 = vmatprep.subr.bf16.mxu1 %v12085_v31 }
 0x53e   : > { %10973 = vmatpush3.bf16.msra.mxu1 %v12085_v31 }
 0x53f   : > { %10982 = vmatprep.subr.bf16.mxu1 %v14190_v37 }
 0x5f4   : > { %v10952_v46 = vpop.f32.mrb[8].mxu1 }
 0x5f5   : > { %v11631_v0 = vadd.f32 %v10952_v46, %v9786_v38  ;;  %v3081_v3 = vpop.f32.mrb[9].mxu1 }
 0x5f6   : > { %v11633_v4 = vadd.f32 %v9786_v38, %v3081_v3  ;;  %v10953_v34 = vpop.f32.mrb[10].mxu1 }
 0x5f7   : > { %v11632_v47 = vadd.f32 %v11631_v0, %v9795_v40  ;;  %v11636_v5 = vadd.f32 %v11637_v43, %v10953_v34  ;;  %v3084_v6 = vpop.f32.mrb[11].mxu1 }
 0x5f8   : > { %v11634_v60 = vadd.f32 %v11633_v4, %v9795_v40  ;;  %v11638_v7 = vadd.f32 %v11637_v43, %v3084_v6 }
 0x5f9   : > { %v3130_v9 = vmin.f32 %v11632_v47, 0.0  ;;  %v3131_v11 = vmin.f32 %v11636_v5, 0.0  ;;  %vm3122_vm14 = vcmp.gt.f32.partialorder %v11632_v47, 0.0  ;;  %vm3123_vm10 = vcmp.gt.f32.partialorder %v11636_v5, 0.0 }
 0x5fa   : > { %v3128_v12 = vmin.f32 %v11634_v60, 0.0  ;;  %v3129_v14 = vmin.f32 %v11638_v7, 0.0  ;;  %vm3120_vm15 = vcmp.gt.f32.partialorder %v11634_v60, 0.0  ;;  %vm3121_vm11 = vcmp.gt.f32.partialorder %v11638_v7, 0.0 }
 0x5fb   : > { %v3140_v15 = vmul.f32 1.442695, %v3130_v9  ;;  %v3142_v17 = vmul.f32 1.442695, %v3131_v11 }
 0x5fc   : > { %v3136_v19 = vmul.f32 1.442695, %v3128_v12  ;;  %v3138_v56 = vmul.f32 1.442695, %v3129_v14  ;;  %v10956_v21 = vpop.f32.mrb[12].mxu1 }
 0x5fd   : > { %12277 = vpow2.f32 %v3140_v15  ;;  %v11640_v22 = vadd.f32 %v11637_v43, %v10956_v21  ;;  %v3097_v26 = vpop.f32.mrb[13].mxu1 }
 0x5fe   : > { %12279 = vpow2.f32 %v3136_v19  ;;  %v11642_v1 = vadd.f32 %v11637_v43, %v3097_v26  ;;  %v10957_v18 = vpop.f32.mrb[14].mxu1 }
 0x5ff   : > { %12281 = vpow2.f32 %v3142_v17  ;;  %v3134_v28 = vmin.f32 %v11640_v22, 0.0  ;;  %v11644_v35 = vadd.f32 %v11637_v43, %v10957_v18  ;;  %v3100_v23 = vpop.f32.mrb[15].mxu1  ;;  %vm3126_vm12 = vcmp.gt.f32.partialorder %v11640_v22, 0.0 }
 0x600   : > { %12283 = vpow2.f32 %v3138_v56  ;;  %v3132_v2 = vmin.f32 %v11642_v1, 0.0  ;;  %v11646_v29 = vadd.f32 %v11637_v43, %v3100_v23  ;;  %vm3124_vm13 = vcmp.gt.f32.partialorder %v11642_v1, 0.0 }
 0x601   : > { %v3148_v39 = vmul.f32 1.442695, %v3134_v28  ;;  %v3135_v36 = vmin.f32 %v11644_v35, 0.0 }
 0x602   : > { %v3144_v41 = vmul.f32 1.442695, %v3132_v2  ;;  %v3133_v42 = vmin.f32 %v11646_v29, 0.0 }
 0x603   : > { %12285 = vpow2.f32 %v3148_v39  ;;  %v3150_v44 = vmul.f32 1.442695, %v3135_v36 }
 0x604   : > { %12287 = vpow2.f32 %v3144_v41  ;;  %v3146_v45 = vmul.f32 1.442695, %v3133_v42 }
 0x605   : > { %12289 = vpow2.f32 %v3150_v44 }
 0x606   : > { %12291 = vpow2.f32 %v3146_v45 }
 0x607   : > { %v12278_v48 = vpop.eup %12277 }
 0x608   : > { %v12280_v50 = vpop.eup %12279  ;;  %v9806_v52 = vadd.f32 -1.0, %v12278_v48 }
 0x609   : > { %v12282_v33 = vpop.eup %12281  ;;  %v9804_v53 = vadd.f32 -1.0, %v12280_v50 }
 0x60a   : > { %v12284_v32 = vpop.eup %12283  ;;  %v3162_v54 = vsel %vm3122_vm14, %v11632_v47, %v9806_v52  ;;  %v9807_v51 = vadd.f32 -1.0, %v12282_v33  ;;  %vm3127_vm14 = vcmp.gt.f32.partialorder %v11644_v35, 0.0 }
 0x60b   : > { %v3181_v30 = vrot.slane %v3162_v54, 7  ;;  %v3160_v55 = vsel %vm3120_vm15, %v11634_v60, %v9804_v53  ;;  %v9805_v25 = vadd.f32 -1.0, %v12284_v32  ;;  %vm3125_vm15 = vcmp.gt.f32.partialorder %v11646_v29, 0.0 }
 0x60c   : > { %v3169_v27 = vrot.slane %v3160_v55, 1  ;;  %v3178_v57 = vrot.slane %v3160_v55, 7  ;;  %v3163_v58 = vsel %vm3123_vm10, %v11636_v5, %v9807_v51  ;;  %vm3857_vm10 = vcmask 515072  }
 0x60d   : > { %v12286_v49 = vpop.eup %12285  ;;  %v3183_v59 = vrot.slane %v3163_v58, 7  ;;  %v3161_v61 = vsel %vm3121_vm11, %v11638_v7, %v9805_v25 }
 0x60e   : > { %v12288_v62 = vpop.eup %12287  ;;  %v3179_v10 = vrot.slane %v3161_v61, 7  ;;  %v3204_v16 = vsel %vm1106_vm1, %v3169_v27, %v3178_v57  ;;  %v9810_v24 = vadd.f32 -1.0, %v12286_v49 }
 0x60f   : > { %v12290_v63 = vpop.eup %12289  ;;  %v3184_v8 = vsel %vm1106_vm1, %v3181_v30, %v3183_v59  ;;  %v9808_v13 = vadd.f32 -1.0, %v12288_v62 }
 0x610   : > { %v12292_v20 = vpop.eup %12291  ;;  %v3180_v31 = vsel %vm1106_vm1, %v3178_v57, %v3179_v10  ;;  %v3182_v38 = vsel %vm1106_vm1, %v3179_v10, %v3181_v30  ;;  %v3166_v40 = vsel %vm3126_vm12, %v11640_v22, %v9810_v24  ;;  %v9811_v43 = vadd.f32 -1.0, %v12290_v63  ;;  %v12087_v57 = vld [vmem:[#allocation9 + $0x8] sm:$0xff]  }
 0x611   : > { %v14200_v46 = vpack.c.bf16 %v3180_v31, %v3204_v16  ;;  %v14202_v0 = vpack.c.bf16 %v3184_v8, %v3182_v38  ;;  %v3164_v3 = vsel %vm3124_vm13, %v11642_v1, %v9808_v13  ;;  %v3189_v4 = vrot.slane %v3166_v40, 7  ;;  %v12088_v40 = vld [vmem:[#allocation9 + $0x10] sm:$0xff]  }
 0x612   : > { %v3185_v34 = vrot.slane %v3164_v3, 7  ;;  %v3167_v47 = vsel %vm3127_vm14, %v11644_v35, %v9811_v43  ;;  %v9809_v5 = vadd.f32 -1.0, %v12292_v20  ;;  %vm13119_vm12 = vmmov 1  }
 0x613   : > { %v3191_v6 = vrot.slane %v3167_v47, 7  ;;  %v3202_v60 = vrot.slane %v3167_v47, 5  ;;  %v3244_v7 = vshrl.u32 %v14200_v46, 16  ;;  %v3246_v9 = vshll.u32 %v14200_v46, 16  ;;  %vm11535_vm13 = vmpackc.low %vm1443_vm7, %vm13119_vm12 }
 0x614   : > { %v3186_v11 = vsel %vm1106_vm1, %v3183_v59, %v3185_v34  ;;  %v3165_v12 = vsel %vm3125_vm15, %v11646_v29, %v9809_v5  ;;  %v3251_v14 = vshll.u32 %v14202_v0, 16  ;;  %v3255_v15 = vshrl.u32 %v14202_v0, 16 }
 0x615   : > { %v3192_v17 = vsel %vm1106_vm1, %v3189_v4, %v3191_v6  ;;  %v3205_v19 = vsel %vm1106_vm1, %v3191_v6, %v3202_v60  ;;  %v3187_v56 = vrot.slane %v3165_v12, 7  ;;  %v3248_v21 = vrot.slane %v3246_v9, 1  ;;  %v12093_v12 = vld [vmem:[#allocation9 + $0x38] sm:$0xff]  }
 0x616   : > { %v3253_v22 = vrot.slane %v3251_v14, 1  ;;  %v3527_v26 = vrot.slane %v14200_v46, 1  ;;  %v3528_v1 = vrot.slane %v14202_v0, 1  ;;  %v3504_v18 = vpack.c.bf16 %v3205_v19, %v3205_v19  ;;  %v12098_v19 = vld [vmem:[#allocation9 + $0xa0] sm:$0xff]  }
 0x617   : > { %v3188_v28 = vsel %vm1106_vm1, %v3185_v34, %v3187_v56  ;;  %v3190_v35 = vsel %vm1106_vm1, %v3187_v56, %v3189_v4  ;;  %v3249_v23 = vor.u32 %v3248_v21, %v3244_v7  ;;  %v3678_v2 = vrot.slane %v3244_v7, 1  ;;  %v12090_v7 = vld [vmem:[#allocation9 + $0x20] sm:$0xff]   ;;  %v12099_v56 = vld [vmem:[#allocation9 + $0xa8] sm:$0xff]   ;;  %v12101_v21 = vld [vmem:[#allocation9 + $0xb8] sm:$0xff]  }
 0x618   : > { %v14215_v29 = vpack.c.bf16 %v3188_v28, %v3186_v11  ;;  %v14217_v39 = vpack.c.bf16 %v3192_v17, %v3190_v35  ;;  %v14220_v36 = vsel %vm1443_vm7, %v3527_v26, %v3528_v1  ;;  %v3534_v42 = vrot.slane %v3504_v18, 1  ;;  %v12092_v11 = vld [vmem:[#allocation9 + $0x30] sm:$0xff]   ;;  %v12097_v17 = vld [vmem:[#allocation9 + $0x98] sm:$0xff]   ;;  %v12103_v26 = vld [vmem:[#allocation9 + $0xc8] sm:$0xff]  }
 0x619   : > { %v3254_v41 = vsel %vm1154_vm3, %v3249_v23, %v3253_v22  ;;  %v3679_v44 = vrot.slane %v3246_v9, 2  ;;  %v3681_v45 = vrot.slane %v3255_v15, 1  ;;  %v3682_v51 = vrot.slane %v3251_v14, 2  ;;  %v12091_v9 = vld [vmem:[#allocation9 + $0x28] sm:$0xff]   ;;  %v12094_v14 = vld [vmem:[#allocation9 + $0x80] sm:$0xff]   ;;  %v12108_v23 = vld [vmem:[#allocation9 + $0xf0] sm:$0xff]  }
 0x61a   : > { %10974 = vmatprep.mubr.bf16.mxu1 %v3254_v41  ;;  %v3259_v48 = vshll.u32 %v14215_v29, 16  ;;  %v3263_v50 = vshrl.u32 %v14215_v29, 16  ;;  %v3267_v52 = vshll.u32 %v14217_v39, 16  ;;  %v3271_v33 = vshrl.u32 %v14217_v39, 16  ;;  %v12106_v28 = vld [vmem:[#allocation9 + $0xe0] sm:$0xff]   ;;  %v12107_v35 = vld [vmem:[#allocation9 + $0xe8] sm:$0xff]  }
 0x61b   : > { %v3530_v53 = vrot.slane %v14215_v29, 1  ;;  %v3532_v32 = vrot.slane %v14217_v39, 1  ;;  %v3680_v54 = vor.u32 %v3679_v44, %v3678_v2  ;;  %v3257_v30 = vor.u32 %v3255_v15, %v3253_v22  ;;  %v12095_v15 = vld [vmem:[#allocation9 + $0x88] sm:$0xff]   ;;  %v12102_v22 = vld [vmem:[#allocation9 + $0xc0] sm:$0xff]   ;;  %v12109_v2 = vld [vmem:[#allocation9 + $0xf8] sm:$0xff]  }
 0x61c   : > { %v3261_v55 = vrot.slane %v3259_v48, 1  ;;  %v3685_v25 = vrot.slane %v3263_v50, 1  ;;  %v3689_v27 = vrot.slane %v3271_v33, 1  ;;  %v3683_v61 = vor.u32 %v3682_v51, %v3681_v45 }
 0x61d   : > { %v14230_v58 = vsel %vm1443_vm7, %v3528_v1, %v3530_v53  ;;  %v14233_v49 = vsel %vm1443_vm7, %v3530_v53, %v3532_v32  ;;  %v14236_v59 = vsel %vm1443_vm7, %v3532_v32, %v3534_v42  ;;  %v3269_v16 = vrot.slane %v3267_v52, 1  ;;  %v12104_v1 = vld [vmem:[#allocation9 + $0xd0] sm:$0xff]  }
 0x61e   : > { %v3262_v62 = vsel %vm1154_vm3, %v3257_v30, %v3261_v55  ;;  %v3265_v10 = vor.u32 %v3263_v50, %v3261_v55  ;;  %v3686_v24 = vrot.slane %v3259_v48, 2  ;;  %v14240_v63 = vsel %vm1595_vm6, %v3680_v54, %v3683_v61 }
 0x61f   : > { %10975 = vmatmul.mubr.bf16.vlgmr.msra.gmra.mrb[16].mxu1 %v3262_v62  ;;  %v3690_v8 = vrot.slane %v3267_v52, 2  ;;  %v3694_v13 = vshrl.u32 %v3504_v18, 16  ;;  %v3697_v20 = vshll.u32 %v3504_v18, 16  ;;  %v3273_v6 = vor.u32 %v3271_v33, %v3269_v16  ;;  %v12105_v18 = vld [vmem:[#allocation9 + $0xd8] sm:$0xff]  }
 0x620   : > { %10983 = vmatpush3.bf16.msra.mxu1 %v14190_v37  ;;  %v3270_v31 = vsel %vm1154_vm3, %v3265_v10, %v3269_v16  ;;  %v3687_v38 = vor.u32 %v3686_v24, %v3685_v25  ;;  %v12089_v37 = vld [vmem:[#allocation9 + $0x18] sm:$0xff]   ;;  %v13118_v42 = vmov 0.0   ;;  %v12110_v24 = vld [vmem:[#allocation12 + $0x40] sm:$0xff]  }
 0x621   : > { %10978 = vmatprep.mubr.bf16.mxu1 %v3270_v31  ;;  %10984 = vmatprep.subr.bf16.mxu1 %v12087_v57  ;;  %v3691_v43 = vor.u32 %v3690_v8, %v3689_v27  ;;  %v3696_v3 = vrot.slane %v3694_v13, 1  ;;  %v3699_v4 = vrot.slane %v3697_v20, 2  ;;  %v12112_v8 = vld [vmem:[#allocation12 + $0x50] sm:$0xff]   ;;  %v12113_v13 = vld [vmem:[#allocation12 + $0x58] sm:$0xff]   ;;  %v12114_v20 = vld [vmem:[#allocation12 + $0x60] sm:$0xff]  }
 0x622   : > { %v14245_v34 = vsel %vm1595_vm6, %v3683_v61, %v3687_v38  ;;  %11076 = vmatprep.subr.bf16.mxu0 %v12110_v24  ;;  %v12115_v31 = vld [vmem:[#allocation12 + $0x68] sm:$0xff]  }
 0x623   : > { %v14248_v47 = vsel %vm1595_vm6, %v3687_v38, %v3691_v43  ;;  %v3700_v5 = vor.u32 %v3699_v4, %v3696_v3  ;;  %11077 = vmatpush3.bf16.msra.mxu0 %v12110_v24  ;;  %v12116_v38 = vld [vmem:[#allocation12 + $0x70] sm:$0xff]   ;;  %v12134_v3 = vld [vmem:[#allocation15] sm:$0xff]  }
 0x624   : > { %10985 = vmatpush3.bf16.msra.mxu1 %v12087_v57  ;;  %v12135_v4 = vld [vmem:[#allocation15 + $0x8] sm:$0xff]  }
 0x625   : > { %10986 = vmatprep.subr.bf16.mxu1 %v12088_v40  ;;  %v14251_v60 = vsel %vm1595_vm6, %v3691_v43, %v3700_v5  ;;  %v14287_v43 = vld [vmem:[#allocation12] sm:$0xff]  }
 0x627   : > { %10979 = vmatmul.mubr.bf16.gmra.mrb[20].mxu1 %v3273_v6 }
 0x628   : > { %10987 = vmatpush3.bf16.msra.mxu1 %v12088_v40  ;;  %10998 = vmatprep.mubr.bf16.mxu1 %v14200_v46  ;;  %v12096_v46 = vld [vmem:[#allocation9 + $0x90] sm:$0xff]   ;;  %v12117_v40 = vld [vmem:[#allocation12 + $0x78] sm:$0xff]  }
 0x629   : > { %10988 = vmatprep.subr.bf16.mxu1 %v12089_v37 }
 0x62c   : > { %10989 = vmatpush3.bf16.msra.mxu1 %v12089_v37 }
 0x62d   : > { %10990 = vmatprep.subr.bf16.mxu1 %v12090_v7 }
 0x630   : > { %10991 = vmatpush3.bf16.msra.mxu1 %v12090_v7 }
 0x631   : > { %10992 = vmatprep.subr.bf16.mxu1 %v12091_v9 }
 0x634   : > { %10993 = vmatpush3.bf16.msra.mxu1 %v12091_v9 }
 0x635   : > { %10994 = vmatprep.subr.bf16.mxu1 %v12092_v11 }
 0x638   : > { %10995 = vmatpush3.bf16.msra.mxu1 %v12092_v11 }
 0x639   : > { %10996 = vmatprep.subr.bf16.mxu1 %v12093_v12 }
 0x63c   : > { %10997 = vmatpush3.bf16.msra.mxu1 %v12093_v12 }
 0x63d   : > { %11006 = vmatprep.subr.bf16.mxu1 %v12094_v14 }
 0x63f   : > { %10999 = vmatmul.mubr.bf16.vlgmr.msra.gmra.mrb[16].mxu1 %v14202_v0  ;;  %v12100_v0 = vld [vmem:[#allocation9 + $0xb0] sm:$0xff]  }
 0x640   : > { %11002 = vmatprep.mubr.bf16.mxu1 %v14215_v29  ;;  %11007 = vmatpush3.bf16.msra.mxu1 %v12094_v14  ;;  %v3827_v29 = vlaneseq }
 0x641   : > { %11008 = vmatprep.subr.bf16.mxu1 %v12095_v15 }
 0x644   : > { %11009 = vmatpush3.bf16.msra.mxu1 %v12095_v15 }
 0x645   : > { %11010 = vmatprep.subr.bf16.mxu1 %v12096_v46 }
 0x647   : > { %11003 = vmatmul.mubr.bf16.gmra.mrb[20].mxu1 %v14217_v39  ;;  %v14265_v39 = vshrl.u32 %v3827_v29, 7 }
 0x648   : > { %11011 = vmatpush3.bf16.msra.mxu1 %v12096_v46  ;;  %11022 = vmatprep.mubr.bf16.mxu1 %v14220_v36  ;;  %v14267_v36 = vand.u32 127, %v3827_v29 }
 0x649   : > { %11012 = vmatprep.subr.bf16.mxu1 %v12097_v17  ;;  %v3834_v41 = vmul.u32 2, %v14265_v39  ;;  %v3829_v54 = vadd.s32 8, %v14265_v39  ;;  %v3830_v30 = vadd.s32 16, %v14265_v39 }
 0x64b   : > { %vm3838_vm11 = vcmp.eq.s32.totalorder %v14267_v36, %v3834_v41 }
 0x64c   : > { %11013 = vmatpush3.bf16.msra.mxu1 %v12097_v17  ;;  %v9844_v44 = vsel %vm3838_vm11, 1.0, %v13118_v42 }
 0x64d   : > { %11014 = vmatprep.subr.bf16.mxu1 %v12098_v19 }
 0x650   : > { %11015 = vmatpush3.bf16.msra.mxu1 %v12098_v19 }
 0x651   : > { %11016 = vmatprep.subr.bf16.mxu1 %v12099_v56 }
 0x654   : > { %11017 = vmatpush3.bf16.msra.mxu1 %v12099_v56 }
 0x655   : > { %11018 = vmatprep.subr.bf16.mxu1 %v12100_v0 }
 0x658   : > { %11019 = vmatpush3.bf16.msra.mxu1 %v12100_v0 }
 0x659   : > { %11020 = vmatprep.subr.bf16.mxu1 %v12101_v21 }
 0x65c   : > { %11021 = vmatpush3.bf16.msra.mxu1 %v12101_v21 }
 0x65d   : > { %11030 = vmatprep.subr.bf16.mxu1 %v12102_v22 }
 0x65f   : > { %11023 = vmatmul.mubr.bf16.vlgmr.msra.gmra.mrb[16].mxu1 %v14230_v58  ;;  %v3835_v58 = vmul.u32 2, %v3829_v54 }
 0x660   : > { %11026 = vmatprep.mubr.bf16.mxu1 %v14233_v49  ;;  %11031 = vmatpush3.bf16.msra.mxu1 %v12102_v22  ;;  %v3831_v49 = vadd.s32 24, %v14265_v39 }
 0x661   : > { %11032 = vmatprep.subr.bf16.mxu1 %v12103_v26  ;;  %vm3839_vm14 = vcmp.eq.s32.totalorder %v14267_v36, %v3835_v58 }
 0x662   : > { %v3837_v61 = vmul.u32 2, %v3831_v49  ;;  %v9845_v62 = vsel %vm3839_vm14, 1.0, %v13118_v42 }
 0x664   : > { %11033 = vmatpush3.bf16.msra.mxu1 %v12103_v26  ;;  %vm3841_vm11 = vcmp.eq.s32.totalorder %v14267_v36, %v3837_v61 }
 0x665   : > { %11034 = vmatprep.subr.bf16.mxu1 %v12104_v1  ;;  %v9847_v16 = vsel %vm3841_vm11, 1.0, %v13118_v42 }
 0x667   : > { %11027 = vmatmul.mubr.bf16.gmra.mrb[20].mxu1 %v14236_v59  ;;  %v3836_v59 = vmul.u32 2, %v3830_v30 }
 0x668   : > { %11035 = vmatpush3.bf16.msra.mxu1 %v12104_v1  ;;  %11046 = vmatprep.mubr.bf16.mxu1 %v14240_v63  ;;  %v12111_v63 = vld [vmem:[#allocation12 + $0x48] sm:$0xff]  }
 0x669   : > { %11036 = vmatprep.subr.bf16.mxu1 %v12105_v18  ;;  %vm3840_vm15 = vcmp.eq.s32.totalorder %v14267_v36, %v3836_v59  ;;  %11078 = vmatprep.subr.bf16.mxu0 %v12111_v63 }
 0x66a   : > { %v9846_v10 = vsel %vm3840_vm15, 1.0, %v13118_v42  ;;  %11079 = vmatpush3.bf16.msra.mxu0 %v12111_v63 }
 0x66b   : > { %11080 = vmatprep.subr.bf16.mxu0 %v12112_v8 }
 0x66c   : > { %11037 = vmatpush3.bf16.msra.mxu1 %v12105_v18 }
 0x66d   : > { %11038 = vmatprep.subr.bf16.mxu1 %v12106_v28 }
 0x66e   : > { %11081 = vmatpush3.bf16.msra.mxu0 %v12112_v8 }
 0x66f   : > { %11082 = vmatprep.subr.bf16.mxu0 %v12113_v13 }
 0x670   : > { %11039 = vmatpush3.bf16.msra.mxu1 %v12106_v28 }
 0x671   : > { %11040 = vmatprep.subr.bf16.mxu1 %v12107_v35 }
 0x672   : > { %11083 = vmatpush3.bf16.msra.mxu0 %v12113_v13 }
 0x673   : > { %11084 = vmatprep.subr.bf16.mxu0 %v12114_v20 }
 0x674   : > { %11041 = vmatpush3.bf16.msra.mxu1 %v12107_v35 }
 0x675   : > { %11042 = vmatprep.subr.bf16.mxu1 %v12108_v23 }
 0x676   : > { %11085 = vmatpush3.bf16.msra.mxu0 %v12114_v20 }
 0x677   : > { %11086 = vmatprep.subr.bf16.mxu0 %v12115_v31 }
 0x678   : > { %11043 = vmatpush3.bf16.msra.mxu1 %v12108_v23 }
 0x679   : > { %11044 = vmatprep.subr.bf16.mxu1 %v12109_v2 }
 0x67a   : > { %11087 = vmatpush3.bf16.msra.mxu0 %v12115_v31 }
 0x67b   : > { %11088 = vmatprep.subr.bf16.mxu0 %v12116_v38 }
 0x67c   : > { %11045 = vmatpush3.bf16.msra.mxu1 %v12109_v2 }
 0x67e   : > { %11089 = vmatpush3.bf16.msra.mxu0 %v12116_v38 }
 0x67f   : > { %11047 = vmatmul.mubr.bf16.vlgmr.msra.gmra.mrb[16].mxu1 %v14245_v34  ;;  %11090 = vmatprep.subr.bf16.mxu0 %v12117_v40  ;;  %v9848_v34 = vld [vmem:[#allocation10] ss:$0 sm:$0xff] }
 0x680   : > { %11050 = vmatprep.mubr.bf16.mxu1 %v14248_v47 }
 0x682   : > { %11091 = vmatpush3.bf16.msra.mxu0 %v12117_v40 }
 0x683   : > { %11096 = vmatprep.subr.bf16.mxu0 %v14287_v43 }
 0x687   : > { %11051 = vmatmul.mubr.bf16.gmra.mrb[20].mxu1 %v14251_v60 }
 0x688   : > { %11070 = vmatprep.mubr.msk.f32.mxu1 %vm3857_vm10, %v9844_v44 }
 0x752   : > { %v11048_v45 = vpop.f32.mrb[16].mxu1 }
 0x753   : > { %v3788_v48 = vpop.f32.mrb[17].mxu1 }
 0x754   : > { %v11049_v50 = vpop.f32.mrb[18].mxu1 }
 0x755   : > { %v11526_v52 = vpack.c.bf16 %v11049_v50, %v11048_v45  ;;  %v3791_v33 = vpop.f32.mrb[19].mxu1 }
 0x756   : > { %v11522_v53 = vpack.c.bf16 %v3791_v33, %v3788_v48 }
 0x758   : > { %11523 = vmatprep.subr.bf16.mxu1 %v11522_v53 }
 0x759   : > { %11525 = vmatpush3.bf16.msra.mxu1 %v11522_v53 }
 0x75a   : > { %v11052_v32 = vpop.f32.mrb[20].mxu1  ;;  %11527 = vmatprep.subr.bf16.mxu1 %v11526_v52 }
 0x75b   : > { %v3804_v51 = vpop.f32.mrb[21].mxu1 }
 0x75c   : > { %v11053_v55 = vpop.f32.mrb[22].mxu1 }
 0x75d   : > { %v11534_v25 = vpack.c.bf16 %v11053_v55, %v11052_v32  ;;  %v3807_v27 = vpop.f32.mrb[23].mxu1  ;;  %11529 = vmatpush3.bf16.msra.mxu1 %v11526_v52 }
 0x75e   : > { %v11530_v57 = vpack.c.bf16 %v3807_v27, %v3804_v51 }
 0x760   : > { %11531 = vmatprep.subr.bf16.mxu1 %v11530_v57 }
 0x761   : > { %11533 = vmatpush3.bf16.msra.mxu1 %v11530_v57 }
 0x762   : > { %11536 = vmatprep.subr.msk.bf16.mxu1 %vm11535_vm13, %v11534_v25 }
 0x765   : > { %11539 = vmatpush3.bf16.msk.msra.mxu1 %vm11535_vm13, %v11534_v25 }
 0x766   : > { %11136 = vmatprep.subr.bf16.mxu1 %v12134_v3 }
 0x768   : > { %11071 = vmatmul.mubr.msk.f32.vlgmr.msra.gmra.mrb[24].mxu1 %vm3857_vm10, %v9845_v62 }
 0x769   : > { %11073 = vmatprep.mubr.msk.f32.mxu1 %vm3857_vm10, %v9846_v10  ;;  %11137 = vmatpush3.bf16.msra.mxu1 %v12134_v3 }
 0x76a   : > { %11138 = vmatprep.subr.bf16.mxu1 %v12135_v4 }
 0x76c   : > { %11074 = vmatmul.mubr.msk.f32.gmra.mrb[26].mxu1 %vm3857_vm10, %v9847_v16 }
 0x76d   : > { %11139 = vmatpush3.bf16.msra.mxu1 %v12135_v4 }
 0x83b   : > { %v11072_v47 = vpop.f32.mrb[24].mxu1 }
 0x83c   : > { %v14290_v5 = vadd.f32 %v11072_v47, %v9848_v34  ;;  %v3940_v6 = vpop.f32.mrb[25].mxu1  ;;  %v12119_v47 = vld [vmem:[#allocation12 + $0x8] sm:$0xff]  }
 0x83d   : > { %v14292_v37 = vadd.f32 %v9848_v34, %v3940_v6 }
 0x83e   : > { %v3964_v60 = vmin.f32 %v14290_v5, 0.0  ;;  %vm3960_vm10 = vcmp.gt.f32.partialorder %v14290_v5, 0.0 }
 0x83f   : > { %v3963_v7 = vmin.f32 %v14292_v37, 0.0  ;;  %v11075_v9 = vpop.f32.mrb[26].mxu1  ;;  %v4542_v11 = vpack.c.bf16 %v14290_v5, %v14292_v37  ;;  %vm3959_vm13 = vcmp.gt.f32.partialorder %v14292_v37, 0.0 }
 0x840   : > { %v3969_v12 = vmul.f32 1.442695, %v3964_v60  ;;  %v14298_v14 = vadd.f32 %v11075_v9, %v9848_v34  ;;  %v3950_v15 = vpop.f32.mrb[27].mxu1  ;;  %v12120_v60 = vld [vmem:[#allocation12 + $0x10] sm:$0xff]   ;;  %v12122_v9 = vld [vmem:[#allocation12 + $0x20] sm:$0xff]  }
 0x841   : > { %v3967_v46 = vmul.f32 1.442695, %v3963_v7  ;;  %v14300_v17 = vadd.f32 %v9848_v34, %v3950_v15  ;;  %v12121_v7 = vld [vmem:[#allocation12 + $0x18] sm:$0xff]   ;;  %v12124_v15 = vld [vmem:[#allocation12 + $0x30] sm:$0xff]  }
 0x842   : > { %12293 = vpow2.f32 %v3969_v12  ;;  %v3966_v19 = vmin.f32 %v14298_v14, 0.0  ;;  %vm3962_vm14 = vcmp.gt.f32.partialorder %v14298_v14, 0.0  ;;  %v12123_v12 = vld [vmem:[#allocation12 + $0x28] sm:$0xff]  }
 0x843   : > { %12295 = vpow2.f32 %v3967_v46  ;;  %v3965_v56 = vmin.f32 %v14300_v17, 0.0  ;;  %v4543_v0 = vpack.c.bf16 %v14298_v14, %v14300_v17  ;;  %vm3961_vm15 = vcmp.gt.f32.partialorder %v14300_v17, 0.0  ;;  %v12125_v46 = vld [vmem:[#allocation12 + $0x38] sm:$0xff]  }
 0x844   : > { %v3973_v21 = vmul.f32 1.442695, %v3966_v19  ;;  %v12127_v19 = vld [vmem:[#allocation12 + $0x88] sm:$0xff]  }
 0x845   : > { %v3971_v22 = vmul.f32 1.442695, %v3965_v56  ;;  %v12128_v56 = vld [vmem:[#allocation12 + $0x90] sm:$0xff]  }
 0x846   : > { %12297 = vpow2.f32 %v3973_v21  ;;  %v12129_v21 = vld [vmem:[#allocation12 + $0x98] sm:$0xff]  }
 0x847   : > { %12299 = vpow2.f32 %v3971_v22  ;;  %v12130_v22 = vld [vmem:[#allocation12 + $0xa0] sm:$0xff]  }
 0x84c   : > { %v12294_v26 = vpop.eup %12293 }
 0x84d   : > { %v12296_v1 = vpop.eup %12295  ;;  %v9855_v18 = vadd.f32 -1.0, %v12294_v26  ;;  %v12131_v26 = vld [vmem:[#allocation12 + $0xa8] sm:$0xff]  }
 0x84e   : > { %v9854_v28 = vadd.f32 -1.0, %v12296_v1  ;;  %v12132_v1 = vld [vmem:[#allocation12 + $0xb0] sm:$0xff]  }
 0x84f   : > { %v3980_v35 = vsel %vm3960_vm10, %v14290_v5, %v9855_v18  ;;  %v12133_v18 = vld [vmem:[#allocation12 + $0xb8] sm:$0xff]  }
 0x850   : > { %v12298_v23 = vpop.eup %12297  ;;  %v3990_v2 = vrot.slane %v3980_v35, 7  ;;  %v3979_v29 = vsel %vm3959_vm13, %v14292_v37, %v9854_v28  ;;  %v12136_v28 = vld [vmem:[#allocation15 + $0x10] sm:$0xff]   ;;  %v12137_v35 = vld [vmem:[#allocation15 + $0x18] sm:$0xff]   ;;  %v12151_v37 = vld [vmem:[%s15277_s27 + $0x48] sm:$0xff]  }
 0x851   : > { %v12300_v41 = vpop.eup %12299  ;;  %v3984_v44 = vrot.slane %v3979_v29, 1  ;;  %v3989_v45 = vrot.slane %v3979_v29, 7  ;;  %v9857_v48 = vadd.f32 -1.0, %v12298_v23  ;;  %11140 = vmatprep.subr.bf16.mxu1 %v12136_v28  ;;  %v12138_v23 = vld [vmem:[#allocation15 + $0x20] sm:$0xff]   ;;  %v12140_v29 = vld [vmem:[#allocation15 + $0x30] sm:$0xff]  }
 0x852   : > { %v9856_v50 = vadd.f32 -1.0, %v12300_v41  ;;  %11141 = vmatpush3.bf16.msra.mxu1 %v12136_v28  ;;  %v12141_v41 = vld [vmem:[#allocation15 + $0x38] sm:$0xff]  }
 0x853   : > { %v3991_v52 = vsel %vm1106_vm1, %v3989_v45, %v3990_v2  ;;  %v4003_v33 = vsel %vm1106_vm1, %v3984_v44, %v3989_v45  ;;  %v3982_v53 = vsel %vm3962_vm14, %v14298_v14, %v9857_v48  ;;  %11142 = vmatprep.subr.bf16.mxu1 %v12137_v35  ;;  %v12142_v44 = vld [vmem:[#allocation18] sm:$0xff]   ;;  %v9882_v45 = vld [vmem:[#allocation13] ss:$0 sm:$0xff]  ;;  %v12153_v14 = vld [vmem:[%s15277_s27 + $0x58] sm:$0xff]  }
 0x854   : > { %v4005_v32 = vpack.c.bf16 %v3991_v52, %v4003_v33  ;;  %v3994_v54 = vrot.slane %v3982_v53, 7  ;;  %v4001_v51 = vrot.slane %v3982_v53, 5  ;;  %v3981_v30 = vsel %vm3961_vm15, %v14300_v17, %v9856_v50  ;;  %v12150_v5 = vld [vmem:[%s15277_s27 + $0x40] sm:$0xff]  }
 0x855   : > { %v3992_v55 = vrot.slane %v3981_v30, 7  ;;  %v12154_v17 = vld [vmem:[%s15277_s27 + $0x60] sm:$0xff]  }
 0x856   : > { %v4044_v25 = vshll.u32 %v4005_v32, 16  ;;  %v4004_v27 = vsel %vm1106_vm1, %v3994_v54, %v4001_v51  ;;  %v4042_v62 = vshrl.u32 %v4005_v32, 16  ;;  %v4277_v63 = vrot.slane %v4005_v32, 1  ;;  %11143 = vmatpush3.bf16.msra.mxu1 %v12137_v35 }
 0x857   : > { %v3993_v57 = vsel %vm1106_vm1, %v3990_v2, %v3992_v55  ;;  %v3995_v58 = vsel %vm1106_vm1, %v3992_v55, %v3994_v54  ;;  %v4023_v49 = vpack.c.bf16 %v4004_v27, %v4004_v27  ;;  %11144 = vmatprep.subr.bf16.mxu1 %v12138_v23  ;;  %v12139_v2 = vld [vmem:[#allocation15 + $0x28] sm:$0xff]  }
 0x858   : > { %v4006_v59 = vpack.c.bf16 %v3995_v58, %v3993_v57  ;;  %v4046_v61 = vrot.slane %v4044_v25, 1 }
 0x859   : > { %v4280_v10 = vrot.slane %v4023_v49, 1  ;;  %v4057_v24 = vshll.u32 %v4023_v49, 16 }
 0x85a   : > { %v4049_v16 = vshll.u32 %v4006_v59, 16  ;;  %v4278_v8 = vrot.slane %v4006_v59, 1  ;;  %v4047_v13 = vor.u32 %v4046_v61, %v4042_v62  ;;  %v4053_v31 = vshrl.u32 %v4006_v59, 16  ;;  %11145 = vmatpush3.bf16.msra.mxu1 %v12138_v23 }
 0x85b   : > { %v4059_v34 = vrot.slane %v4057_v24, 1  ;;  %11146 = vmatprep.subr.bf16.mxu1 %v12139_v2 }
 0x85c   : > { %v4051_v20 = vrot.slane %v4049_v16, 1  ;;  %v4279_v38 = vsel %vm1443_vm7, %v4277_v63, %v4278_v8  ;;  %v4281_v40 = vsel %vm1443_vm7, %v4278_v8, %v4280_v10 }
 0x85e   : > { %v4052_v3 = vsel %vm1154_vm3, %v4047_v13, %v4051_v20  ;;  %v4055_v4 = vor.u32 %v4053_v31, %v4051_v20  ;;  %11147 = vmatpush3.bf16.msra.mxu1 %v12139_v2 }
 0x85f   : > { %11092 = vmatprep.mubr.bf16.mxu0 %v4052_v3  ;;  %11148 = vmatprep.subr.bf16.mxu1 %v12140_v29 }
 0x860   : > { %v4060_v6 = vsel %vm1154_vm3, %v4055_v4, %v4059_v34  ;;  %v12143_v34 = vld [vmem:[#allocation18 + $0x8] sm:$0xff]  }
 0x861   : > { %11093 = vmatmul.mubr.bf16.vlgmr.msra.gmra.mrb[8].mxu0 %v4060_v6  ;;  %v12145_v6 = vld [vmem:[#allocation18 + $0x18] sm:$0xff]  }
 0x862   : > { %11097 = vmatpush3.bf16.msra.mxu0 %v14287_v43  ;;  %11112 = vmatprep.mubr.bf16.mxu0 %v4005_v32  ;;  %v12126_v43 = vld [vmem:[#allocation12 + $0x80] sm:$0xff]  }
 0x863   : > { %11098 = vmatprep.subr.bf16.mxu0 %v12119_v47  ;;  %11149 = vmatpush3.bf16.msra.mxu1 %v12140_v29 }
 0x864   : > { %11150 = vmatprep.subr.bf16.mxu1 %v12141_v41 }
 0x866   : > { %11099 = vmatpush3.bf16.msra.mxu0 %v12119_v47  ;;  %v12144_v47 = vld [vmem:[#allocation18 + $0x10] sm:$0xff]  }
 0x867   : > { %11100 = vmatprep.subr.bf16.mxu0 %v12120_v60  ;;  %11151 = vmatpush3.bf16.msra.mxu1 %v12141_v41 }
 0x868   : > { %11156 = vmatprep.subr.bf16.mxu1 %v12142_v44 }
 0x86a   : > { %11101 = vmatpush3.bf16.msra.mxu0 %v12120_v60  ;;  %v12146_v60 = vld [vmem:[#allocation18 + $0x20] sm:$0xff]  }
 0x86b   : > { %11102 = vmatprep.subr.bf16.mxu0 %v12121_v7 }
 0x86e   : > { %11103 = vmatpush3.bf16.msra.mxu0 %v12121_v7  ;;  %v12147_v7 = vld [vmem:[#allocation18 + $0x28] sm:$0xff]  }
 0x86f   : > { %11104 = vmatprep.subr.bf16.mxu0 %v12122_v9 }
 0x872   : > { %11105 = vmatpush3.bf16.msra.mxu0 %v12122_v9  ;;  %v12148_v9 = vld [vmem:[#allocation18 + $0x30] sm:$0xff]  }
 0x873   : > { %11106 = vmatprep.subr.bf16.mxu0 %v12123_v12 }
 0x876   : > { %11107 = vmatpush3.bf16.msra.mxu0 %v12123_v12  ;;  %v12149_v12 = vld [vmem:[#allocation18 + $0x38] sm:$0xff]  }
 0x877   : > { %11108 = vmatprep.subr.bf16.mxu0 %v12124_v15 }
 0x87a   : > { %11109 = vmatpush3.bf16.msra.mxu0 %v12124_v15  ;;  %v12156_v15 = vld [vmem:[%s15277_s27 + $0x70] sm:$0xff]  }
 0x87b   : > { %11110 = vmatprep.subr.bf16.mxu0 %v12125_v46 }
 0x87e   : > { %11111 = vmatpush3.bf16.msra.mxu0 %v12125_v46  ;;  %v12157_v46 = vld [vmem:[%s15277_s27 + $0x78] sm:$0xff]  }
 0x87f   : > { %11116 = vmatprep.subr.bf16.mxu0 %v12126_v43 }
 0x881   : > { %11113 = vmatmul.mubr.bf16.vlgmr.msra.gmra.mrb[8].mxu0 %v4006_v59 }
 0x882   : > { %11117 = vmatpush3.bf16.msra.mxu0 %v12126_v43  ;;  %11132 = vmatprep.mubr.bf16.mxu0 %v4279_v38  ;;  %v14357_v43 = vld [vmem:[%s15277_s27] sm:$0xff]  }
 0x883   : > { %11118 = vmatprep.subr.bf16.mxu0 %v12127_v19 }
 0x886   : > { %11119 = vmatpush3.bf16.msra.mxu0 %v12127_v19  ;;  %v9887_v19 = vld [vmem:[#allocation16] ss:$0 sm:$0xff] }
 0x887   : > { %11120 = vmatprep.subr.bf16.mxu0 %v12128_v56 }
 0x88a   : > { %11121 = vmatpush3.bf16.msra.mxu0 %v12128_v56  ;;  %v9896_v56 = vld [vmem:[#allocation19] ss:$0 sm:$0xff] }
 0x88b   : > { %11122 = vmatprep.subr.bf16.mxu0 %v12129_v21 }
 0x88e   : > { %11123 = vmatpush3.bf16.msra.mxu0 %v12129_v21  ;;  %v11653_v21 = vadd.f32 %v9896_v56, %v9887_v19 }
 0x88f   : > { %11124 = vmatprep.subr.bf16.mxu0 %v12130_v22 }
 0x892   : > { %11125 = vmatpush3.bf16.msra.mxu0 %v12130_v22 }
 0x893   : > { %11126 = vmatprep.subr.bf16.mxu0 %v12131_v26 }
 0x896   : > { %11127 = vmatpush3.bf16.msra.mxu0 %v12131_v26 }
 0x897   : > { %11128 = vmatprep.subr.bf16.mxu0 %v12132_v1 }
 0x89a   : > { %11129 = vmatpush3.bf16.msra.mxu0 %v12132_v1 }
 0x89b   : > { %11130 = vmatprep.subr.bf16.mxu0 %v12133_v18 }
 0x89e   : > { %11131 = vmatpush3.bf16.msra.mxu0 %v12133_v18 }
 0x89f   : > { %11176 = vmatprep.subr.bf16.mxu0 %v12150_v5 }
 0x8a1   : > { %11133 = vmatmul.mubr.bf16.vlgmr.msra.gmra.mrb[8].mxu0 %v4281_v40 }
 0x8a2   : > { %11177 = vmatpush3.bf16.msra.mxu0 %v12150_v5 }
 0x8a3   : > { %11178 = vmatprep.subr.bf16.mxu0 %v12151_v37 }
 0x8a6   : > { %11179 = vmatpush3.bf16.msra.mxu0 %v12151_v37 }
 0x974   : > { %v11134_v48 = vpop.f32.mrb[8].mxu0 }
 0x975   : > { %v4394_v50 = vadd.f32 %v11134_v48, %v9882_v45  ;;  %v4366_v52 = vpop.f32.mrb[9].mxu0 }
 0x976   : > { %v4392_v33 = vadd.f32 %v9882_v45, %v4366_v52  ;;  %v11135_v53 = vpop.f32.mrb[10].mxu0 }
 0x977   : > { %v4402_v32 = vmin.f32 %v4394_v50, 0.0  ;;  %v4395_v54 = vadd.f32 %v11135_v53, %v9882_v45  ;;  %v4369_v51 = vpop.f32.mrb[11].mxu0  ;;  %vm4398_vm11 = vcmp.gt.f32.partialorder %v4394_v50, 0.0 }
 0x978   : > { %v4400_v30 = vmin.f32 %v4392_v33, 0.0  ;;  %v4393_v55 = vadd.f32 %v9882_v45, %v4369_v51  ;;  %vm4396_vm13 = vcmp.gt.f32.partialorder %v4392_v33, 0.0 }
 0x979   : > { %v4408_v25 = vmul.f32 1.442695, %v4402_v32  ;;  %v4403_v27 = vmin.f32 %v4395_v54, 0.0  ;;  %vm4399_vm10 = vcmp.gt.f32.partialorder %v4395_v54, 0.0 }
 0x97a   : > { %v4404_v57 = vmul.f32 1.442695, %v4400_v30  ;;  %v4401_v58 = vmin.f32 %v4393_v55, 0.0  ;;  %vm4397_vm14 = vcmp.gt.f32.partialorder %v4393_v55, 0.0 }
 0x97b   : > { %12301 = vpow2.f32 %v4408_v25  ;;  %v4410_v49 = vmul.f32 1.442695, %v4403_v27 }
 0x97c   : > { %12303 = vpow2.f32 %v4404_v57  ;;  %v4406_v59 = vmul.f32 1.442695, %v4401_v58 }
 0x97d   : > { %12305 = vpow2.f32 %v4410_v49 }
 0x97e   : > { %12307 = vpow2.f32 %v4406_v59 }
 0x985   : > { %v12302_v61 = vpop.eup %12301 }
 0x986   : > { %v12304_v62 = vpop.eup %12303  ;;  %v9885_v10 = vadd.f32 -1.0, %v12302_v61 }
 0x987   : > { %v12306_v16 = vpop.eup %12305  ;;  %v9883_v24 = vadd.f32 -1.0, %v12304_v62 }
 0x988   : > { %v12308_v63 = vpop.eup %12307  ;;  %v9886_v8 = vadd.f32 -1.0, %v12306_v16  ;;  %v4418_v20 = vsel %vm4398_vm11, %v4394_v50, %v9885_v10 }
 0x989   : > { %v9884_v13 = vadd.f32 -1.0, %v12308_v63  ;;  %v4416_v40 = vsel %vm4396_vm13, %v4392_v33, %v9883_v24 }
 0x98a   : > { %v4419_v31 = vsel %vm4399_vm10, %v4395_v54, %v9886_v8 }
 0x98b   : > { %v4421_v38 = vpack.c.bf16 %v4419_v31, %v4418_v20  ;;  %v4417_v3 = vsel %vm4397_vm14, %v4393_v55, %v9884_v13  ;;  %vm5621_vm14 = vsmask.f32 4352 }
 0x98c   : > { %v4420_v4 = vpack.c.bf16 %v4417_v3, %v4416_v40 }
 0x98e   : > { %11152 = vmatprep.mubr.bf16.mxu1 %v4420_v4 }
 0x98f   : > { %11153 = vmatmul.mubr.bf16.vlgmr.msra.gmra.mrb[28].mxu1 %v4421_v38 }
 0x990   : > { %11157 = vmatpush3.bf16.msra.mxu1 %v12142_v44  ;;  %11172 = vmatprep.mubr.bf16.mxu1 %v4542_v11  ;;  %v12152_v11 = vld [vmem:[%s15277_s27 + $0x50] sm:$0xff]  }
 0x991   : > { %11158 = vmatprep.subr.bf16.mxu1 %v12143_v34  ;;  %11180 = vmatprep.subr.bf16.mxu0 %v12152_v11 }
 0x992   : > { %11181 = vmatpush3.bf16.msra.mxu0 %v12152_v11 }
 0x993   : > { %11182 = vmatprep.subr.bf16.mxu0 %v12153_v14 }
 0x994   : > { %11159 = vmatpush3.bf16.msra.mxu1 %v12143_v34 }
 0x995   : > { %11160 = vmatprep.subr.bf16.mxu1 %v12144_v47 }
 0x996   : > { %11183 = vmatpush3.bf16.msra.mxu0 %v12153_v14 }
 0x997   : > { %11184 = vmatprep.subr.bf16.mxu0 %v12154_v17 }
 0x998   : > { %11161 = vmatpush3.bf16.msra.mxu1 %v12144_v47 }
 0x999   : > { %11162 = vmatprep.subr.bf16.mxu1 %v12145_v6 }
 0x99a   : > { %11185 = vmatpush3.bf16.msra.mxu0 %v12154_v17 }
 0x99c   : > { %11163 = vmatpush3.bf16.msra.mxu1 %v12145_v6 }
 0x99d   : > { %11164 = vmatprep.subr.bf16.mxu1 %v12146_v60 }
 0x9a0   : > { %11165 = vmatpush3.bf16.msra.mxu1 %v12146_v60 }
 0x9a1   : > { %11166 = vmatprep.subr.bf16.mxu1 %v12147_v7 }
 0x9a4   : > { %11167 = vmatpush3.bf16.msra.mxu1 %v12147_v7 }
 0x9a5   : > { %11168 = vmatprep.subr.bf16.mxu1 %v12148_v9 }
 0x9a8   : > { %11169 = vmatpush3.bf16.msra.mxu1 %v12148_v9 }
 0x9a9   : > { %11170 = vmatprep.subr.bf16.mxu1 %v12149_v12 }
 0x9ac   : > { %11171 = vmatpush3.bf16.msra.mxu1 %v12149_v12 }
 0x9af   : > { %11173 = vmatmul.mubr.bf16.vlgmr.msra.gmra.mrb[28].mxu1 %v4543_v0  ;;  %v12155_v0 = vld [vmem:[%s15277_s27 + $0x68] sm:$0xff]  }
 0x9b0   : > { %11186 = vmatprep.subr.bf16.mxu0 %v12155_v0 }
 0x9b1   : > { %11187 = vmatpush3.bf16.msra.mxu0 %v12155_v0 }
 0x9b2   : > { %11188 = vmatprep.subr.bf16.mxu0 %v12156_v15 }
 0x9b5   : > { %11189 = vmatpush3.bf16.msra.mxu0 %v12156_v15 }
 0x9b6   : > { %11190 = vmatprep.subr.bf16.mxu0 %v12157_v46 }
 0x9b9   : > { %11191 = vmatpush3.bf16.msra.mxu0 %v12157_v46 }
 0x9ba   : > { %11196 = vmatprep.subr.bf16.mxu0 %v14357_v43 }
 0xa82   : > { %v11174_v22 = vpop.f32.mrb[28].mxu1 }
 0xa83   : > { %v11647_v26 = vadd.f32 %v11174_v22, %v9887_v19  ;;  %v4649_v1 = vpop.f32.mrb[29].mxu1 }
 0xa84   : > { %v11649_v18 = vadd.f32 %v9887_v19, %v4649_v1  ;;  %v11175_v28 = vpop.f32.mrb[30].mxu1 }
 0xa85   : > { %v11648_v35 = vadd.f32 %v11647_v26, %v9896_v56  ;;  %v11652_v23 = vadd.f32 %v11653_v21, %v11175_v28  ;;  %v4652_v2 = vpop.f32.mrb[31].mxu1 }
 0xa86   : > { %v11650_v29 = vadd.f32 %v11649_v18, %v9896_v56  ;;  %v11654_v41 = vadd.f32 %v11653_v21, %v4652_v2 }
 0xa87   : > { %v4674_v44 = vmin.f32 %v11648_v35, 0.0  ;;  %v4675_v45 = vmin.f32 %v11652_v23, 0.0  ;;  %vm4670_vm15 = vcmp.gt.f32.partialorder %v11648_v35, 0.0  ;;  %vm4671_vm10 = vcmp.gt.f32.partialorder %v11652_v23, 0.0 }
 0xa88   : > { %v4672_v48 = vmin.f32 %v11650_v29, 0.0  ;;  %v4673_v50 = vmin.f32 %v11654_v41, 0.0  ;;  %vm4668_vm11 = vcmp.gt.f32.partialorder %v11650_v29, 0.0  ;;  %vm4669_vm13 = vcmp.gt.f32.partialorder %v11654_v41, 0.0 }
 0xa89   : > { %v4680_v52 = vmul.f32 1.442695, %v4674_v44  ;;  %v4682_v33 = vmul.f32 1.442695, %v4675_v45 }
 0xa8a   : > { %v4676_v53 = vmul.f32 1.442695, %v4672_v48  ;;  %v4678_v32 = vmul.f32 1.442695, %v4673_v50  ;;  %v12159_v48 = vld [vmem:[%s15277_s27 + $0x8] sm:$0xff]  }
 0xa8b   : > { %12309 = vpow2.f32 %v4680_v52 }
 0xa8c   : > { %12311 = vpow2.f32 %v4676_v53 }
 0xa8d   : > { %12313 = vpow2.f32 %v4682_v33 }
 0xa8e   : > { %12315 = vpow2.f32 %v4678_v32 }
 0xa95   : > { %v12310_v54 = vpop.eup %12309 }
 0xa96   : > { %v12312_v51 = vpop.eup %12311  ;;  %v9907_v30 = vadd.f32 -1.0, %v12310_v54 }
 0xa97   : > { %v12314_v55 = vpop.eup %12313  ;;  %v9905_v25 = vadd.f32 -1.0, %v12312_v51 }
 0xa98   : > { %v12316_v27 = vpop.eup %12315  ;;  %v4690_v57 = vsel %vm4670_vm15, %v11648_v35, %v9907_v30  ;;  %v9908_v58 = vadd.f32 -1.0, %v12314_v55  ;;  %vm5747_vm15 = vcmask 236544  }
 0xa99   : > { %v4701_v49 = vrot.slane %v4690_v57, 6  ;;  %v4688_v59 = vsel %vm4668_vm11, %v11650_v29, %v9905_v25  ;;  %v9906_v61 = vadd.f32 -1.0, %v12316_v27  ;;  %vm8933_vm11 = vcmp.eq.s32.totalorder %v14267_v36, 1 }
 0xa9a   : > { %v4693_v62 = vrot.slane %v4688_v59, 2  ;;  %v4698_v10 = vrot.slane %v4688_v59, 6  ;;  %v4691_v16 = vsel %vm4671_vm10, %v11652_v23, %v9908_v58 }
 0xa9b   : > { %v4703_v24 = vrot.slane %v4691_v16, 6  ;;  %v4710_v63 = vrot.slane %v4691_v16, 4  ;;  %v4712_v8 = vrot.slane %v4691_v16, 2  ;;  %v4689_v13 = vsel %vm4669_vm13, %v11654_v41, %v9906_v61  ;;  %v12160_v61 = vld [vmem:[%s15277_s27 + $0x10] sm:$0xff]  }
 0xa9c   : > { %v4714_v20 = vsel %vm1106_vm1, %v4693_v62, %v4688_v59  ;;  %v4699_v31 = vrot.slane %v4689_v13, 6 }
 0xa9d   : > { %v4715_v38 = vsel %vm1108_vm2, %v4714_v20, %v4698_v10  ;;  %v4716_v40 = vsel %vm1108_vm2, %v4703_v24, %v4710_v63  ;;  %v4704_v3 = vsel %vm1108_vm2, %v4701_v49, %v4703_v24 }
 0xa9e   : > { %v4717_v4 = vsel %vm1075_vm0, %v4716_v40, %v4712_v8  ;;  %v4700_v34 = vsel %vm1108_vm2, %v4698_v10, %v4699_v31  ;;  %v4702_v47 = vsel %vm1108_vm2, %v4699_v31, %v4701_v49  ;;  %v12161_v40 = vld [vmem:[%s15277_s27 + $0x18] sm:$0xff]  }
 0xa9f   : > { %v4718_v6 = vpack.c.bf16 %v4700_v34, %v4715_v38  ;;  %v14367_v60 = vpack.c.bf16 %v4704_v3, %v4702_v47  ;;  %v5216_v7 = vpack.c.bf16 %v4717_v4, %v4717_v4  ;;  %v12162_v34 = vld [vmem:[%s15277_s27 + $0x20] sm:$0xff]   ;;  %v12163_v47 = vld [vmem:[%s15277_s27 + $0x28] sm:$0xff]  }
 0xaa1   : > { %v4754_v9 = vshrl.u32 %v4718_v6, 16  ;;  %v4756_v12 = vshll.u32 %v4718_v6, 16  ;;  %v4761_v5 = vshll.u32 %v14367_v60, 16  ;;  %v4765_v37 = vshrl.u32 %v14367_v60, 16 }
 0xaa2   : > { %v4983_v11 = vrot.slane %v4718_v6, 1  ;;  %v4984_v14 = vrot.slane %v14367_v60, 1  ;;  %v5235_v17 = vrot.slane %v4718_v6, 2  ;;  %v5236_v0 = vrot.slane %v14367_v60, 2 }
 0xaa3   : > { %v4758_v15 = vrot.slane %v4756_v12, 1  ;;  %v4763_v46 = vrot.slane %v4761_v5, 1  ;;  %v5106_v19 = vrot.slane %v4754_v9, 1  ;;  %v5107_v56 = vrot.slane %v4756_v12, 2 }
 0xaa4   : > { %v14376_v21 = vsel %vm1443_vm7, %v4983_v11, %v4984_v14  ;;  %v5109_v22 = vrot.slane %v4765_v37, 1  ;;  %v5110_v26 = vrot.slane %v4761_v5, 2  ;;  %v14379_v1 = vsel %vm1759_vm9, %v5235_v17, %v5236_v0  ;;  %v12170_v11 = vld [vmem:[%s15277_s27 + $0xa0] sm:$0xff]   ;;  %v12171_v17 = vld [vmem:[%s15277_s27 + $0xa8] sm:$0xff]  }
 0xaa5   : > { %v4759_v18 = vor.u32 %v4758_v15, %v4754_v9  ;;  %v4767_v28 = vor.u32 %v4765_v37, %v4763_v46  ;;  %v5108_v35 = vor.u32 %v5107_v56, %v5106_v19  ;;  %v5238_v23 = vrot.slane %v5216_v7, 2  ;;  %v12173_v15 = vld [vmem:[%s15277_s27 + $0xb8] sm:$0xff]   ;;  %v12175_v19 = vld [vmem:[%s15277_s27 + $0xc8] sm:$0xff]   ;;  %v12176_v56 = vld [vmem:[%s15277_s27 + $0xd0] sm:$0xff]  }
 0xaa6   : > { %v14381_v2 = vor.u32 %v5110_v26, %v5109_v22  ;;  %v5360_v29 = vrot.slane %v4754_v9, 2  ;;  %v5361_v41 = vrot.slane %v4756_v12, 3  ;;  %v5363_v44 = vrot.slane %v4765_v37, 2  ;;  %v12180_v22 = vld [vmem:[%s15277_s27 + $0xf0] sm:$0xff]   ;;  %v12181_v26 = vld [vmem:[%s15277_s27 + $0xf8] sm:$0xff]  }
 0xaa7   : > { %v4764_v45 = vsel %vm1154_vm3, %v4759_v18, %v4763_v46  ;;  %v14388_v50 = vsel %vm1759_vm9, %v5236_v0, %v5238_v23  ;;  %v5364_v52 = vrot.slane %v4761_v5, 3  ;;  %v5368_v33 = vshrl.u32 %v5216_v7, 16  ;;  %v12172_v0 = vld [vmem:[%s15277_s27 + $0xb0] sm:$0xff]   ;;  %v12174_v46 = vld [vmem:[%s15277_s27 + $0xc0] sm:$0xff]   ;;  %v12185_v23 = vld [vmem:[%s15277_s27 + $0x118] sm:$0xff]  }
 0xaa8   : > { %11192 = vmatprep.mubr.bf16.mxu0 %v4764_v45  ;;  %v14392_v53 = vsel %vm1595_vm6, %v5108_v35, %v14381_v2  ;;  %v5362_v32 = vor.u32 %v5361_v41, %v5360_v29  ;;  %v5371_v54 = vshll.u32 %v5216_v7, 16  ;;  %v5496_v51 = vrot.slane %v4718_v6, 3  ;;  %v12182_v18 = vld [vmem:[%s15277_s27 + $0x100] sm:$0xff]   ;;  %v12184_v35 = vld [vmem:[%s15277_s27 + $0x110] sm:$0xff]   ;;  %v12189_v41 = vld [vmem:[%s15277_s27 + $0x138] sm:$0xff]  }
 0xaa9   : > { %11193 = vmatmul.mubr.bf16.vlgmr.msra.gmra.mrb[12].mxu0 %v4767_v28  ;;  %v5365_v30 = vor.u32 %v5364_v52, %v5363_v44  ;;  %v5370_v55 = vrot.slane %v5368_v33, 2  ;;  %v5497_v25 = vrot.slane %v14367_v60, 3  ;;  %v5499_v27 = vrot.slane %v5216_v7, 3  ;;  %v12165_v7 = vld [vmem:[%s15277_s27 + $0x38] sm:$0xff]   ;;  %v12183_v28 = vld [vmem:[%s15277_s27 + $0x108] sm:$0xff]   ;;  %v12188_v29 = vld [vmem:[%s15277_s27 + $0x130] sm:$0xff]  }
 0xaaa   : > { %11197 = vmatpush3.bf16.msra.mxu0 %v14357_v43  ;;  %11212 = vmatprep.mubr.bf16.mxu0 %v4718_v6  ;;  %v5373_v57 = vrot.slane %v5371_v54, 3  ;;  %v5622_v58 = vrot.slane %v4754_v9, 3  ;;  %v5623_v49 = vrot.slane %v4756_v12, 4  ;;  %v5625_v59 = vrot.slane %v4765_v37, 3  ;;  %v12164_v6 = vld [vmem:[%s15277_s27 + $0x30] sm:$0xff]   ;;  %v12166_v9 = vld [vmem:[%s15277_s27 + $0x80] sm:$0xff]   ;;  %vm11545_vm6 = vmpackc.low %vm1114_vm5, %vm13119_vm12 }
 0xaab   : > { %11198 = vmatprep.subr.bf16.mxu0 %v12159_v48  ;;  %v14400_v62 = vsel %vm1911_vm8, %v5362_v32, %v5365_v30  ;;  %v14403_v10 = vsel %vm1114_vm5, %v5496_v51, %v5497_v25  ;;  %v14406_v16 = vsel %vm1114_vm5, %v5497_v25, %v5499_v27  ;;  %v5626_v43 = vrot.slane %v4761_v5, 4  ;;  %v12167_v12 = vld [vmem:[%s15277_s27 + $0x88] sm:$0xff]   ;;  %v12168_v5 = vld [vmem:[%s15277_s27 + $0x90] sm:$0xff]   ;;  %v12169_v37 = vld [vmem:[%s15277_s27 + $0x98] sm:$0xff]  }
 0xaac   : > { %v5374_v24 = vor.u32 %v5373_v57, %v5370_v55  ;;  %v5624_v63 = vor.u32 %v5623_v49, %v5622_v58  ;;  %v5629_v8 = vrot.slane %v5368_v33, 3  ;;  %v5630_v13 = vrot.slane %v5371_v54, 4  ;;  %v12190_v44 = vld [vmem:[%s15277_s27 + $0x140] sm:$0xff]   ;;  %v12191_v45 = vld [vmem:[%s15277_s27 + $0x148] sm:$0xff]   ;;  %v12193_v52 = vld [vmem:[%s15277_s27 + $0x158] sm:$0xff]  }
 0xaad   : > { %v5627_v20 = vor.u32 %v5626_v43, %v5625_v59  ;;  %v12195_v33 = vld [vmem:[%s15277_s27 + $0x168] sm:$0xff]   ;;  %v12197_v32 = vld [vmem:[%s15277_s27 + $0x178] sm:$0xff]   ;;  %v12198_v54 = vld [vmem:[%s15277_s27 + $0x180] sm:$0xff]   ;;  %vm13121_vm3 = vmmov 0   ;;  %vm5875_vm12 = vcmask 130048  }
 0xaae   : > { %11199 = vmatpush3.bf16.msra.mxu0 %v12159_v48  ;;  %v14409_v31 = vsel %vm1911_vm8, %v5365_v30, %v5374_v24  ;;  %v5631_v38 = vor.u32 %v5630_v13, %v5629_v8  ;;  %v12192_v48 = vld [vmem:[%s15277_s27 + $0x150] sm:$0xff]   ;;  %v12199_v51 = vld [vmem:[%s15277_s27 + $0x188] sm:$0xff]   ;;  %v12201_v55 = vld [vmem:[%s15277_s27 + $0x198] sm:$0xff]  }
 0xaaf   : > { %11200 = vmatprep.subr.bf16.mxu0 %v12160_v61  ;;  %v14415_v3 = vsel %vm5621_vm14, %v5624_v63, %v5627_v20  ;;  %v12200_v30 = vld [vmem:[%s15277_s27 + $0x190] sm:$0xff]   ;;  %v12202_v25 = vld [vmem:[%s15277_s27 + $0x1a0] sm:$0xff]   ;;  %v12203_v27 = vld [vmem:[%s15277_s27 + $0x1a8] sm:$0xff]   ;;  %v13120_v63 = vmov 0.0|0.0  }
 0xab0   : > { %v14418_v4 = vsel %vm5621_vm14, %v5627_v20, %v5631_v38  ;;  %v12204_v57 = vld [vmem:[%s15277_s27 + $0x1b0] sm:$0xff]   ;;  %v12205_v58 = vld [vmem:[%s15277_s27 + $0x1b8] sm:$0xff]   ;;  %v12206_v49 = vld [vmem:[%s15277_s27 + $0x1c0] sm:$0xff]  }
 0xab1   : > { %v12207_v59 = vld [vmem:[%s15277_s27 + $0x1c8] sm:$0xff]   ;;  %v12212_v43 = vld [vmem:[%s15277_s27 + $0x1f0] sm:$0xff]   ;;  %v12213_v24 = vld [vmem:[%s15277_s27 + $0x1f8] sm:$0xff]  }
 0xab2   : > { %11201 = vmatpush3.bf16.msra.mxu0 %v12160_v61  ;;  %v12208_v61 = vld [vmem:[%s15277_s27 + $0x1d0] sm:$0xff]   ;;  %v12214_v8 = vld [vmem:[#allocation22] ss:$16 sps:$4 sm:$0xff]  }
 0xab3   : > { %11202 = vmatprep.subr.bf16.mxu0 %v12161_v40  ;;  %v12216_v13 = vld [vmem:[#allocation22 + $0x4] ss:$16 sps:$4 sm:$0xff]  }
 0xab4   : > { %5879 = vmatprep.subr.bf16.mxu1 %v12216_v13 }
 0xab5   : > { %5880 = vmatpush1.bf16.msra.mxu1 %v12214_v8 }
 0xab6   : > { %11203 = vmatpush3.bf16.msra.mxu0 %v12161_v40 }
 0xab7   : > { %11204 = vmatprep.subr.bf16.mxu0 %v12162_v34 }
 0xaba   : > { %11205 = vmatpush3.bf16.msra.mxu0 %v12162_v34  ;;  %v5736_v34 = vmul.u32 4, %v14265_v39 }
 0xabb   : > { %11206 = vmatprep.subr.bf16.mxu0 %v12163_v47 }
 0xabc   : > { %vm5737_vm8 = vcmp.eq.s32.totalorder %v14267_v36, %v5736_v34 }
 0xabe   : > { %11207 = vmatpush3.bf16.msra.mxu0 %v12163_v47 }
 0xabf   : > { %11208 = vmatprep.subr.bf16.mxu0 %v12164_v6 }
 0xac2   : > { %11209 = vmatpush3.bf16.msra.mxu0 %v12164_v6  ;;  %v13122_v6 = vmov 0  }
 0xac3   : > { %11210 = vmatprep.subr.bf16.mxu0 %v12165_v7  ;;  %5911 = vmatprep.mubr.bf16.mxu1 %v13122_v6 }
 0xac6   : > { %11211 = vmatpush3.bf16.msra.mxu0 %v12165_v7  ;;  %v12219_v7 = vld [vmem:[#allocation22 + $0xc] ss:$16 sps:$4 sm:$0xff]  }
 0xac7   : > { %11216 = vmatprep.subr.bf16.mxu0 %v12166_v9  ;;  %5920 = vmatprep.subr.bf16.mxu1 %v12219_v7 }
 0xac9   : > { %11213 = vmatmul.mubr.bf16.vlgmr.msra.gmra.mrb[12].mxu0 %v14367_v60  ;;  %v12178_v60 = vld [vmem:[%s15277_s27 + $0xe0] sm:$0xff]  }
 0xaca   : > { %11217 = vmatpush3.bf16.msra.mxu0 %v12166_v9  ;;  %11232 = vmatprep.mubr.bf16.mxu0 %v14376_v21  ;;  %v12177_v21 = vld [vmem:[%s15277_s27 + $0xd8] sm:$0xff]   ;;  %v10086_v9 = vld [vmem:[#allocation21] ss:$0 sm:$0xff] }
 0xacb   : > { %11218 = vmatprep.subr.bf16.mxu0 %v12167_v12 }
 0xace   : > { %11219 = vmatpush3.bf16.msra.mxu0 %v12167_v12 }
 0xacf   : > { %11220 = vmatprep.subr.bf16.mxu0 %v12168_v5 }
 0xad2   : > { %11221 = vmatpush3.bf16.msra.mxu0 %v12168_v5 }
 0xad3   : > { %11222 = vmatprep.subr.bf16.mxu0 %v12169_v37 }
 0xad6   : > { %11223 = vmatpush3.bf16.msra.mxu0 %v12169_v37 }
 0xad7   : > { %11224 = vmatprep.subr.bf16.mxu0 %v12170_v11 }
 0xada   : > { %11225 = vmatpush3.bf16.msra.mxu0 %v12170_v11  ;;  %v12217_v11 = vld [vmem:[#allocation22 + $0x8] ss:$16 sps:$4 sm:$0xff]  }
 0xadb   : > { %11226 = vmatprep.subr.bf16.mxu0 %v12171_v17 }
 0xade   : > { %11227 = vmatpush3.bf16.msra.mxu0 %v12171_v17 }
 0xadf   : > { %11228 = vmatprep.subr.bf16.mxu0 %v12172_v0 }
 0xae2   : > { %11229 = vmatpush3.bf16.msra.mxu0 %v12172_v0  ;;  %v14605_v0 = vld [vmem:[#allocation24 + $0x4] ss:$16 sps:$4 sm:$0xff]  }
 0xae3   : > { %11230 = vmatprep.subr.bf16.mxu0 %v12173_v15 }
 0xae6   : > { %11231 = vmatpush3.bf16.msra.mxu0 %v12173_v15  ;;  %v14610_v15 = vld [vmem:[#allocation24] ss:$16 sps:$4 sm:$0xff]  }
 0xae7   : > { %11236 = vmatprep.subr.bf16.mxu0 %v12174_v46 }
 0xae9   : > { %11233 = vmatmul.mubr.bf16.vlgmr.msra.gmra.mrb[12].mxu0 %v4984_v14  ;;  %v12179_v14 = vld [vmem:[%s15277_s27 + $0xe8] sm:$0xff]  }
 0xaea   : > { %11237 = vmatpush3.bf16.msra.mxu0 %v12174_v46  ;;  %11252 = vmatprep.mubr.bf16.mxu0 %v14392_v53  ;;  %v12196_v53 = vld [vmem:[%s15277_s27 + $0x170] sm:$0xff]   ;;  %v14612_v46 = vld [vmem:[#allocation24 + $0xc] ss:$16 sps:$4 sm:$0xff]  }
 0xaeb   : > { %11238 = vmatprep.subr.bf16.mxu0 %v12175_v19 }
 0xaee   : > { %11239 = vmatpush3.bf16.msra.mxu0 %v12175_v19  ;;  %v14618_v19 = vld [vmem:[#allocation24 + $0x8] ss:$16 sps:$4 sm:$0xff]  }
 0xaef   : > { %11240 = vmatprep.subr.bf16.mxu0 %v12176_v56 }
 0xaf2   : > { %11241 = vmatpush3.bf16.msra.mxu0 %v12176_v56 }
 0xaf3   : > { %11242 = vmatprep.subr.bf16.mxu0 %v12177_v21 }
 0xaf6   : > { %11243 = vmatpush3.bf16.msra.mxu0 %v12177_v21 }
 0xaf7   : > { %11244 = vmatprep.subr.bf16.mxu0 %v12178_v60 }
 0xafa   : > { %11245 = vmatpush3.bf16.msra.mxu0 %v12178_v60 }
 0xafb   : > { %11246 = vmatprep.subr.bf16.mxu0 %v12179_v14 }
 0xafe   : > { %11247 = vmatpush3.bf16.msra.mxu0 %v12179_v14 }
 0xaff   : > { %11248 = vmatprep.subr.bf16.mxu0 %v12180_v22 }
 0xb02   : > { %11249 = vmatpush3.bf16.msra.mxu0 %v12180_v22  ;;  %v5837_v22 = vsub.s32 0, %v14265_v39 }
 0xb03   : > { %11250 = vmatprep.subr.bf16.mxu0 %v12181_v26 }
 0xb06   : > { %11251 = vmatpush3.bf16.msra.mxu0 %v12181_v26  ;;  %v5832_v26 = vld [vmem:[%s15278_s2] sm:$0xf] }
 0xb07   : > { %11256 = vmatprep.subr.bf16.mxu0 %v12182_v18 }
 0xb09   : > { %11253 = vmatmul.mubr.bf16.vlgmr.msra.gmra.mrb[12].mxu0 %v14381_v2  ;;  %v12186_v2 = vld [vmem:[%s15277_s27 + $0x120] sm:$0xff]  }
 0xb0a   : > { %11257 = vmatpush3.bf16.msra.mxu0 %v12182_v18  ;;  %11272 = vmatprep.mubr.bf16.mxu0 %v14379_v1  ;;  %v12187_v1 = vld [vmem:[%s15277_s27 + $0x128] sm:$0xff]   ;;  %v5841_v18 = vsub.s32 1, %v14265_v39 }
 0xb0b   : > { %11258 = vmatprep.subr.bf16.mxu0 %v12183_v28 }
 0xb0e   : > { %11259 = vmatpush3.bf16.msra.mxu0 %v12183_v28 }
 0xb0f   : > { %11260 = vmatprep.subr.bf16.mxu0 %v12184_v35 }
 0xb12   : > { %11261 = vmatpush3.bf16.msra.mxu0 %v12184_v35 }
 0xb13   : > { %11262 = vmatprep.subr.bf16.mxu0 %v12185_v23 }
 0xb16   : > { %11263 = vmatpush3.bf16.msra.mxu0 %v12185_v23 }
 0xb17   : > { %11264 = vmatprep.subr.bf16.mxu0 %v12186_v2 }
 0xb1a   : > { %11265 = vmatpush3.bf16.msra.mxu0 %v12186_v2  ;;  %v5838_v2 = vrot.slane %v5832_v26, %v5837_v22 }
 0xb1b   : > { %11266 = vmatprep.subr.bf16.mxu0 %v12187_v1 }
 0xb1e   : > { %11267 = vmatpush3.bf16.msra.mxu0 %v12187_v1 }
 0xb1f   : > { %11268 = vmatprep.subr.bf16.mxu0 %v12188_v29 }
 0xb22   : > { %11269 = vmatpush3.bf16.msra.mxu0 %v12188_v29  ;;  %v5842_v29 = vrot.slane %v5832_v26, %v5841_v18 }
 0xb23   : > { %11270 = vmatprep.subr.bf16.mxu0 %v12189_v41 }
 0xb26   : > { %11271 = vmatpush3.bf16.msra.mxu0 %v12189_v41 }
 0xb27   : > { %11276 = vmatprep.subr.bf16.mxu0 %v12190_v44 }
 0xb29   : > { %11273 = vmatmul.mubr.bf16.vlgmr.msra.gmra.mrb[12].mxu0 %v14388_v50  ;;  %v12194_v50 = vld [vmem:[%s15277_s27 + $0x160] sm:$0xff]  }
 0xb2a   : > { %11277 = vmatpush3.bf16.msra.mxu0 %v12190_v44  ;;  %11292 = vmatprep.mubr.bf16.mxu0 %v14400_v62  ;;  %v12209_v62 = vld [vmem:[%s15277_s27 + $0x1d8] sm:$0xff]  }
 0xb2b   : > { %11278 = vmatprep.subr.bf16.mxu0 %v12191_v45 }
 0xb2e   : > { %11279 = vmatpush3.bf16.msra.mxu0 %v12191_v45  ;;  %v5849_v45 = vsub.s32 3, %v14265_v39 }
 0xb2f   : > { %11280 = vmatprep.subr.bf16.mxu0 %v12192_v48 }
 0xb32   : > { %11281 = vmatpush3.bf16.msra.mxu0 %v12192_v48 }
 0xb33   : > { %11282 = vmatprep.subr.bf16.mxu0 %v12193_v52 }
 0xb36   : > { %11283 = vmatpush3.bf16.msra.mxu0 %v12193_v52 }
 0xb37   : > { %11284 = vmatprep.subr.bf16.mxu0 %v12194_v50 }
 0xb3a   : > { %11285 = vmatpush3.bf16.msra.mxu0 %v12194_v50 }
 0xb3b   : > { %11286 = vmatprep.subr.bf16.mxu0 %v12195_v33 }
 0xb3e   : > { %11287 = vmatpush3.bf16.msra.mxu0 %v12195_v33 }
 0xb3f   : > { %11288 = vmatprep.subr.bf16.mxu0 %v12196_v53 }
 0xb42   : > { %11289 = vmatpush3.bf16.msra.mxu0 %v12196_v53 }
 0xb43   : > { %11290 = vmatprep.subr.bf16.mxu0 %v12197_v32 }
 0xb46   : > { %11291 = vmatpush3.bf16.msra.mxu0 %v12197_v32  ;;  %v5845_v32 = vsub.s32 2, %v14265_v39 }
 0xb47   : > { %11296 = vmatprep.subr.bf16.mxu0 %v12198_v54 }
 0xb49   : > { %11293 = vmatmul.mubr.bf16.vlgmr.msra.gmra.mrb[12].mxu0 %v14409_v31 }
 0xb4a   : > { %11297 = vmatpush3.bf16.msra.mxu0 %v12198_v54  ;;  %11312 = vmatprep.mubr.bf16.mxu0 %v14403_v10  ;;  %v12210_v10 = vld [vmem:[%s15277_s27 + $0x1e0] sm:$0xff]  }
 0xb4b   : > { %11298 = vmatprep.subr.bf16.mxu0 %v12199_v51 }
 0xb4e   : > { %11299 = vmatpush3.bf16.msra.mxu0 %v12199_v51 }
 0xb4f   : > { %11300 = vmatprep.subr.bf16.mxu0 %v12200_v30 }
 0xb52   : > { %11301 = vmatpush3.bf16.msra.mxu0 %v12200_v30  ;;  %v5850_v30 = vrot.slane %v5832_v26, %v5849_v45 }
 0xb53   : > { %11302 = vmatprep.subr.bf16.mxu0 %v12201_v55 }
 0xb56   : > { %11303 = vmatpush3.bf16.msra.mxu0 %v12201_v55 }
 0xb57   : > { %11304 = vmatprep.subr.bf16.mxu0 %v12202_v25 }
 0xb5a   : > { %11305 = vmatpush3.bf16.msra.mxu0 %v12202_v25  ;;  %v5846_v25 = vrot.slane %v5832_v26, %v5845_v32 }
 0xb5b   : > { %11306 = vmatprep.subr.bf16.mxu0 %v12203_v27 }
 0xb5e   : > { %11307 = vmatpush3.bf16.msra.mxu0 %v12203_v27 }
 0xb5f   : > { %11308 = vmatprep.subr.bf16.mxu0 %v12204_v57 }
 0xb62   : > { %11309 = vmatpush3.bf16.msra.mxu0 %v12204_v57 }
 0xb63   : > { %11310 = vmatprep.subr.bf16.mxu0 %v12205_v58 }
 0xb66   : > { %11311 = vmatpush3.bf16.msra.mxu0 %v12205_v58 }
 0xb67   : > { %11316 = vmatprep.subr.bf16.mxu0 %v12206_v49 }
 0xb69   : > { %11313 = vmatmul.mubr.bf16.vlgmr.msra.gmra.mrb[12].mxu0 %v14406_v16  ;;  %v12211_v16 = vld [vmem:[%s15277_s27 + $0x1e8] sm:$0xff]  }
 0xb6a   : > { %11317 = vmatpush3.bf16.msra.mxu0 %v12206_v49  ;;  %11332 = vmatprep.mubr.bf16.mxu0 %v14415_v3 }
 0xb6b   : > { %11318 = vmatprep.subr.bf16.mxu0 %v12207_v59 }
 0xb6e   : > { %11319 = vmatpush3.bf16.msra.mxu0 %v12207_v59 }
 0xb6f   : > { %11320 = vmatprep.subr.bf16.mxu0 %v12208_v61 }
 0xb72   : > { %11321 = vmatpush3.bf16.msra.mxu0 %v12208_v61 }
 0xb73   : > { %11322 = vmatprep.subr.bf16.mxu0 %v12209_v62 }
 0xb76   : > { %11323 = vmatpush3.bf16.msra.mxu0 %v12209_v62 }
 0xb77   : > { %11324 = vmatprep.subr.bf16.mxu0 %v12210_v10 }
 0xb7a   : > { %11325 = vmatpush3.bf16.msra.mxu0 %v12210_v10 }
 0xb7b   : > { %11326 = vmatprep.subr.bf16.mxu0 %v12211_v16 }
 0xb7e   : > { %11327 = vmatpush3.bf16.msra.mxu0 %v12211_v16 }
 0xb7f   : > { %11328 = vmatprep.subr.bf16.mxu0 %v12212_v43 }
 0xb82   : > { %11329 = vmatpush3.bf16.msra.mxu0 %v12212_v43 }
 0xb83   : > { %11330 = vmatprep.subr.bf16.mxu0 %v12213_v24 }
 0xb86   : > { %11331 = vmatpush3.bf16.msra.mxu0 %v12213_v24 }
 0xb87   : > { %11540 = vmatprep.subr.bf16.mxu0 %v13120_v63 }
 0xb89   : > { %11333 = vmatmul.mubr.bf16.vlgmr.msra.gmra.mrb[12].mxu0 %v14418_v4  ;;  %v10085_v4 = vsel %vm5737_vm8, 1.0, %v13118_v42 }
 0xb8a   : > { %11344 = vmatprep.mubr.msk.f32.mxu0 %vm13121_vm3, %v13118_v42 }
 0xc5c   : > { %v11334_v20 = vpop.f32.mrb[12].mxu0 }
 0xc5d   : > { %v5717_v31 = vpop.f32.mrb[13].mxu0 }
 0xc5e   : > { %v11335_v38 = vpop.f32.mrb[14].mxu0 }
 0xc5f   : > { %v11544_v40 = vpack.c.bf16 %v11335_v38, %v11334_v20  ;;  %v5720_v3 = vpop.f32.mrb[15].mxu0 }
 0xc60   : > { %v11541_v47 = vpack.c.bf16 %v5720_v3, %v5717_v31 }
 0xc62   : > { %11542 = vmatpush3.bf16.msra.mxu0 %v11541_v47 }
 0xc63   : > { %11543 = vmatprep.subr.bf16.mxu0 %v13120_v63 }
 0xc66   : > { %11546 = vmatpush3.bf16.msk.msra.mxu0 %vm11545_vm6, %v11544_v40 }
 0xc69   : > { %11345 = vmatmul.mubr.msk.f32.vlgmr.msra.gmra.mrb[16].mxu0 %vm5747_vm15, %v10085_v4 }
 0xc6a   : > { %7854 = vmatprep.mubr.bf16.mxu0 %v13122_v6 }
 0xd3c   : > { %v5820_v12 = vpop.f32.mrb[16].mxu0 }
 0xd3d   : > { %v14601_v5 = vadd.f32 %v10086_v9, %v5820_v12  ;;  %v11346_v37 = vpop.f32.mrb[17].mxu0 }
 0xd3f   : > { %v5833_v17 = vpack.c.bf16 %v14601_v5, %v14601_v5 }
 0xd41   : > { %10093 = vmatmul.mubr.msk.bf16.vlgmr.msra.gmra.mrb[32].mxu1 %vm5875_vm12, %v5833_v17 }
 0xd42   : > { %5921 = vmatpush1.bf16.msra.mxu1 %v12217_v11  ;;  %5952 = vmatprep.mubr.bf16.mxu1 %v13122_v6 }
 0xd43   : > { %5984 = vmatprep.subr.bf16.mxu1 %v14605_v0 }
 0xd49   : > { %10094 = vmatmul.mubr.msk.bf16.vlgmr.msra.gmra.mrb[36].mxu1 %vm5875_vm12, %v5833_v17 }
 0xd4a   : > { %5985 = vmatpush1.bf16.msra.mxu1 %v14610_v15  ;;  %6016 = vmatprep.mubr.bf16.mxu1 %v13122_v6 }
 0xd4b   : > { %6025 = vmatprep.subr.bf16.mxu1 %v14612_v46 }
 0xd51   : > { %6017 = vmatmul.mubr.bf16.vlgmr.msra.gmra.mrb[40].mxu1 %v13122_v6 }
 0xd52   : > { %6026 = vmatpush1.bf16.msra.mxu1 %v14618_v19  ;;  %6057 = vmatprep.mubr.bf16.mxu1 %v13122_v6 }
 0xd53   : > { %6098 = vmatprep.subr.bf16.mxu1 %v14605_v0 }
 0xd59   : > { %6058 = vmatmul.mubr.bf16.vlgmr.msra.gmra.mrb[44].mxu1 %v13122_v6 }
 0xd5a   : > { %6099 = vmatpush1.bf16.msra.mxu1 %v14610_v15  ;;  %6130 = vmatprep.mubr.bf16.mxu1 %v13122_v6 }
 0xd5b   : > { %6139 = vmatprep.subr.bf16.mxu1 %v14612_v46 }
 0xe14   : > { %v5913_v56 = vpop.f32.mrb[32].mxu1 }
 0xe15   : > { %v5915_v21 = vpop.f32.mrb[33].mxu1  ;;  %v14637_v41 = vadd.f32 %v5913_v56, %v5838_v2 }
 0xe16   : > { %v5917_v60 = vpop.f32.mrb[34].mxu1  ;;  %v14639_v44 = vadd.f32 %v5915_v21, %v5842_v29 }
 0xe17   : > { %v5918_v14 = vpop.f32.mrb[35].mxu1 }
 0xe1c   : > { %v5954_v28 = vpop.f32.mrb[36].mxu1 }
 0xe1d   : > { %v5956_v35 = vpop.f32.mrb[37].mxu1  ;;  %v14652_v61 = vadd.f32 %v5954_v28, %v5846_v25 }
 0xe1e   : > { %v5958_v23 = vpop.f32.mrb[38].mxu1  ;;  %v14649_v27 = vadd.f32 %v5956_v35, %v5850_v30 }
 0xe1f   : > { %v5959_v1 = vpop.f32.mrb[39].mxu1 }
 0xe24   : > { %v6018_v48 = vpop.f32.mrb[40].mxu1 }
 0xe25   : > { %v6066_v52 = vadd.f32 %v6018_v48, %v14637_v41  ;;  %v6020_v50 = vpop.f32.mrb[41].mxu1 }
 0xe26   : > { %v6067_v33 = vadd.f32 %v6020_v50, %v14639_v44  ;;  %v6022_v53 = vpop.f32.mrb[42].mxu1 }
 0xe27   : > { %v10099_v54 = vmul.f32 -1.442695, %v6066_v52  ;;  %v6023_v51 = vpop.f32.mrb[43].mxu1 }
 0xe28   : > { %v10100_v55 = vmul.f32 -1.442695, %v6067_v33 }
 0xe29   : > { %12317 = vpow2.f32 %v10099_v54 }
 0xe2a   : > { %12319 = vpow2.f32 %v10100_v55 }
 0xe2c   : > { %v6059_v57 = vpop.f32.mrb[44].mxu1 }
 0xe2d   : > { %v6061_v58 = vpop.f32.mrb[45].mxu1  ;;  %v6068_v16 = vadd.f32 %v6059_v57, %v14652_v61 }
 0xe2e   : > { %v6069_v49 = vadd.f32 %v6061_v58, %v14649_v27  ;;  %v6063_v59 = vpop.f32.mrb[46].mxu1 }
 0xe2f   : > { %v6064_v62 = vpop.f32.mrb[47].mxu1 }
 0xe30   : > { %v10101_v10 = vmul.f32 -1.442695, %v6069_v49 }
 0xe32   : > { %12321 = vpow2.f32 %v10101_v10 }
 0xe33   : > { %v12318_v43 = vpop.eup %12317  ;;  %12323 = vtanh.f32 %v6068_v16 }
 0xe34   : > { %v12320_v24 = vpop.eup %12319  ;;  %v6073_v8 = vadd.f32 1.0, %v12318_v43 }
 0xe35   : > { %v6079_v13 = vadd.f32 1.0, %v12320_v24 }
 0xe36   : > { %12325 = vrcp.f32 %v6073_v8 }
 0xe37   : > { %12327 = vrcp.f32 %v6079_v13 }
 0xe3c   : > { %v12322_v20 = vpop.eup %12321 }
 0xe3d   : > { %v12324_v31 = vpop.eup %12323  ;;  %v6086_v34 = vadd.f32 1.0, %v12322_v20 }
 0xe3f   : > { %12329 = vrcp.f32 %v6086_v34 }
 0xe40   : > { %v12326_v38 = vpop.eup %12325 }
 0xe41   : > { %v12328_v40 = vpop.eup %12327  ;;  %v6090_v3 = vmul.f32 %v12326_v38, %v12324_v31 }
 0xe42   : > { %v6089_v47 = vmul.f32 0.0, %v12328_v40 }
 0xe44   : > { %v6091_v4 = vadd.f32 %v6090_v3, %v6089_v47 }
 0xe46   : > { %12331 = vtanh.f32 %v6091_v4  ;;  %v6216_v59 = vrot.slane %v6091_v4, 7 }
 0xe49   : > { %v12330_v7 = vpop.eup %12329 }
 0xe50   : > { %v12332_v9 = vpop.eup %12331 }
 0xe51   : > { %v14655_v12 = vmul.f32 %v12332_v9, %v12330_v7 }
 0xe53   : > { %v6094_v37 = vpack.c.bf16 %v14655_v12, %v14655_v12 }
 0xe55   : > { %10102 = vmatmul.mubr.msk.bf16.vlgmr.msra.gmra.mrb[48].mxu1 %vm5875_vm12, %v6094_v37 }
 0xe56   : > { %6140 = vmatpush1.bf16.msra.mxu1 %v14618_v19  ;;  %6171 = vmatprep.mubr.bf16.mxu1 %v13122_v6 }
 0xe57   : > { %6230 = vmatprep.subr.bf16.mxu1 %v14605_v0 }
 0xe5d   : > { %10103 = vmatmul.mubr.msk.bf16.vlgmr.msra.gmra.mrb[52].mxu1 %vm5875_vm12, %v6094_v37 }
 0xe5e   : > { %6231 = vmatpush1.bf16.msra.mxu1 %v14610_v15  ;;  %6262 = vmatprep.mubr.bf16.mxu1 %v13122_v6 }
 0xe5f   : > { %6271 = vmatprep.subr.bf16.mxu1 %v14612_v46 }
 0xf28   : > { %v6132_v11 = vpop.f32.mrb[48].mxu1 }
 0xf29   : > { %v6184_v17 = vrot.slane %v6132_v11, 7  ;;  %v6134_v56 = vpop.f32.mrb[49].mxu1 }
 0xf2a   : > { %v6185_v21 = vrot.slane %v6134_v56, 7  ;;  %v6136_v60 = vpop.f32.mrb[50].mxu1 }
 0xf2b   : > { %v6192_v14 = vadd.f32 %v6184_v17, %v14637_v41  ;;  %v6137_v26 = vpop.f32.mrb[51].mxu1 }
 0xf2c   : > { %v6193_v28 = vadd.f32 %v6185_v21, %v14639_v44 }
 0xf2d   : > { %v10104_v35 = vmul.f32 -1.442695, %v6192_v14 }
 0xf2e   : > { %v10105_v23 = vmul.f32 -1.442695, %v6193_v28 }
 0xf2f   : > { %12333 = vpow2.f32 %v10104_v35 }
 0xf30   : > { %12335 = vpow2.f32 %v10105_v23  ;;  %v6173_v2 = vpop.f32.mrb[52].mxu1 }
 0xf31   : > { %v6175_v1 = vpop.f32.mrb[53].mxu1  ;;  %v6186_v52 = vrot.slane %v6173_v2, 7 }
 0xf32   : > { %v6187_v29 = vrot.slane %v6175_v1, 7  ;;  %v6177_v48 = vpop.f32.mrb[54].mxu1 }
 0xf33   : > { %v6178_v50 = vpop.f32.mrb[55].mxu1  ;;  %v6194_v54 = vadd.f32 %v6186_v52, %v14652_v61 }
 0xf34   : > { %v6195_v33 = vadd.f32 %v6187_v29, %v14649_v27 }
 0xf36   : > { %v10106_v53 = vmul.f32 -1.442695, %v6195_v33 }
 0xf38   : > { %12337 = vpow2.f32 %v10106_v53 }
 0xf39   : > { %v12334_v51 = vpop.eup %12333  ;;  %12339 = vtanh.f32 %v6194_v54 }
 0xf3a   : > { %v12336_v30 = vpop.eup %12335  ;;  %v6199_v55 = vadd.f32 1.0, %v12334_v51 }
 0xf3b   : > { %v6205_v25 = vadd.f32 1.0, %v12336_v30 }
 0xf3c   : > { %12341 = vrcp.f32 %v6199_v55 }
 0xf3d   : > { %12343 = vrcp.f32 %v6205_v25 }
 0xf42   : > { %v12338_v57 = vpop.eup %12337 }
 0xf43   : > { %v12340_v58 = vpop.eup %12339  ;;  %v6212_v16 = vadd.f32 1.0, %v12338_v57 }
 0xf45   : > { %12345 = vrcp.f32 %v6212_v16 }
 0xf46   : > { %v12342_v49 = vpop.eup %12341 }
 0xf47   : > { %v12344_v62 = vpop.eup %12343  ;;  %v6219_v10 = vmul.f32 %v12342_v49, %v12340_v58 }
 0xf48   : > { %v6218_v43 = vmul.f32 %v12344_v62, %v6216_v59 }
 0xf4a   : > { %v6220_v24 = vadd.f32 %v6219_v10, %v6218_v43 }
 0xf4c   : > { %12347 = vtanh.f32 %v6220_v24  ;;  %v6348_v54 = vrot.slane %v6220_v24, 7 }
 0xf4f   : > { %v12346_v8 = vpop.eup %12345 }
 0xf56   : > { %v12348_v13 = vpop.eup %12347 }
 0xf57   : > { %v6222_v20 = vmul.f32 %v12348_v13, %v12346_v8 }
 0xf59   : > { %v6223_v31 = vpack.c.bf16 %v6222_v20, %v6222_v20  ;;  %v7014_v62 = vsel %vm1106_vm1, %v14655_v12, %v6222_v20 }
 0xf5b   : > { %v6225_v38 = vshrl.u32 %v6223_v31, 16 }
 0xf5d   : > { %10107 = vmatmul.mubr.msk.bf16.vlgmr.msra.gmra.mrb[56].mxu1 %vm5875_vm12, %v6225_v38 }
 0xf5e   : > { %6272 = vmatpush1.bf16.msra.mxu1 %v14618_v19  ;;  %6303 = vmatprep.mubr.bf16.mxu1 %v13122_v6 }
 0xf5f   : > { %6361 = vmatprep.subr.bf16.mxu1 %v14605_v0 }
 0xf65   : > { %10108 = vmatmul.mubr.msk.bf16.vlgmr.msra.gmra.mrb[60].mxu1 %vm5875_vm12, %v6225_v38 }
 0xf66   : > { %6362 = vmatpush1.bf16.msra.mxu1 %v14610_v15  ;;  %6393 = vmatprep.mubr.bf16.mxu1 %v13122_v6 }
 0xf67   : > { %6402 = vmatprep.subr.bf16.mxu1 %v14612_v46 }
0x1030   : > { %v6264_v40 = vpop.f32.mrb[56].mxu1 }
0x1031   : > { %v6316_v3 = vrot.slane %v6264_v40, 6  ;;  %v6266_v34 = vpop.f32.mrb[57].mxu1 }
0x1032   : > { %v6317_v47 = vrot.slane %v6266_v34, 6  ;;  %v6268_v4 = vpop.f32.mrb[58].mxu1 }
0x1033   : > { %v6324_v7 = vadd.f32 %v6316_v3, %v14637_v41  ;;  %v6269_v9 = vpop.f32.mrb[59].mxu1 }
0x1034   : > { %v6325_v37 = vadd.f32 %v6317_v47, %v14639_v44 }
0x1035   : > { %v10109_v11 = vmul.f32 -1.442695, %v6324_v7 }
0x1036   : > { %v10110_v17 = vmul.f32 -1.442695, %v6325_v37 }
0x1037   : > { %12349 = vpow2.f32 %v10109_v11 }
0x1038   : > { %12351 = vpow2.f32 %v10110_v17  ;;  %v6305_v56 = vpop.f32.mrb[60].mxu1 }
0x1039   : > { %v6307_v21 = vpop.f32.mrb[61].mxu1  ;;  %v6318_v26 = vrot.slane %v6305_v56, 6 }
0x103a   : > { %v6319_v60 = vrot.slane %v6307_v21, 6  ;;  %v6309_v14 = vpop.f32.mrb[62].mxu1 }
0x103b   : > { %v6310_v28 = vpop.f32.mrb[63].mxu1  ;;  %v6326_v2 = vadd.f32 %v6318_v26, %v14652_v61 }
0x103c   : > { %v6327_v35 = vadd.f32 %v6319_v60, %v14649_v27 }
0x103e   : > { %v10111_v23 = vmul.f32 -1.442695, %v6327_v35 }
0x1040   : > { %12353 = vpow2.f32 %v10111_v23 }
0x1041   : > { %v12350_v1 = vpop.eup %12349  ;;  %12355 = vtanh.f32 %v6326_v2 }
0x1042   : > { %v12352_v29 = vpop.eup %12351  ;;  %v6331_v48 = vadd.f32 1.0, %v12350_v1 }
0x1043   : > { %v6337_v52 = vadd.f32 1.0, %v12352_v29 }
0x1044   : > { %12357 = vrcp.f32 %v6331_v48 }
0x1045   : > { %12359 = vrcp.f32 %v6337_v52 }
0x104a   : > { %v12354_v50 = vpop.eup %12353 }
0x104b   : > { %v12356_v33 = vpop.eup %12355  ;;  %v6344_v55 = vadd.f32 1.0, %v12354_v50 }
0x104d   : > { %12361 = vrcp.f32 %v6344_v55 }
0x104e   : > { %v12358_v53 = vpop.eup %12357 }
0x104f   : > { %v12360_v51 = vpop.eup %12359  ;;  %v6351_v30 = vmul.f32 %v12358_v53, %v12356_v33 }
0x1050   : > { %v6350_v25 = vmul.f32 %v12360_v51, %v6348_v54 }
0x1052   : > { %v6352_v57 = vadd.f32 %v6351_v30, %v6350_v25 }
0x1054   : > { %12363 = vtanh.f32 %v6352_v57  ;;  %v6479_v1 = vrot.slane %v6352_v57, 7 }
0x1057   : > { %v12362_v58 = vpop.eup %12361 }
0x105e   : > { %v12364_v49 = vpop.eup %12363 }
0x105f   : > { %v6354_v59 = vmul.f32 %v12364_v49, %v12362_v58 }
0x1061   : > { %v6355_v10 = vpack.c.bf16 %v6354_v59, %v6354_v59  ;;  %v7015_v16 = vsel %vm1108_vm2, %v7014_v62, %v6354_v59 }
0x1063   : > { %v6357_v43 = vrot.slane %v6355_v10, 1 }
0x1065   : > { %10112 = vmatmul.mubr.msk.bf16.vlgmr.msra.gmra.mrb[64].mxu1 %vm5875_vm12, %v6357_v43 }
0x1066   : > { %6403 = vmatpush1.bf16.msra.mxu1 %v14618_v19  ;;  %6434 = vmatprep.mubr.bf16.mxu1 %v13122_v6 }
0x1067   : > { %6494 = vmatprep.subr.bf16.mxu1 %v14605_v0 }
0x106d   : > { %10113 = vmatmul.mubr.msk.bf16.vlgmr.msra.gmra.mrb[68].mxu1 %vm5875_vm12, %v6357_v43 }
0x106e   : > { %6495 = vmatpush1.bf16.msra.mxu1 %v14610_v15  ;;  %6526 = vmatprep.mubr.bf16.mxu1 %v13122_v6 }
0x106f   : > { %6535 = vmatprep.subr.bf16.mxu1 %v14612_v46 }
0x1138   : > { %v6395_v12 = vpop.f32.mrb[64].mxu1 }
0x1139   : > { %v6447_v24 = vrot.slane %v6395_v12, 5  ;;  %v6397_v8 = vpop.f32.mrb[65].mxu1 }
0x113a   : > { %v6448_v13 = vrot.slane %v6397_v8, 5  ;;  %v6399_v20 = vpop.f32.mrb[66].mxu1 }
0x113b   : > { %v6455_v31 = vadd.f32 %v6447_v24, %v14637_v41  ;;  %v6400_v38 = vpop.f32.mrb[67].mxu1 }
0x113c   : > { %v6456_v40 = vadd.f32 %v6448_v13, %v14639_v44 }
0x113d   : > { %v10114_v3 = vmul.f32 -1.442695, %v6455_v31 }
0x113e   : > { %v10115_v34 = vmul.f32 -1.442695, %v6456_v40 }
0x113f   : > { %12365 = vpow2.f32 %v10114_v3 }
0x1140   : > { %12367 = vpow2.f32 %v10115_v34  ;;  %v6436_v47 = vpop.f32.mrb[68].mxu1 }
0x1141   : > { %v6438_v4 = vpop.f32.mrb[69].mxu1  ;;  %v6449_v37 = vrot.slane %v6436_v47, 5 }
0x1142   : > { %v6450_v7 = vrot.slane %v6438_v4, 5  ;;  %v6440_v9 = vpop.f32.mrb[70].mxu1 }
0x1143   : > { %v6441_v11 = vpop.f32.mrb[71].mxu1  ;;  %v6457_v21 = vadd.f32 %v6449_v37, %v14652_v61 }
0x1144   : > { %v6458_v17 = vadd.f32 %v6450_v7, %v14649_v27 }
0x1146   : > { %v10116_v56 = vmul.f32 -1.442695, %v6458_v17 }
0x1148   : > { %12369 = vpow2.f32 %v10116_v56 }
0x1149   : > { %v12366_v60 = vpop.eup %12365  ;;  %12371 = vtanh.f32 %v6457_v21 }
0x114a   : > { %v12368_v14 = vpop.eup %12367  ;;  %v6462_v26 = vadd.f32 1.0, %v12366_v60 }
0x114b   : > { %v6468_v28 = vadd.f32 1.0, %v12368_v14 }
0x114c   : > { %12373 = vrcp.f32 %v6462_v26 }
0x114d   : > { %12375 = vrcp.f32 %v6468_v28 }
0x1152   : > { %v12370_v35 = vpop.eup %12369 }
0x1153   : > { %v12372_v23 = vpop.eup %12371  ;;  %v6475_v52 = vadd.f32 1.0, %v12370_v35 }
0x1155   : > { %12377 = vrcp.f32 %v6475_v52 }
0x1156   : > { %v12374_v2 = vpop.eup %12373 }
0x1157   : > { %v12376_v29 = vpop.eup %12375  ;;  %v6482_v48 = vmul.f32 %v12374_v2, %v12372_v23 }
0x1158   : > { %v6481_v50 = vmul.f32 %v12376_v29, %v6479_v1 }
0x115a   : > { %v6483_v33 = vadd.f32 %v6482_v48, %v6481_v50 }
0x115c   : > { %12379 = vtanh.f32 %v6483_v33  ;;  %v6612_v60 = vrot.slane %v6483_v33, 7 }
0x115f   : > { %v12378_v53 = vpop.eup %12377 }
0x1166   : > { %v12380_v54 = vpop.eup %12379 }
0x1167   : > { %v6485_v51 = vmul.f32 %v12380_v54, %v12378_v53 }
0x1169   : > { %v6486_v30 = vpack.c.bf16 %v6485_v51, %v6485_v51  ;;  %v7016_v55 = vsel %vm1075_vm0, %v7015_v16, %v6485_v51 }
0x116b   : > { %v6488_v25 = vshrl.u32 %v6486_v30, 16 }
0x116d   : > { %v6490_v58 = vrot.slane %v6488_v25, 1 }
0x116f   : > { %10117 = vmatmul.mubr.msk.bf16.vlgmr.msra.gmra.mrb[72].mxu1 %vm5875_vm12, %v6490_v58 }
0x1170   : > { %6536 = vmatpush1.bf16.msra.mxu1 %v14618_v19  ;;  %6567 = vmatprep.mubr.bf16.mxu1 %v13122_v6 }
0x1171   : > { %6625 = vmatprep.subr.bf16.mxu1 %v14605_v0 }
0x1177   : > { %10118 = vmatmul.mubr.msk.bf16.vlgmr.msra.gmra.mrb[76].mxu1 %vm5875_vm12, %v6490_v58 }
0x1178   : > { %6626 = vmatpush1.bf16.msra.mxu1 %v14610_v15  ;;  %6657 = vmatprep.mubr.bf16.mxu1 %v13122_v6 }
0x1179   : > { %6666 = vmatprep.subr.bf16.mxu1 %v14612_v46 }
0x1242   : > { %v6528_v57 = vpop.f32.mrb[72].mxu1 }
0x1243   : > { %v6580_v49 = vrot.slane %v6528_v57, 4  ;;  %v6530_v59 = vpop.f32.mrb[73].mxu1 }
0x1244   : > { %v6581_v62 = vrot.slane %v6530_v59, 4  ;;  %v6532_v10 = vpop.f32.mrb[74].mxu1 }
0x1245   : > { %v6588_v16 = vadd.f32 %v6580_v49, %v14637_v41  ;;  %v6533_v43 = vpop.f32.mrb[75].mxu1 }
0x1246   : > { %v6589_v12 = vadd.f32 %v6581_v62, %v14639_v44 }
0x1247   : > { %v10119_v24 = vmul.f32 -1.442695, %v6588_v16 }
0x1248   : > { %v10120_v8 = vmul.f32 -1.442695, %v6589_v12 }
0x1249   : > { %12381 = vpow2.f32 %v10119_v24 }
0x124a   : > { %12383 = vpow2.f32 %v10120_v8  ;;  %v6569_v13 = vpop.f32.mrb[76].mxu1 }
0x124b   : > { %v6571_v20 = vpop.f32.mrb[77].mxu1  ;;  %v6582_v40 = vrot.slane %v6569_v13, 4 }
0x124c   : > { %v6583_v31 = vrot.slane %v6571_v20, 4  ;;  %v6573_v38 = vpop.f32.mrb[78].mxu1 }
0x124d   : > { %v6574_v3 = vpop.f32.mrb[79].mxu1  ;;  %v6590_v4 = vadd.f32 %v6582_v40, %v14652_v61 }
0x124e   : > { %v6591_v34 = vadd.f32 %v6583_v31, %v14649_v27 }
0x1250   : > { %v10121_v47 = vmul.f32 -1.442695, %v6591_v34 }
0x1252   : > { %12385 = vpow2.f32 %v10121_v47 }
0x1253   : > { %v12382_v7 = vpop.eup %12381  ;;  %12387 = vtanh.f32 %v6590_v4 }
0x1254   : > { %v12384_v9 = vpop.eup %12383  ;;  %v6595_v37 = vadd.f32 1.0, %v12382_v7 }
0x1255   : > { %v6601_v11 = vadd.f32 1.0, %v12384_v9 }
0x1256   : > { %12389 = vrcp.f32 %v6595_v37 }
0x1257   : > { %12391 = vrcp.f32 %v6601_v11 }
0x125c   : > { %v12386_v17 = vpop.eup %12385 }
0x125d   : > { %v12388_v56 = vpop.eup %12387  ;;  %v6608_v28 = vadd.f32 1.0, %v12386_v17 }
0x125f   : > { %12393 = vrcp.f32 %v6608_v28 }
0x1260   : > { %v12390_v21 = vpop.eup %12389 }
0x1261   : > { %v12392_v14 = vpop.eup %12391  ;;  %v6615_v26 = vmul.f32 %v12390_v21, %v12388_v56 }
0x1262   : > { %v6614_v35 = vmul.f32 %v12392_v14, %v6612_v60 }
0x1264   : > { %v6616_v23 = vadd.f32 %v6615_v26, %v6614_v35 }
0x1266   : > { %12395 = vtanh.f32 %v6616_v23  ;;  %v6743_v4 = vrot.slane %v6616_v23, 7 }
0x1269   : > { %v12394_v2 = vpop.eup %12393 }
0x1270   : > { %v12396_v1 = vpop.eup %12395 }
0x1271   : > { %v6618_v29 = vmul.f32 %v12396_v1, %v12394_v2 }
0x1273   : > { %v6619_v48 = vpack.c.bf16 %v6618_v29, %v6618_v29  ;;  %v7017_v52 = vsel %vm1112_vm4, %v7016_v55, %v6618_v29 }
0x1275   : > { %v6621_v50 = vrot.slane %v6619_v48, 2 }
0x1277   : > { %10122 = vmatmul.mubr.msk.bf16.vlgmr.msra.gmra.mrb[80].mxu1 %vm5875_vm12, %v6621_v50 }
0x1278   : > { %6667 = vmatpush1.bf16.msra.mxu1 %v14618_v19  ;;  %6698 = vmatprep.mubr.bf16.mxu1 %v13122_v6 }
0x1279   : > { %6758 = vmatprep.subr.bf16.mxu1 %v14605_v0 }
0x127f   : > { %10123 = vmatmul.mubr.msk.bf16.vlgmr.msra.gmra.mrb[84].mxu1 %vm5875_vm12, %v6621_v50 }
0x1280   : > { %6759 = vmatpush1.bf16.msra.mxu1 %v14610_v15  ;;  %6790 = vmatprep.mubr.bf16.mxu1 %v13122_v6 }
0x1281   : > { %6799 = vmatprep.subr.bf16.mxu1 %v14612_v46 }
0x134a   : > { %v6659_v33 = vpop.f32.mrb[80].mxu1 }
0x134b   : > { %v6711_v53 = vrot.slane %v6659_v33, 3  ;;  %v6661_v54 = vpop.f32.mrb[81].mxu1 }
0x134c   : > { %v6712_v51 = vrot.slane %v6661_v54, 3  ;;  %v6663_v30 = vpop.f32.mrb[82].mxu1 }
0x134d   : > { %v6719_v55 = vadd.f32 %v6711_v53, %v14637_v41  ;;  %v6664_v25 = vpop.f32.mrb[83].mxu1 }
0x134e   : > { %v6720_v58 = vadd.f32 %v6712_v51, %v14639_v44 }
0x134f   : > { %v10124_v57 = vmul.f32 -1.442695, %v6719_v55 }
0x1350   : > { %v10125_v49 = vmul.f32 -1.442695, %v6720_v58 }
0x1351   : > { %12397 = vpow2.f32 %v10124_v57 }
0x1352   : > { %12399 = vpow2.f32 %v10125_v49  ;;  %v6700_v59 = vpop.f32.mrb[84].mxu1 }
0x1353   : > { %v6702_v62 = vpop.f32.mrb[85].mxu1  ;;  %v6713_v43 = vrot.slane %v6700_v59, 3 }
0x1354   : > { %v6714_v10 = vrot.slane %v6702_v62, 3  ;;  %v6704_v16 = vpop.f32.mrb[86].mxu1 }
0x1355   : > { %v6705_v12 = vpop.f32.mrb[87].mxu1  ;;  %v6721_v13 = vadd.f32 %v6713_v43, %v14652_v61 }
0x1356   : > { %v6722_v24 = vadd.f32 %v6714_v10, %v14649_v27 }
0x1358   : > { %v10126_v8 = vmul.f32 -1.442695, %v6722_v24 }
0x135a   : > { %12401 = vpow2.f32 %v10126_v8 }
0x135b   : > { %v12398_v20 = vpop.eup %12397  ;;  %12403 = vtanh.f32 %v6721_v13 }
0x135c   : > { %v12400_v31 = vpop.eup %12399  ;;  %v6726_v38 = vadd.f32 1.0, %v12398_v20 }
0x135d   : > { %v6732_v40 = vadd.f32 1.0, %v12400_v31 }
0x135e   : > { %12405 = vrcp.f32 %v6726_v38 }
0x135f   : > { %12407 = vrcp.f32 %v6732_v40 }
0x1364   : > { %v12402_v3 = vpop.eup %12401 }
0x1365   : > { %v12404_v34 = vpop.eup %12403  ;;  %v6739_v37 = vadd.f32 1.0, %v12402_v3 }
0x1367   : > { %12409 = vrcp.f32 %v6739_v37  ;;  %v12228_v37 = vld [vmem:[#allocation22 + $0x24] ss:$16 sps:$4 sm:$0xff]  }
0x1368   : > { %v12406_v47 = vpop.eup %12405 }
0x1369   : > { %v12408_v7 = vpop.eup %12407  ;;  %v6746_v9 = vmul.f32 %v12406_v47, %v12404_v34 }
0x136a   : > { %v6745_v11 = vmul.f32 %v12408_v7, %v6743_v4 }
0x136c   : > { %v6747_v17 = vadd.f32 %v6746_v9, %v6745_v11  ;;  %v12226_v9 = vld [vmem:[#allocation22 + $0x20] ss:$16 sps:$4 sm:$0xff]   ;;  %v12231_v11 = vld [vmem:[#allocation22 + $0x2c] ss:$16 sps:$4 sm:$0xff]  }
0x136e   : > { %12411 = vtanh.f32 %v6747_v17  ;;  %v6876_v24 = vrot.slane %v6747_v17, 7  ;;  %v14743_v17 = vld [vmem:[#allocation24 + $0x24] ss:$16 sps:$4 sm:$0xff]  }
0x136f   : > { %7822 = vmatprep.subr.bf16.mxu0 %v14743_v17 }
0x1371   : > { %v12410_v56 = vpop.eup %12409 }
0x1378   : > { %v12412_v21 = vpop.eup %12411 }
0x1379   : > { %v6749_v60 = vmul.f32 %v12412_v21, %v12410_v56  ;;  %v14745_v56 = vld [vmem:[#allocation24 + $0x20] ss:$16 sps:$4 sm:$0xff]  }
0x137a   : > { %7823 = vmatpush1.bf16.msra.mxu0 %v14745_v56 }
0x137b   : > { %v6750_v14 = vpack.c.bf16 %v6749_v60, %v6749_v60  ;;  %v7018_v26 = vsel %vm1114_vm5, %v7017_v52, %v6749_v60  ;;  %7955 = vmatprep.subr.bf16.mxu0 %v14743_v17 }
0x137d   : > { %v6752_v28 = vshrl.u32 %v6750_v14, 16 }
0x137f   : > { %v6754_v35 = vrot.slane %v6752_v28, 2 }
0x1381   : > { %10127 = vmatmul.mubr.msk.bf16.vlgmr.msra.gmra.mrb[88].mxu1 %vm5875_vm12, %v6754_v35 }
0x1382   : > { %6800 = vmatpush1.bf16.msra.mxu1 %v14618_v19  ;;  %6831 = vmatprep.mubr.bf16.mxu1 %v13122_v6 }
0x1383   : > { %6889 = vmatprep.subr.bf16.mxu1 %v14605_v0 }
0x1389   : > { %10128 = vmatmul.mubr.msk.bf16.vlgmr.msra.gmra.mrb[92].mxu1 %vm5875_vm12, %v6754_v35 }
0x138a   : > { %6890 = vmatpush1.bf16.msra.mxu1 %v14610_v15  ;;  %6921 = vmatprep.mubr.bf16.mxu1 %v13122_v6 }
0x138b   : > { %6930 = vmatprep.subr.bf16.mxu1 %v14612_v46 }
0x1454   : > { %v6792_v23 = vpop.f32.mrb[88].mxu1 }
0x1455   : > { %v6844_v2 = vrot.slane %v6792_v23, 2  ;;  %v6794_v1 = vpop.f32.mrb[89].mxu1 }
0x1456   : > { %v6845_v29 = vrot.slane %v6794_v1, 2  ;;  %v6796_v48 = vpop.f32.mrb[90].mxu1 }
0x1457   : > { %v6852_v52 = vadd.f32 %v6844_v2, %v14637_v41  ;;  %v6797_v50 = vpop.f32.mrb[91].mxu1 }
0x1458   : > { %v6853_v33 = vadd.f32 %v6845_v29, %v14639_v44 }
0x1459   : > { %v10129_v53 = vmul.f32 -1.442695, %v6852_v52 }
0x145a   : > { %v10130_v0 = vmul.f32 -1.442695, %v6853_v33 }
0x145b   : > { %12413 = vpow2.f32 %v10129_v53 }
0x145c   : > { %12415 = vpow2.f32 %v10130_v0  ;;  %v6833_v54 = vpop.f32.mrb[92].mxu1 }
0x145d   : > { %v6835_v15 = vpop.f32.mrb[93].mxu1  ;;  %v6846_v55 = vrot.slane %v6833_v54, 2 }
0x145e   : > { %v6847_v51 = vrot.slane %v6835_v15, 2  ;;  %v6837_v30 = vpop.f32.mrb[94].mxu1 }
0x145f   : > { %v6838_v46 = vpop.f32.mrb[95].mxu1  ;;  %v6854_v57 = vadd.f32 %v6846_v55, %v14652_v61 }
0x1460   : > { %v6855_v25 = vadd.f32 %v6847_v51, %v14649_v27 }
0x1462   : > { %v10131_v58 = vmul.f32 -1.442695, %v6855_v25 }
0x1464   : > { %12417 = vpow2.f32 %v10131_v58 }
0x1465   : > { %v12414_v49 = vpop.eup %12413  ;;  %12419 = vtanh.f32 %v6854_v57 }
0x1466   : > { %v12416_v59 = vpop.eup %12415  ;;  %v6859_v62 = vadd.f32 1.0, %v12414_v49 }
0x1467   : > { %v6865_v10 = vadd.f32 1.0, %v12416_v59 }
0x1468   : > { %12421 = vrcp.f32 %v6859_v62 }
0x1469   : > { %12423 = vrcp.f32 %v6865_v10 }
0x146e   : > { %v12418_v16 = vpop.eup %12417 }
0x146f   : > { %v12420_v43 = vpop.eup %12419  ;;  %v6872_v20 = vadd.f32 1.0, %v12418_v16 }
0x1471   : > { %12425 = vrcp.f32 %v6872_v20 }
0x1472   : > { %v12422_v12 = vpop.eup %12421 }
0x1473   : > { %v12424_v8 = vpop.eup %12423  ;;  %v6879_v13 = vmul.f32 %v12422_v12, %v12420_v43  ;;  %v12229_v12 = vld [vmem:[#allocation22 + $0x28] ss:$16 sps:$4 sm:$0xff]  }
0x1474   : > { %v6878_v31 = vmul.f32 %v12424_v8, %v6876_v24  ;;  %v14758_v8 = vld [vmem:[#allocation24 + $0x2c] ss:$16 sps:$4 sm:$0xff]  }
0x1476   : > { %v6880_v38 = vadd.f32 %v6879_v13, %v6878_v31  ;;  %v14764_v13 = vld [vmem:[#allocation24 + $0x28] ss:$16 sps:$4 sm:$0xff]  }
0x1478   : > { %12427 = vtanh.f32 %v6880_v38  ;;  %v7007_v58 = vrot.slane %v6880_v38, 7 }
0x147b   : > { %v12426_v40 = vpop.eup %12425 }
0x1482   : > { %v12428_v3 = vpop.eup %12427 }
0x1483   : > { %v6882_v34 = vmul.f32 %v12428_v3, %v12426_v40  ;;  %v10137_v3 = vld [vmem:[%s15278_s2 + $0x4] sm:$0xf] }
0x1485   : > { %v6883_v47 = vpack.c.bf16 %v6882_v34, %v6882_v34  ;;  %v7020_v4 = vsel %vm1759_vm9, %v7018_v26, %v6882_v34 }
0x1487   : > { %v6885_v7 = vrot.slane %v6883_v47, 3 }
0x1489   : > { %10132 = vmatmul.mubr.msk.bf16.vlgmr.msra.gmra.mrb[96].mxu1 %vm5875_vm12, %v6885_v7 }
0x148a   : > { %6931 = vmatpush1.bf16.msra.mxu1 %v14618_v19  ;;  %6962 = vmatprep.mubr.bf16.mxu1 %v13122_v6 }
0x148b   : > { %7079 = vmatprep.subr.bf16.mxu1 %v12228_v37  ;;  %v7043_v37 = vrot.slane %v10137_v3, %v5841_v18  ;;  %v7047_v18 = vrot.slane %v10137_v3, %v5845_v32 }
0x1491   : > { %10133 = vmatmul.mubr.msk.bf16.vlgmr.msra.gmra.mrb[100].mxu1 %vm5875_vm12, %v6885_v7  ;;  %v7039_v7 = vrot.slane %v10137_v3, %v5837_v22  ;;  %v7051_v22 = vrot.slane %v10137_v3, %v5849_v45 }
0x1492   : > { %7111 = vmatprep.mubr.bf16.mxu1 %v13122_v6  ;;  %7080 = vmatpush1.bf16.msra.mxu1 %v12226_v9 }
0x1493   : > { %7120 = vmatprep.subr.bf16.mxu1 %v12231_v11 }
0x155c   : > { %v6923_v19 = vpop.f32.mrb[96].mxu1 }
0x155d   : > { %v6975_v21 = vrot.slane %v6923_v19, 1  ;;  %v6925_v60 = vpop.f32.mrb[97].mxu1 }
0x155e   : > { %v6976_v14 = vrot.slane %v6925_v60, 1  ;;  %v6927_v26 = vpop.f32.mrb[98].mxu1 }
0x155f   : > { %v6983_v28 = vadd.f32 %v6975_v21, %v14637_v41  ;;  %v6928_v35 = vpop.f32.mrb[99].mxu1 }
0x1560   : > { %v6984_v23 = vadd.f32 %v6976_v14, %v14639_v44 }
0x1561   : > { %v10134_v2 = vmul.f32 -1.442695, %v6983_v28 }
0x1562   : > { %v10135_v1 = vmul.f32 -1.442695, %v6984_v23 }
0x1563   : > { %12429 = vpow2.f32 %v10134_v2 }
0x1564   : > { %12431 = vpow2.f32 %v10135_v1  ;;  %v6964_v29 = vpop.f32.mrb[100].mxu1 }
0x1565   : > { %v6966_v48 = vpop.f32.mrb[101].mxu1  ;;  %v6977_v33 = vrot.slane %v6964_v29, 1 }
0x1566   : > { %v6978_v52 = vrot.slane %v6966_v48, 1  ;;  %v6968_v50 = vpop.f32.mrb[102].mxu1 }
0x1567   : > { %v6969_v53 = vpop.f32.mrb[103].mxu1  ;;  %v6985_v15 = vadd.f32 %v6977_v33, %v14652_v61 }
0x1568   : > { %v6986_v0 = vadd.f32 %v6978_v52, %v14649_v27 }
0x156a   : > { %v10136_v54 = vmul.f32 -1.442695, %v6986_v0 }
0x156c   : > { %12433 = vpow2.f32 %v10136_v54 }
0x156d   : > { %v12430_v51 = vpop.eup %12429  ;;  %12435 = vtanh.f32 %v6985_v15 }
0x156e   : > { %v12432_v41 = vpop.eup %12431  ;;  %v6990_v30 = vadd.f32 1.0, %v12430_v51 }
0x156f   : > { %v6996_v44 = vadd.f32 1.0, %v12432_v41 }
0x1570   : > { %12437 = vrcp.f32 %v6990_v30 }
0x1571   : > { %12439 = vrcp.f32 %v6996_v44 }
0x1576   : > { %v12434_v55 = vpop.eup %12433 }
0x1577   : > { %v12436_v46 = vpop.eup %12435  ;;  %v7003_v59 = vadd.f32 1.0, %v12434_v55 }
0x1579   : > { %12441 = vrcp.f32 %v7003_v59 }
0x157a   : > { %v12438_v25 = vpop.eup %12437 }
0x157b   : > { %v12440_v57 = vpop.eup %12439  ;;  %v7010_v49 = vmul.f32 %v12438_v25, %v12436_v46 }
0x157c   : > { %v7009_v62 = vmul.f32 %v12440_v57, %v7007_v58 }
0x157e   : > { %v7011_v27 = vadd.f32 %v7010_v49, %v7009_v62 }
0x1580   : > { %12443 = vtanh.f32 %v7011_v27 }
0x1583   : > { %v12442_v61 = vpop.eup %12441 }
0x158a   : > { %v12444_v10 = vpop.eup %12443 }
0x158b   : > { %v7013_v16 = vmul.f32 %v12444_v10, %v12442_v61 }
0x158d   : > { %v7021_v43 = vsel %vm1443_vm7, %v7020_v4, %v7013_v16 }
0x158e   : > { %v7034_v24 = vpack.c.bf16 %v7021_v43, %v7021_v43 }
0x1590   : > { %10142 = vmatmul.mubr.msk.bf16.vlgmr.msra.gmra.mrb[104].mxu1 %vm5875_vm12, %v7034_v24 }
0x1591   : > { %7121 = vmatpush1.bf16.msra.mxu1 %v12229_v12  ;;  %7152 = vmatprep.mubr.bf16.mxu1 %v13122_v6 }
0x1592   : > { %7181 = vmatprep.subr.bf16.mxu1 %v14743_v17 }
0x1598   : > { %10143 = vmatmul.mubr.msk.bf16.vlgmr.msra.gmra.mrb[108].mxu1 %vm5875_vm12, %v7034_v24 }
0x1599   : > { %7182 = vmatpush1.bf16.msra.mxu1 %v14745_v56  ;;  %7213 = vmatprep.mubr.bf16.mxu1 %v13122_v6 }
0x159a   : > { %7222 = vmatprep.subr.bf16.mxu1 %v14758_v8 }
0x15a0   : > { %7214 = vmatmul.mubr.bf16.vlgmr.msra.gmra.mrb[112].mxu1 %v13122_v6 }
0x15a1   : > { %7223 = vmatpush1.bf16.msra.mxu1 %v14764_v13  ;;  %7254 = vmatprep.mubr.bf16.mxu1 %v13122_v6 }
0x15a2   : > { %7295 = vmatprep.subr.bf16.mxu1 %v14743_v17 }
0x15a8   : > { %7255 = vmatmul.mubr.bf16.vlgmr.msra.gmra.mrb[116].mxu1 %v13122_v6 }
0x15a9   : > { %7296 = vmatpush1.bf16.msra.mxu1 %v14745_v56  ;;  %7327 = vmatprep.mubr.bf16.mxu1 %v13122_v6 }
0x15aa   : > { %7336 = vmatprep.subr.bf16.mxu1 %v14758_v8 }
0x1663   : > { %v7113_v20 = vpop.f32.mrb[104].mxu1 }
0x1664   : > { %v7115_v31 = vpop.f32.mrb[105].mxu1  ;;  %v14781_v11 = vadd.f32 %v7113_v20, %v7039_v7 }
0x1665   : > { %v7117_v38 = vpop.f32.mrb[106].mxu1  ;;  %v14783_v19 = vadd.f32 %v7115_v31, %v7043_v37 }
0x1666   : > { %v7118_v40 = vpop.f32.mrb[107].mxu1 }
0x166b   : > { %v7154_v34 = vpop.f32.mrb[108].mxu1 }
0x166c   : > { %v7156_v47 = vpop.f32.mrb[109].mxu1  ;;  %v14794_v33 = vadd.f32 %v7154_v34, %v7047_v18 }
0x166d   : > { %v7158_v4 = vpop.f32.mrb[110].mxu1  ;;  %v14791_v1 = vadd.f32 %v7156_v47, %v7051_v22 }
0x166e   : > { %v7159_v9 = vpop.f32.mrb[111].mxu1 }
0x1673   : > { %v7215_v21 = vpop.f32.mrb[112].mxu1 }
0x1674   : > { %v7263_v60 = vadd.f32 %v7215_v21, %v14781_v11  ;;  %v7217_v14 = vpop.f32.mrb[113].mxu1 }
0x1675   : > { %v7264_v26 = vadd.f32 %v7217_v14, %v14783_v19  ;;  %v7219_v28 = vpop.f32.mrb[114].mxu1 }
0x1676   : > { %v10148_v35 = vmul.f32 -1.442695, %v7263_v60  ;;  %v7220_v23 = vpop.f32.mrb[115].mxu1 }
0x1677   : > { %v10149_v2 = vmul.f32 -1.442695, %v7264_v26 }
0x1678   : > { %12445 = vpow2.f32 %v10148_v35 }
0x1679   : > { %12447 = vpow2.f32 %v10149_v2 }
0x167b   : > { %v7256_v29 = vpop.f32.mrb[116].mxu1 }
0x167c   : > { %v7258_v48 = vpop.f32.mrb[117].mxu1  ;;  %v7265_v54 = vadd.f32 %v7256_v29, %v14794_v33 }
0x167d   : > { %v7266_v52 = vadd.f32 %v7258_v48, %v14791_v1  ;;  %v7260_v50 = vpop.f32.mrb[118].mxu1 }
0x167e   : > { %v7261_v53 = vpop.f32.mrb[119].mxu1 }
0x167f   : > { %v10150_v0 = vmul.f32 -1.442695, %v7266_v52 }
0x1681   : > { %12449 = vpow2.f32 %v10150_v0 }
0x1682   : > { %v12446_v45 = vpop.eup %12445  ;;  %12451 = vtanh.f32 %v7265_v54 }
0x1683   : > { %v12448_v15 = vpop.eup %12447  ;;  %v7270_v51 = vadd.f32 1.0, %v12446_v45 }
0x1684   : > { %v7276_v41 = vadd.f32 1.0, %v12448_v15 }
0x1685   : > { %12453 = vrcp.f32 %v7270_v51 }
0x1686   : > { %12455 = vrcp.f32 %v7276_v41 }
0x168b   : > { %v12450_v39 = vpop.eup %12449 }
0x168c   : > { %v12452_v32 = vpop.eup %12451  ;;  %v7283_v46 = vadd.f32 1.0, %v12450_v39 }
0x168e   : > { %12457 = vrcp.f32 %v7283_v46 }
0x168f   : > { %v12454_v30 = vpop.eup %12453 }
0x1690   : > { %v12456_v44 = vpop.eup %12455  ;;  %v7287_v55 = vmul.f32 %v12454_v30, %v12452_v32 }
0x1691   : > { %v7286_v25 = vmul.f32 0.0, %v12456_v44 }
0x1693   : > { %v7288_v58 = vadd.f32 %v7287_v55, %v7286_v25 }
0x1695   : > { %12459 = vtanh.f32 %v7288_v58  ;;  %v7413_v2 = vrot.slane %v7288_v58, 7 }
0x1698   : > { %v12458_v57 = vpop.eup %12457 }
0x169f   : > { %v12460_v49 = vpop.eup %12459 }
0x16a0   : > { %v14797_v59 = vmul.f32 %v12460_v49, %v12458_v57 }
0x16a2   : > { %v7291_v62 = vpack.c.bf16 %v14797_v59, %v14797_v59 }
0x16a4   : > { %10151 = vmatmul.mubr.msk.bf16.vlgmr.msra.gmra.mrb[120].mxu1 %vm5875_vm12, %v7291_v62 }
0x16a5   : > { %7337 = vmatpush1.bf16.msra.mxu1 %v14764_v13  ;;  %7368 = vmatprep.mubr.bf16.mxu1 %v13122_v6 }
0x16a6   : > { %7427 = vmatprep.subr.bf16.mxu1 %v14743_v17 }
0x16ac   : > { %10152 = vmatmul.mubr.msk.bf16.vlgmr.msra.gmra.mrb[124].mxu1 %vm5875_vm12, %v7291_v62 }
0x16ad   : > { %7428 = vmatpush1.bf16.msra.mxu1 %v14745_v56  ;;  %7459 = vmatprep.mubr.bf16.mxu1 %v13122_v6 }
0x16ae   : > { %7468 = vmatprep.subr.bf16.mxu1 %v14758_v8 }
0x1777   : > { %v7329_v27 = vpop.f32.mrb[120].mxu1 }
0x1778   : > { %v7381_v61 = vrot.slane %v7329_v27, 7  ;;  %v7331_v10 = vpop.f32.mrb[121].mxu1 }
0x1779   : > { %v7382_v16 = vrot.slane %v7331_v10, 7  ;;  %v7333_v43 = vpop.f32.mrb[122].mxu1 }
0x177a   : > { %v7389_v12 = vadd.f32 %v7381_v61, %v14781_v11  ;;  %v7334_v24 = vpop.f32.mrb[123].mxu1 }
0x177b   : > { %v7390_v20 = vadd.f32 %v7382_v16, %v14783_v19 }
0x177c   : > { %v10153_v31 = vmul.f32 -1.442695, %v7389_v12 }
0x177d   : > { %v10154_v38 = vmul.f32 -1.442695, %v7390_v20 }
0x177e   : > { %12461 = vpow2.f32 %v10153_v31 }
0x177f   : > { %12463 = vpow2.f32 %v10154_v38  ;;  %v7370_v40 = vpop.f32.mrb[124].mxu1 }
0x1780   : > { %v7372_v3 = vpop.f32.mrb[125].mxu1  ;;  %v7383_v4 = vrot.slane %v7370_v40, 7 }
0x1781   : > { %v7384_v34 = vrot.slane %v7372_v3, 7  ;;  %v7374_v47 = vpop.f32.mrb[126].mxu1 }
0x1782   : > { %v7375_v7 = vpop.f32.mrb[127].mxu1  ;;  %v7391_v21 = vadd.f32 %v7383_v4, %v14794_v33 }
0x1783   : > { %v7392_v9 = vadd.f32 %v7384_v34, %v14791_v1 }
0x1785   : > { %v10155_v37 = vmul.f32 -1.442695, %v7392_v9 }
0x1787   : > { %12465 = vpow2.f32 %v10155_v37 }
0x1788   : > { %v12462_v60 = vpop.eup %12461  ;;  %12467 = vtanh.f32 %v7391_v21 }
0x1789   : > { %v12464_v14 = vpop.eup %12463  ;;  %v7396_v26 = vadd.f32 1.0, %v12462_v60 }
0x178a   : > { %v7402_v28 = vadd.f32 1.0, %v12464_v14 }
0x178b   : > { %12469 = vrcp.f32 %v7396_v26 }
0x178c   : > { %12471 = vrcp.f32 %v7402_v28 }
0x1791   : > { %v12466_v35 = vpop.eup %12465 }
0x1792   : > { %v12468_v23 = vpop.eup %12467  ;;  %v7409_v48 = vadd.f32 1.0, %v12466_v35 }
0x1794   : > { %12473 = vrcp.f32 %v7409_v48 }
0x1795   : > { %v12470_v22 = vpop.eup %12469 }
0x1796   : > { %v12472_v18 = vpop.eup %12471  ;;  %v7416_v29 = vmul.f32 %v12470_v22, %v12468_v23 }
0x1797   : > { %v7415_v52 = vmul.f32 %v12472_v18, %v7413_v2 }
0x1799   : > { %v7417_v50 = vadd.f32 %v7416_v29, %v7415_v52 }
0x179b   : > { %12475 = vtanh.f32 %v7417_v50  ;;  %v7545_v47 = vrot.slane %v7417_v50, 7 }
0x179e   : > { %v12474_v53 = vpop.eup %12473 }
0x17a5   : > { %v12476_v0 = vpop.eup %12475 }
0x17a6   : > { %v7419_v54 = vmul.f32 %v12476_v0, %v12474_v53 }
0x17a8   : > { %v7420_v45 = vpack.c.bf16 %v7419_v54, %v7419_v54  ;;  %v8211_v28 = vsel %vm1106_vm1, %v14797_v59, %v7419_v54 }
0x17aa   : > { %v7422_v15 = vshrl.u32 %v7420_v45, 16 }
0x17ac   : > { %10156 = vmatmul.mubr.msk.bf16.vlgmr.msra.gmra.mrb[128].mxu1 %vm5875_vm12, %v7422_v15 }
0x17ad   : > { %7469 = vmatpush1.bf16.msra.mxu1 %v14764_v13  ;;  %7500 = vmatprep.mubr.bf16.mxu1 %v13122_v6 }
0x17ae   : > { %7558 = vmatprep.subr.bf16.mxu1 %v14743_v17 }
0x17b4   : > { %10157 = vmatmul.mubr.msk.bf16.vlgmr.msra.gmra.mrb[132].mxu1 %vm5875_vm12, %v7422_v15 }
0x17b5   : > { %7559 = vmatpush1.bf16.msra.mxu1 %v14745_v56  ;;  %7590 = vmatprep.mubr.bf16.mxu1 %v13122_v6 }
0x17b6   : > { %7599 = vmatprep.subr.bf16.mxu1 %v14758_v8 }
0x187f   : > { %v7461_v51 = vpop.f32.mrb[128].mxu1 }
0x1880   : > { %v7513_v41 = vrot.slane %v7461_v51, 6  ;;  %v7463_v39 = vpop.f32.mrb[129].mxu1 }
0x1881   : > { %v7514_v32 = vrot.slane %v7463_v39, 6  ;;  %v7465_v30 = vpop.f32.mrb[130].mxu1 }
0x1882   : > { %v7521_v44 = vadd.f32 %v7513_v41, %v14781_v11  ;;  %v7466_v55 = vpop.f32.mrb[131].mxu1 }
0x1883   : > { %v7522_v46 = vadd.f32 %v7514_v32, %v14783_v19 }
0x1884   : > { %v10158_v25 = vmul.f32 -1.442695, %v7521_v44 }
0x1885   : > { %v10159_v58 = vmul.f32 -1.442695, %v7522_v46 }
0x1886   : > { %12477 = vpow2.f32 %v10158_v25 }
0x1887   : > { %12479 = vpow2.f32 %v10159_v58  ;;  %v7502_v57 = vpop.f32.mrb[132].mxu1 }
0x1888   : > { %v7504_v49 = vpop.f32.mrb[133].mxu1  ;;  %v7515_v61 = vrot.slane %v7502_v57, 6 }
0x1889   : > { %v7516_v62 = vrot.slane %v7504_v49, 6  ;;  %v7506_v27 = vpop.f32.mrb[134].mxu1 }
0x188a   : > { %v7507_v10 = vpop.f32.mrb[135].mxu1  ;;  %v7523_v12 = vadd.f32 %v7515_v61, %v14794_v33 }
0x188b   : > { %v7524_v16 = vadd.f32 %v7516_v62, %v14791_v1 }
0x188d   : > { %v10160_v43 = vmul.f32 -1.442695, %v7524_v16 }
0x188f   : > { %12481 = vpow2.f32 %v10160_v43 }
0x1890   : > { %v12478_v24 = vpop.eup %12477  ;;  %12483 = vtanh.f32 %v7523_v12 }
0x1891   : > { %v12480_v20 = vpop.eup %12479  ;;  %v7528_v31 = vadd.f32 1.0, %v12478_v24 }
0x1892   : > { %v7534_v38 = vadd.f32 1.0, %v12480_v20 }
0x1893   : > { %12485 = vrcp.f32 %v7528_v31 }
0x1894   : > { %12487 = vrcp.f32 %v7534_v38 }
0x1899   : > { %v12482_v40 = vpop.eup %12481 }
0x189a   : > { %v12484_v3 = vpop.eup %12483  ;;  %v7541_v9 = vadd.f32 1.0, %v12482_v40 }
0x189c   : > { %12489 = vrcp.f32 %v7541_v9 }
0x189d   : > { %v12486_v34 = vpop.eup %12485 }
0x189e   : > { %v12488_v4 = vpop.eup %12487  ;;  %v7548_v7 = vmul.f32 %v12486_v34, %v12484_v3 }
0x189f   : > { %v7547_v37 = vmul.f32 %v12488_v4, %v7545_v47 }
0x18a1   : > { %v7549_v21 = vadd.f32 %v7548_v7, %v7547_v37 }
0x18a3   : > { %12491 = vtanh.f32 %v7549_v21  ;;  %v7676_v61 = vrot.slane %v7549_v21, 7 }
0x18a6   : > { %v12490_v60 = vpop.eup %12489 }
0x18ad   : > { %v12492_v14 = vpop.eup %12491 }
0x18ae   : > { %v7551_v26 = vmul.f32 %v12492_v14, %v12490_v60 }
0x18b0   : > { %v7552_v35 = vpack.c.bf16 %v7551_v26, %v7551_v26  ;;  %v8212_v23 = vsel %vm1108_vm2, %v8211_v28, %v7551_v26 }
0x18b2   : > { %v7554_v22 = vrot.slane %v7552_v35, 1 }
0x18b4   : > { %10161 = vmatmul.mubr.msk.bf16.vlgmr.msra.gmra.mrb[136].mxu1 %vm5875_vm12, %v7554_v22 }
0x18b5   : > { %7600 = vmatpush1.bf16.msra.mxu1 %v14764_v13  ;;  %7631 = vmatprep.mubr.bf16.mxu1 %v13122_v6 }
0x18b6   : > { %7691 = vmatprep.subr.bf16.mxu1 %v14743_v17 }
0x18bc   : > { %10162 = vmatmul.mubr.msk.bf16.vlgmr.msra.gmra.mrb[140].mxu1 %vm5875_vm12, %v7554_v22 }
0x18bd   : > { %7692 = vmatpush1.bf16.msra.mxu1 %v14745_v56  ;;  %7723 = vmatprep.mubr.bf16.mxu1 %v13122_v6 }
0x18be   : > { %7732 = vmatprep.subr.bf16.mxu1 %v14758_v8 }
0x1987   : > { %v7592_v59 = vpop.f32.mrb[136].mxu1 }
0x1988   : > { %v7644_v2 = vrot.slane %v7592_v59, 5  ;;  %v7594_v18 = vpop.f32.mrb[137].mxu1 }
0x1989   : > { %v7645_v29 = vrot.slane %v7594_v18, 5  ;;  %v7596_v48 = vpop.f32.mrb[138].mxu1 }
0x198a   : > { %v7652_v52 = vadd.f32 %v7644_v2, %v14781_v11  ;;  %v7597_v50 = vpop.f32.mrb[139].mxu1 }
0x198b   : > { %v7653_v53 = vadd.f32 %v7645_v29, %v14783_v19 }
0x198c   : > { %v10163_v0 = vmul.f32 -1.442695, %v7652_v52 }
0x198d   : > { %v10164_v54 = vmul.f32 -1.442695, %v7653_v53 }
0x198e   : > { %12493 = vpow2.f32 %v10163_v0 }
0x198f   : > { %12495 = vpow2.f32 %v10164_v54  ;;  %v7633_v45 = vpop.f32.mrb[140].mxu1 }
0x1990   : > { %v7635_v15 = vpop.f32.mrb[141].mxu1  ;;  %v7646_v39 = vrot.slane %v7633_v45, 5 }
0x1991   : > { %v7647_v51 = vrot.slane %v7635_v15, 5  ;;  %v7637_v41 = vpop.f32.mrb[142].mxu1 }
0x1992   : > { %v7638_v32 = vpop.f32.mrb[143].mxu1  ;;  %v7654_v55 = vadd.f32 %v7646_v39, %v14794_v33 }
0x1993   : > { %v7655_v30 = vadd.f32 %v7647_v51, %v14791_v1 }
0x1995   : > { %v10165_v44 = vmul.f32 -1.442695, %v7655_v30 }
0x1997   : > { %12497 = vpow2.f32 %v10165_v44 }
0x1998   : > { %v12494_v46 = vpop.eup %12493  ;;  %12499 = vtanh.f32 %v7654_v55 }
0x1999   : > { %v12496_v25 = vpop.eup %12495  ;;  %v7659_v58 = vadd.f32 1.0, %v12494_v46 }
0x199a   : > { %v7665_v57 = vadd.f32 1.0, %v12496_v25 }
0x199b   : > { %12501 = vrcp.f32 %v7659_v58 }
0x199c   : > { %12503 = vrcp.f32 %v7665_v57 }
0x19a1   : > { %v12498_v49 = vpop.eup %12497 }
0x19a2   : > { %v12500_v62 = vpop.eup %12499  ;;  %v7672_v43 = vadd.f32 1.0, %v12498_v49 }
0x19a4   : > { %12505 = vrcp.f32 %v7672_v43 }
0x19a5   : > { %v12502_v27 = vpop.eup %12501 }
0x19a6   : > { %v12504_v10 = vpop.eup %12503  ;;  %v7679_v16 = vmul.f32 %v12502_v27, %v12500_v62 }
0x19a7   : > { %v7678_v12 = vmul.f32 %v12504_v10, %v7676_v61 }
0x19a9   : > { %v7680_v24 = vadd.f32 %v7679_v16, %v7678_v12 }
0x19ab   : > { %12507 = vtanh.f32 %v7680_v24  ;;  %v7809_v39 = vrot.slane %v7680_v24, 7 }
0x19ae   : > { %v12506_v20 = vpop.eup %12505 }
0x19b5   : > { %v12508_v31 = vpop.eup %12507 }
0x19b6   : > { %v7682_v38 = vmul.f32 %v12508_v31, %v12506_v20 }
0x19b8   : > { %v7683_v40 = vpack.c.bf16 %v7682_v38, %v7682_v38  ;;  %v8213_v3 = vsel %vm1075_vm0, %v8212_v23, %v7682_v38 }
0x19ba   : > { %v7685_v34 = vshrl.u32 %v7683_v40, 16 }
0x19bc   : > { %v7687_v47 = vrot.slane %v7685_v34, 1 }
0x19be   : > { %10166 = vmatmul.mubr.msk.bf16.vlgmr.msra.gmra.mrb[144].mxu1 %vm5875_vm12, %v7687_v47 }
0x19bf   : > { %7733 = vmatpush1.bf16.msra.mxu1 %v14764_v13  ;;  %7764 = vmatprep.mubr.bf16.mxu1 %v13122_v6 }
0x19c0   : > { %7863 = vmatprep.subr.bf16.mxu1 %v14758_v8 }
0x19c6   : > { %10167 = vmatmul.mubr.msk.bf16.vlgmr.msra.gmra.mrb[148].mxu1 %vm5875_vm12, %v7687_v47 }
0x19c7   : > { %7864 = vmatpush1.bf16.msra.mxu1 %v14764_v13  ;;  %7895 = vmatprep.mubr.bf16.mxu1 %v13122_v6 }
0x19c8   : > { %7996 = vmatprep.subr.bf16.mxu1 %v14758_v8 }
0x1a91   : > { %v7725_v4 = vpop.f32.mrb[144].mxu1 }
0x1a92   : > { %v7777_v7 = vrot.slane %v7725_v4, 4  ;;  %v7727_v9 = vpop.f32.mrb[145].mxu1 }
0x1a93   : > { %v7778_v37 = vrot.slane %v7727_v9, 4  ;;  %v7729_v21 = vpop.f32.mrb[146].mxu1 }
0x1a94   : > { %v7785_v60 = vadd.f32 %v7777_v7, %v14781_v11  ;;  %v7730_v14 = vpop.f32.mrb[147].mxu1 }
0x1a95   : > { %v7786_v26 = vadd.f32 %v7778_v37, %v14783_v19 }
0x1a96   : > { %v10168_v28 = vmul.f32 -1.442695, %v7785_v60 }
0x1a97   : > { %v10169_v35 = vmul.f32 -1.442695, %v7786_v26 }
0x1a98   : > { %12509 = vpow2.f32 %v10168_v28 }
0x1a99   : > { %12511 = vpow2.f32 %v10169_v35  ;;  %v7766_v23 = vpop.f32.mrb[148].mxu1 }
0x1a9a   : > { %v7768_v22 = vpop.f32.mrb[149].mxu1  ;;  %v7779_v18 = vrot.slane %v7766_v23, 4 }
0x1a9b   : > { %v7780_v59 = vrot.slane %v7768_v22, 4  ;;  %v7770_v2 = vpop.f32.mrb[150].mxu1 }
0x1a9c   : > { %v7771_v29 = vpop.f32.mrb[151].mxu1  ;;  %v7787_v50 = vadd.f32 %v7779_v18, %v14794_v33 }
0x1a9d   : > { %v7788_v48 = vadd.f32 %v7780_v59, %v14791_v1 }
0x1a9f   : > { %v10170_v52 = vmul.f32 -1.442695, %v7788_v48 }
0x1aa1   : > { %12513 = vpow2.f32 %v10170_v52 }
0x1aa2   : > { %v12510_v53 = vpop.eup %12509  ;;  %12515 = vtanh.f32 %v7787_v50 }
0x1aa3   : > { %v12512_v0 = vpop.eup %12511  ;;  %v7792_v54 = vadd.f32 1.0, %v12510_v53 }
0x1aa4   : > { %v7798_v45 = vadd.f32 1.0, %v12512_v0 }
0x1aa5   : > { %12517 = vrcp.f32 %v7792_v54 }
0x1aa6   : > { %12519 = vrcp.f32 %v7798_v45 }
0x1aab   : > { %v12514_v15 = vpop.eup %12513 }
0x1aac   : > { %v12516_v51 = vpop.eup %12515  ;;  %v7805_v44 = vadd.f32 1.0, %v12514_v15 }
0x1aae   : > { %12521 = vrcp.f32 %v7805_v44 }
0x1aaf   : > { %v12518_v41 = vpop.eup %12517 }
0x1ab0   : > { %v12520_v32 = vpop.eup %12519  ;;  %v7812_v30 = vmul.f32 %v12518_v41, %v12516_v51 }
0x1ab1   : > { %v7811_v55 = vmul.f32 %v12520_v32, %v7809_v39 }
0x1ab3   : > { %v7813_v46 = vadd.f32 %v7812_v30, %v7811_v55 }
0x1ab5   : > { %12523 = vtanh.f32 %v7813_v46  ;;  %v7940_v22 = vrot.slane %v7813_v46, 7 }
0x1ab8   : > { %v12522_v25 = vpop.eup %12521 }
0x1abf   : > { %v12524_v58 = vpop.eup %12523 }
0x1ac0   : > { %v7815_v57 = vmul.f32 %v12524_v58, %v12522_v25 }
0x1ac2   : > { %v7816_v49 = vpack.c.bf16 %v7815_v57, %v7815_v57  ;;  %v8214_v62 = vsel %vm1112_vm4, %v8213_v3, %v7815_v57 }
0x1ac4   : > { %v7818_v27 = vrot.slane %v7816_v49, 2 }
0x1ac6   : > { %10171 = vmatmul.mubr.msk.bf16.vlgmr.msra.gmra.mrb[20].mxu0 %vm5875_vm12, %v7818_v27  ;;  %10172 = vmatmul.mubr.msk.bf16.vlgmr.msra.gmra.mrb[152].mxu1 %vm5875_vm12, %v7818_v27 }
0x1ac7   : > { %7956 = vmatpush1.bf16.msra.mxu0 %v14745_v56  ;;  %7997 = vmatpush1.bf16.msra.mxu1 %v14764_v13 }
0x1ac8   : > { %7987 = vmatprep.mubr.bf16.mxu0 %v13122_v6  ;;  %8028 = vmatprep.mubr.bf16.mxu1 %v13122_v6 }
0x1ac9   : > { %8086 = vmatprep.subr.bf16.mxu0 %v14743_v17  ;;  %8127 = vmatprep.subr.bf16.mxu1 %v14758_v8 }
0x1b99   : > { %v7856_v61 = vpop.f32.mrb[20].mxu0  ;;  %v7897_v10 = vpop.f32.mrb[152].mxu1 }
0x1b9a   : > { %v7908_v16 = vrot.slane %v7856_v61, 3  ;;  %v7858_v43 = vpop.f32.mrb[21].mxu0  ;;  %v7899_v12 = vpop.f32.mrb[153].mxu1  ;;  %v7910_v8 = vrot.slane %v7897_v10, 3 }
0x1b9b   : > { %v7909_v24 = vrot.slane %v7858_v43, 3  ;;  %v7860_v20 = vpop.f32.mrb[22].mxu0  ;;  %v7901_v31 = vpop.f32.mrb[154].mxu1  ;;  %v7911_v7 = vrot.slane %v7899_v12, 3 }
0x1b9c   : > { %v7916_v38 = vadd.f32 %v7908_v16, %v14781_v11  ;;  %v7861_v40 = vpop.f32.mrb[23].mxu0  ;;  %v7902_v3 = vpop.f32.mrb[155].mxu1  ;;  %v7918_v37 = vadd.f32 %v7910_v8, %v14794_v33 }
0x1b9d   : > { %v7917_v34 = vadd.f32 %v7909_v24, %v14783_v19  ;;  %v7919_v17 = vadd.f32 %v7911_v7, %v14791_v1 }
0x1b9e   : > { %v10173_v47 = vmul.f32 -1.442695, %v7916_v38 }
0x1b9f   : > { %v10174_v4 = vmul.f32 -1.442695, %v7917_v34  ;;  %v10175_v9 = vmul.f32 -1.442695, %v7919_v17 }
0x1ba0   : > { %12525 = vpow2.f32 %v10173_v47 }
0x1ba1   : > { %12527 = vpow2.f32 %v10174_v4 }
0x1ba2   : > { %12529 = vpow2.f32 %v10175_v9 }
0x1ba3   : > { %12531 = vtanh.f32 %v7918_v37 }
0x1baa   : > { %v12526_v21 = vpop.eup %12525 }
0x1bab   : > { %v12528_v60 = vpop.eup %12527  ;;  %v7923_v14 = vadd.f32 1.0, %v12526_v21 }
0x1bac   : > { %v7929_v26 = vadd.f32 1.0, %v12528_v60  ;;  %v12530_v28 = vpop.eup %12529 }
0x1bad   : > { %12533 = vrcp.f32 %v7923_v14  ;;  %v12532_v35 = vpop.eup %12531  ;;  %v7936_v18 = vadd.f32 1.0, %v12530_v28  ;;  %v12238_v14 = vld [vmem:[#allocation25] sm:$0xff]  }
0x1bae   : > { %12535 = vrcp.f32 %v7929_v26  ;;  %v12239_v26 = vld [vmem:[#allocation25 + $0x8] sm:$0xff]  }
0x1baf   : > { %12537 = vrcp.f32 %v7936_v18 }
0x1bb7   : > { %v12534_v23 = vpop.eup %12533 }
0x1bb8   : > { %v12536_v59 = vpop.eup %12535  ;;  %v7943_v2 = vmul.f32 %v12534_v23, %v12532_v35 }
0x1bb9   : > { %v7942_v29 = vmul.f32 %v12536_v59, %v7940_v22  ;;  %v12538_v52 = vpop.eup %12537 }
0x1bbb   : > { %v7944_v48 = vadd.f32 %v7943_v2, %v7942_v29 }
0x1bbd   : > { %12539 = vtanh.f32 %v7944_v48  ;;  %v8073_v40 = vrot.slane %v7944_v48, 7 }
0x1bc7   : > { %v12540_v50 = vpop.eup %12539 }
0x1bc8   : > { %v7946_v53 = vmul.f32 %v12540_v50, %v12538_v52 }
0x1bca   : > { %v7947_v0 = vpack.c.bf16 %v7946_v53, %v7946_v53  ;;  %v8215_v54 = vsel %vm1114_vm5, %v8214_v62, %v7946_v53 }
0x1bcc   : > { %v7949_v45 = vshrl.u32 %v7947_v0, 16 }
0x1bce   : > { %v7951_v15 = vrot.slane %v7949_v45, 2 }
0x1bd0   : > { %10176 = vmatmul.mubr.msk.bf16.vlgmr.msra.gmra.mrb[24].mxu0 %vm5875_vm12, %v7951_v15  ;;  %10177 = vmatmul.mubr.msk.bf16.vlgmr.msra.gmra.mrb[156].mxu1 %vm5875_vm12, %v7951_v15 }
0x1bd1   : > { %8087 = vmatpush1.bf16.msra.mxu0 %v14745_v56  ;;  %8128 = vmatpush1.bf16.msra.mxu1 %v14764_v13 }
0x1bd2   : > { %8118 = vmatprep.mubr.bf16.mxu0 %v13122_v6  ;;  %8159 = vmatprep.mubr.bf16.mxu1 %v13122_v6 }
0x1bd3   : > { %11353 = vmatprep.subr.bf16.mxu1 %v13118_v42  ;;  %11347 = vmatprep.subr.bf16.mxu0 %v13118_v42 }
0x1ca3   : > { %v7989_v51 = vpop.f32.mrb[24].mxu0  ;;  %v8030_v41 = vpop.f32.mrb[156].mxu1 }
0x1ca4   : > { %v8041_v39 = vrot.slane %v7989_v51, 2  ;;  %v7991_v32 = vpop.f32.mrb[25].mxu0  ;;  %v8032_v30 = vpop.f32.mrb[157].mxu1  ;;  %v8043_v27 = vrot.slane %v8030_v41, 2 }
0x1ca5   : > { %v8042_v44 = vrot.slane %v7991_v32, 2  ;;  %v7993_v55 = vpop.f32.mrb[26].mxu0  ;;  %v8034_v46 = vpop.f32.mrb[158].mxu1  ;;  %v8044_v49 = vrot.slane %v8032_v30, 2 }
0x1ca6   : > { %v8049_v56 = vadd.f32 %v8041_v39, %v14781_v11  ;;  %v7994_v25 = vpop.f32.mrb[27].mxu0  ;;  %v8035_v13 = vpop.f32.mrb[159].mxu1  ;;  %v8051_v10 = vadd.f32 %v8043_v27, %v14794_v33 }
0x1ca7   : > { %v8050_v58 = vadd.f32 %v8042_v44, %v14783_v19  ;;  %v8052_v62 = vadd.f32 %v8044_v49, %v14791_v1 }
0x1ca8   : > { %v10178_v57 = vmul.f32 -1.442695, %v8049_v56 }
0x1ca9   : > { %v10179_v6 = vmul.f32 -1.442695, %v8050_v58  ;;  %v10180_v61 = vmul.f32 -1.442695, %v8052_v62 }
0x1caa   : > { %12541 = vpow2.f32 %v10178_v57 }
0x1cab   : > { %12543 = vpow2.f32 %v10179_v6 }
0x1cac   : > { %12545 = vpow2.f32 %v10180_v61 }
0x1cad   : > { %12547 = vtanh.f32 %v8051_v10 }
0x1cb4   : > { %v12542_v16 = vpop.eup %12541 }
0x1cb5   : > { %v12544_v43 = vpop.eup %12543  ;;  %v8056_v12 = vadd.f32 1.0, %v12542_v16 }
0x1cb6   : > { %v8062_v24 = vadd.f32 1.0, %v12544_v43  ;;  %v12546_v20 = vpop.eup %12545 }
0x1cb7   : > { %12549 = vrcp.f32 %v8056_v12  ;;  %v12548_v31 = vpop.eup %12547  ;;  %v8069_v47 = vadd.f32 1.0, %v12546_v20 }
0x1cb8   : > { %12551 = vrcp.f32 %v8062_v24 }
0x1cb9   : > { %12553 = vrcp.f32 %v8069_v47 }
0x1cc1   : > { %v12550_v38 = vpop.eup %12549 }
0x1cc2   : > { %v12552_v3 = vpop.eup %12551  ;;  %v8076_v34 = vmul.f32 %v12550_v38, %v12548_v31 }
0x1cc3   : > { %v8075_v4 = vmul.f32 %v12552_v3, %v8073_v40  ;;  %v12554_v17 = vpop.eup %12553 }
0x1cc5   : > { %v8077_v7 = vadd.f32 %v8076_v34, %v8075_v4 }
0x1cc7   : > { %12555 = vtanh.f32 %v8077_v7  ;;  %v8204_v56 = vrot.slane %v8077_v7, 7  ;;  %v12240_v7 = vld [vmem:[#allocation25 + $0x18] sm:$0xff]  }
0x1cd1   : > { %v12556_v8 = vpop.eup %12555 }
0x1cd2   : > { %v8079_v9 = vmul.f32 %v12556_v8, %v12554_v17 }
0x1cd4   : > { %v8080_v37 = vpack.c.bf16 %v8079_v9, %v8079_v9  ;;  %v8216_v21 = vsel %vm1759_vm9, %v8215_v54, %v8079_v9 }
0x1cd6   : > { %v8082_v60 = vrot.slane %v8080_v37, 3 }
0x1cd8   : > { %10181 = vmatmul.mubr.msk.bf16.vlgmr.msra.gmra.mrb[28].mxu0 %vm5875_vm12, %v8082_v60  ;;  %10182 = vmatmul.mubr.msk.bf16.vlgmr.msra.gmra.mrb[160].mxu1 %vm5875_vm12, %v8082_v60 }
0x1cd9   : > { %11355 = vmatprep.mubr.msk.bf16.mxu1 %vm13121_vm3, %v13118_v42  ;;  %11349 = vmatprep.mubr.msk.bf16.mxu0 %vm13121_vm3, %v13118_v42 }
0x1cda   : > { %11354 = vmatpush3.bf16.msra.mxu1 %v12238_v14  ;;  %11348 = vmatpush3.bf16.msra.mxu0 %v12239_v26  ;;  %v12241_v26 = vld [vmem:[#allocation25 + $0x10] sm:$0xff]  }
0x1cdb   : > { %11365 = vmatprep.subr.bf16.mxu1 %v13118_v42  ;;  %11359 = vmatprep.subr.bf16.mxu0 %v13118_v42 }
0x1dab   : > { %v8120_v28 = vpop.f32.mrb[28].mxu0  ;;  %v8161_v35 = vpop.f32.mrb[160].mxu1 }
0x1dac   : > { %v8172_v23 = vrot.slane %v8120_v28, 1  ;;  %v8122_v22 = vpop.f32.mrb[29].mxu0  ;;  %v8163_v59 = vpop.f32.mrb[161].mxu1  ;;  %v8174_v51 = vrot.slane %v8161_v35, 1  ;;  %v12242_v35 = vld [vmem:[#allocation25 + $0x28] sm:$0xff]  }
0x1dad   : > { %v8173_v2 = vrot.slane %v8122_v22, 1  ;;  %v8124_v18 = vpop.f32.mrb[30].mxu0  ;;  %v8165_v29 = vpop.f32.mrb[162].mxu1  ;;  %v8175_v45 = vrot.slane %v8163_v59, 1 }
0x1dae   : > { %v8180_v48 = vadd.f32 %v8172_v23, %v14781_v11  ;;  %v8125_v52 = vpop.f32.mrb[31].mxu0  ;;  %v8166_v50 = vpop.f32.mrb[163].mxu1  ;;  %v8182_v39 = vadd.f32 %v8174_v51, %v14794_v33 }
0x1daf   : > { %v8181_v53 = vadd.f32 %v8173_v2, %v14783_v19  ;;  %v8183_v15 = vadd.f32 %v8175_v45, %v14791_v1  ;;  %v12243_v2 = vld [vmem:[#allocation25 + $0x20] sm:$0xff]  }
0x1db0   : > { %v10183_v0 = vmul.f32 -1.442695, %v8180_v48  ;;  %v12244_v48 = vld [vmem:[#allocation25 + $0x30] sm:$0xff]  }
0x1db1   : > { %v10184_v54 = vmul.f32 -1.442695, %v8181_v53  ;;  %v10185_v41 = vmul.f32 -1.442695, %v8183_v15  ;;  %v8635_v53 = vld [vmem:[#allocation27] sm:$0xff] }
0x1db2   : > { %12557 = vpow2.f32 %v10183_v0  ;;  %v8636_v0 = vld [vmem:[#allocation27 + $0x8] sm:$0xff] }
0x1db3   : > { %12559 = vpow2.f32 %v10184_v54  ;;  %v11548_v54 = vpack.c.bf16 %v8636_v0, %v8635_v53  ;;  %v8751_v53 = vld [vmem:[%s15281_s21 + $0x48] sm:$0xff] }
0x1db4   : > { %12561 = vpow2.f32 %v10185_v41 }
0x1db5   : > { %12563 = vtanh.f32 %v8182_v39 }
0x1dbc   : > { %v12558_v32 = vpop.eup %12557 }
0x1dbd   : > { %v12560_v30 = vpop.eup %12559  ;;  %v8187_v44 = vadd.f32 1.0, %v12558_v32 }
0x1dbe   : > { %v8193_v11 = vadd.f32 1.0, %v12560_v30  ;;  %v12562_v19 = vpop.eup %12561 }
0x1dbf   : > { %12565 = vrcp.f32 %v8187_v44  ;;  %v12564_v55 = vpop.eup %12563  ;;  %v8200_v58 = vadd.f32 1.0, %v12562_v19 }
0x1dc0   : > { %12567 = vrcp.f32 %v8193_v11 }
0x1dc1   : > { %12569 = vrcp.f32 %v8200_v58 }
0x1dc9   : > { %v12566_v46 = vpop.eup %12565 }
0x1dca   : > { %v12568_v25 = vpop.eup %12567  ;;  %v8207_v13 = vmul.f32 %v12566_v46, %v12564_v55 }
0x1dcb   : > { %v8206_v1 = vmul.f32 %v12568_v25, %v8204_v56  ;;  %v12570_v33 = vpop.eup %12569 }
0x1dcd   : > { %v8208_v57 = vadd.f32 %v8207_v13, %v8206_v1 }
0x1dcf   : > { %12571 = vtanh.f32 %v8208_v57 }
0x1dd9   : > { %v12572_v6 = vpop.eup %12571 }
0x1dda   : > { %v8210_v49 = vmul.f32 %v12572_v6, %v12570_v33 }
0x1ddc   : > { %v8217_v62 = vsel %vm1443_vm7, %v8216_v21, %v8210_v49  ;;  %vm8737_vm7 = vcmp.eq.s32.totalorder %v14267_v36, 0 }
0x1ddd   : > { %v8218_v27 = vadd.f32 %v8217_v62, %v14601_v5 }
0x1ddf   : > { %v8220_v61 = vmin.f32 %v8218_v27, 0.0  ;;  %vm8219_vm9 = vcmp.gt.f32.partialorder %v8218_v27, 0.0 }
0x1de1   : > { %v8221_v10 = vmul.f32 1.442695, %v8220_v61 }
0x1de3   : > { %12573 = vpow2.f32 %v8221_v10 }
0x1ded   : > { %v12574_v16 = vpop.eup %12573 }
0x1dee   : > { %v10186_v43 = vadd.f32 -1.0, %v12574_v16 }
0x1df0   : > { %v8224_v12 = vsel %vm8219_vm9, %v8218_v27, %v10186_v43 }
0x1df1   : > { %v8226_v24 = vrot.slane %v8224_v12, 3  ;;  %v8228_v20 = vrot.slane %v8224_v12, 1  ;;  %v8230_v31 = vrot.slane %v8224_v12, 7  ;;  %v8232_v38 = vrot.slane %v8224_v12, 5 }
0x1df3   : > { %v8234_v40 = vsel %vm1106_vm1, %v8226_v24, %v8228_v20  ;;  %v8237_v3 = vsel %vm1075_vm0, %v8232_v38, %v8226_v24 }
0x1df4   : > { %v8235_v34 = vsel %vm1108_vm2, %v8234_v40, %v8230_v31  ;;  %v8238_v47 = vsel %vm1112_vm4, %v8237_v3, %v8228_v20 }
0x1df5   : > { %v8236_v5 = vsel %vm1075_vm0, %v8235_v34, %v8232_v38  ;;  %v8239_v4 = vsel %vm1114_vm5, %v8238_v47, %v8230_v31  ;;  %v10201_v31 = vld [vmem:[%s15279_s11] ss:$0 sm:$0xff]  ;;  %s15282_s11 = sld [smem:[#allocation56_spill]] }
0x1df6   : > { %v8240_v17 = vpack.c.bf16 %v8236_v5, %v8236_v5  ;;  %v8243_v8 = vpack.c.bf16 %v8239_v4, %v8236_v5  ;;  %v10203_v4 = vld [vmem:[%s15280_s28] ss:$0 sm:$0xff] }
0x1df8   : > { %11356 = vmatmul.mubr.msk.bf16.vlgmr.msra.gmra.mrb[164].mxu1 %vm5875_vm12, %v8240_v17  ;;  %v8248_v9 = vshrl.u32 %v8243_v8, 16  ;;  %v8250_v37 = vshll.u32 %v8243_v8, 16  ;;  %v8356_v18 = vrot.slane %v8243_v8, 1  ;;  %v8466_v52 = vrot.slane %v8243_v8, 2 }
0x1df9   : > { %11366 = vmatpush3.bf16.msra.mxu1 %v12240_v7  ;;  %11367 = vmatprep.mubr.msk.bf16.mxu1 %vm13121_vm3, %v13118_v42  ;;  %v8576_v50 = vrot.slane %v8243_v8, 3 }
0x1dfa   : > { %v8252_v21 = vrot.slane %v8250_v37, 1  ;;  %v8410_v60 = vrot.slane %v8248_v9, 1  ;;  %v8411_v14 = vrot.slane %v8250_v37, 2  ;;  %11377 = vmatprep.subr.bf16.mxu1 %v13118_v42  ;;  %v8520_v22 = vrot.slane %v8248_v9, 2 }
0x1dfb   : > { %v8521_v59 = vrot.slane %v8250_v37, 3  ;;  %s1051_s26 = scalar_lea.vmem %s15282_s11, %s9591_s23 }
0x1dfc   : > { %v8253_v28 = vor.u32 %v8252_v21, %v8248_v9  ;;  %v8412_v23 = vor.u32 %v8411_v14, %v8410_v60  ;;  %v8742_v14 = vld [vmem:[%s15281_s21] sm:$0xff] }
0x1dfd   : > { %v8522_v29 = vor.u32 %v8521_v59, %v8520_v22  ;;  %v8746_v59 = vld [vmem:[%s15281_s21 + $0x20] sm:$0xff] }
0x1dfe   : > { %11350 = vmatmul.mubr.msk.bf16.vlgmr.msra.gmra.mrb[32].mxu0 %vm5875_vm12, %v8253_v28  ;;  %v8744_v28 = vld [vmem:[%s15281_s21 + $0x10] sm:$0xff] }
0x1dff   : > { %11360 = vmatpush3.bf16.msra.mxu0 %v12241_v26  ;;  %11361 = vmatprep.mubr.msk.bf16.mxu0 %vm13121_vm3, %v13118_v42  ;;  %v8743_v26 = vld [vmem:[%s15281_s21 + $0x8] sm:$0xff] }
0x1e00   : > { %11368 = vmatmul.mubr.msk.bf16.vlgmr.msra.gmra.mrb[168].mxu1 %vm5875_vm12, %v8412_v23  ;;  %11371 = vmatprep.subr.bf16.mxu0 %v13118_v42  ;;  %v8745_v23 = vld [vmem:[%s15281_s21 + $0x18] sm:$0xff] }
0x1e01   : > { %11378 = vmatpush3.bf16.msra.mxu1 %v12242_v35  ;;  %11379 = vmatprep.mubr.msk.bf16.mxu1 %vm13121_vm3, %v13118_v42  ;;  %v11551_v35 = vpack.c.bf16 %v8743_v26, %v8742_v14  ;;  %v11554_v22 = vpack.c.bf16 %v8745_v23, %v8744_v28  ;;  %v10218_v14 = vld [vmem:[%s15281_s21 + $0xc0] sm:$0xff]  ;;  %v10219_v26 = vld [vmem:[%s15281_s21 + $0xc8] sm:$0xff]  ;;  %v10221_v23 = vld [vmem:[%s15281_s21 + $0xd8] sm:$0xff] }
0x1e02   : > { %11547 = vmatprep.subr.bf16.mxu1 %v13120_v63  ;;  %v11590_v28 = vpack.c.bf16 %v10219_v26, %v10218_v14 }
0x1e06   : > { %11362 = vmatmul.mubr.msk.bf16.vlgmr.msra.gmra.mrb[36].mxu0 %vm5875_vm12, %v8356_v18 }
0x1e07   : > { %11372 = vmatpush3.bf16.msra.mxu0 %v12243_v2  ;;  %11373 = vmatprep.mubr.msk.bf16.mxu0 %vm13121_vm3, %v13118_v42  ;;  %v8747_v2 = vld [vmem:[%s15281_s21 + $0x28] sm:$0xff] }
0x1e08   : > { %11380 = vmatmul.mubr.msk.bf16.vlgmr.msra.gmra.mrb[172].mxu1 %vm5875_vm12, %v8522_v29  ;;  %11383 = vmatprep.subr.bf16.mxu0 %v13118_v42  ;;  %v11557_v18 = vpack.c.bf16 %v8747_v2, %v8746_v59  ;;  %v8748_v29 = vld [vmem:[%s15281_s21 + $0x30] sm:$0xff]  ;;  %v10222_v59 = vld [vmem:[%s15281_s21 + $0xe0] sm:$0xff]  ;;  %v10223_v2 = vld [vmem:[%s15281_s21 + $0xe8] sm:$0xff] }
0x1e09   : > { %11393 = vmatprep.mubr.msk.f32.mxu1 %vm13121_vm3, %v13118_v42  ;;  %11549 = vmatpush3.bf16.msra.mxu1 %v11548_v54  ;;  %v8752_v54 = vld [vmem:[%s15281_s21 + $0x50] sm:$0xff] }
0x1e0a   : > { %11574 = vmatprep.subr.bf16.mxu1 %v13120_v63 }
0x1e0e   : > { %11374 = vmatmul.mubr.msk.bf16.vlgmr.msra.gmra.mrb[40].mxu0 %vm5875_vm12, %v8466_v52 }
0x1e0f   : > { %11384 = vmatpush3.bf16.msra.mxu0 %v12244_v48  ;;  %11385 = vmatprep.mubr.msk.bf16.mxu0 %vm13121_vm3, %v13118_v42  ;;  %v8749_v48 = vld [vmem:[%s15281_s21 + $0x38] sm:$0xff] }
0x1e10   : > { %11550 = vmatprep.subr.bf16.mxu0 %v13120_v63  ;;  %v11560_v52 = vpack.c.bf16 %v8749_v48, %v8748_v29 }
0x1e16   : > { %11386 = vmatmul.mubr.msk.bf16.vlgmr.msra.gmra.mrb[44].mxu0 %vm5875_vm12, %v8576_v50  ;;  %v8750_v50 = vld [vmem:[%s15281_s21 + $0x40] sm:$0xff] }
0x1e17   : > { %11428 = vmatprep.mubr.msk.f32.mxu0 %vm13121_vm3, %v13118_v42  ;;  %11552 = vmatpush3.bf16.msra.mxu0 %v11551_v35  ;;  %v11563_v0 = vpack.c.bf16 %v8751_v53, %v8750_v50  ;;  %v10220_v35 = vld [vmem:[%s15281_s21 + $0xd0] sm:$0xff] }
0x1e18   : > { %11553 = vmatprep.subr.bf16.mxu0 %v13120_v63  ;;  %v10224_v53 = vld [vmem:[%s15281_s21 + $0xf0] sm:$0xff] }
0x1e1b   : > { %11555 = vmatpush3.bf16.msra.mxu0 %v11554_v22  ;;  %v11593_v22 = vpack.c.bf16 %v10221_v23, %v10220_v35  ;;  %v10245_v35 = vld [vmem:[%s15281_s21 + $0x170] sm:$0xff]  ;;  %v10246_v23 = vld [vmem:[%s15281_s21 + $0x178] sm:$0xff] }
0x1e1c   : > { %11556 = vmatprep.subr.bf16.mxu0 %v13120_v63 }
0x1e1f   : > { %11558 = vmatpush3.bf16.msra.mxu0 %v11557_v18  ;;  %v11596_v18 = vpack.c.bf16 %v10223_v2, %v10222_v59 }
0x1e20   : > { %11559 = vmatprep.subr.bf16.mxu0 %v13120_v63 }
0x1e23   : > { %11561 = vmatpush3.bf16.msra.mxu0 %v11560_v52 }
0x1e24   : > { %11562 = vmatprep.subr.bf16.mxu0 %v13120_v63 }
0x1e27   : > { %11564 = vmatpush3.bf16.msra.mxu0 %v11563_v0  ;;  %v10225_v0 = vld [vmem:[%s15281_s21 + $0xf8] sm:$0xff] }
0x1e28   : > { %11565 = vmatprep.subr.bf16.mxu0 %v13120_v63 }
0x1ecb   : > { %v8346_v45 = vpop.f32.mrb[164].mxu1 }
0x1ecc   : > { %v11357_v15 = vpop.f32.mrb[165].mxu1 }
0x1ecd   : > { %v8349_v51 = vpop.f32.mrb[166].mxu1 }
0x1ece   : > { %v11358_v41 = vpop.f32.mrb[167].mxu1  ;;  %v8754_v51 = vld [vmem:[%s15281_s21 + $0x60] sm:$0xff] }
0x1ecf   : > { %v8755_v41 = vld [vmem:[%s15281_s21 + $0x68] sm:$0xff] }
0x1ed1   : > { %v8297_v39 = vpop.f32.mrb[32].mxu0 }
0x1ed2   : > { %v8347_v32 = vadd.f32 %v8346_v45, %v8297_v39  ;;  %v11351_v30 = vpop.f32.mrb[33].mxu0  ;;  %v8753_v45 = vld [vmem:[%s15281_s21 + $0x58] sm:$0xff]  ;;  %v11569_v39 = vpack.c.bf16 %v8755_v41, %v8754_v51 }
0x1ed3   : > { %v8300_v44 = vpop.f32.mrb[34].mxu0  ;;  %v8456_v11 = vpop.f32.mrb[168].mxu1  ;;  %v11566_v15 = vpack.c.bf16 %v8753_v45, %v8752_v54  ;;  %v11599_v54 = vpack.c.bf16 %v10225_v0, %v10224_v53  ;;  %v9227_v53 = vld [vmem:[#allocation27 + $0x38] sm:$0xff] }
0x1ed4   : > { %v11352_v19 = vpop.f32.mrb[35].mxu0  ;;  %v11369_v55 = vpop.f32.mrb[169].mxu1 }
0x1ed5   : > { %v8459_v46 = vpop.f32.mrb[170].mxu1  ;;  %11567 = vmatpush3.bf16.msra.mxu0 %v11566_v15  ;;  %v8756_v19 = vld [vmem:[%s15281_s21 + $0x70] sm:$0xff]  ;;  %v8757_v55 = vld [vmem:[%s15281_s21 + $0x78] sm:$0xff] }
0x1ed6   : > { %v11370_v56 = vpop.f32.mrb[171].mxu1  ;;  %11568 = vmatprep.subr.bf16.mxu0 %v13120_v63  ;;  %v11572_v46 = vpack.c.bf16 %v8757_v55, %v8756_v19  ;;  %v9029_v19 = vld [vmem:[#allocation27 + $0x28] sm:$0xff] }
0x1ed9   : > { %v8400_v25 = vpop.f32.mrb[36].mxu0  ;;  %11570 = vmatpush3.bf16.msra.mxu0 %v11569_v39 }
0x1eda   : > { %v8406_v13 = vadd.f32 %v8400_v25, %v8347_v32  ;;  %v11363_v58 = vpop.f32.mrb[37].mxu0  ;;  %11571 = vmatprep.subr.bf16.mxu0 %v13120_v63 }
0x1edb   : > { %v8403_v1 = vpop.f32.mrb[38].mxu0  ;;  %v8566_v57 = vpop.f32.mrb[172].mxu1 }
0x1edc   : > { %v11364_v33 = vpop.f32.mrb[39].mxu0  ;;  %v11381_v6 = vpop.f32.mrb[173].mxu1  ;;  %v8462_v49 = vadd.f32 %v8456_v11, %v8406_v13 }
0x1edd   : > { %v8569_v62 = vpop.f32.mrb[174].mxu1  ;;  %11573 = vmatpush3.bf16.msra.mxu0 %v11572_v46  ;;  %v8830_v33 = vld [vmem:[#allocation27 + $0x10] sm:$0xff]  ;;  %v8831_v6 = vld [vmem:[#allocation27 + $0x18] sm:$0xff] }
0x1ede   : > { %v11382_v27 = vpop.f32.mrb[175].mxu1  ;;  %11601 = vmatprep.subr.bf16.mxu0 %v13120_v63 }
0x1ee1   : > { %v8510_v61 = vpop.f32.mrb[40].mxu0 }
0x1ee2   : > { %v8516_v10 = vadd.f32 %v8510_v61, %v8462_v49  ;;  %v11375_v16 = vpop.f32.mrb[41].mxu0  ;;  %v11575_v49 = vpack.c.bf16 %v8831_v6, %v8830_v33 }
0x1ee3   : > { %v8513_v43 = vpop.f32.mrb[42].mxu0  ;;  %v10208_v16 = vld [vmem:[%s15280_s28 + $0x1] ss:$0 sm:$0xff] }
0x1ee4   : > { %v11376_v12 = vpop.f32.mrb[43].mxu0  ;;  %v8572_v24 = vadd.f32 %v8566_v57, %v8516_v10  ;;  %v13123_v57 = vmov 1.0  }
0x1ee9   : > { %v8620_v20 = vpop.f32.mrb[44].mxu0 }
0x1eea   : > { %v8626_v38 = vadd.f32 %v8620_v20, %v8572_v24  ;;  %v11387_v40 = vpop.f32.mrb[45].mxu0 }
0x1eeb   : > { %v8623_v3 = vpop.f32.mrb[46].mxu0 }
0x1eec   : > { %v14930_v34 = vadd.f32 %v10201_v31, %v8626_v38  ;;  %v11388_v47 = vpop.f32.mrb[47].mxu0  ;;  %v10210_v3 = vld [vmem:[%s15281_s21 + $0x80] sm:$0xff] }
0x1eed   : > { %v10212_v47 = vld [vmem:[%s15281_s21 + $0x90] sm:$0xff] }
0x1eee   : > { %11394 = vmatmul.mubr.msk.f32.vlgmr.msra.gmra.mrb[176].mxu1 %vm5875_vm12, %v14930_v34 }
0x1eef   : > { %11435 = vmatprep.mubr.msk.f32.mxu1 %vm13121_vm3, %v13118_v42  ;;  %11576 = vmatpush3.bf16.msra.mxu1 %v11575_v49 }
0x1ef0   : > { %11577 = vmatprep.subr.bf16.mxu1 %v13120_v63 }
0x1fc1   : > { %v8706_v5 = vpop.f32.mrb[176].mxu1 }
0x1fc2   : > { %v8711_v7 = vmul.f32 2.0, %v8706_v5  ;;  %v11395_v17 = vpop.f32.mrb[177].mxu1 }
0x1fc3   : > { %v10214_v17 = vld [vmem:[%s15281_s21 + $0xa0] sm:$0xff] }
0x1fc4   : > { %v8718_v8 = vsub.f32 %v10203_v4, %v8711_v7  ;;  %v10213_v4 = vld [vmem:[%s15281_s21 + $0x98] sm:$0xff] }
0x1fc5   : > { %v11581_v7 = vpack.c.bf16 %v10213_v4, %v10212_v47  ;;  %v10239_v47 = vld [vmem:[%s15281_s21 + $0x140] sm:$0xff] }
0x1fc6   : > { %8719 = vmin.xlane.f32.xlu0 %v8718_v8 }
0x2053   : > { %v8720_v9 = vpop.xlane.xlu0 %8719 }
0x2054   : > { %vm8721_vm0 = vcmp.le.f32.partialorder %v8718_v8, %v8720_v9  ;;  %v10215_v8 = vld [vmem:[%s15281_s21 + $0xa8] sm:$0xff] }
0x2055   : > { %v8722_v37 = vsel %vm8721_vm0, %v14267_v36, 128  ;;  %v11584_v9 = vpack.c.bf16 %v10215_v8, %v10214_v17  ;;  %v10242_v17 = vld [vmem:[%s15281_s21 + $0x158] sm:$0xff] }
0x2056   : > { %v8724_v21 = vshra.s32 %v8722_v37, 16  ;;  %v8723_v32 = vand.u32 65535, %v8722_v37  ;;  %v10216_v37 = vld [vmem:[%s15281_s21 + $0xb0] sm:$0xff] }
0x2058   : > { %v8726_v60 = vcvt.s32.f32 %v8724_v21  ;;  %v8725_v44 = vcvt.s32.f32 %v8723_v32  ;;  %v10217_v21 = vld [vmem:[%s15281_s21 + $0xb8] sm:$0xff] }
0x205a   : > { %8727 = vmin.xlane.f32.xlu0 %v8726_v60 }
0x20e7   : > { %v8728_v30 = vpop.xlane.xlu0 %8727 }
0x20e8   : > { %vm8729_vm1 = vcmp.eq.f32.partialorder %v8726_v60, %v8728_v30  ;;  %v8734_v56 = vcvt.f32.s32 %v8728_v30  ;;  %v11587_v60 = vpack.c.bf16 %v10217_v21, %v10216_v37  ;;  %v10244_v37 = vld [vmem:[%s15281_s21 + $0x168] sm:$0xff] }
0x20e9   : > { %v8730_v11 = vsel %vm8729_vm1, %v8725_v44, inf }
0x20ea   : > { %8731 = vmin.xlane.f32.xlu1 %v8730_v11  ;;  %v8735_v13 = vshll.u32 %v8734_v56, 16  ;;  %v9028_v11 = vld [vmem:[#allocation27 + $0x20] sm:$0xff] }
0x20eb   : > { %v11602_v55 = vpack.c.bf16 %v9029_v19, %v9028_v11 }
0x2177   : > { %v8732_v25 = vpop.xlane.xlu1 %8731 }
0x2178   : > { %v8733_v58 = vcvt.f32.s32 %v8732_v25 }
0x217a   : > { %v14996_v1 = vadd.s32 %v8735_v13, %v8733_v58  ;;  %v10229_v58 = vld [vmem:[%s15280_s28 + $0x2] ss:$0 sm:$0xff] }
0x217c   : > { %vm8739_vm2 = vcmp.eq.s32.totalorder %v14267_v36, %v14996_v1  ;;  %v8738_v32 = vsel %vm8737_vm7, %v14996_v1, 0 }
0x217d   : > { %11429 = vmatmul.mubr.msk.f32.vlgmr.msra.gmra.mrb[18].mxu0 %vm8739_vm2, %v13123_v57 }
0x217e   : > { %11477 = vmatprep.mubr.msk.f32.mxu0 %vm13121_vm3, %v13118_v42  ;;  %11603 = vmatpush3.bf16.msra.mxu0 %v11602_v55 }
0x217f   : > { %11604 = vmatprep.subr.bf16.mxu0 %v13120_v63 }
0x2250   : > { %v8824_v62 = vpop.f32.mrb[18].mxu0 }
0x2251   : > { %v15005_v27 = vsub.f32 %v14930_v34, %v8824_v62  ;;  %v11430_v61 = vpop.f32.mrb[19].mxu0  ;;  %v10211_v34 = vld [vmem:[%s15281_s21 + $0x88] sm:$0xff] }
0x2252   : > { %v11578_v5 = vpack.c.bf16 %v10211_v34, %v10210_v3  ;;  %v10238_v3 = vld [vmem:[%s15281_s21 + $0x138] sm:$0xff] }
0x2253   : > { %11436 = vmatmul.mubr.msk.f32.vlgmr.msra.gmra.mrb[178].mxu1 %vm5875_vm12, %v15005_v27 }
0x2254   : > { %11470 = vmatprep.mubr.msk.f32.mxu1 %vm13121_vm3, %v13118_v42  ;;  %11579 = vmatpush3.bf16.msra.mxu1 %v11578_v5  ;;  %v10240_v5 = vld [vmem:[%s15281_s21 + $0x148] sm:$0xff] }
0x2255   : > { %11580 = vmatprep.subr.bf16.mxu1 %v13120_v63  ;;  %v11617_v4 = vpack.c.bf16 %v10240_v5, %v10239_v47 }
0x2258   : > { %11582 = vmatpush3.bf16.msra.mxu1 %v11581_v7  ;;  %v10241_v7 = vld [vmem:[%s15281_s21 + $0x150] sm:$0xff] }
0x2259   : > { %11583 = vmatprep.subr.bf16.mxu1 %v13120_v63  ;;  %v11620_v8 = vpack.c.bf16 %v10242_v17, %v10241_v7 }
0x225c   : > { %11585 = vmatpush3.bf16.msra.mxu1 %v11584_v9  ;;  %v10243_v9 = vld [vmem:[%s15281_s21 + $0x160] sm:$0xff] }
0x225d   : > { %11586 = vmatprep.subr.bf16.mxu1 %v13120_v63  ;;  %v11623_v21 = vpack.c.bf16 %v10244_v37, %v10243_v9 }
0x2260   : > { %11588 = vmatpush3.bf16.msra.mxu1 %v11587_v60 }
0x2261   : > { %11589 = vmatprep.subr.bf16.mxu1 %v13120_v63 }
0x2264   : > { %11591 = vmatpush3.bf16.msra.mxu1 %v11590_v28 }
0x2265   : > { %11592 = vmatprep.subr.bf16.mxu1 %v13120_v63 }
0x2268   : > { %11594 = vmatpush3.bf16.msra.mxu1 %v11593_v22  ;;  %v11626_v22 = vpack.c.bf16 %v10246_v23, %v10245_v35 }
0x2269   : > { %11595 = vmatprep.subr.bf16.mxu1 %v13120_v63 }
0x226c   : > { %11597 = vmatpush3.bf16.msra.mxu1 %v11596_v18 }
0x226d   : > { %11598 = vmatprep.subr.bf16.mxu1 %v13120_v63 }
0x2270   : > { %11600 = vmatpush3.bf16.msra.mxu1 %v11599_v54 }
0x2271   : > { %11628 = vmatprep.subr.bf16.mxu1 %v13120_v63 }
0x2326   : > { %v8901_v10 = vpop.f32.mrb[178].mxu1 }
0x2327   : > { %v8907_v43 = vmul.f32 2.0, %v8901_v10  ;;  %v11437_v12 = vpop.f32.mrb[179].mxu1  ;;  %v10232_v10 = vld [vmem:[%s15281_s21 + $0x108] sm:$0xff] }
0x2328   : > { %v10234_v12 = vld [vmem:[%s15281_s21 + $0x118] sm:$0xff] }
0x2329   : > { %v8914_v24 = vsub.f32 %v10208_v16, %v8907_v43  ;;  %v10233_v16 = vld [vmem:[%s15281_s21 + $0x110] sm:$0xff] }
0x232b   : > { %8915 = vmin.xlane.f32.xlu1 %v8914_v24 }
0x23b8   : > { %v8916_v20 = vpop.xlane.xlu1 %8915 }
0x23b9   : > { %vm8917_vm4 = vcmp.le.f32.partialorder %v8914_v24, %v8916_v20  ;;  %v11608_v24 = vpack.c.bf16 %v10234_v12, %v10233_v16  ;;  %v10235_v20 = vld [vmem:[%s15281_s21 + $0x120] sm:$0xff] }
0x23ba   : > { %v8918_v31 = vsel %vm8917_vm4, %v14267_v36, 128 }
0x23bb   : > { %v8920_v38 = vshra.s32 %v8918_v31, 16  ;;  %v8919_v29 = vand.u32 65535, %v8918_v31  ;;  %v10236_v31 = vld [vmem:[%s15281_s21 + $0x128] sm:$0xff] }
0x23bd   : > { %v8922_v40 = vcvt.s32.f32 %v8920_v38  ;;  %v8921_v52 = vcvt.s32.f32 %v8919_v29  ;;  %v11611_v38 = vpack.c.bf16 %v10236_v31, %v10235_v20 }
0x23bf   : > { %8923 = vmin.xlane.f32.xlu0 %v8922_v40 }
0x244c   : > { %v8924_v48 = vpop.xlane.xlu0 %8923 }
0x244d   : > { %vm8925_vm5 = vcmp.eq.f32.partialorder %v8922_v40, %v8924_v48  ;;  %v8930_v45 = vcvt.f32.s32 %v8924_v48  ;;  %v10237_v40 = vld [vmem:[%s15281_s21 + $0x130] sm:$0xff] }
0x244e   : > { %v8926_v50 = vsel %vm8925_vm5, %v8921_v52, inf  ;;  %v11614_v34 = vpack.c.bf16 %v10238_v3, %v10237_v40 }
0x244f   : > { %8927 = vmin.xlane.f32.xlu1 %v8926_v50  ;;  %v8931_v51 = vshll.u32 %v8930_v45, 16  ;;  %v9226_v50 = vld [vmem:[#allocation27 + $0x30] sm:$0xff] }
0x2450   : > { %v11629_v0 = vpack.c.bf16 %v9227_v53, %v9226_v50 }
0x24dc   : > { %v8928_v15 = vpop.xlane.xlu1 %8927 }
0x24dd   : > { %v8929_v41 = vcvt.f32.s32 %v8928_v15 }
0x24df   : > { %v8932_v39 = vadd.s32 %v8931_v51, %v8929_v41  ;;  %v10250_v41 = vld [vmem:[%s15280_s28 + $0x3] ss:$0 sm:$0xff] }
0x24e1   : > { %v8934_v30 = vsel %vm8933_vm11, %v8932_v39, 0  ;;  %vm8936_vm10 = vcmp.eq.s32.totalorder %v14267_v36, %v8932_v39 }
0x24e2   : > { %v15075_v44 = vadd.s32 %v8934_v30, %v8738_v32  ;;  %11471 = vmatmul.mubr.msk.f32.vlgmr.msra.gmra.mrb[180].mxu1 %vm8936_vm10, %v13123_v57 }
0x24e3   : > { %11519 = vmatprep.mubr.msk.f32.mxu1 %vm13121_vm3, %v13118_v42  ;;  %11630 = vmatpush3.bf16.msra.mxu1 %v11629_v0 }
0x25b5   : > { %v9022_v46 = vpop.f32.mrb[180].mxu1 }
0x25b6   : > { %v15082_v56 = vsub.f32 %v15005_v27, %v9022_v46  ;;  %v11472_v25 = vpop.f32.mrb[181].mxu1 }
0x25b8   : > { %11478 = vmatmul.mubr.msk.f32.vlgmr.msra.gmra.mrb[48].mxu0 %vm5875_vm12, %v15082_v56 }
0x25b9   : > { %11512 = vmatprep.mubr.msk.f32.mxu0 %vm13121_vm3, %v13118_v42  ;;  %v10231_v42 = vld [vmem:[%s15281_s21 + $0x100] sm:$0xff]  ;;  %vm9131_vm3 = vcmp.eq.s32.totalorder %v14267_v36, 2 }
0x25ba   : > { %v11605_v43 = vpack.c.bf16 %v10232_v10, %v10231_v42 }
0x25bc   : > { %11606 = vmatpush3.bf16.msra.mxu0 %v11605_v43 }
0x25bd   : > { %11607 = vmatprep.subr.bf16.mxu0 %v13120_v63 }
0x25c0   : > { %11609 = vmatpush3.bf16.msra.mxu0 %v11608_v24 }
0x25c1   : > { %11610 = vmatprep.subr.bf16.mxu0 %v13120_v63 }
0x25c4   : > { %11612 = vmatpush3.bf16.msra.mxu0 %v11611_v38 }
0x25c5   : > { %11613 = vmatprep.subr.bf16.mxu0 %v13120_v63 }
0x25c8   : > { %11615 = vmatpush3.bf16.msra.mxu0 %v11614_v34 }
0x25c9   : > { %11616 = vmatprep.subr.bf16.mxu0 %v13120_v63 }
0x25cc   : > { %11618 = vmatpush3.bf16.msra.mxu0 %v11617_v4 }
0x25cd   : > { %11619 = vmatprep.subr.bf16.mxu0 %v13120_v63 }
0x25d0   : > { %11621 = vmatpush3.bf16.msra.mxu0 %v11620_v8 }
0x25d1   : > { %11622 = vmatprep.subr.bf16.mxu0 %v13120_v63 }
0x25d4   : > { %11624 = vmatpush3.bf16.msra.mxu0 %v11623_v21 }
0x25d5   : > { %11625 = vmatprep.subr.bf16.mxu0 %v13120_v63 }
0x25d8   : > { %11627 = vmatpush3.bf16.msra.mxu0 %v11626_v22 }
0x268b   : > { %v9099_v13 = vpop.f32.mrb[48].mxu0 }
0x268c   : > { %v9105_v1 = vmul.f32 2.0, %v9099_v13  ;;  %v11479_v33 = vpop.f32.mrb[49].mxu0 }
0x268e   : > { %v9112_v6 = vsub.f32 %v10229_v58, %v9105_v1 }
0x2690   : > { %9113 = vmin.xlane.f32.xlu0 %v9112_v6 }
0x271d   : > { %v9114_v49 = vpop.xlane.xlu0 %9113 }
0x271e   : > { %vm9115_vm13 = vcmp.le.f32.partialorder %v9112_v6, %v9114_v49 }
0x271f   : > { %v9116_v62 = vsel %vm9115_vm13, %v14267_v36, 128 }
0x2720   : > { %v9118_v27 = vshra.s32 %v9116_v62, 16  ;;  %v9117_v60 = vand.u32 65535, %v9116_v62 }
0x2722   : > { %v9120_v61 = vcvt.s32.f32 %v9118_v27  ;;  %v9119_v26 = vcvt.s32.f32 %v9117_v60 }
0x2724   : > { %9121 = vmin.xlane.f32.xlu1 %v9120_v61 }
0x27b1   : > { %v9122_v14 = vpop.xlane.xlu1 %9121 }
0x27b2   : > { %vm9123_vm14 = vcmp.eq.f32.partialorder %v9120_v61, %v9122_v14  ;;  %v9128_v59 = vcvt.f32.s32 %v9122_v14 }
0x27b3   : > { %v9124_v28 = vsel %vm9123_vm14, %v9119_v26, inf }
0x27b4   : > { %9125 = vmin.xlane.f32.xlu0 %v9124_v28  ;;  %v9129_v18 = vshll.u32 %v9128_v59, 16 }
0x2841   : > { %v9126_v2 = vpop.xlane.xlu0 %9125 }
0x2842   : > { %v9127_v63 = vcvt.f32.s32 %v9126_v2 }
0x2844   : > { %v9130_v29 = vadd.s32 %v9129_v18, %v9127_v63 }
0x2846   : > { %v9132_v48 = vsel %vm9131_vm3, %v9130_v29, 0  ;;  %vm9134_vm6 = vcmp.eq.s32.totalorder %v14267_v36, %v9130_v29 }
0x2847   : > { %v9133_v52 = vadd.s32 %v9132_v48, %v15075_v44  ;;  %11513 = vmatmul.mubr.msk.f32.vlgmr.msra.gmra.mrb[50].mxu0 %vm9134_vm6, %v13123_v57 }
0x291a   : > { %v9220_v54 = vpop.f32.mrb[50].mxu0 }
0x291b   : > { %v9224_v45 = vsub.f32 %v15082_v56, %v9220_v54  ;;  %v11514_v15 = vpop.f32.mrb[51].mxu0 }
0x291d   : > { %11520 = vmatmul.mubr.msk.f32.vlgmr.msra.gmra.mrb[182].mxu1 %vm5875_vm12, %v9224_v45  ;;  %vm9329_vm12 = vcmp.eq.s32.totalorder %v14267_v36, 3 }
0x29f0   : > { %v9297_v51 = vpop.f32.mrb[182].mxu1 }
0x29f1   : > { %v9303_v39 = vmul.f32 2.0, %v9297_v51  ;;  %v11521_v32 = vpop.f32.mrb[183].mxu1 }
0x29f3   : > { %v9310_v30 = vsub.f32 %v10250_v41, %v9303_v39 }
0x29f5   : > { %9311 = vmin.xlane.f32.xlu1 %v9310_v30 }
0x2a82   : > { %v9312_v57 = vpop.xlane.xlu1 %9311 }
0x2a83   : > { %vm9313_vm8 = vcmp.le.f32.partialorder %v9310_v30, %v9312_v57 }
0x2a84   : > { %v9314_v44 = vsel %vm9313_vm8, %v14267_v36, 128 }
0x2a85   : > { %v9316_v11 = vshra.s32 %v9314_v44, 16  ;;  %v9315_v55 = vand.u32 65535, %v9314_v44 }
0x2a87   : > { %v9318_v19 = vcvt.s32.f32 %v9316_v11  ;;  %v9317_v56 = vcvt.s32.f32 %v9315_v55 }
0x2a89   : > { %9319 = vmin.xlane.f32.xlu0 %v9318_v19 }
0x2b16   : > { %v9320_v46 = vpop.xlane.xlu0 %9319 }
0x2b17   : > { %vm9321_vm15 = vcmp.eq.f32.partialorder %v9318_v19, %v9320_v46  ;;  %v9326_v13 = vcvt.f32.s32 %v9320_v46 }
0x2b18   : > { %v9322_v25 = vsel %vm9321_vm15, %v9317_v56, inf }
0x2b19   : > { %9323 = vmin.xlane.f32.xlu1 %v9322_v25  ;;  %v9327_v1 = vshll.u32 %v9326_v13, 16 }
0x2ba6   : > { %v9324_v58 = vpop.xlane.xlu1 %9323 }
0x2ba7   : > { %v9325_v33 = vcvt.f32.s32 %v9324_v58 }
0x2ba9   : > { %v9328_v6 = vadd.s32 %v9327_v1, %v9325_v33 }
0x2bab   : > { %v9330_v49 = vsel %vm9329_vm12, %v9328_v6, 0 }
0x2bac   : > { %v9331_v62 = vadd.s32 %v9330_v49, %v9133_v52 }
0x2bae   : > { %9332 = vst [vmem:[%s1051_s26] sm:$0xff] %v9331_v62 }
0x2baf PF: > { %s15283_s8 = sld [smem:[#allocation37_spill]] }
0x2bb5   : > { %s46_s7 = sadd.s32 1, %s15283_s8  }
0x2bb6   : > { %p43_p5 = scmp.ge.s32.totalorder %s46_s7, 4  }
0x2bb8   :  { %45 = sbr.rel (!%p43_p5) target bundleno = 29 (0x1d), region = 264 }
0x2bbf   :  { %9352 = vsyncpa [#allocation3], 1 }
0x2bc0   :  { %9354 = vsyncpa [#allocation3 + $0x1], 1 }
0x2bc1   :  { %9355 = vsyncpa [#allocation5], 1 }
0x2bc2   :  { %9356 = vsyncpa [#allocation8], 1 }
0x2bc3   :  { %9357 = vsyncpa [#allocation11], 1 }
0x2bc4   :  { %9358 = vsyncpa [#allocation14], 1 }
0x2bc5   :  { %9359 = vsyncpa [#allocation17], 1 }
0x2bc6   :  { %9360 = vsyncpa [#allocation20], 1 }
0x2bc7   :  { %9361 = vsyncpa [#allocation23], 1 }
0x2bc8   :  { %9362 = vsyncpa [#allocation26], 1 }

</bundles_post_ra>
